<compile_context>
chip_gen: v5e
topology: v5e:2x2
jax: 0.10.0
libtpu: 0.0.40
codegen_flags: <defaults>
</compile_context>

<pallas_src>
import functools

import jax
import jax.numpy as jnp
from jax import lax
from jax.experimental import pallas as pl


# ----------------------------------------------------------------------------
# In-kernel building blocks
# ----------------------------------------------------------------------------
def _bn_elu(out, gamma, beta, apply_elu, eps=1e-5):
    """BatchNorm1d over the node axis (batch statistics, biased variance),
    one-pass stats, optionally followed by ELU."""
    mean = jnp.mean(out, axis=0, keepdims=True)
    var = jnp.mean(out * out, axis=0, keepdims=True) - mean * mean   # E[x^2]-mean^2
    y = (out - mean) * lax.rsqrt(var + eps) * gamma + beta
    if apply_elu:
        y = jnp.where(y > 0.0, y, jnp.exp(jnp.minimum(y, 0.0)) - 1.0)
    return y


def _sigmoid(x):
    return 1.0 / (1.0 + jnp.exp(-x))


def _enc_layer_packed(xp, adjp, w, bn, f_out, apply_elu):
    """One GAT+BN(+ELU) layer for BOTH encoders, lane-packed [con | spa].

    xp   : (N, Fin_pack)   packed input activations (layer 1: shared features)
    adjp : (N, 2N)         packed edge-multiplicity adjacency [adj_con | adj_spa]
    w    : (Fin_pack, 2*(f_out+2)) packed+augmented weights
           columns = [h_con | a_src_con | a_dst_con | h_spa | a_src_spa | a_dst_spa]
    bn   : (2, 2*f_out)    rows = [gamma_pack, beta_pack]
    """
    n = adjp.shape[0]
    f = f_out
    haug = jnp.dot(xp, w, preferred_element_type=jnp.float32)        # (N, 2f+4) MXU

    h_c = haug[:, 0:f]
    s_c = haug[:, f:f + 1]               # a_src (con), folded into the matmul
    d_c = haug[:, f + 1:f + 2]           # a_dst (con)
    h_s = haug[:, f + 2:2 * f + 2]
    s_s = haug[:, 2 * f + 2:2 * f + 3]
    d_s = haug[:, 2 * f + 3:2 * f + 4]

    # lane-dense (N, 2N) attention slab: first N lanes = con, last N = spa
    logits = jnp.concatenate(
        [d_c + jnp.transpose(s_c), d_s + jnp.transpose(s_s)], axis=1)
    # masked softmax numerator; sigmoid in [0,1] -> no row-max shift needed
    p = adjp * jnp.exp(_sigmoid(logits))                             # (N, 2N)

    p_c = p[:, :n]
    p_s = p[:, n:]
    inv_c = 1.0 / (jnp.sum(p_c, axis=1, keepdims=True) + 1e-16)
    inv_s = 1.0 / (jnp.sum(p_s, axis=1, keepdims=True) + 1e-16)

    out = jnp.concatenate(
        [jnp.dot(p_c * inv_c, h_c, preferred_element_type=jnp.float32),
         jnp.dot(p_s * inv_s, h_s, preferred_element_type=jnp.float32)],
        axis=1)                                                      # (N, 2f) packed
    return _bn_elu(out, bn[0:1, :], bn[1:2, :], apply_elu)


def _gat_bn(x, adj, w, bn, f_out, apply_elu):
    """Single-graph GAT+BN(+ELU) layer (decoder).  w is augmented: (Fin, f_out+2)."""
    f = f_out
    haug = jnp.dot(x, w, preferred_element_type=jnp.float32)         # (N, f+2) MXU
    h = haug[:, 0:f]
    a_src = haug[:, f:f + 1]
    a_dst = haug[:, f + 1:f + 2]
    p = adj * jnp.exp(_sigmoid(a_dst + jnp.transpose(a_src)))        # (N, N)
    inv = 1.0 / (jnp.sum(p, axis=1, keepdims=True) + 1e-16)
    out = jnp.dot(p * inv, h, preferred_element_type=jnp.float32)
    return _bn_elu(out, bn[0:1, :], bn[1:2, :], apply_elu)


# ----------------------------------------------------------------------------
# Fully fused SpaCon forward kernel
# ----------------------------------------------------------------------------
def spacon_kernel(x_ref, adjp_ref,
                  we1_ref, bn1_ref, we2_ref, bn2_ref, we3_ref, bn3_ref,
                  wd3_ref, bnd3_ref, wd2_ref, bnd2_ref, wd1_ref, bnd1_ref,
                  h3_ref, xhat_ref, *, f0, f1, f2, f3, fusion_method):
    n = x_ref.shape[0]
    adjp = adjp_ref[...]                 # (N, 2N) = [adj_con | adj_spa]
    adj_con = adjp[:, :n]                # decoder uses edge_index_con

    # ---- both 3-layer encoders, lane-packed [con | spa] on the feature axis ----
    h1p = _enc_layer_packed(x_ref[...], adjp, we1_ref[...], bn1_ref[...], f1, True)
    h2p = _enc_layer_packed(h1p, adjp, we2_ref[...], bn2_ref[...], f2, True)
    h3p = _enc_layer_packed(h2p, adjp, we3_ref[...], bn3_ref[...], f3, False)
    h3_ref[...] = h3p                    # lane-packed user output [h3_con | h3_spa]

    # ---- cross-encoder fusion ----
    h1f = h1p[:, :f1] + h1p[:, f1:]      # h1_con + h1_spa
    h2f = h2p[:, :f2] + h2p[:, f2:]      # h2_con + h2_spa
    if fusion_method == "concat":
        enc = h3p                        # already torch.cat((h3_con, h3_spa), dim=1)
    else:                                # 'add': L2-normalize each then add
        def l2n(t):
            nrm2 = jnp.sum(t * t, axis=1, keepdims=True)
            return t * lax.rsqrt(jnp.maximum(nrm2, 1e-24))
        enc = l2n(h3p[:, :f3]) + l2n(h3p[:, f3:])

    # ---- 3-layer decoder with skip fusion ----
    d3 = _gat_bn(enc, adj_con, wd3_ref[...], bnd3_ref[...], f2, True)
    d2 = _gat_bn(d3 + h2f, adj_con, wd2_ref[...], bnd2_ref[...], f1, True)
    d1 = _gat_bn(d2 + h1f, adj_con, wd1_ref[...], bnd1_ref[...], f0, False)
    xhat_ref[...] = d1


def _cost_estimate(n, f0, f1, f2, f3, d3_in):
    flops = 0
    # encoder matmuls (packed / block-diag weights)
    flops += 2 * n * f0 * 2 * (f1 + 2)
    flops += 2 * n * (2 * f1) * 2 * (f2 + 2)
    flops += 2 * n * (2 * f2) * 2 * (f3 + 2)
    flops += 2 * (2 * n * n * (f1 + f2 + f3))        # attention aggregation x2 graphs
    # decoder matmuls
    flops += 2 * n * d3_in * (f2 + 2)
    flops += 2 * n * f2 * (f1 + 2)
    flops += 2 * n * f1 * (f0 + 2)
    flops += 2 * n * n * (f2 + f1 + f0)
    # sigmoid + exp on (N,2N) x3 encoder layers, on (N,N) x3 decoder layers, + ELUs
    trans = 12 * n * n + 6 * n * n + 2 * n * (2 * f1 + 2 * f2 + f2 + f1)
    return flops, trans


def spacon_forward(params, features, adj_con, adj_spa, fusion_method="concat"):
    """Returns (h3_con, h3_spa, features_hat) — matches SpaCon.forward."""
    n, f0 = features.shape
    enc, dec = params["enc"], params["dec"]
    f1 = enc["bn1"].shape[1] // 2
    f2 = enc["bn2"].shape[1] // 2
    f3 = enc["bn3"].shape[1] // 2
    d3_in = dec["w3"].shape[0]

    # lane-dense packed adjacency: (N, 2N) = [adj_con | adj_spa]
    adj_pack = jnp.concatenate([adj_con, adj_spa], axis=1)

    operands = (features, adj_pack,
                enc["w1"], enc["bn1"], enc["w2"], enc["bn2"], enc["w3"], enc["bn3"],
                dec["w3"], dec["bn3"], dec["w2"], dec["bn2"], dec["w1"], dec["bn1"])

    flops, trans = _cost_estimate(n, f0, f1, f2, f3, d3_in)
    bytes_accessed = 4 * (sum(int(o.size) for o in operands) + n * 2 * f3 + n * f0)

    kernel = functools.partial(spacon_kernel, f0=f0, f1=f1, f2=f2, f3=f3,
                               fusion_method=fusion_method)
    h3_pack, x_hat = pl.pallas_call(
        kernel,
        out_shape=(jax.ShapeDtypeStruct((n, 2 * f3), jnp.float32),
                   jax.ShapeDtypeStruct((n, f0), jnp.float32)),
        cost_estimate=pl.CostEstimate(flops=int(flops), transcendentals=int(trans),
                                      bytes_accessed=int(bytes_accessed)),
    )(*operands)

    return h3_pack[:, :f3], h3_pack[:, f3:], x_hat


# ----------------------------------------------------------------------------
# Parameter construction (deterministic, synthetic) + packing for the kernel
# ----------------------------------------------------------------------------
def make_layer_params(key, fin, fout):
    k1, k2, k3 = jax.random.split(key, 3)
    w = (jax.random.normal(k1, (fin, fout), jnp.float32)
         * jnp.sqrt(2.0 / (fin + fout)) * 1.414)                   # ~ xavier_normal
    att_src = (jax.random.normal(k2, (fout,), jnp.float32)
               * jnp.sqrt(2.0 / (1 + fout)) * 1.414)
    att_dst = (jax.random.normal(k3, (fout,), jnp.float32)
               * jnp.sqrt(2.0 / (1 + fout)) * 1.414)
    gamma = jnp.ones((fout,), jnp.float32)                         # BN default init
    beta = jnp.zeros((fout,), jnp.float32)
    return w, att_src, att_dst, gamma, beta


def _aug(w, att_src, att_dst):
    # Fold the per-node attention dot products into the linear transform (MXU):
    #   a_src = (x @ W) . att_src = x @ (W @ att_src), same for a_dst.
    return jnp.concatenate(
        [w, (w @ att_src)[:, None], (w @ att_dst)[:, None]], axis=1)   # (Fin, Fout+2)


def make_spacon_params(key, hidden_dims, fusion_method="concat"):
    assert len(hidden_dims) == 4
    f = list(hidden_dims)
    keys = jax.random.split(key, 9)
    raw_con = [make_layer_params(keys[i], f[i], f[i + 1]) for i in range(3)]
    raw_spa = [make_layer_params(keys[3 + i], f[i], f[i + 1]) for i in range(3)]

    enc = {}
    for li in range(3):
        wc = _aug(*raw_con[li][:3])                    # (fin, fout+2) con
        ws = _aug(*raw_spa[li][:3])                    # (fin, fout+2) spa
        if li == 0:
            # layer 1: shared input features -> side-by-side packing
            wpack = jnp.concatenate([wc, ws], axis=1)
        else:
            # layers 2-3: input is lane-packed [con | spa] -> block-diagonal weights
            fin = f[li]
            z = jnp.zeros((fin, wc.shape[1]), jnp.float32)
            wpack = jnp.concatenate(
                [jnp.concatenate([wc, z], axis=1),
                 jnp.concatenate([z, ws], axis=1)], axis=0)
        gpack = jnp.concatenate([raw_con[li][3], raw_spa[li][3]])
        bpack = jnp.concatenate([raw_con[li][4], raw_spa[li][4]])
        enc[f"w{li + 1}"] = wpack
        enc[f"bn{li + 1}"] = jnp.stack([gpack, bpack], axis=0)

    d = f[:-1] + [2 * f[-1]] if fusion_method == "concat" else f
    dec = {}
    for name, kidx, fin, fout in (("3", 6, d[3], d[2]),
                                  ("2", 7, d[2], d[1]),
                                  ("1", 8, d[1], d[0])):
        w, asrc, adst, g, b = make_layer_params(keys[kidx], fin, fout)
        dec[f"w{name}"] = _aug(w, asrc, adst)
        dec[f"bn{name}"] = jnp.stack([g, b], axis=0)
    return {"enc": enc, "dec": dec}


# ----------------------------------------------------------------------------
# Glue: edge_index (2, E) -> dense adjacency with edge multiplicity adj[dst, src]
# ----------------------------------------------------------------------------
def edge_index_to_adj(edge_index, num_nodes):
    src, dst = edge_index[0], edge_index[1]
    adj = jnp.zeros((num_nodes, num_nodes), jnp.float32)
    return adj.at[dst, src].add(1.0)    # count duplicates like PyG scatter softmax


# ----------------------------------------------------------------------------
# Main
# ----------------------------------------------------------------------------
if __name__ == "__main__":
    key = jax.random.PRNGKey(0)
    k_feat, k_econ, k_espa, k_params = jax.random.split(key, 4)

    N = 64                 # number of graph nodes
    E = 256                # number of directed edges per graph
    hidden_dims = [32, 16, 16, 8]
    fusion_method = "concat"

    features = jax.random.normal(k_feat, (N, hidden_dims[0]), jnp.float32)
    edge_index_con = jax.random.randint(k_econ, (2, E), 0, N, jnp.int32)
    edge_index_spa = jax.random.randint(k_espa, (2, E), 0, N, jnp.int32)

    adj_con = edge_index_to_adj(edge_index_con, N)
    adj_spa = edge_index_to_adj(edge_index_spa, N)

    params = make_spacon_params(k_params, hidden_dims, fusion_method)

    fwd = jax.jit(functools.partial(spacon_forward, fusion_method=fusion_method))
    h3_con, h3_spa, features_hat = fwd(params, features, adj_con, adj_spa)
    jax.block_until_ready((h3_con, h3_spa, features_hat))

    assert h3_con.shape == (N, hidden_dims[3])
    assert h3_spa.shape == (N, hidden_dims[3])
    assert features_hat.shape == (N, hidden_dims[0])
    assert bool(jnp.all(jnp.isfinite(h3_con))) and bool(jnp.all(jnp.isfinite(h3_spa)))
    assert bool(jnp.all(jnp.isfinite(features_hat)))

    print("KERNEL_OK")
</pallas_src>

<mosaic_0001>
module attributes {stable_mosaic.version = 11 : i64} {
  func.func @spacon_kernel(%arg0: memref<64x32xf32, #tpu.memory_space<vmem>>, %arg1: memref<64x128xf32, #tpu.memory_space<vmem>>, %arg2: memref<32x36xf32, #tpu.memory_space<vmem>>, %arg3: memref<2x32xf32, #tpu.memory_space<vmem>>, %arg4: memref<32x36xf32, #tpu.memory_space<vmem>>, %arg5: memref<2x32xf32, #tpu.memory_space<vmem>>, %arg6: memref<32x20xf32, #tpu.memory_space<vmem>>, %arg7: memref<2x16xf32, #tpu.memory_space<vmem>>, %arg8: memref<16x18xf32, #tpu.memory_space<vmem>>, %arg9: memref<2x16xf32, #tpu.memory_space<vmem>>, %arg10: memref<16x18xf32, #tpu.memory_space<vmem>>, %arg11: memref<2x16xf32, #tpu.memory_space<vmem>>, %arg12: memref<16x34xf32, #tpu.memory_space<vmem>>, %arg13: memref<2x32xf32, #tpu.memory_space<vmem>>, %arg14: memref<64x16xf32, #tpu.memory_space<vmem>>, %arg15: memref<64x32xf32, #tpu.memory_space<vmem>>) attributes {dimension_semantics = [], scalar_prefetch = 0 : i64, scratch_operands = 0 : i64, tpu.core_type = #tpu.core_type<tc>} {
    %c0 = arith.constant 0 : index
    %c0_0 = arith.constant 0 : index
    %0 = vector.load %arg1[%c0, %c0_0] : memref<64x128xf32, #tpu.memory_space<vmem>>, vector<64x128xf32>
    %1 = vector.extract_strided_slice %0 {offsets = [0, 0], sizes = [64, 64], strides = [1, 1]} : vector<64x128xf32> to vector<64x64xf32>
    %c0_1 = arith.constant 0 : index
    %c0_2 = arith.constant 0 : index
    %2 = vector.load %arg0[%c0_1, %c0_2] : memref<64x32xf32, #tpu.memory_space<vmem>>, vector<64x32xf32>
    %c0_3 = arith.constant 0 : index
    %c0_4 = arith.constant 0 : index
    %3 = vector.load %arg2[%c0_3, %c0_4] : memref<32x36xf32, #tpu.memory_space<vmem>>, vector<32x36xf32>
    %c0_5 = arith.constant 0 : index
    %c0_6 = arith.constant 0 : index
    %4 = vector.load %arg3[%c0_5, %c0_6] : memref<2x32xf32, #tpu.memory_space<vmem>>, vector<2x32xf32>
    %cst = arith.constant dense<0.000000e+00> : vector<64x36xf32>
    %5 = tpu.matmul %2, %3, %cst {dimension_numbers = #tpu.dot_dimension_numbers<[1], [0], [0], [1], [0, 0, 1, 1], [], []>} : vector<64x32xf32>, vector<32x36xf32>, vector<64x36xf32> -> vector<64x36xf32>
    %6 = vector.extract_strided_slice %5 {offsets = [0, 0], sizes = [64, 16], strides = [1, 1]} : vector<64x36xf32> to vector<64x16xf32>
    %7 = vector.extract_strided_slice %5 {offsets = [0, 16], sizes = [64, 1], strides = [1, 1]} : vector<64x36xf32> to vector<64x1xf32>
    %8 = vector.extract_strided_slice %5 {offsets = [0, 17], sizes = [64, 1], strides = [1, 1]} : vector<64x36xf32> to vector<64x1xf32>
    %9 = vector.extract_strided_slice %5 {offsets = [0, 18], sizes = [64, 16], strides = [1, 1]} : vector<64x36xf32> to vector<64x16xf32>
    %10 = vector.extract_strided_slice %5 {offsets = [0, 34], sizes = [64, 1], strides = [1, 1]} : vector<64x36xf32> to vector<64x1xf32>
    %11 = vector.extract_strided_slice %5 {offsets = [0, 35], sizes = [64, 1], strides = [1, 1]} : vector<64x36xf32> to vector<64x1xf32>
    %12 = tpu.transpose %7, [1, 0] : vector<64x1xf32> -> vector<1x64xf32>
    %13 = vector.broadcast %8 : vector<64x1xf32> to vector<64x64xf32>
    %14 = vector.broadcast %12 : vector<1x64xf32> to vector<64x64xf32>
    %15 = arith.addf %13, %14 : vector<64x64xf32>
    %16 = tpu.transpose %10, [1, 0] : vector<64x1xf32> -> vector<1x64xf32>
    %17 = vector.broadcast %11 : vector<64x1xf32> to vector<64x64xf32>
    %18 = vector.broadcast %16 : vector<1x64xf32> to vector<64x64xf32>
    %19 = arith.addf %17, %18 : vector<64x64xf32>
    %20 = tpu.concatenate %15, %19 in 1 : vector<64x64xf32>, vector<64x64xf32> -> vector<64x128xf32>
    %cst_7 = arith.constant 0.000000e+00 : f32
    %21 = vector.broadcast %cst_7 : f32 to vector<64x128xf32>
    %22 = arith.subf %21, %20 : vector<64x128xf32>
    %23 = math.exp %22 : vector<64x128xf32>
    %cst_8 = arith.constant 1.000000e+00 : f32
    %24 = vector.broadcast %cst_8 : f32 to vector<64x128xf32>
    %25 = arith.addf %24, %23 : vector<64x128xf32>
    %cst_9 = arith.constant 1.000000e+00 : f32
    %26 = vector.broadcast %cst_9 : f32 to vector<64x128xf32>
    %27 = arith.divf %26, %25 : vector<64x128xf32>
    %28 = math.exp %27 : vector<64x128xf32>
    %29 = arith.mulf %0, %28 : vector<64x128xf32>
    %30 = vector.extract_strided_slice %29 {offsets = [0, 0], sizes = [64, 64], strides = [1, 1]} : vector<64x128xf32> to vector<64x64xf32>
    %31 = vector.extract_strided_slice %29 {offsets = [0, 64], sizes = [64, 64], strides = [1, 1]} : vector<64x128xf32> to vector<64x64xf32>
    %cst_10 = arith.constant dense<0.000000e+00> : vector<64xf32>
    %32 = vector.multi_reduction <add>, %30, %cst_10 [1] : vector<64x64xf32> to vector<64xf32>
    %33 = vector.shape_cast %32 : vector<64xf32> to vector<64x1xf32>
    %cst_11 = arith.constant 1.000000e-16 : f32
    %34 = vector.broadcast %cst_11 : f32 to vector<64x1xf32>
    %35 = arith.addf %33, %34 : vector<64x1xf32>
    %cst_12 = arith.constant 1.000000e+00 : f32
    %36 = vector.broadcast %cst_12 : f32 to vector<64x1xf32>
    %37 = arith.divf %36, %35 : vector<64x1xf32>
    %cst_13 = arith.constant dense<0.000000e+00> : vector<64xf32>
    %38 = vector.multi_reduction <add>, %31, %cst_13 [1] : vector<64x64xf32> to vector<64xf32>
    %39 = vector.shape_cast %38 : vector<64xf32> to vector<64x1xf32>
    %cst_14 = arith.constant 1.000000e-16 : f32
    %40 = vector.broadcast %cst_14 : f32 to vector<64x1xf32>
    %41 = arith.addf %39, %40 : vector<64x1xf32>
    %cst_15 = arith.constant 1.000000e+00 : f32
    %42 = vector.broadcast %cst_15 : f32 to vector<64x1xf32>
    %43 = arith.divf %42, %41 : vector<64x1xf32>
    %44 = vector.broadcast %37 : vector<64x1xf32> to vector<64x64xf32>
    %45 = arith.mulf %30, %44 : vector<64x64xf32>
    %cst_16 = arith.constant dense<0.000000e+00> : vector<64x16xf32>
    %46 = tpu.matmul %45, %6, %cst_16 {dimension_numbers = #tpu.dot_dimension_numbers<[1], [0], [0], [1], [0, 0, 1, 1], [], []>} : vector<64x64xf32>, vector<64x16xf32>, vector<64x16xf32> -> vector<64x16xf32>
    %47 = vector.broadcast %43 : vector<64x1xf32> to vector<64x64xf32>
    %48 = arith.mulf %31, %47 : vector<64x64xf32>
    %cst_17 = arith.constant dense<0.000000e+00> : vector<64x16xf32>
    %49 = tpu.matmul %48, %9, %cst_17 {dimension_numbers = #tpu.dot_dimension_numbers<[1], [0], [0], [1], [0, 0, 1, 1], [], []>} : vector<64x64xf32>, vector<64x16xf32>, vector<64x16xf32> -> vector<64x16xf32>
    %50 = tpu.concatenate %46, %49 in 1 : vector<64x16xf32>, vector<64x16xf32> -> vector<64x32xf32>
    %51 = vector.extract_strided_slice %4 {offsets = [0, 0], sizes = [1, 32], strides = [1, 1]} : vector<2x32xf32> to vector<1x32xf32>
    %52 = vector.extract_strided_slice %4 {offsets = [1, 0], sizes = [1, 32], strides = [1, 1]} : vector<2x32xf32> to vector<1x32xf32>
    %cst_18 = arith.constant dense<0.000000e+00> : vector<32xf32>
    %53 = vector.multi_reduction <add>, %50, %cst_18 [0] : vector<64x32xf32> to vector<32xf32>
    %54 = vector.shape_cast %53 : vector<32xf32> to vector<1x32xf32>
    %cst_19 = arith.constant 6.400000e+01 : f32
    %55 = vector.broadcast %cst_19 : f32 to vector<1x32xf32>
    %56 = arith.divf %54, %55 : vector<1x32xf32>
    %57 = arith.mulf %50, %50 : vector<64x32xf32>
    %cst_20 = arith.constant dense<0.000000e+00> : vector<32xf32>
    %58 = vector.multi_reduction <add>, %57, %cst_20 [0] : vector<64x32xf32> to vector<32xf32>
    %59 = vector.shape_cast %58 : vector<32xf32> to vector<1x32xf32>
    %cst_21 = arith.constant 6.400000e+01 : f32
    %60 = vector.broadcast %cst_21 : f32 to vector<1x32xf32>
    %61 = arith.divf %59, %60 : vector<1x32xf32>
    %62 = arith.mulf %56, %56 : vector<1x32xf32>
    %63 = arith.subf %61, %62 : vector<1x32xf32>
    %64 = vector.broadcast %56 : vector<1x32xf32> to vector<64x32xf32>
    %65 = arith.subf %50, %64 : vector<64x32xf32>
    %cst_22 = arith.constant 9.99999974E-6 : f32
    %66 = vector.broadcast %cst_22 : f32 to vector<1x32xf32>
    %67 = arith.addf %63, %66 : vector<1x32xf32>
    %68 = math.rsqrt %67 : vector<1x32xf32>
    %69 = vector.broadcast %68 : vector<1x32xf32> to vector<64x32xf32>
    %70 = arith.mulf %65, %69 : vector<64x32xf32>
    %71 = vector.broadcast %51 : vector<1x32xf32> to vector<64x32xf32>
    %72 = arith.mulf %70, %71 : vector<64x32xf32>
    %73 = vector.broadcast %52 : vector<1x32xf32> to vector<64x32xf32>
    %74 = arith.addf %72, %73 : vector<64x32xf32>
    %cst_23 = arith.constant 0.000000e+00 : f32
    %75 = vector.broadcast %cst_23 : f32 to vector<64x32xf32>
    %76 = arith.cmpf ogt, %74, %75 : vector<64x32xf32>
    %cst_24 = arith.constant 0.000000e+00 : f32
    %77 = vector.broadcast %cst_24 : f32 to vector<64x32xf32>
    %78 = arith.minimumf %74, %77 : vector<64x32xf32>
    %79 = math.exp %78 : vector<64x32xf32>
    %cst_25 = arith.constant 1.000000e+00 : f32
    %80 = vector.broadcast %cst_25 : f32 to vector<64x32xf32>
    %81 = arith.subf %79, %80 : vector<64x32xf32>
    %82 = arith.select %76, %74, %81 : vector<64x32xi1>, vector<64x32xf32>
    %c0_26 = arith.constant 0 : index
    %c0_27 = arith.constant 0 : index
    %83 = vector.load %arg4[%c0_26, %c0_27] : memref<32x36xf32, #tpu.memory_space<vmem>>, vector<32x36xf32>
    %c0_28 = arith.constant 0 : index
    %c0_29 = arith.constant 0 : index
    %84 = vector.load %arg5[%c0_28, %c0_29] : memref<2x32xf32, #tpu.memory_space<vmem>>, vector<2x32xf32>
    %cst_30 = arith.constant dense<0.000000e+00> : vector<64x36xf32>
    %85 = tpu.matmul %82, %83, %cst_30 {dimension_numbers = #tpu.dot_dimension_numbers<[1], [0], [0], [1], [0, 0, 1, 1], [], []>} : vector<64x32xf32>, vector<32x36xf32>, vector<64x36xf32> -> vector<64x36xf32>
    %86 = vector.extract_strided_slice %85 {offsets = [0, 0], sizes = [64, 16], strides = [1, 1]} : vector<64x36xf32> to vector<64x16xf32>
    %87 = vector.extract_strided_slice %85 {offsets = [0, 16], sizes = [64, 1], strides = [1, 1]} : vector<64x36xf32> to vector<64x1xf32>
    %88 = vector.extract_strided_slice %85 {offsets = [0, 17], sizes = [64, 1], strides = [1, 1]} : vector<64x36xf32> to vector<64x1xf32>
    %89 = vector.extract_strided_slice %85 {offsets = [0, 18], sizes = [64, 16], strides = [1, 1]} : vector<64x36xf32> to vector<64x16xf32>
    %90 = vector.extract_strided_slice %85 {offsets = [0, 34], sizes = [64, 1], strides = [1, 1]} : vector<64x36xf32> to vector<64x1xf32>
    %91 = vector.extract_strided_slice %85 {offsets = [0, 35], sizes = [64, 1], strides = [1, 1]} : vector<64x36xf32> to vector<64x1xf32>
    %92 = tpu.transpose %87, [1, 0] : vector<64x1xf32> -> vector<1x64xf32>
    %93 = vector.broadcast %88 : vector<64x1xf32> to vector<64x64xf32>
    %94 = vector.broadcast %92 : vector<1x64xf32> to vector<64x64xf32>
    %95 = arith.addf %93, %94 : vector<64x64xf32>
    %96 = tpu.transpose %90, [1, 0] : vector<64x1xf32> -> vector<1x64xf32>
    %97 = vector.broadcast %91 : vector<64x1xf32> to vector<64x64xf32>
    %98 = vector.broadcast %96 : vector<1x64xf32> to vector<64x64xf32>
    %99 = arith.addf %97, %98 : vector<64x64xf32>
    %100 = tpu.concatenate %95, %99 in 1 : vector<64x64xf32>, vector<64x64xf32> -> vector<64x128xf32>
    %cst_31 = arith.constant 0.000000e+00 : f32
    %101 = vector.broadcast %cst_31 : f32 to vector<64x128xf32>
    %102 = arith.subf %101, %100 : vector<64x128xf32>
    %103 = math.exp %102 : vector<64x128xf32>
    %cst_32 = arith.constant 1.000000e+00 : f32
    %104 = vector.broadcast %cst_32 : f32 to vector<64x128xf32>
    %105 = arith.addf %104, %103 : vector<64x128xf32>
    %cst_33 = arith.constant 1.000000e+00 : f32
    %106 = vector.broadcast %cst_33 : f32 to vector<64x128xf32>
    %107 = arith.divf %106, %105 : vector<64x128xf32>
    %108 = math.exp %107 : vector<64x128xf32>
    %109 = arith.mulf %0, %108 : vector<64x128xf32>
    %110 = vector.extract_strided_slice %109 {offsets = [0, 0], sizes = [64, 64], strides = [1, 1]} : vector<64x128xf32> to vector<64x64xf32>
    %111 = vector.extract_strided_slice %109 {offsets = [0, 64], sizes = [64, 64], strides = [1, 1]} : vector<64x128xf32> to vector<64x64xf32>
    %cst_34 = arith.constant dense<0.000000e+00> : vector<64xf32>
    %112 = vector.multi_reduction <add>, %110, %cst_34 [1] : vector<64x64xf32> to vector<64xf32>
    %113 = vector.shape_cast %112 : vector<64xf32> to vector<64x1xf32>
    %cst_35 = arith.constant 1.000000e-16 : f32
    %114 = vector.broadcast %cst_35 : f32 to vector<64x1xf32>
    %115 = arith.addf %113, %114 : vector<64x1xf32>
    %cst_36 = arith.constant 1.000000e+00 : f32
    %116 = vector.broadcast %cst_36 : f32 to vector<64x1xf32>
    %117 = arith.divf %116, %115 : vector<64x1xf32>
    %cst_37 = arith.constant dense<0.000000e+00> : vector<64xf32>
    %118 = vector.multi_reduction <add>, %111, %cst_37 [1] : vector<64x64xf32> to vector<64xf32>
    %119 = vector.shape_cast %118 : vector<64xf32> to vector<64x1xf32>
    %cst_38 = arith.constant 1.000000e-16 : f32
    %120 = vector.broadcast %cst_38 : f32 to vector<64x1xf32>
    %121 = arith.addf %119, %120 : vector<64x1xf32>
    %cst_39 = arith.constant 1.000000e+00 : f32
    %122 = vector.broadcast %cst_39 : f32 to vector<64x1xf32>
    %123 = arith.divf %122, %121 : vector<64x1xf32>
    %124 = vector.broadcast %117 : vector<64x1xf32> to vector<64x64xf32>
    %125 = arith.mulf %110, %124 : vector<64x64xf32>
    %cst_40 = arith.constant dense<0.000000e+00> : vector<64x16xf32>
    %126 = tpu.matmul %125, %86, %cst_40 {dimension_numbers = #tpu.dot_dimension_numbers<[1], [0], [0], [1], [0, 0, 1, 1], [], []>} : vector<64x64xf32>, vector<64x16xf32>, vector<64x16xf32> -> vector<64x16xf32>
    %127 = vector.broadcast %123 : vector<64x1xf32> to vector<64x64xf32>
    %128 = arith.mulf %111, %127 : vector<64x64xf32>
    %cst_41 = arith.constant dense<0.000000e+00> : vector<64x16xf32>
    %129 = tpu.matmul %128, %89, %cst_41 {dimension_numbers = #tpu.dot_dimension_numbers<[1], [0], [0], [1], [0, 0, 1, 1], [], []>} : vector<64x64xf32>, vector<64x16xf32>, vector<64x16xf32> -> vector<64x16xf32>
    %130 = tpu.concatenate %126, %129 in 1 : vector<64x16xf32>, vector<64x16xf32> -> vector<64x32xf32>
    %131 = vector.extract_strided_slice %84 {offsets = [0, 0], sizes = [1, 32], strides = [1, 1]} : vector<2x32xf32> to vector<1x32xf32>
    %132 = vector.extract_strided_slice %84 {offsets = [1, 0], sizes = [1, 32], strides = [1, 1]} : vector<2x32xf32> to vector<1x32xf32>
    %cst_42 = arith.constant dense<0.000000e+00> : vector<32xf32>
    %133 = vector.multi_reduction <add>, %130, %cst_42 [0] : vector<64x32xf32> to vector<32xf32>
    %134 = vector.shape_cast %133 : vector<32xf32> to vector<1x32xf32>
    %cst_43 = arith.constant 6.400000e+01 : f32
    %135 = vector.broadcast %cst_43 : f32 to vector<1x32xf32>
    %136 = arith.divf %134, %135 : vector<1x32xf32>
    %137 = arith.mulf %130, %130 : vector<64x32xf32>
    %cst_44 = arith.constant dense<0.000000e+00> : vector<32xf32>
    %138 = vector.multi_reduction <add>, %137, %cst_44 [0] : vector<64x32xf32> to vector<32xf32>
    %139 = vector.shape_cast %138 : vector<32xf32> to vector<1x32xf32>
    %cst_45 = arith.constant 6.400000e+01 : f32
    %140 = vector.broadcast %cst_45 : f32 to vector<1x32xf32>
    %141 = arith.divf %139, %140 : vector<1x32xf32>
    %142 = arith.mulf %136, %136 : vector<1x32xf32>
    %143 = arith.subf %141, %142 : vector<1x32xf32>
    %144 = vector.broadcast %136 : vector<1x32xf32> to vector<64x32xf32>
    %145 = arith.subf %130, %144 : vector<64x32xf32>
    %cst_46 = arith.constant 9.99999974E-6 : f32
    %146 = vector.broadcast %cst_46 : f32 to vector<1x32xf32>
    %147 = arith.addf %143, %146 : vector<1x32xf32>
    %148 = math.rsqrt %147 : vector<1x32xf32>
    %149 = vector.broadcast %148 : vector<1x32xf32> to vector<64x32xf32>
    %150 = arith.mulf %145, %149 : vector<64x32xf32>
    %151 = vector.broadcast %131 : vector<1x32xf32> to vector<64x32xf32>
    %152 = arith.mulf %150, %151 : vector<64x32xf32>
    %153 = vector.broadcast %132 : vector<1x32xf32> to vector<64x32xf32>
    %154 = arith.addf %152, %153 : vector<64x32xf32>
    %cst_47 = arith.constant 0.000000e+00 : f32
    %155 = vector.broadcast %cst_47 : f32 to vector<64x32xf32>
    %156 = arith.cmpf ogt, %154, %155 : vector<64x32xf32>
    %cst_48 = arith.constant 0.000000e+00 : f32
    %157 = vector.broadcast %cst_48 : f32 to vector<64x32xf32>
    %158 = arith.minimumf %154, %157 : vector<64x32xf32>
    %159 = math.exp %158 : vector<64x32xf32>
    %cst_49 = arith.constant 1.000000e+00 : f32
    %160 = vector.broadcast %cst_49 : f32 to vector<64x32xf32>
    %161 = arith.subf %159, %160 : vector<64x32xf32>
    %162 = arith.select %156, %154, %161 : vector<64x32xi1>, vector<64x32xf32>
    %c0_50 = arith.constant 0 : index
    %c0_51 = arith.constant 0 : index
    %163 = vector.load %arg6[%c0_50, %c0_51] : memref<32x20xf32, #tpu.memory_space<vmem>>, vector<32x20xf32>
    %c0_52 = arith.constant 0 : index
    %c0_53 = arith.constant 0 : index
    %164 = vector.load %arg7[%c0_52, %c0_53] : memref<2x16xf32, #tpu.memory_space<vmem>>, vector<2x16xf32>
    %cst_54 = arith.constant dense<0.000000e+00> : vector<64x20xf32>
    %165 = tpu.matmul %162, %163, %cst_54 {dimension_numbers = #tpu.dot_dimension_numbers<[1], [0], [0], [1], [0, 0, 1, 1], [], []>} : vector<64x32xf32>, vector<32x20xf32>, vector<64x20xf32> -> vector<64x20xf32>
    %166 = vector.extract_strided_slice %165 {offsets = [0, 0], sizes = [64, 8], strides = [1, 1]} : vector<64x20xf32> to vector<64x8xf32>
    %167 = vector.extract_strided_slice %165 {offsets = [0, 8], sizes = [64, 1], strides = [1, 1]} : vector<64x20xf32> to vector<64x1xf32>
    %168 = vector.extract_strided_slice %165 {offsets = [0, 9], sizes = [64, 1], strides = [1, 1]} : vector<64x20xf32> to vector<64x1xf32>
    %169 = vector.extract_strided_slice %165 {offsets = [0, 10], sizes = [64, 8], strides = [1, 1]} : vector<64x20xf32> to vector<64x8xf32>
    %170 = vector.extract_strided_slice %165 {offsets = [0, 18], sizes = [64, 1], strides = [1, 1]} : vector<64x20xf32> to vector<64x1xf32>
    %171 = vector.extract_strided_slice %165 {offsets = [0, 19], sizes = [64, 1], strides = [1, 1]} : vector<64x20xf32> to vector<64x1xf32>
    %172 = tpu.transpose %167, [1, 0] : vector<64x1xf32> -> vector<1x64xf32>
    %173 = vector.broadcast %168 : vector<64x1xf32> to vector<64x64xf32>
    %174 = vector.broadcast %172 : vector<1x64xf32> to vector<64x64xf32>
    %175 = arith.addf %173, %174 : vector<64x64xf32>
    %176 = tpu.transpose %170, [1, 0] : vector<64x1xf32> -> vector<1x64xf32>
    %177 = vector.broadcast %171 : vector<64x1xf32> to vector<64x64xf32>
    %178 = vector.broadcast %176 : vector<1x64xf32> to vector<64x64xf32>
    %179 = arith.addf %177, %178 : vector<64x64xf32>
    %180 = tpu.concatenate %175, %179 in 1 : vector<64x64xf32>, vector<64x64xf32> -> vector<64x128xf32>
    %cst_55 = arith.constant 0.000000e+00 : f32
    %181 = vector.broadcast %cst_55 : f32 to vector<64x128xf32>
    %182 = arith.subf %181, %180 : vector<64x128xf32>
    %183 = math.exp %182 : vector<64x128xf32>
    %cst_56 = arith.constant 1.000000e+00 : f32
    %184 = vector.broadcast %cst_56 : f32 to vector<64x128xf32>
    %185 = arith.addf %184, %183 : vector<64x128xf32>
    %cst_57 = arith.constant 1.000000e+00 : f32
    %186 = vector.broadcast %cst_57 : f32 to vector<64x128xf32>
    %187 = arith.divf %186, %185 : vector<64x128xf32>
    %188 = math.exp %187 : vector<64x128xf32>
    %189 = arith.mulf %0, %188 : vector<64x128xf32>
    %190 = vector.extract_strided_slice %189 {offsets = [0, 0], sizes = [64, 64], strides = [1, 1]} : vector<64x128xf32> to vector<64x64xf32>
    %191 = vector.extract_strided_slice %189 {offsets = [0, 64], sizes = [64, 64], strides = [1, 1]} : vector<64x128xf32> to vector<64x64xf32>
    %cst_58 = arith.constant dense<0.000000e+00> : vector<64xf32>
    %192 = vector.multi_reduction <add>, %190, %cst_58 [1] : vector<64x64xf32> to vector<64xf32>
    %193 = vector.shape_cast %192 : vector<64xf32> to vector<64x1xf32>
    %cst_59 = arith.constant 1.000000e-16 : f32
    %194 = vector.broadcast %cst_59 : f32 to vector<64x1xf32>
    %195 = arith.addf %193, %194 : vector<64x1xf32>
    %cst_60 = arith.constant 1.000000e+00 : f32
    %196 = vector.broadcast %cst_60 : f32 to vector<64x1xf32>
    %197 = arith.divf %196, %195 : vector<64x1xf32>
    %cst_61 = arith.constant dense<0.000000e+00> : vector<64xf32>
    %198 = vector.multi_reduction <add>, %191, %cst_61 [1] : vector<64x64xf32> to vector<64xf32>
    %199 = vector.shape_cast %198 : vector<64xf32> to vector<64x1xf32>
    %cst_62 = arith.constant 1.000000e-16 : f32
    %200 = vector.broadcast %cst_62 : f32 to vector<64x1xf32>
    %201 = arith.addf %199, %200 : vector<64x1xf32>
    %cst_63 = arith.constant 1.000000e+00 : f32
    %202 = vector.broadcast %cst_63 : f32 to vector<64x1xf32>
    %203 = arith.divf %202, %201 : vector<64x1xf32>
    %204 = vector.broadcast %197 : vector<64x1xf32> to vector<64x64xf32>
    %205 = arith.mulf %190, %204 : vector<64x64xf32>
    %cst_64 = arith.constant dense<0.000000e+00> : vector<64x8xf32>
    %206 = tpu.matmul %205, %166, %cst_64 {dimension_numbers = #tpu.dot_dimension_numbers<[1], [0], [0], [1], [0, 0, 1, 1], [], []>} : vector<64x64xf32>, vector<64x8xf32>, vector<64x8xf32> -> vector<64x8xf32>
    %207 = vector.broadcast %203 : vector<64x1xf32> to vector<64x64xf32>
    %208 = arith.mulf %191, %207 : vector<64x64xf32>
    %cst_65 = arith.constant dense<0.000000e+00> : vector<64x8xf32>
    %209 = tpu.matmul %208, %169, %cst_65 {dimension_numbers = #tpu.dot_dimension_numbers<[1], [0], [0], [1], [0, 0, 1, 1], [], []>} : vector<64x64xf32>, vector<64x8xf32>, vector<64x8xf32> -> vector<64x8xf32>
    %210 = tpu.concatenate %206, %209 in 1 : vector<64x8xf32>, vector<64x8xf32> -> vector<64x16xf32>
    %211 = vector.extract_strided_slice %164 {offsets = [0, 0], sizes = [1, 16], strides = [1, 1]} : vector<2x16xf32> to vector<1x16xf32>
    %212 = vector.extract_strided_slice %164 {offsets = [1, 0], sizes = [1, 16], strides = [1, 1]} : vector<2x16xf32> to vector<1x16xf32>
    %cst_66 = arith.constant dense<0.000000e+00> : vector<16xf32>
    %213 = vector.multi_reduction <add>, %210, %cst_66 [0] : vector<64x16xf32> to vector<16xf32>
    %214 = vector.shape_cast %213 : vector<16xf32> to vector<1x16xf32>
    %cst_67 = arith.constant 6.400000e+01 : f32
    %215 = vector.broadcast %cst_67 : f32 to vector<1x16xf32>
    %216 = arith.divf %214, %215 : vector<1x16xf32>
    %217 = arith.mulf %210, %210 : vector<64x16xf32>
    %cst_68 = arith.constant dense<0.000000e+00> : vector<16xf32>
    %218 = vector.multi_reduction <add>, %217, %cst_68 [0] : vector<64x16xf32> to vector<16xf32>
    %219 = vector.shape_cast %218 : vector<16xf32> to vector<1x16xf32>
    %cst_69 = arith.constant 6.400000e+01 : f32
    %220 = vector.broadcast %cst_69 : f32 to vector<1x16xf32>
    %221 = arith.divf %219, %220 : vector<1x16xf32>
    %222 = arith.mulf %216, %216 : vector<1x16xf32>
    %223 = arith.subf %221, %222 : vector<1x16xf32>
    %224 = vector.broadcast %216 : vector<1x16xf32> to vector<64x16xf32>
    %225 = arith.subf %210, %224 : vector<64x16xf32>
    %cst_70 = arith.constant 9.99999974E-6 : f32
    %226 = vector.broadcast %cst_70 : f32 to vector<1x16xf32>
    %227 = arith.addf %223, %226 : vector<1x16xf32>
    %228 = math.rsqrt %227 : vector<1x16xf32>
    %229 = vector.broadcast %228 : vector<1x16xf32> to vector<64x16xf32>
    %230 = arith.mulf %225, %229 : vector<64x16xf32>
    %231 = vector.broadcast %211 : vector<1x16xf32> to vector<64x16xf32>
    %232 = arith.mulf %230, %231 : vector<64x16xf32>
    %233 = vector.broadcast %212 : vector<1x16xf32> to vector<64x16xf32>
    %234 = arith.addf %232, %233 : vector<64x16xf32>
    %c0_71 = arith.constant 0 : index
    %c0_72 = arith.constant 0 : index
    %235 = vector.load %arg14[%c0_71, %c0_72] : memref<64x16xf32, #tpu.memory_space<vmem>>, vector<64x16xf32>
    tpu.vector_store %arg14[%c0_71, %c0_72], %234 {strides = array<i32>} : memref<64x16xf32, #tpu.memory_space<vmem>>, vector<64x16xf32>,
    %236 = vector.extract_strided_slice %82 {offsets = [0, 0], sizes = [64, 16], strides = [1, 1]} : vector<64x32xf32> to vector<64x16xf32>
    %237 = vector.extract_strided_slice %82 {offsets = [0, 16], sizes = [64, 16], strides = [1, 1]} : vector<64x32xf32> to vector<64x16xf32>
    %238 = arith.addf %236, %237 : vector<64x16xf32>
    %239 = vector.extract_strided_slice %162 {offsets = [0, 0], sizes = [64, 16], strides = [1, 1]} : vector<64x32xf32> to vector<64x16xf32>
    %240 = vector.extract_strided_slice %162 {offsets = [0, 16], sizes = [64, 16], strides = [1, 1]} : vector<64x32xf32> to vector<64x16xf32>
    %241 = arith.addf %239, %240 : vector<64x16xf32>
    %c0_73 = arith.constant 0 : index
    %c0_74 = arith.constant 0 : index
    %242 = vector.load %arg8[%c0_73, %c0_74] : memref<16x18xf32, #tpu.memory_space<vmem>>, vector<16x18xf32>
    %c0_75 = arith.constant 0 : index
    %c0_76 = arith.constant 0 : index
    %243 = vector.load %arg9[%c0_75, %c0_76] : memref<2x16xf32, #tpu.memory_space<vmem>>, vector<2x16xf32>
    %cst_77 = arith.constant dense<0.000000e+00> : vector<64x18xf32>
    %244 = tpu.matmul %234, %242, %cst_77 {dimension_numbers = #tpu.dot_dimension_numbers<[1], [0], [0], [1], [0, 0, 1, 1], [], []>} : vector<64x16xf32>, vector<16x18xf32>, vector<64x18xf32> -> vector<64x18xf32>
    %245 = vector.extract_strided_slice %244 {offsets = [0, 0], sizes = [64, 16], strides = [1, 1]} : vector<64x18xf32> to vector<64x16xf32>
    %246 = vector.extract_strided_slice %244 {offsets = [0, 16], sizes = [64, 1], strides = [1, 1]} : vector<64x18xf32> to vector<64x1xf32>
    %247 = vector.extract_strided_slice %244 {offsets = [0, 17], sizes = [64, 1], strides = [1, 1]} : vector<64x18xf32> to vector<64x1xf32>
    %248 = tpu.transpose %246, [1, 0] : vector<64x1xf32> -> vector<1x64xf32>
    %249 = vector.broadcast %247 : vector<64x1xf32> to vector<64x64xf32>
    %250 = vector.broadcast %248 : vector<1x64xf32> to vector<64x64xf32>
    %251 = arith.addf %249, %250 : vector<64x64xf32>
    %cst_78 = arith.constant 0.000000e+00 : f32
    %252 = vector.broadcast %cst_78 : f32 to vector<64x64xf32>
    %253 = arith.subf %252, %251 : vector<64x64xf32>
    %254 = math.exp %253 : vector<64x64xf32>
    %cst_79 = arith.constant 1.000000e+00 : f32
    %255 = vector.broadcast %cst_79 : f32 to vector<64x64xf32>
    %256 = arith.addf %255, %254 : vector<64x64xf32>
    %cst_80 = arith.constant 1.000000e+00 : f32
    %257 = vector.broadcast %cst_80 : f32 to vector<64x64xf32>
    %258 = arith.divf %257, %256 : vector<64x64xf32>
    %259 = math.exp %258 : vector<64x64xf32>
    %260 = arith.mulf %1, %259 : vector<64x64xf32>
    %cst_81 = arith.constant dense<0.000000e+00> : vector<64xf32>
    %261 = vector.multi_reduction <add>, %260, %cst_81 [1] : vector<64x64xf32> to vector<64xf32>
    %262 = vector.shape_cast %261 : vector<64xf32> to vector<64x1xf32>
    %cst_82 = arith.constant 1.000000e-16 : f32
    %263 = vector.broadcast %cst_82 : f32 to vector<64x1xf32>
    %264 = arith.addf %262, %263 : vector<64x1xf32>
    %cst_83 = arith.constant 1.000000e+00 : f32
    %265 = vector.broadcast %cst_83 : f32 to vector<64x1xf32>
    %266 = arith.divf %265, %264 : vector<64x1xf32>
    %267 = vector.broadcast %266 : vector<64x1xf32> to vector<64x64xf32>
    %268 = arith.mulf %260, %267 : vector<64x64xf32>
    %cst_84 = arith.constant dense<0.000000e+00> : vector<64x16xf32>
    %269 = tpu.matmul %268, %245, %cst_84 {dimension_numbers = #tpu.dot_dimension_numbers<[1], [0], [0], [1], [0, 0, 1, 1], [], []>} : vector<64x64xf32>, vector<64x16xf32>, vector<64x16xf32> -> vector<64x16xf32>
    %270 = vector.extract_strided_slice %243 {offsets = [0, 0], sizes = [1, 16], strides = [1, 1]} : vector<2x16xf32> to vector<1x16xf32>
    %271 = vector.extract_strided_slice %243 {offsets = [1, 0], sizes = [1, 16], strides = [1, 1]} : vector<2x16xf32> to vector<1x16xf32>
    %cst_85 = arith.constant dense<0.000000e+00> : vector<16xf32>
    %272 = vector.multi_reduction <add>, %269, %cst_85 [0] : vector<64x16xf32> to vector<16xf32>
    %273 = vector.shape_cast %272 : vector<16xf32> to vector<1x16xf32>
    %cst_86 = arith.constant 6.400000e+01 : f32
    %274 = vector.broadcast %cst_86 : f32 to vector<1x16xf32>
    %275 = arith.divf %273, %274 : vector<1x16xf32>
    %276 = arith.mulf %269, %269 : vector<64x16xf32>
    %cst_87 = arith.constant dense<0.000000e+00> : vector<16xf32>
    %277 = vector.multi_reduction <add>, %276, %cst_87 [0] : vector<64x16xf32> to vector<16xf32>
    %278 = vector.shape_cast %277 : vector<16xf32> to vector<1x16xf32>
    %cst_88 = arith.constant 6.400000e+01 : f32
    %279 = vector.broadcast %cst_88 : f32 to vector<1x16xf32>
    %280 = arith.divf %278, %279 : vector<1x16xf32>
    %281 = arith.mulf %275, %275 : vector<1x16xf32>
    %282 = arith.subf %280, %281 : vector<1x16xf32>
    %283 = vector.broadcast %275 : vector<1x16xf32> to vector<64x16xf32>
    %284 = arith.subf %269, %283 : vector<64x16xf32>
    %cst_89 = arith.constant 9.99999974E-6 : f32
    %285 = vector.broadcast %cst_89 : f32 to vector<1x16xf32>
    %286 = arith.addf %282, %285 : vector<1x16xf32>
    %287 = math.rsqrt %286 : vector<1x16xf32>
    %288 = vector.broadcast %287 : vector<1x16xf32> to vector<64x16xf32>
    %289 = arith.mulf %284, %288 : vector<64x16xf32>
    %290 = vector.broadcast %270 : vector<1x16xf32> to vector<64x16xf32>
    %291 = arith.mulf %289, %290 : vector<64x16xf32>
    %292 = vector.broadcast %271 : vector<1x16xf32> to vector<64x16xf32>
    %293 = arith.addf %291, %292 : vector<64x16xf32>
    %cst_90 = arith.constant 0.000000e+00 : f32
    %294 = vector.broadcast %cst_90 : f32 to vector<64x16xf32>
    %295 = arith.cmpf ogt, %293, %294 : vector<64x16xf32>
    %cst_91 = arith.constant 0.000000e+00 : f32
    %296 = vector.broadcast %cst_91 : f32 to vector<64x16xf32>
    %297 = arith.minimumf %293, %296 : vector<64x16xf32>
    %298 = math.exp %297 : vector<64x16xf32>
    %cst_92 = arith.constant 1.000000e+00 : f32
    %299 = vector.broadcast %cst_92 : f32 to vector<64x16xf32>
    %300 = arith.subf %298, %299 : vector<64x16xf32>
    %301 = arith.select %295, %293, %300 : vector<64x16xi1>, vector<64x16xf32>
    %302 = arith.addf %301, %241 : vector<64x16xf32>
    %c0_93 = arith.constant 0 : index
    %c0_94 = arith.constant 0 : index
    %303 = vector.load %arg10[%c0_93, %c0_94] : memref<16x18xf32, #tpu.memory_space<vmem>>, vector<16x18xf32>
    %c0_95 = arith.constant 0 : index
    %c0_96 = arith.constant 0 : index
    %304 = vector.load %arg11[%c0_95, %c0_96] : memref<2x16xf32, #tpu.memory_space<vmem>>, vector<2x16xf32>
    %cst_97 = arith.constant dense<0.000000e+00> : vector<64x18xf32>
    %305 = tpu.matmul %302, %303, %cst_97 {dimension_numbers = #tpu.dot_dimension_numbers<[1], [0], [0], [1], [0, 0, 1, 1], [], []>} : vector<64x16xf32>, vector<16x18xf32>, vector<64x18xf32> -> vector<64x18xf32>
    %306 = vector.extract_strided_slice %305 {offsets = [0, 0], sizes = [64, 16], strides = [1, 1]} : vector<64x18xf32> to vector<64x16xf32>
    %307 = vector.extract_strided_slice %305 {offsets = [0, 16], sizes = [64, 1], strides = [1, 1]} : vector<64x18xf32> to vector<64x1xf32>
    %308 = vector.extract_strided_slice %305 {offsets = [0, 17], sizes = [64, 1], strides = [1, 1]} : vector<64x18xf32> to vector<64x1xf32>
    %309 = tpu.transpose %307, [1, 0] : vector<64x1xf32> -> vector<1x64xf32>
    %310 = vector.broadcast %308 : vector<64x1xf32> to vector<64x64xf32>
    %311 = vector.broadcast %309 : vector<1x64xf32> to vector<64x64xf32>
    %312 = arith.addf %310, %311 : vector<64x64xf32>
    %cst_98 = arith.constant 0.000000e+00 : f32
    %313 = vector.broadcast %cst_98 : f32 to vector<64x64xf32>
    %314 = arith.subf %313, %312 : vector<64x64xf32>
    %315 = math.exp %314 : vector<64x64xf32>
    %cst_99 = arith.constant 1.000000e+00 : f32
    %316 = vector.broadcast %cst_99 : f32 to vector<64x64xf32>
    %317 = arith.addf %316, %315 : vector<64x64xf32>
    %cst_100 = arith.constant 1.000000e+00 : f32
    %318 = vector.broadcast %cst_100 : f32 to vector<64x64xf32>
    %319 = arith.divf %318, %317 : vector<64x64xf32>
    %320 = math.exp %319 : vector<64x64xf32>
    %321 = arith.mulf %1, %320 : vector<64x64xf32>
    %cst_101 = arith.constant dense<0.000000e+00> : vector<64xf32>
    %322 = vector.multi_reduction <add>, %321, %cst_101 [1] : vector<64x64xf32> to vector<64xf32>
    %323 = vector.shape_cast %322 : vector<64xf32> to vector<64x1xf32>
    %cst_102 = arith.constant 1.000000e-16 : f32
    %324 = vector.broadcast %cst_102 : f32 to vector<64x1xf32>
    %325 = arith.addf %323, %324 : vector<64x1xf32>
    %cst_103 = arith.constant 1.000000e+00 : f32
    %326 = vector.broadcast %cst_103 : f32 to vector<64x1xf32>
    %327 = arith.divf %326, %325 : vector<64x1xf32>
    %328 = vector.broadcast %327 : vector<64x1xf32> to vector<64x64xf32>
    %329 = arith.mulf %321, %328 : vector<64x64xf32>
    %cst_104 = arith.constant dense<0.000000e+00> : vector<64x16xf32>
    %330 = tpu.matmul %329, %306, %cst_104 {dimension_numbers = #tpu.dot_dimension_numbers<[1], [0], [0], [1], [0, 0, 1, 1], [], []>} : vector<64x64xf32>, vector<64x16xf32>, vector<64x16xf32> -> vector<64x16xf32>
    %331 = vector.extract_strided_slice %304 {offsets = [0, 0], sizes = [1, 16], strides = [1, 1]} : vector<2x16xf32> to vector<1x16xf32>
    %332 = vector.extract_strided_slice %304 {offsets = [1, 0], sizes = [1, 16], strides = [1, 1]} : vector<2x16xf32> to vector<1x16xf32>
    %cst_105 = arith.constant dense<0.000000e+00> : vector<16xf32>
    %333 = vector.multi_reduction <add>, %330, %cst_105 [0] : vector<64x16xf32> to vector<16xf32>
    %334 = vector.shape_cast %333 : vector<16xf32> to vector<1x16xf32>
    %cst_106 = arith.constant 6.400000e+01 : f32
    %335 = vector.broadcast %cst_106 : f32 to vector<1x16xf32>
    %336 = arith.divf %334, %335 : vector<1x16xf32>
    %337 = arith.mulf %330, %330 : vector<64x16xf32>
    %cst_107 = arith.constant dense<0.000000e+00> : vector<16xf32>
    %338 = vector.multi_reduction <add>, %337, %cst_107 [0] : vector<64x16xf32> to vector<16xf32>
    %339 = vector.shape_cast %338 : vector<16xf32> to vector<1x16xf32>
    %cst_108 = arith.constant 6.400000e+01 : f32
    %340 = vector.broadcast %cst_108 : f32 to vector<1x16xf32>
    %341 = arith.divf %339, %340 : vector<1x16xf32>
    %342 = arith.mulf %336, %336 : vector<1x16xf32>
    %343 = arith.subf %341, %342 : vector<1x16xf32>
    %344 = vector.broadcast %336 : vector<1x16xf32> to vector<64x16xf32>
    %345 = arith.subf %330, %344 : vector<64x16xf32>
    %cst_109 = arith.constant 9.99999974E-6 : f32
    %346 = vector.broadcast %cst_109 : f32 to vector<1x16xf32>
    %347 = arith.addf %343, %346 : vector<1x16xf32>
    %348 = math.rsqrt %347 : vector<1x16xf32>
    %349 = vector.broadcast %348 : vector<1x16xf32> to vector<64x16xf32>
    %350 = arith.mulf %345, %349 : vector<64x16xf32>
    %351 = vector.broadcast %331 : vector<1x16xf32> to vector<64x16xf32>
    %352 = arith.mulf %350, %351 : vector<64x16xf32>
    %353 = vector.broadcast %332 : vector<1x16xf32> to vector<64x16xf32>
    %354 = arith.addf %352, %353 : vector<64x16xf32>
    %cst_110 = arith.constant 0.000000e+00 : f32
    %355 = vector.broadcast %cst_110 : f32 to vector<64x16xf32>
    %356 = arith.cmpf ogt, %354, %355 : vector<64x16xf32>
    %cst_111 = arith.constant 0.000000e+00 : f32
    %357 = vector.broadcast %cst_111 : f32 to vector<64x16xf32>
    %358 = arith.minimumf %354, %357 : vector<64x16xf32>
    %359 = math.exp %358 : vector<64x16xf32>
    %cst_112 = arith.constant 1.000000e+00 : f32
    %360 = vector.broadcast %cst_112 : f32 to vector<64x16xf32>
    %361 = arith.subf %359, %360 : vector<64x16xf32>
    %362 = arith.select %356, %354, %361 : vector<64x16xi1>, vector<64x16xf32>
    %363 = arith.addf %362, %238 : vector<64x16xf32>
    %c0_113 = arith.constant 0 : index
    %c0_114 = arith.constant 0 : index
    %364 = vector.load %arg12[%c0_113, %c0_114] : memref<16x34xf32, #tpu.memory_space<vmem>>, vector<16x34xf32>
    %c0_115 = arith.constant 0 : index
    %c0_116 = arith.constant 0 : index
    %365 = vector.load %arg13[%c0_115, %c0_116] : memref<2x32xf32, #tpu.memory_space<vmem>>, vector<2x32xf32>
    %cst_117 = arith.constant dense<0.000000e+00> : vector<64x34xf32>
    %366 = tpu.matmul %363, %364, %cst_117 {dimension_numbers = #tpu.dot_dimension_numbers<[1], [0], [0], [1], [0, 0, 1, 1], [], []>} : vector<64x16xf32>, vector<16x34xf32>, vector<64x34xf32> -> vector<64x34xf32>
    %367 = vector.extract_strided_slice %366 {offsets = [0, 0], sizes = [64, 32], strides = [1, 1]} : vector<64x34xf32> to vector<64x32xf32>
    %368 = vector.extract_strided_slice %366 {offsets = [0, 32], sizes = [64, 1], strides = [1, 1]} : vector<64x34xf32> to vector<64x1xf32>
    %369 = vector.extract_strided_slice %366 {offsets = [0, 33], sizes = [64, 1], strides = [1, 1]} : vector<64x34xf32> to vector<64x1xf32>
    %370 = tpu.transpose %368, [1, 0] : vector<64x1xf32> -> vector<1x64xf32>
    %371 = vector.broadcast %369 : vector<64x1xf32> to vector<64x64xf32>
    %372 = vector.broadcast %370 : vector<1x64xf32> to vector<64x64xf32>
    %373 = arith.addf %371, %372 : vector<64x64xf32>
    %cst_118 = arith.constant 0.000000e+00 : f32
    %374 = vector.broadcast %cst_118 : f32 to vector<64x64xf32>
    %375 = arith.subf %374, %373 : vector<64x64xf32>
    %376 = math.exp %375 : vector<64x64xf32>
    %cst_119 = arith.constant 1.000000e+00 : f32
    %377 = vector.broadcast %cst_119 : f32 to vector<64x64xf32>
    %378 = arith.addf %377, %376 : vector<64x64xf32>
    %cst_120 = arith.constant 1.000000e+00 : f32
    %379 = vector.broadcast %cst_120 : f32 to vector<64x64xf32>
    %380 = arith.divf %379, %378 : vector<64x64xf32>
    %381 = math.exp %380 : vector<64x64xf32>
    %382 = arith.mulf %1, %381 : vector<64x64xf32>
    %cst_121 = arith.constant dense<0.000000e+00> : vector<64xf32>
    %383 = vector.multi_reduction <add>, %382, %cst_121 [1] : vector<64x64xf32> to vector<64xf32>
    %384 = vector.shape_cast %383 : vector<64xf32> to vector<64x1xf32>
    %cst_122 = arith.constant 1.000000e-16 : f32
    %385 = vector.broadcast %cst_122 : f32 to vector<64x1xf32>
    %386 = arith.addf %384, %385 : vector<64x1xf32>
    %cst_123 = arith.constant 1.000000e+00 : f32
    %387 = vector.broadcast %cst_123 : f32 to vector<64x1xf32>
    %388 = arith.divf %387, %386 : vector<64x1xf32>
    %389 = vector.broadcast %388 : vector<64x1xf32> to vector<64x64xf32>
    %390 = arith.mulf %382, %389 : vector<64x64xf32>
    %cst_124 = arith.constant dense<0.000000e+00> : vector<64x32xf32>
    %391 = tpu.matmul %390, %367, %cst_124 {dimension_numbers = #tpu.dot_dimension_numbers<[1], [0], [0], [1], [0, 0, 1, 1], [], []>} : vector<64x64xf32>, vector<64x32xf32>, vector<64x32xf32> -> vector<64x32xf32>
    %392 = vector.extract_strided_slice %365 {offsets = [0, 0], sizes = [1, 32], strides = [1, 1]} : vector<2x32xf32> to vector<1x32xf32>
    %393 = vector.extract_strided_slice %365 {offsets = [1, 0], sizes = [1, 32], strides = [1, 1]} : vector<2x32xf32> to vector<1x32xf32>
    %cst_125 = arith.constant dense<0.000000e+00> : vector<32xf32>
    %394 = vector.multi_reduction <add>, %391, %cst_125 [0] : vector<64x32xf32> to vector<32xf32>
    %395 = vector.shape_cast %394 : vector<32xf32> to vector<1x32xf32>
    %cst_126 = arith.constant 6.400000e+01 : f32
    %396 = vector.broadcast %cst_126 : f32 to vector<1x32xf32>
    %397 = arith.divf %395, %396 : vector<1x32xf32>
    %398 = arith.mulf %391, %391 : vector<64x32xf32>
    %cst_127 = arith.constant dense<0.000000e+00> : vector<32xf32>
    %399 = vector.multi_reduction <add>, %398, %cst_127 [0] : vector<64x32xf32> to vector<32xf32>
    %400 = vector.shape_cast %399 : vector<32xf32> to vector<1x32xf32>
    %cst_128 = arith.constant 6.400000e+01 : f32
    %401 = vector.broadcast %cst_128 : f32 to vector<1x32xf32>
    %402 = arith.divf %400, %401 : vector<1x32xf32>
    %403 = arith.mulf %397, %397 : vector<1x32xf32>
    %404 = arith.subf %402, %403 : vector<1x32xf32>
    %405 = vector.broadcast %397 : vector<1x32xf32> to vector<64x32xf32>
    %406 = arith.subf %391, %405 : vector<64x32xf32>
    %cst_129 = arith.constant 9.99999974E-6 : f32
    %407 = vector.broadcast %cst_129 : f32 to vector<1x32xf32>
    %408 = arith.addf %404, %407 : vector<1x32xf32>
    %409 = math.rsqrt %408 : vector<1x32xf32>
    %410 = vector.broadcast %409 : vector<1x32xf32> to vector<64x32xf32>
    %411 = arith.mulf %406, %410 : vector<64x32xf32>
    %412 = vector.broadcast %392 : vector<1x32xf32> to vector<64x32xf32>
    %413 = arith.mulf %411, %412 : vector<64x32xf32>
    %414 = vector.broadcast %393 : vector<1x32xf32> to vector<64x32xf32>
    %415 = arith.addf %413, %414 : vector<64x32xf32>
    %c0_130 = arith.constant 0 : index
    %c0_131 = arith.constant 0 : index
    %416 = vector.load %arg15[%c0_130, %c0_131] : memref<64x32xf32, #tpu.memory_space<vmem>>, vector<64x32xf32>
    tpu.vector_store %arg15[%c0_130, %c0_131], %415 {strides = array<i32>} : memref<64x32xf32, #tpu.memory_space<vmem>>, vector<64x32xf32>,
    return
  }
}

</mosaic_0001>

<bundles_post_ra>
// kernel: spacon_forward.1
= control target key start
LH: loop header
LB: loop body
LE: loop exit
PB: predicated region body
PF: predicated region fallthrough
CT: control target
= control target key end

     0   :  { %vm9365_vm0 = vcmask 261120   ;;  %v6662_v12 = vmov 35   ;;  %s6663_s26 = smov 112   ;;  %s6664_s27 = smov 94   ;;  %v6665_v16 = vmov 17   ;;  %vm9367_vm1 = vcmask 523264   ;;  %s9349_s2 = inlined_call_operand.vmem [shape: f32[32,36], index: 2, kind: input, shape index: {}]   ;;  %s9350_s0 = inlined_call_operand.vmem [shape: f32[64,32], index: 0, kind: input, shape index: {}]   ;;  %s9351_s1 = inlined_call_operand.vmem [shape: f32[64,128], index: 1, kind: input, shape index: {}]   ;;  %s9352_s4 = inlined_call_operand.vmem [shape: f32[32,36], index: 4, kind: input, shape index: {}]   ;;  %s9353_s3 = inlined_call_operand.vmem [shape: f32[2,32], index: 3, kind: input, shape index: {}]   ;;  %s9354_s6 = inlined_call_operand.vmem [shape: f32[32,20], index: 6, kind: input, shape index: {}]   ;;  %s9355_s5 = inlined_call_operand.vmem [shape: f32[2,32], index: 5, kind: input, shape index: {}]   ;;  %s9356_s8 = inlined_call_operand.vmem [shape: f32[16,18], index: 8, kind: input, shape index: {}]   ;;  %s9357_s7 = inlined_call_operand.vmem [shape: f32[2,16], index: 7, kind: input, shape index: {}]   ;;  %s9358_s14 = inlined_call_operand.vmem [shape: f32[64,16], index: 14, kind: output, shape index: {0}]   ;;  %s9359_s10 = inlined_call_operand.vmem [shape: f32[16,18], index: 10, kind: input, shape index: {}]   ;;  %s9360_s9 = inlined_call_operand.vmem [shape: f32[2,16], index: 9, kind: input, shape index: {}]   ;;  %s9361_s12 = inlined_call_operand.vmem [shape: f32[16,34], index: 12, kind: input, shape index: {}]   ;;  %s9362_s11 = inlined_call_operand.vmem [shape: f32[2,16], index: 11, kind: input, shape index: {}]   ;;  %s9363_s13 = inlined_call_operand.vmem [shape: f32[2,32], index: 13, kind: input, shape index: {}]   ;;  %s9364_s15 = inlined_call_operand.vmem [shape: f32[64,32], index: 15, kind: output, shape index: {1}]  }
   0x1   :  { %v68_v0 = vld [vmem:[%s9349_s2 + $0x18] sm:$0xff]  ;;  %v67_v1 = vld [vmem:[%s9349_s2 + $0x10] sm:$0xff]  ;;  %v66_v2 = vld [vmem:[%s9349_s2 + $0x8] sm:$0xff]  ;;  %6024 = vset.pattern.permute.xlu0 %v6662_v12  ;;  %6026 = vset.pattern.permute.xlu1 %v6662_v12  ;;  %s6667_s24 = smov 110   ;;  %s6668_s16 = smov 16  }
   0x2   :  { %107 = vmatpush.msra.mxu0 %v68_v0  ;;  %v65_v3 = vld [vmem:[%s9349_s2] sm:$0xff]  ;;  %v58_v5 = vld [vmem:[%s9350_s0 + $0x8] sm:$0xff]  ;;  %v59_v6 = vld [vmem:[%s9350_s0 + $0x10] sm:$0xff]  ;;  %6027 = vset.pattern.permute.xlu2 %v6662_v12 }
   0x3   :  { %v57_v4 = vld [vmem:[%s9350_s0] sm:$0xff]  ;;  %v60_v7 = vld [vmem:[%s9350_s0 + $0x18] sm:$0xff]  ;;  %v62_v9 = vld [vmem:[%s9350_s0 + $0x28] sm:$0xff] }
   0x4   :  { %108 = vmatpush.msra.mxu0 %v67_v1  ;;  %v61_v8 = vld [vmem:[%s9350_s0 + $0x20] sm:$0xff]  ;;  %v63_v10 = vld [vmem:[%s9350_s0 + $0x30] sm:$0xff]  ;;  %v64_v11 = vld [vmem:[%s9350_s0 + $0x38] sm:$0xff]  ;;  %s6666_s0 = smov 64  }
   0x6   :  { %109 = vmatpush.msra.mxu0 %v66_v2 }
   0x8   :  { %110 = vmatpush.msra.mxu0 %v65_v3 }
   0x9   :  { %5838 = vmatmul.msk.f32.vlgmr.msra.gmra.mxu0 %vm9365_vm0, %v57_v4 }
  0x11   :  { %5839 = vmatmul.msk.f32.gmra.mxu0 %vm9365_vm0, %v58_v5 }
  0x19   :  { %5840 = vmatmul.msk.f32.gmra.mxu0 %vm9365_vm0, %v59_v6 }
  0x21   :  { %5841 = vmatmul.msk.f32.gmra.mxu0 %vm9365_vm0, %v60_v7 }
  0x29   :  { %5842 = vmatmul.msk.f32.gmra.mxu0 %vm9365_vm0, %v61_v8 }
  0x31   :  { %5843 = vmatmul.msk.f32.gmra.mxu0 %vm9365_vm0, %v62_v9 }
  0x39   :  { %5844 = vmatmul.msk.f32.gmra.mxu0 %vm9365_vm0, %v63_v10 }
  0x41   :  { %5845 = vmatmul.msk.f32.gmra.mxu0 %vm9365_vm0, %v64_v11 }
  0x86   :  { %v6804_v13 = vpop.f32.mrf.mxu0 }
  0x87   :  { %144 = vrot.lane.b32.xlu2 %v6804_v13, %s6663_s26  ;;  %241 = vrot.lane.b32.xlu0 %v6804_v13, %s6664_s27 }
  0x8e   :  { %v6810_v14 = vpop.f32.mrf.mxu0 }
  0x8f   :  { %298 = vperm.xlu0 %6024, %v6804_v13   ;;  %146 = vrot.lane.b32.xlu1 %v6810_v14, %s6663_s26 }
  0x96   :  { %v6815_v15 = vpop.f32.mrf.mxu0 }
  0x97   :  { %6025 = vset.pattern.permute.xlu0 %v6665_v16  ;;  %302 = vperm.xlu1 %6026, %v6810_v14  }
  0x98   :  { %148 = vrot.lane.b32.xlu2 %v6815_v15, %s6663_s26  ;;  %201 = vperm.xlu0 %6025, %v6804_v13  }
  0x9e   :  { %v6822_v17 = vpop.f32.mrf.mxu0 }
  0x9f   :  { %245 = vrot.lane.b32.xlu1 %v6815_v15, %s6664_s27 }
  0xa0   :  { %306 = vperm.xlu2 %6027, %v6815_v15   ;;  %243 = vrot.lane.b32.xlu0 %v6810_v14, %s6664_s27 }
  0xa1   :  { %6028 = vset.pattern.permute.xlu1 %v6665_v16 }
  0xa6   :  { %v6830_v18 = vpop.f32.mrf.mxu0 }
  0xa7   :  { %209 = vperm.xlu1 %6028, %v6815_v15  }
  0xa8   :  { %205 = vperm.xlu0 %6025, %v6810_v14   ;;  %150 = vrot.lane.b32.xlu2 %v6822_v17, %s6663_s26 }
  0xae   :  { %v6836_v19 = vpop.f32.mrf.mxu0 }
  0xaf   :  { %247 = vrot.lane.b32.xlu1 %v6822_v17, %s6664_s27 }
  0xb0   :  { %6029 = vset.pattern.permute.xlu1 %v6662_v12  ;;  %152 = vrot.lane.b32.xlu0 %v6830_v18, %s6663_s26 }
  0xb1   :  { %249 = vrot.lane.b32.xlu2 %v6830_v18, %s6664_s27 }
  0xb6   :  { %v6845_v20 = vpop.f32.mrf.mxu0 }
  0xb7   :  { %314 = vperm.xlu1 %6029, %v6830_v18  }
  0xb8   :  { %253 = vrot.lane.b32.xlu0 %v6845_v20, %s6664_s27 }
  0xb9   :  { %251 = vrot.lane.b32.xlu2 %v6836_v19, %s6664_s27 }
  0xbe   :  { %v6852_v21 = vpop.f32.mrf.mxu0 }
  0xbf   :  { %154 = vrot.lane.b32.xlu1 %v6836_v19, %s6663_s26  ;;  %931 = vmatpush.msra.mxu1 %v6852_v21 }
  0xc0   :  { %5990 = vmatpush.msra.mxu2 %v6852_v21  ;;  %156 = vrot.lane.b32.xlu0 %v6845_v20, %s6663_s26 }
  0xc1   :  { %932 = vmatpush.msra.mxu1 %v6845_v20 }
  0xc2   :  { %5991 = vmatpush.msra.mxu2 %v6845_v20 }
  0xc3   :  { %933 = vmatpush.msra.mxu1 %v6836_v19 }
  0xc4   :  { %5992 = vmatpush.msra.mxu2 %v6836_v19 }
  0xc5   :  { %934 = vmatpush.msra.mxu1 %v6830_v18 }
  0xc6   :  { %5993 = vmatpush.msra.mxu2 %v6830_v18 }
  0xc7   :  { %318 = vperm.xlu1 %6029, %v6836_v19   ;;  %935 = vmatpush.msra.mxu1 %v6822_v17 }
  0xc8   :  { %5994 = vmatpush.msra.mxu2 %v6822_v17 }
  0xc9   :  { %936 = vmatpush.msra.mxu1 %v6815_v15 }
  0xca   :  { %5995 = vmatpush.msra.mxu2 %v6815_v15 }
  0xcb   :  { %937 = vmatpush.msra.mxu1 %v6810_v14 }
  0xcc   :  { %5996 = vmatpush.msra.mxu2 %v6810_v14 }
  0xcd   :  { %938 = vmatpush.msra.mxu1 %v6804_v13 }
  0xce   :  { %5997 = vmatpush.msra.mxu2 %v6804_v13 }
  0xcf   :  { %322 = vperm.xlu1 %6029, %v6845_v20  }
  0xd7   :  { %255 = vrot.lane.b32.xlu1 %v6852_v21, %s6664_s27 }
  0xdf   :  { %158 = vrot.lane.b32.xlu1 %v6852_v21, %s6663_s26 }
  0xe1   :  { %v145_v25 = vpop.permute.xlu2 %144 }
  0xf2   :  { %v149_v28 = vpop.permute.xlu2 %148 }
  0xf9   :  { %v242_v22 = vpop.permute.xlu0 %241 }
  0xfa   :  { %265 = vxpose.xlu2.b32.start [1/8] (short) (narrow) %v242_v22, 8  ;;  %v307_v31 = vpop.permute.xlu2 %306 }
 0x101   :  { %v299_v23 = vpop.permute.xlu0 %298  ;;  %v147_v24 = vpop.permute.xlu1 %146 }
 0x102   :  { %v151_v33 = vpop.permute.xlu2 %150 }
 0x109   :  { %v303_v26 = vpop.permute.xlu1 %302 }
 0x10a   :  { %v6880_v27 = vpop.permute.xlu0 %201 }
 0x10b   :  { %v250_v35 = vpop.permute.xlu2 %249 }
 0x111   :  { %v246_v29 = vpop.permute.xlu1 %245 }
 0x112   :  { %v244_v30 = vpop.permute.xlu0 %243 }
 0x113   :  { %266 = vxpose.xlu2.b32.cont [2/8] (short) (narrow) %v244_v30, 8  ;;  %v252_v39 = vpop.permute.xlu2 %251 }
 0x119   :  { %v6882_v32 = vpop.permute.xlu1 %209 }
 0x11a   :  { %v6884_v37 = vpop.permute.xlu0 %205 }
 0x11b   :  { %267 = vxpose.xlu2.b32.cont [3/8] (short) (narrow) %v246_v29, 8 }
 0x121   :  { %v248_v34 = vpop.permute.xlu1 %247 }
 0x122   :  { %v153_v40 = vpop.permute.xlu0 %152 }
 0x123   :  { %268 = vxpose.xlu2.b32.cont [4/8] (short) (narrow) %v248_v34, 8 }
 0x129   :  { %v315_v36 = vpop.permute.xlu1 %314 }
 0x12a   :  { %v254_v42 = vpop.permute.xlu0 %253 }
 0x12b   :  { %269 = vxpose.xlu2.b32.cont [5/8] (short) (narrow) %v250_v35, 8 }
 0x131   :  { %v155_v38 = vpop.permute.xlu1 %154 }
 0x132   :  { %v157_v51 = vpop.permute.xlu0 %156 }
 0x133   :  { %270 = vxpose.xlu2.b32.cont [6/8] (short) (narrow) %v252_v39, 8 }
 0x139   :  { %v319_v41 = vpop.permute.xlu1 %318 }
 0x13b   :  { %271 = vxpose.xlu2.b32.cont [7/8] (short) (narrow) %v254_v42, 8 }
 0x141   :  { %v323_v43 = vpop.permute.xlu1 %322 }
 0x149   :  { %v256_v44 = vpop.permute.xlu1 %255 }
 0x14a   :  { %272 = vxpose.xlu2.b32.end [8/8] (short) (narrow) %v256_v44, 8 }
 0x151   :  { %v159_v53 = vpop.permute.xlu1 %158 }
 0x1ab   :  { %v281_v45 = vpop.trf.xlu2 }
 0x1ac   :  { %v329_v46 = vperm.slane %v281_v45, 0 }
 0x1ae   :  { %v331_v47 = vadd.f32 %v329_v46, %v303_v26  ;;  %v330_v48 = vadd.f32 %v329_v46, %v299_v23  ;;  %v334_v49 = vadd.f32 %v329_v46, %v315_v36  ;;  %v332_v50 = vadd.f32 %v329_v46, %v307_v31 }
 0x1af   :  { %v335_v61 = vadd.f32 %v329_v46, %v319_v41  ;;  %v336_v62 = vadd.f32 %v329_v46, %v323_v43 }
 0x1b0   :  { %348 = vrot.lane.b32.xlu0 %v331_v47, %s6666_s0  ;;  %346 = vrot.lane.b32.xlu1 %v330_v48, %s6666_s0 }
 0x1b3   :  { %354 = vrot.lane.b32.xlu2 %v334_v49, %s6666_s0 }
 0x1b8   :  { %213 = vperm.xlu0 %6025, %v6822_v17   ;;  %350 = vrot.lane.b32.xlu1 %v332_v50, %s6666_s0 }
 0x1c0   :  { %217 = vperm.xlu0 %6025, %v6830_v18  }
 0x1c8   :  { %221 = vperm.xlu0 %6025, %v6836_v19  }
 0x1d0   :  { %225 = vperm.xlu0 %6025, %v6845_v20  }
 0x1d8   :  { %229 = vperm.xlu0 %6025, %v6852_v21  }
 0x1e0   :  { %6030 = vset.pattern.permute.xlu0 %v6662_v12 }
 0x1e1   :  { %310 = vperm.xlu0 %6030, %v6822_v17  }
 0x1e9   :  { %326 = vperm.xlu0 %6030, %v6852_v21  }
 0x1ed   :  { %168 = vxpose.xlu1.b32.start [1/8] (short) (narrow) %v145_v25, 8 }
 0x1f5   :  { %169 = vxpose.xlu1.b32.cont [2/8] (short) (narrow) %v147_v24, 8 }
 0x1fd   :  { %170 = vxpose.xlu1.b32.cont [3/8] (short) (narrow) %v149_v28, 8 }
 0x205   :  { %171 = vxpose.xlu1.b32.cont [4/8] (short) (narrow) %v151_v33, 8 }
 0x20d   :  { %172 = vxpose.xlu1.b32.cont [5/8] (short) (narrow) %v153_v40, 8  ;;  %v355_v9 = vpop.permute.xlu2 %354 }
 0x215   :  { %173 = vxpose.xlu1.b32.cont [6/8] (short) (narrow) %v155_v38, 8 }
 0x21d   :  { %174 = vxpose.xlu1.b32.cont [7/8] (short) (narrow) %v157_v51, 8 }
 0x222   :  { %v349_v52 = vpop.permute.xlu0 %348  ;;  %v347_v1 = vpop.permute.xlu1 %346 }
 0x225   :  { %175 = vxpose.xlu1.b32.end [8/8] (short) (narrow) %v159_v53, 8 }
 0x22a   :  { %v6898_v54 = vpop.permute.xlu0 %213  ;;  %v351_v2 = vpop.permute.xlu1 %350 }
 0x232   :  { %v218_v55 = vpop.permute.xlu0 %217 }
 0x23a   :  { %v6900_v56 = vpop.permute.xlu0 %221 }
 0x242   :  { %v6902_v57 = vpop.permute.xlu0 %225 }
 0x24a   :  { %v6904_v58 = vpop.permute.xlu0 %229 }
 0x253   :  { %v311_v59 = vpop.permute.xlu0 %310 }
 0x254   :  { %v333_v60 = vadd.f32 %v329_v46, %v311_v59 }
 0x256   :  { %352 = vrot.lane.b32.xlu0 %v333_v60, %s6666_s0 }
 0x25b   :  { %v327_v63 = vpop.permute.xlu0 %326 }
 0x25c   :  { %v337_v0 = vadd.f32 %v329_v46, %v327_v63 }
 0x25e   :  { %356 = vrot.lane.b32.xlu0 %v335_v61, %s6666_s0 }
 0x266   :  { %358 = vrot.lane.b32.xlu0 %v336_v62, %s6666_s0 }
 0x26e   :  { %360 = vrot.lane.b32.xlu0 %v337_v0, %s6666_s0 }
 0x291   :  { %v184_v3 = vpop.trf.xlu1 }
 0x292   :  { %v6910_v4 = vperm.slane %v184_v3, 0 }
 0x294   :  { %v233_v5 = vadd.f32 %v6910_v4, %v6880_v27  ;;  %v234_v6 = vadd.f32 %v6910_v4, %v6884_v37  ;;  %v235_v7 = vadd.f32 %v6910_v4, %v6882_v32  ;;  %v237_v8 = vadd.f32 %v6910_v4, %v218_v55 }
 0x296   :  { %v371_v10 = vsel %vm9367_vm1, %v233_v5, %v347_v1  ;;  %v372_v11 = vsel %vm9367_vm1, %v234_v6, %v349_v52  ;;  %v373_v22 = vsel %vm9367_vm1, %v235_v7, %v351_v2  ;;  %v375_v23 = vsel %vm9367_vm1, %v237_v8, %v355_v9 }
 0x297   :  { %v379_v24 = vsub.f32 0.0, %v371_v10  ;;  %v380_v25 = vsub.f32 0.0, %v372_v11  ;;  %v381_v26 = vsub.f32 0.0, %v373_v22  ;;  %v383_v27 = vsub.f32 0.0, %v375_v23  ;;  %v49_v23 = vld [vmem:[%s9351_s1] sm:$0xff] }
 0x299   :  { %v387_v28 = vmul.f32 1.442695, %v379_v24  ;;  %v389_v29 = vmul.f32 1.442695, %v380_v25  ;;  %v391_v30 = vmul.f32 1.442695, %v381_v26 }
 0x29a   :  { %v395_v31 = vmul.f32 1.442695, %v383_v27 }
 0x29b   :  { %6112 = vpow2.f32 %v387_v28 }
 0x29c   :  { %6114 = vpow2.f32 %v389_v29 }
 0x29d   :  { %6116 = vpow2.f32 %v391_v30 }
 0x29e   :  { %6118 = vpow2.f32 %v395_v31 }
 0x2a1   :  { %v6113_v32 = vpop.eup %6112 }
 0x2a2   :  { %v6115_v33 = vpop.eup %6114  ;;  %v403_v34 = vadd.f32 1.0, %v6113_v32 }
 0x2a3   :  { %v6117_v35 = vpop.eup %6116  ;;  %v404_v36 = vadd.f32 1.0, %v6115_v33 }
 0x2a4   :  { %v6119_v37 = vpop.eup %6118  ;;  %6120 = vrcp.f32 %v403_v34  ;;  %v405_v38 = vadd.f32 1.0, %v6117_v35  ;;  %v422_v46 = vand.u32 2147483648, %v403_v34  ;;  %v420_v49 = vand.u32 2147483647, %v403_v34  ;;  %v50_v35 = vld [vmem:[%s9351_s1 + $0x8] sm:$0xff] }
 0x2a5   :  { %6122 = vrcp.f32 %v404_v36  ;;  %v6923_v39 = vadd.f32 1.0, %v6119_v37  ;;  %v437_v53 = vand.u32 2147483648, %v404_v36  ;;  %vm416_vm4 = vweird.f32 %v403_v34 }
 0x2a6   :  { %6124 = vrcp.f32 %v405_v38  ;;  %v435_v59 = vand.u32 2147483647, %v404_v36  ;;  %v423_v61 = vor.u32 1.1754944e-38, %v422_v46  ;;  %vm431_vm6 = vweird.f32 %v404_v36  ;;  %v51_v46 = vld [vmem:[%s9351_s1 + $0x10] sm:$0xff] }
 0x2a7   :  { %6126 = vrcp.f32 %v6923_v39  ;;  %vm421_vm7 = vcmp.eq.f32.partialorder %v420_v49, 8.507059e+37  ;;  %v438_v5 = vor.u32 1.1754944e-38, %v437_v53  ;;  %v452_v10 = vand.u32 2147483648, %v405_v38  ;;  %v53_v53 = vld [vmem:[%s9351_s1 + $0x20] sm:$0xff] }
 0x2a8   :  { %vm436_vm9 = vcmp.eq.f32.partialorder %v435_v59, 8.507059e+37  ;;  %vm446_vm11 = vweird.f32 %v405_v38  ;;  %v450_v22 = vand.u32 2147483647, %v405_v38  ;;  %v482_v31 = vand.u32 2147483648, %v6923_v39 }
 0x2a9   :  { %v453_v26 = vor.u32 1.1754944e-38, %v452_v10  ;;  %vm476_vm15 = vweird.f32 %v6923_v39  ;;  %v480_v33 = vand.u32 2147483647, %v6923_v39 }
 0x2aa   :  { %v6121_v40 = vpop.eup %6120  ;;  %vm451_vm13 = vcmp.eq.f32.partialorder %v450_v22, 8.507059e+37  ;;  %v483_v37 = vor.u32 1.1754944e-38, %v482_v31 }
 0x2ab   :  { %v6123_v41 = vpop.eup %6122  ;;  %v412_v42 = vmul.f32 %v6121_v40, %v403_v34  ;;  %vm417_vm2 = vweird.f32 %v6121_v40 }
 0x2ac   :  { %v427_v43 = vmul.f32 %v6123_v41, %v404_v36  ;;  %v6125_v45 = vpop.eup %6124  ;;  %vm432_vm3 = vweird.f32 %v6123_v41  ;;  %vm418_vm5 = vmor %vm416_vm4, %vm417_vm2 }
 0x2ad   :  { %v413_v44 = vsub.f32 1.0, %v412_v42  ;;  %v442_v50 = vmul.f32 %v6125_v45, %v405_v38  ;;  %v6127_v51 = vpop.eup %6126  ;;  %vm433_vm8 = vmor %vm431_vm6, %vm432_vm3  ;;  %vm447_vm10 = vweird.f32 %v6125_v45  ;;  %vm481_vm3 = vcmp.eq.f32.partialorder %v480_v33, 8.507059e+37 }
 0x2ae   :  { %v428_v47 = vsub.f32 1.0, %v427_v43  ;;  %v472_v1 = vmul.f32 %v6127_v51, %v6923_v39  ;;  %vm448_vm12 = vmor %vm446_vm11, %vm447_vm10  ;;  %vm477_vm14 = vweird.f32 %v6127_v51 }
 0x2af   :  { %v414_v48 = vmul.f32 %v6121_v40, %v413_v44  ;;  %v443_v60 = vsub.f32 1.0, %v442_v50  ;;  %vm478_vm2 = vmor %vm476_vm15, %vm477_vm14 }
 0x2b0   :  { %v429_v52 = vmul.f32 %v6123_v41, %v428_v47  ;;  %v473_v9 = vsub.f32 1.0, %v472_v1 }
 0x2b1   :  { %v415_v55 = vadd.f32 %v6121_v40, %v414_v48  ;;  %v444_v0 = vmul.f32 %v6125_v45, %v443_v60 }
 0x2b2   :  { %v430_v62 = vadd.f32 %v6123_v41, %v429_v52  ;;  %v474_v25 = vmul.f32 %v6127_v51, %v473_v9 }
 0x2b3   :  { %v419_v63 = vsel %vm418_vm5, %v6121_v40, %v415_v55  ;;  %v445_v8 = vadd.f32 %v6125_v45, %v444_v0 }
 0x2b4   :  { %v424_v2 = vsel %vm421_vm7, %v423_v61, %v419_v63  ;;  %v434_v3 = vsel %vm433_vm8, %v6123_v41, %v430_v62  ;;  %v475_v30 = vadd.f32 %v6127_v51, %v474_v25  ;;  %v236_v41 = vadd.f32 %v6910_v4, %v6898_v54 }
 0x2b5   :  { %v531_v6 = vmul.f32 1.442695, %v424_v2  ;;  %v439_v7 = vsel %vm436_vm9, %v438_v5, %v434_v3  ;;  %v449_v24 = vsel %vm448_vm12, %v6125_v45, %v445_v8  ;;  %v238_v54 = vadd.f32 %v6910_v4, %v6900_v56 }
 0x2b6   :  { %v533_v11 = vmul.f32 1.442695, %v439_v7  ;;  %v454_v29 = vsel %vm451_vm13, %v453_v26, %v449_v24  ;;  %v479_v36 = vsel %vm478_vm2, %v6127_v51, %v475_v30  ;;  %v239_v56 = vadd.f32 %v6910_v4, %v6902_v57 }
 0x2b7   :  { %6128 = vpow2.f32 %v531_v6  ;;  %v535_v32 = vmul.f32 1.442695, %v454_v29  ;;  %v484_v40 = vsel %vm481_vm3, %v483_v37, %v479_v36  ;;  %v240_v7 = vadd.f32 %v6910_v4, %v6904_v58 }
 0x2b8   :  { %6130 = vpow2.f32 %v533_v11  ;;  %v539_v43 = vmul.f32 1.442695, %v484_v40 }
 0x2b9   :  { %6132 = vpow2.f32 %v535_v32 }
 0x2ba   :  { %6134 = vpow2.f32 %v539_v43 }
 0x2bd   :  { %v6129_v27 = vpop.eup %6128 }
 0x2be   :  { %v6930_v28 = vmul.f32 %v6129_v27, %v49_v23  ;;  %v6131_v34 = vpop.eup %6130 }
 0x2bf   :  { %v6940_v38 = vmul.f32 %v6131_v34, %v50_v35  ;;  %v6133_v45 = vpop.eup %6132 }
 0x2c0   :  { %715 = vrot.lane.b32.xlu0 %v6930_v28, %s6666_s0  ;;  %v6950_v48 = vmul.f32 %v6133_v45, %v51_v46  ;;  %v6135_v52 = vpop.eup %6134  ;;  %v52_v45 = vld [vmem:[%s9351_s1 + $0x18] sm:$0xff] }
 0x2c1   :  { %v6960_v61 = vmul.f32 %v6135_v52, %v53_v53 }
 0x2c8   :  { %v353_v42 = vpop.permute.xlu0 %352  ;;  %717 = vrot.lane.b32.xlu0 %v6940_v38, %s6666_s0 }
 0x2c9   :  { %v374_v39 = vsel %vm9367_vm1, %v236_v41, %v353_v42 }
 0x2ca   :  { %v382_v44 = vsub.f32 0.0, %v374_v39 }
 0x2cc   :  { %v393_v47 = vmul.f32 1.442695, %v382_v44 }
 0x2ce   :  { %6136 = vpow2.f32 %v393_v47 }
 0x2d0   :  { %v357_v49 = vpop.permute.xlu0 %356  ;;  %719 = vrot.lane.b32.xlu0 %v6950_v48, %s6666_s0 }
 0x2d1   :  { %v376_v50 = vsel %vm9367_vm1, %v238_v54, %v357_v49 }
 0x2d2   :  { %v384_v51 = vsub.f32 0.0, %v376_v50 }
 0x2d4   :  { %v6137_v55 = vpop.eup %6136  ;;  %v397_v59 = vmul.f32 1.442695, %v384_v51 }
 0x2d5   :  { %v406_v60 = vadd.f32 1.0, %v6137_v55 }
 0x2d6   :  { %6138 = vpow2.f32 %v397_v59 }
 0x2d7   :  { %6140 = vrcp.f32 %v406_v60  ;;  %v467_v11 = vand.u32 2147483648, %v406_v60  ;;  %v465_v23 = vand.u32 2147483647, %v406_v60  ;;  %vm461_vm5 = vweird.f32 %v406_v60 }
 0x2d8   :  { %v359_v62 = vpop.permute.xlu0 %358  ;;  %723 = vrot.lane.b32.xlu0 %v6960_v61, %s6666_s0 }
 0x2d9   :  { %v377_v63 = vsel %vm9367_vm1, %v239_v56, %v359_v62  ;;  %v468_v30 = vor.u32 1.1754944e-38, %v467_v11  ;;  %vm466_vm7 = vcmp.eq.f32.partialorder %v465_v23, 8.507059e+37  ;;  %v55_v11 = vld [vmem:[%s9351_s1 + $0x30] sm:$0xff] }
 0x2da   :  { %v385_v0 = vsub.f32 0.0, %v377_v63  ;;  %v54_v63 = vld [vmem:[%s9351_s1 + $0x28] sm:$0xff] }
 0x2dc   :  { %v6139_v1 = vpop.eup %6138  ;;  %v399_v2 = vmul.f32 1.442695, %v385_v0 }
 0x2dd   :  { %v6141_v3 = vpop.eup %6140  ;;  %v408_v5 = vadd.f32 1.0, %v6139_v1 }
 0x2de   :  { %v457_v6 = vmul.f32 %v6141_v3, %v406_v60  ;;  %6142 = vpow2.f32 %v399_v2  ;;  %vm462_vm4 = vweird.f32 %v6141_v3 }
 0x2df   :  { %6144 = vrcp.f32 %v408_v5  ;;  %vm463_vm6 = vmor %vm461_vm5, %vm462_vm4  ;;  %v497_v35 = vand.u32 2147483648, %v408_v5  ;;  %v495_v36 = vand.u32 2147483647, %v408_v5  ;;  %vm491_vm9 = vweird.f32 %v408_v5 }
 0x2e0   :  { %v458_v8 = vsub.f32 1.0, %v457_v6  ;;  %v361_v9 = vpop.permute.xlu0 %360 }
 0x2e1   :  { %v378_v57 = vsel %vm9367_vm1, %v240_v7, %v361_v9  ;;  %v498_v39 = vor.u32 1.1754944e-38, %v497_v35  ;;  %vm496_vm11 = vcmp.eq.f32.partialorder %v495_v36, 8.507059e+37  ;;  %v6041_v7 = vpack.i.bf16 %v6815_v15, %v6822_v17 }
 0x2e2   :  { %v459_v10 = vmul.f32 %v6141_v3, %v458_v8  ;;  %v386_v22 = vsub.f32 0.0, %v378_v57  ;;  %v6031_v35 = vpack.i.bf16 %v6845_v20, %v6852_v21 }
 0x2e4   :  { %v6143_v24 = vpop.eup %6142  ;;  %v460_v25 = vadd.f32 %v6141_v3, %v459_v10  ;;  %v401_v26 = vmul.f32 1.442695, %v386_v22 }
 0x2e5   :  { %v6145_v27 = vpop.eup %6144  ;;  %v409_v29 = vadd.f32 1.0, %v6143_v24 }
 0x2e6   :  { %v487_v31 = vmul.f32 %v6145_v27, %v408_v5  ;;  %6146 = vpow2.f32 %v401_v26  ;;  %v464_v58 = vsel %vm463_vm6, %v6141_v3, %v460_v25  ;;  %vm492_vm8 = vweird.f32 %v6145_v27  ;;  %v56_v25 = vld [vmem:[%s9351_s1 + $0x38] sm:$0xff] }
 0x2e7   :  { %6148 = vrcp.f32 %v409_v29  ;;  %v469_v32 = vsel %vm466_vm7, %v468_v30, %v464_v58  ;;  %vm493_vm10 = vmor %vm491_vm9, %vm492_vm8  ;;  %v512_v49 = vand.u32 2147483648, %v409_v29  ;;  %v510_v52 = vand.u32 2147483647, %v409_v29 }
 0x2e8   :  { %v488_v4 = vsub.f32 1.0, %v487_v31  ;;  %v537_v33 = vmul.f32 1.442695, %v469_v32  ;;  %vm506_vm13 = vweird.f32 %v409_v29 }
 0x2e9   :  { %v513_v60 = vor.u32 1.1754944e-38, %v512_v49  ;;  %vm511_vm15 = vcmp.eq.f32.partialorder %v510_v52, 8.507059e+37 }
 0x2ea   :  { %v489_v34 = vmul.f32 %v6145_v27, %v488_v4  ;;  %6150 = vpow2.f32 %v537_v33  ;;  %v6036_v33 = vpack.i.bf16 %v6830_v18, %v6836_v19 }
 0x2ec   :  { %v6147_v37 = vpop.eup %6146  ;;  %v490_v40 = vadd.f32 %v6145_v27, %v489_v34  ;;  %v6046_v34 = vpack.i.bf16 %v6804_v13, %v6810_v14 }
 0x2ed   :  { %v6149_v41 = vpop.eup %6148  ;;  %v410_v42 = vadd.f32 1.0, %v6147_v37 }
 0x2ee   :  { %v502_v43 = vmul.f32 %v6149_v41, %v409_v29  ;;  %v494_v44 = vsel %vm493_vm10, %v6145_v27, %v490_v40  ;;  %vm507_vm12 = vweird.f32 %v6149_v41 }
 0x2ef   :  { %6152 = vrcp.f32 %v410_v42  ;;  %v499_v47 = vsel %vm496_vm11, %v498_v39, %v494_v44  ;;  %vm508_vm14 = vmor %vm506_vm13, %vm507_vm12  ;;  %v525_v5 = vand.u32 2147483647, %v410_v42  ;;  %v527_v6 = vand.u32 2147483648, %v410_v42 }
 0x2f0   :  { %v503_v46 = vsub.f32 1.0, %v502_v43  ;;  %v6151_v54 = vpop.eup %6150  ;;  %v541_v50 = vmul.f32 1.442695, %v499_v47  ;;  %vm521_vm3 = vweird.f32 %v410_v42 }
 0x2f1   :  { %v6973_v53 = vmul.f32 %v6151_v54, %v52_v45  ;;  %v528_v10 = vor.u32 1.1754944e-38, %v527_v6  ;;  %vm526_vm5 = vcmp.eq.f32.partialorder %v525_v5, 8.507059e+37 }
 0x2f2   :  { %v504_v51 = vmul.f32 %v6149_v41, %v503_v46  ;;  %6154 = vpow2.f32 %v541_v50 }
 0x2f3   :  { %721 = vrot.lane.b32.xlu1 %v6973_v53, %s6666_s0 }
 0x2f4   :  { %v505_v55 = vadd.f32 %v6149_v41, %v504_v51 }
 0x2f5   :  { %v6153_v59 = vpop.eup %6152 }
 0x2f6   :  { %v517_v56 = vmul.f32 %v6153_v59, %v410_v42  ;;  %v509_v62 = vsel %vm508_vm14, %v6149_v41, %v505_v55  ;;  %vm522_vm2 = vweird.f32 %v6153_v59 }
 0x2f7   :  { %v514_v0 = vsel %vm511_vm15, %v513_v60, %v509_v62  ;;  %vm523_vm4 = vmor %vm521_vm3, %vm522_vm2 }
 0x2f8   :  { %v518_v1 = vsub.f32 1.0, %v517_v56  ;;  %v543_v2 = vmul.f32 1.442695, %v514_v0  ;;  %v6155_v3 = vpop.eup %6154 }
 0x2f9   :  { %v6982_v9 = vmul.f32 %v6155_v3, %v54_v63 }
 0x2fa   :  { %v519_v8 = vmul.f32 %v6153_v59, %v518_v1  ;;  %6156 = vpow2.f32 %v543_v2 }
 0x2fb   :  { %6042 = vrot.lane.b32.xlu1 %v6041_v7, %s6667_s24  ;;  %725 = vrot.lane.b32.xlu0 %v6982_v9, %s6666_s0 }
 0x2fc   :  { %v520_v57 = vadd.f32 %v6153_v59, %v519_v8 }
 0x2fe   :  { %v524_v15 = vsel %vm523_vm4, %v6153_v59, %v520_v57 }
 0x2ff   :  { %v529_v17 = vsel %vm526_vm5, %v528_v10, %v524_v15 }
 0x300   :  { %v6157_v22 = vpop.eup %6156  ;;  %v545_v23 = vmul.f32 1.442695, %v529_v17 }
 0x301   :  { %v6990_v24 = vmul.f32 %v6157_v22, %v55_v11 }
 0x302   :  { %6158 = vpow2.f32 %v545_v23 }
 0x303   :  { %727 = vrot.lane.b32.xlu2 %v6990_v24, %s6666_s0  ;;  %v573_v29 = vsel %vm9367_vm1, %v6990_v24, 0.0 }
 0x308   :  { %v6159_v26 = vpop.eup %6158 }
 0x309   :  { %v6997_v27 = vmul.f32 %v6159_v26, %v56_v25 }
 0x30b   :  { %729 = vrot.lane.b32.xlu0 %v6997_v27, %s6666_s0  ;;  %v576_v31 = vsel %vm9367_vm1, %v6997_v27, 0.0 }
 0x32c   :  { %574 = vadd.xlane.f32.xlu2 %v573_v29 }
 0x332   :  { %v716_v30 = vpop.permute.xlu0 %715 }
 0x333   :  { %v739_v58 = vsel %vm9367_vm1, %v716_v30, 0.0 }
 0x334   :  { %577 = vadd.xlane.f32.xlu2 %v576_v31 }
 0x335   :  { %740 = vadd.xlane.f32.xlu0 %v739_v58 }
 0x33a   :  { %v718_v4 = vpop.permute.xlu0 %717 }
 0x33b   :  { %v742_v32 = vsel %vm9367_vm1, %v718_v4, 0.0 }
 0x33c   :  { %743 = vadd.xlane.f32.xlu2 %v742_v32 }
 0x342   :  { %v720_v40 = vpop.permute.xlu0 %719 }
 0x343   :  { %v745_v18 = vsel %vm9367_vm1, %v720_v40, 0.0 }
 0x349   :  { %6037 = vrot.lane.b32.xlu0 %v6036_v33, %s6667_s24 }
 0x34a   :  { %v724_v41 = vpop.permute.xlu0 %723 }
 0x34b   :  { %v751_v19 = vsel %vm9367_vm1, %v724_v41, 0.0 }
 0x351   :  { %6047 = vrot.lane.b32.xlu0 %v6046_v34, %s6667_s24 }
 0x354   :  { %6032 = vrot.lane.b32.xlu2 %v6031_v35, %s6667_s24 }
 0x35d   :  { %v728_v13 = vpop.permute.xlu2 %727 }
 0x35e   :  { %v757_v42 = vsel %vm9367_vm1, %v728_v13, 0.0 }
 0x365   :  { %v722_v36 = vpop.permute.xlu1 %721 }
 0x366   :  { %v748_v37 = vsel %vm9367_vm1, %v722_v36, 0.0 }
 0x367   :  { %749 = vadd.xlane.f32.xlu1 %v748_v37 }
 0x36d   :  { %v726_v14 = vpop.permute.xlu0 %725 }
 0x36e   :  { %v754_v20 = vsel %vm9367_vm1, %v726_v14, 0.0 }
 0x37b   :  { %746 = vadd.xlane.f32.xlu0 %v745_v18 }
 0x37d   :  { %752 = vadd.xlane.f32.xlu2 %v751_v19  ;;  %v730_v21 = vpop.permute.xlu0 %729 }
 0x37e   :  { %v760_v39 = vsel %vm9367_vm1, %v730_v21, 0.0 }
 0x383   :  { %758 = vadd.xlane.f32.xlu0 %v757_v42  ;;  %v6043_v42 = vpop.permute.xlu1 %6042 }
 0x385   :  { %755 = vadd.xlane.f32.xlu2 %v754_v20 }
 0x38d   :  { %761 = vadd.xlane.f32.xlu2 %v760_v39 }
 0x39f   :  { %v575_v43 = vpop.xlane.xlu2 %574 }
 0x3a0   :  { %v585_v44 = vadd.f32 1e-16, %v575_v43 }
 0x3a2   :  { %6160 = vrcp.f32 %v585_v44  ;;  %v688_v52 = vand.u32 2147483648, %v585_v44  ;;  %v686_v59 = vand.u32 2147483647, %v585_v44  ;;  %vm682_vm7 = vweird.f32 %v585_v44 }
 0x3a4   :  { %v689_v0 = vor.u32 1.1754944e-38, %v688_v52  ;;  %vm687_vm9 = vcmp.eq.f32.partialorder %v686_v59, 8.507059e+37 }
 0x3a7   :  { %v578_v45 = vpop.xlane.xlu2 %577 }
 0x3a8   :  { %v6161_v46 = vpop.eup %6160  ;;  %v586_v47 = vadd.f32 1e-16, %v578_v45  ;;  %v741_v54 = vpop.xlane.xlu0 %740 }
 0x3a9   :  { %v678_v49 = vmul.f32 %v6161_v46, %v585_v44  ;;  %v763_v50 = vadd.f32 1e-16, %v741_v54  ;;  %vm683_vm6 = vweird.f32 %v6161_v46  ;;  %v6044_v44 = vunpack.i.l.bf16 %v6043_v42 }
 0x3aa   :  { %6162 = vrcp.f32 %v586_v47  ;;  %vm684_vm8 = vmor %vm682_vm7, %vm683_vm6  ;;  %v703_v10 = vand.u32 2147483648, %v586_v47  ;;  %v701_v15 = vand.u32 2147483647, %v586_v47  ;;  %vm697_vm12 = vweird.f32 %v586_v47 }
 0x3ab   :  { %v679_v51 = vsub.f32 1.0, %v678_v49  ;;  %6164 = vrcp.f32 %v763_v50  ;;  %v782_v17 = vand.u32 2147483648, %v763_v50  ;;  %v780_v23 = vand.u32 2147483647, %v763_v50 }
 0x3ac   :  { %v704_v31 = vor.u32 1.1754944e-38, %v703_v10  ;;  %vm776_vm14 = vweird.f32 %v763_v50  ;;  %vm702_vm15 = vcmp.eq.f32.partialorder %v701_v15, 8.507059e+37 }
 0x3ad   :  { %v680_v55 = vmul.f32 %v6161_v46, %v679_v51  ;;  %v783_v33 = vor.u32 1.1754944e-38, %v782_v17  ;;  %vm781_vm3 = vcmp.eq.f32.partialorder %v780_v23, 8.507059e+37 }
 0x3af   :  { %v744_v60 = vpop.xlane.xlu2 %743  ;;  %v681_v56 = vadd.f32 %v6161_v46, %v680_v55 }
 0x3b0   :  { %v6163_v62 = vpop.eup %6162  ;;  %v7022_v63 = vadd.f32 1e-16, %v744_v60 }
 0x3b1   :  { %v6165_v1 = vpop.eup %6164  ;;  %v693_v2 = vmul.f32 %v6163_v62, %v586_v47  ;;  %v685_v3 = vsel %vm684_vm8, %v6161_v46, %v681_v56  ;;  %vm698_vm10 = vweird.f32 %v6163_v62  ;;  %v6045_v47 = vunpack.i.h.bf16 %v6043_v42 }
 0x3b2   :  { %v772_v5 = vmul.f32 %v6165_v1, %v763_v50  ;;  %6166 = vrcp.f32 %v7022_v63  ;;  %v690_v6 = vsel %vm687_vm9, %v689_v0, %v685_v3  ;;  %vm777_vm11 = vweird.f32 %v6165_v1  ;;  %vm699_vm13 = vmor %vm697_vm12, %vm698_vm10 }
 0x3b3   :  { %v694_v7 = vsub.f32 1.0, %v693_v2  ;;  %v897_v8 = vmul.f32 %v690_v6, %v6990_v24  ;;  %vm778_vm2 = vmor %vm776_vm14, %vm777_vm11  ;;  %v797_v14 = vand.u32 2147483648, %v7022_v63  ;;  %v795_v21 = vand.u32 2147483647, %v7022_v63 }
 0x3b4   :  { %v773_v57 = vsub.f32 1.0, %v772_v5  ;;  %vm791_vm5 = vweird.f32 %v7022_v63 }
 0x3b5   :  { %5852 = vmatmul.msk.f32.vlgmr.msra.gmra.mxu2 %vm9367_vm1, %v897_v8  ;;  %v695_v11 = vmul.f32 %v6163_v62, %v694_v7  ;;  %v798_v45 = vor.u32 1.1754944e-38, %v797_v14  ;;  %vm796_vm7 = vcmp.eq.f32.partialorder %v795_v21, 8.507059e+37 }
 0x3b6   :  { %v774_v22 = vmul.f32 %v6165_v1, %v773_v57 }
 0x3b7   :  { %v6033_v25 = vpop.permute.xlu2 %6032  ;;  %v696_v26 = vadd.f32 %v6163_v62, %v695_v11 }
 0x3b8   :  { %v6167_v29 = vpop.eup %6166  ;;  %v6034_v30 = vunpack.i.l.bf16 %v6033_v25  ;;  %v775_v58 = vadd.f32 %v6165_v1, %v774_v22  ;;  %v6035_v34 = vunpack.i.h.bf16 %v6033_v25 }
 0x3b9   :  { %v787_v4 = vmul.f32 %v6167_v29, %v7022_v63  ;;  %v700_v32 = vsel %vm699_vm13, %v6163_v62, %v696_v26  ;;  %vm792_vm4 = vweird.f32 %v6167_v29 }
 0x3ba   :  { %1044 = vmatpush.msrb.mxu2 %v6034_v30  ;;  %v705_v35 = vsel %vm702_vm15, %v704_v31, %v700_v32  ;;  %v779_v36 = vsel %vm778_vm2, %v6165_v1, %v775_v58  ;;  %vm793_vm6 = vmor %vm791_vm5, %vm792_vm4 }
 0x3bb   :  { %v788_v37 = vsub.f32 1.0, %v787_v4  ;;  %v6038_v40 = vpop.permute.xlu0 %6037  ;;  %v898_v41 = vmul.f32 %v705_v35, %v6997_v27  ;;  %v784_v18 = vsel %vm781_vm3, %v783_v33, %v779_v36 }
 0x3bc   :  { %1045 = vmatpush.msrb.mxu2 %v6035_v34  ;;  %v964_v19 = vmul.f32 %v784_v18, %v6930_v28  ;;  %v6039_v13 = vunpack.i.l.bf16 %v6038_v40  ;;  %v6040_v39 = vunpack.i.h.bf16 %v6038_v40 }
 0x3bd   :  { %5853 = vmatmul.msk.f32.gmra.mxu2 %vm9367_vm1, %v898_v41  ;;  %v789_v20 = vmul.f32 %v6167_v29, %v788_v37 }
 0x3be   :  { %980 = vrot.lane.b32.xlu1 %v964_v19, %s6666_s0  ;;  %1046 = vmatpush.msrb.mxu2 %v6039_v13 }
 0x3bf   :  { %v790_v43 = vadd.f32 %v6167_v29, %v789_v20 }
 0x3c0   :  { %1047 = vmatpush.msrb.mxu2 %v6040_v39 }
 0x3c1   :  { %v794_v46 = vsel %vm793_vm6, %v6167_v29, %v790_v43 }
 0x3c2   :  { %1048 = vmatpush.msrb.mxu2 %v6044_v44  ;;  %v799_v54 = vsel %vm796_vm7, %v798_v45, %v794_v46 }
 0x3c3   :  { %v6048_v49 = vpop.permute.xlu0 %6047  ;;  %v965_v50 = vmul.f32 %v799_v54, %v6940_v38 }
 0x3c4   :  { %1049 = vmatpush.msrb.mxu2 %v6045_v47  ;;  %v6049_v51 = vunpack.i.l.bf16 %v6048_v49  ;;  %v6050_v52 = vunpack.i.h.bf16 %v6048_v49 }
 0x3c5   :  { %982 = vrot.lane.b32.xlu0 %v965_v50, %s6666_s0 }
 0x3c6   :  { %1050 = vmatpush.msrb.mxu2 %v6049_v51 }
 0x3c8   :  { %1051 = vmatpush.msrb.mxu2 %v6050_v52 }
 0x3da   :  { %v750_v55 = vpop.xlane.xlu1 %749 }
 0x3db   :  { %v766_v59 = vadd.f32 1e-16, %v750_v55 }
 0x3dd   :  { %6168 = vrcp.f32 %v766_v59  ;;  %v827_v63 = vand.u32 2147483648, %v766_v59  ;;  %v825_v1 = vand.u32 2147483647, %v766_v59  ;;  %vm821_vm9 = vweird.f32 %v766_v59 }
 0x3df   :  { %v828_v3 = vor.u32 1.1754944e-38, %v827_v63  ;;  %vm826_vm11 = vcmp.eq.f32.partialorder %v825_v1, 8.507059e+37 }
 0x3e3   :  { %v6169_v60 = vpop.eup %6168 }
 0x3e4   :  { %v817_v56 = vmul.f32 %v6169_v60, %v766_v59  ;;  %vm822_vm8 = vweird.f32 %v6169_v60 }
 0x3e5   :  { %vm823_vm10 = vmor %vm821_vm9, %vm822_vm8 }
 0x3e6   :  { %v818_v62 = vsub.f32 1.0, %v817_v56 }
 0x3e8   :  { %v819_v0 = vmul.f32 %v6169_v60, %v818_v62 }
 0x3ea   :  { %v820_v2 = vadd.f32 %v6169_v60, %v819_v0 }
 0x3ec   :  { %v824_v5 = vsel %vm823_vm10, %v6169_v60, %v820_v2 }
 0x3ed   :  { %v829_v7 = vsel %vm826_vm11, %v828_v3, %v824_v5 }
 0x3ee   :  { %v747_v6 = vpop.xlane.xlu0 %746  ;;  %v967_v57 = vmul.f32 %v829_v7, %v6973_v53 }
 0x3ef   :  { %v765_v8 = vadd.f32 1e-16, %v747_v6 }
 0x3f0   :  { %v753_v10 = vpop.xlane.xlu2 %752  ;;  %986 = vrot.lane.b32.xlu0 %v967_v57, %s6666_s0 }
 0x3f1   :  { %6170 = vrcp.f32 %v765_v8  ;;  %v767_v11 = vadd.f32 1e-16, %v753_v10  ;;  %v810_v58 = vand.u32 2147483647, %v765_v8  ;;  %v812_v4 = vand.u32 2147483648, %v765_v8 }
 0x3f2   :  { %vm806_vm13 = vweird.f32 %v765_v8  ;;  %v555_v10 = vsel %vm9367_vm1, %v6930_v28, 0.0 }
 0x3f3   :  { %6172 = vrcp.f32 %v767_v11  ;;  %vm811_vm15 = vcmp.eq.f32.partialorder %v810_v58, 8.507059e+37  ;;  %v813_v37 = vor.u32 1.1754944e-38, %v812_v4  ;;  %vm836_vm3 = vweird.f32 %v767_v11 }
 0x3f4   :  { %v842_v14 = vand.u32 2147483648, %v767_v11  ;;  %v840_v39 = vand.u32 2147483647, %v767_v11  ;;  %v564_v4 = vsel %vm9367_vm1, %v6973_v53, 0.0 }
 0x3f6   :  { %v759_v15 = vpop.xlane.xlu0 %758  ;;  %v843_v45 = vor.u32 1.1754944e-38, %v842_v14  ;;  %vm841_vm5 = vcmp.eq.f32.partialorder %v840_v39, 8.507059e+37 }
 0x3f7   :  { %v6171_v17 = vpop.eup %6170  ;;  %v7039_v22 = vadd.f32 1e-16, %v759_v15 }
 0x3f8   :  { %v802_v23 = vmul.f32 %v6171_v17, %v765_v8  ;;  %v756_v25 = vpop.xlane.xlu2 %755  ;;  %vm807_vm12 = vweird.f32 %v6171_v17 }
 0x3f9   :  { %v6173_v26 = vpop.eup %6172  ;;  %6174 = vrcp.f32 %v7039_v22  ;;  %v768_v29 = vadd.f32 1e-16, %v756_v25  ;;  %vm808_vm14 = vmor %vm806_vm13, %vm807_vm12  ;;  %v872_v0 = vand.u32 2147483648, %v7039_v22  ;;  %vm866_vm11 = vweird.f32 %v7039_v22 }
 0x3fa   :  { %v803_v30 = vsub.f32 1.0, %v802_v23  ;;  %v832_v31 = vmul.f32 %v6173_v26, %v767_v11  ;;  %vm837_vm2 = vweird.f32 %v6173_v26  ;;  %v870_v2 = vand.u32 2147483647, %v7039_v22 }
 0x3fb   :  { %6176 = vrcp.f32 %v768_v29  ;;  %vm838_vm4 = vmor %vm836_vm3, %vm837_vm2  ;;  %v855_v46 = vand.u32 2147483647, %v768_v29  ;;  %v857_v47 = vand.u32 2147483648, %v768_v29  ;;  %vm851_vm7 = vweird.f32 %v768_v29 }
 0x3fc   :  { %v833_v32 = vsub.f32 1.0, %v832_v31  ;;  %v804_v33 = vmul.f32 %v6171_v17, %v803_v30  ;;  %v873_v5 = vor.u32 1.1754944e-38, %v872_v0  ;;  %vm871_vm13 = vcmp.eq.f32.partialorder %v870_v2, 8.507059e+37 }
 0x3fd   :  { %vm856_vm9 = vcmp.eq.f32.partialorder %v855_v46, 8.507059e+37  ;;  %v858_v55 = vor.u32 1.1754944e-38, %v857_v47  ;;  %v558_v31 = vsel %vm9367_vm1, %v6940_v38, 0.0 }
 0x3fe   :  { %v805_v34 = vadd.f32 %v6171_v17, %v804_v33  ;;  %v834_v35 = vmul.f32 %v6173_v26, %v833_v32  ;;  %v561_v32 = vsel %vm9367_vm1, %v6950_v48, 0.0  ;;  %v570_v33 = vsel %vm9367_vm1, %v6982_v9, 0.0 }
 0x3ff   :  { %v6175_v36 = vpop.eup %6174 }
 0x400   :  { %v862_v40 = vmul.f32 %v6175_v36, %v7039_v22  ;;  %v809_v41 = vsel %vm808_vm14, %v6171_v17, %v805_v34  ;;  %v835_v18 = vadd.f32 %v6173_v26, %v834_v35  ;;  %v762_v50 = vpop.xlane.xlu2 %761  ;;  %vm867_vm10 = vweird.f32 %v6175_v36 }
 0x401   :  { %v6177_v19 = vpop.eup %6176  ;;  %v814_v13 = vsel %vm811_vm15, %v813_v37, %v809_v41  ;;  %v770_v59 = vadd.f32 1e-16, %v762_v50  ;;  %vm868_vm12 = vmor %vm866_vm11, %vm867_vm10 }
 0x402   :  { %v863_v42 = vsub.f32 1.0, %v862_v40  ;;  %v847_v20 = vmul.f32 %v6177_v19, %v768_v29  ;;  %v966_v21 = vmul.f32 %v814_v13, %v6950_v48  ;;  %v839_v44 = vsel %vm838_vm4, %v6173_v26, %v835_v18 }
 0x403   :  { %vm852_vm6 = vweird.f32 %v6177_v19  ;;  %v844_v51 = vsel %vm841_vm5, %v843_v45, %v839_v44  ;;  %6178 = vrcp.f32 %v770_v59  ;;  %v887_v22 = vand.u32 2147483648, %v770_v59 }
 0x404   :  { %v848_v43 = vsub.f32 1.0, %v847_v20  ;;  %984 = vrot.lane.b32.xlu1 %v966_v21, %s6666_s0  ;;  %v864_v49 = vmul.f32 %v6175_v36, %v863_v42  ;;  %vm853_vm8 = vmor %vm851_vm7, %vm852_vm6  ;;  %v968_v60 = vmul.f32 %v844_v51, %v6960_v61  ;;  %vm881_vm15 = vweird.f32 %v770_v59 }
 0x405   :  { %v885_v23 = vand.u32 2147483647, %v770_v59  ;;  %v888_v26 = vor.u32 1.1754944e-38, %v887_v22 }
 0x406   :  { %v849_v54 = vmul.f32 %v6177_v19, %v848_v43  ;;  %v865_v62 = vadd.f32 %v6175_v36, %v864_v49 }
 0x407   :  { %vm886_vm3 = vcmp.eq.f32.partialorder %v885_v23, 8.507059e+37 }
 0x408   :  { %v850_v52 = vadd.f32 %v6177_v19, %v849_v54  ;;  %v869_v3 = vsel %vm868_vm12, %v6175_v36, %v865_v62 }
 0x409   :  { %v874_v6 = vsel %vm871_vm13, %v873_v5, %v869_v3  ;;  %v6179_v7 = vpop.eup %6178 }
 0x40a   :  { %v854_v56 = vsel %vm853_vm8, %v6177_v19, %v850_v52  ;;  %v970_v8 = vmul.f32 %v874_v6, %v6990_v24  ;;  %v877_v57 = vmul.f32 %v6179_v7, %v770_v59  ;;  %vm882_vm14 = vweird.f32 %v6179_v7 }
 0x40b   :  { %v859_v63 = vsel %vm856_vm9, %v858_v55, %v854_v56  ;;  %vm883_vm2 = vmor %vm881_vm15, %vm882_vm14 }
 0x40c   :  { %988 = vrot.lane.b32.xlu1 %v968_v60, %s6666_s0  ;;  %v969_v1 = vmul.f32 %v859_v63, %v6982_v9  ;;  %v878_v11 = vsub.f32 1.0, %v877_v57 }
 0x40e   :  { %990 = vrot.lane.b32.xlu2 %v969_v1, %s6666_s0  ;;  %v879_v15 = vmul.f32 %v6179_v7, %v878_v11 }
 0x410   :  { %v880_v17 = vadd.f32 %v6179_v7, %v879_v15 }
 0x412   :  { %v884_v25 = vsel %vm883_vm2, %v6179_v7, %v880_v17 }
 0x413   :  { %v889_v29 = vsel %vm886_vm3, %v888_v26, %v884_v25 }
 0x414   :  { %v971_v24 = vmul.f32 %v889_v29, %v6997_v27  ;;  %v567_v27 = vsel %vm9367_vm1, %v6960_v61, 0.0 }
 0x416   :  { %992 = vrot.lane.b32.xlu2 %v970_v8, %s6666_s0 }
 0x41a   :  { %556 = vadd.xlane.f32.xlu0 %v555_v10 }
 0x42e   :  { %994 = vrot.lane.b32.xlu0 %v971_v24, %s6666_s0 }
 0x430   :  { %v981_v30 = vpop.permute.xlu1 %980 }
 0x431   :  { %5854 = vmatmul.msk.f32.vlgmr.msrb.gmra.mxu2 %vm9367_vm1, %v981_v30 }
 0x436   :  { %559 = vadd.xlane.f32.xlu1 %v558_v31 }
 0x437   :  { %v983_v58 = vpop.permute.xlu0 %982 }
 0x438   :  { %v7075_v47 = vpop.f32.mrf.mxu2 }
 0x439   :  { %5855 = vmatmul.msk.f32.gmra.mxu2 %vm9367_vm1, %v983_v58 }
 0x43e   :  { %565 = vadd.xlane.f32.xlu1 %v564_v4 }
 0x43f   :  { %562 = vadd.xlane.f32.xlu2 %v561_v32 }
 0x440   :  { %v7080_v51 = vpop.f32.mrf.mxu2 }
 0x446   :  { %568 = vadd.xlane.f32.xlu1 %v567_v27 }
 0x458   :  { %571 = vadd.xlane.f32.xlu0 %v570_v33 }
 0x462   :  { %v987_v35 = vpop.permute.xlu0 %986 }
 0x468   :  { %v991_v37 = vpop.permute.xlu2 %990 }
 0x470   :  { %v993_v18 = vpop.permute.xlu2 %992 }
 0x476   :  { %v985_v34 = vpop.permute.xlu1 %984 }
 0x477   :  { %5856 = vmatmul.msk.f32.gmra.mxu2 %vm9367_vm1, %v985_v34 }
 0x47e   :  { %v989_v36 = vpop.permute.xlu1 %988 }
 0x47f   :  { %5857 = vmatmul.msk.f32.gmra.mxu2 %vm9367_vm1, %v987_v35 }
 0x487   :  { %5858 = vmatmul.msk.f32.gmra.mxu2 %vm9367_vm1, %v989_v36 }
 0x48d   :  { %v557_v40 = vpop.xlane.xlu0 %556 }
 0x48e   :  { %v579_v41 = vadd.f32 1e-16, %v557_v40 }
 0x48f   :  { %5859 = vmatmul.msk.f32.gmra.mxu2 %vm9367_vm1, %v991_v37 }
 0x490   :  { %6180 = vrcp.f32 %v579_v41  ;;  %v598_v42 = vand.u32 2147483648, %v579_v41  ;;  %v596_v21 = vand.u32 2147483647, %v579_v41  ;;  %vm592_vm5 = vweird.f32 %v579_v41 }
 0x492   :  { %v599_v43 = vor.u32 1.1754944e-38, %v598_v42  ;;  %vm597_vm7 = vcmp.eq.f32.partialorder %v596_v21, 8.507059e+37 }
 0x496   :  { %v6181_v19 = vpop.eup %6180 }
 0x497   :  { %5860 = vmatmul.msk.f32.gmra.mxu2 %vm9367_vm1, %v993_v18  ;;  %v588_v13 = vmul.f32 %v6181_v19, %v579_v41  ;;  %vm593_vm4 = vweird.f32 %v6181_v19 }
 0x498   :  { %vm594_vm6 = vmor %vm592_vm5, %vm593_vm4 }
 0x499   :  { %v589_v14 = vsub.f32 1.0, %v588_v13 }
 0x49b   :  { %v590_v20 = vmul.f32 %v6181_v19, %v589_v14 }
 0x49d   :  { %v591_v39 = vadd.f32 %v6181_v19, %v590_v20 }
 0x49f   :  { %v595_v44 = vsel %vm594_vm6, %v6181_v19, %v591_v39 }
 0x4a0   :  { %v995_v45 = vpop.permute.xlu0 %994  ;;  %v600_v46 = vsel %vm597_vm7, %v599_v43, %v595_v44 }
 0x4a1   :  { %5861 = vmatmul.msk.f32.gmra.mxu2 %vm9367_vm1, %v995_v45  ;;  %v891_v54 = vmul.f32 %v600_v46, %v6930_v28 }
 0x4a3   :  { %5846 = vmatmul.msk.f32.vlgmr.msra.gmra.mxu1 %vm9367_vm1, %v891_v54 }
 0x4a9   :  { %v560_v49 = vpop.xlane.xlu1 %559 }
 0x4aa   :  { %v580_v50 = vadd.f32 1e-16, %v560_v49 }
 0x4ac   :  { %6182 = vrcp.f32 %v580_v50  ;;  %v613_v28 = vand.u32 2147483648, %v580_v50  ;;  %v611_v2 = vand.u32 2147483647, %v580_v50  ;;  %vm607_vm9 = vweird.f32 %v580_v50 }
 0x4ae   :  { %v614_v8 = vor.u32 1.1754944e-38, %v613_v28  ;;  %vm612_vm11 = vcmp.eq.f32.partialorder %v611_v2, 8.507059e+37 }
 0x4b1   :  { %v566_v52 = vpop.xlane.xlu1 %565 }
 0x4b2   :  { %v6183_v55 = vpop.eup %6182  ;;  %v582_v59 = vadd.f32 1e-16, %v566_v52  ;;  %v563_v60 = vpop.xlane.xlu2 %562 }
 0x4b3   :  { %v603_v56 = vmul.f32 %v6183_v55, %v580_v50  ;;  %v581_v62 = vadd.f32 1e-16, %v563_v60  ;;  %vm608_vm8 = vweird.f32 %v6183_v55 }
 0x4b4   :  { %6184 = vrcp.f32 %v582_v59  ;;  %v1053_v63 = vpop.f32.mrf.mxu2  ;;  %vm609_vm10 = vmor %vm607_vm9, %vm608_vm8  ;;  %v643_v36 = vand.u32 2147483648, %v582_v59  ;;  %vm637_vm3 = vweird.f32 %v582_v59  ;;  %v641_v40 = vand.u32 2147483647, %v582_v59 }
 0x4b5   :  { %v604_v0 = vsub.f32 1.0, %v603_v56  ;;  %6186 = vrcp.f32 %v581_v62  ;;  %1085 = vrot.lane.b32.xlu1 %v1053_v63, %s6668_s16  ;;  %v628_v29 = vand.u32 2147483648, %v581_v62  ;;  %v626_v30 = vand.u32 2147483647, %v581_v62 }
 0x4b6   :  { %vm622_vm13 = vweird.f32 %v581_v62  ;;  %v644_v19 = vor.u32 1.1754944e-38, %v643_v36  ;;  %vm642_vm5 = vcmp.eq.f32.partialorder %v641_v40, 8.507059e+37 }
 0x4b7   :  { %v605_v1 = vmul.f32 %v6183_v55, %v604_v0  ;;  %v629_v27 = vor.u32 1.1754944e-38, %v628_v29  ;;  %vm627_vm15 = vcmp.eq.f32.partialorder %v626_v30, 8.507059e+37 }
 0x4b9   :  { %v569_v3 = vpop.xlane.xlu1 %568  ;;  %v606_v5 = vadd.f32 %v6183_v55, %v605_v1 }
 0x4ba   :  { %v6185_v6 = vpop.eup %6184  ;;  %v583_v7 = vadd.f32 1e-16, %v569_v3 }
 0x4bb   :  { %v6187_v57 = vpop.eup %6186  ;;  %v633_v10 = vmul.f32 %v6185_v6, %v582_v59  ;;  %v610_v11 = vsel %vm609_vm10, %v6183_v55, %v606_v5  ;;  %vm638_vm2 = vweird.f32 %v6185_v6 }
 0x4bc   :  { %v618_v15 = vmul.f32 %v6187_v57, %v581_v62  ;;  %6188 = vrcp.f32 %v583_v7  ;;  %v1056_v17 = vpop.f32.mrf.mxu2  ;;  %v615_v22 = vsel %vm612_vm11, %v614_v8, %v610_v11  ;;  %vm623_vm12 = vweird.f32 %v6187_v57  ;;  %vm639_vm4 = vmor %vm637_vm3, %vm638_vm2 }
 0x4bd   :  { %v634_v23 = vsub.f32 1.0, %v633_v10  ;;  %1087 = vrot.lane.b32.xlu2 %v1056_v17, %s6668_s16  ;;  %v892_v25 = vmul.f32 %v615_v22, %v6940_v38  ;;  %vm624_vm14 = vmor %vm622_vm13, %vm623_vm12  ;;  %v658_v21 = vand.u32 2147483648, %v583_v7  ;;  %vm652_vm7 = vweird.f32 %v583_v7 }
 0x4be   :  { %v619_v26 = vsub.f32 1.0, %v618_v15  ;;  %v656_v43 = vand.u32 2147483647, %v583_v7 }
 0x4bf   :  { %5847 = vmatmul.msk.f32.gmra.mxu1 %vm9367_vm1, %v892_v25  ;;  %v635_v31 = vmul.f32 %v6185_v6, %v634_v23  ;;  %v659_v44 = vor.u32 1.1754944e-38, %v658_v21 }
 0x4c0   :  { %v620_v24 = vmul.f32 %v6187_v57, %v619_v26  ;;  %vm657_vm9 = vcmp.eq.f32.partialorder %v656_v43, 8.507059e+37 }
 0x4c1   :  { %v636_v34 = vadd.f32 %v6185_v6, %v635_v31 }
 0x4c2   :  { %v6189_v58 = vpop.eup %6188  ;;  %v621_v4 = vadd.f32 %v6187_v57, %v620_v24 }
 0x4c3   :  { %v648_v32 = vmul.f32 %v6189_v58, %v583_v7  ;;  %v640_v41 = vsel %vm639_vm4, %v6185_v6, %v636_v34  ;;  %vm653_vm6 = vweird.f32 %v6189_v58  ;;  %v6669_v34 = vmov 64.0  }
 0x4c4   :  { %v625_v33 = vsel %vm624_vm14, %v6187_v57, %v621_v4  ;;  %v645_v13 = vsel %vm642_vm5, %v644_v19, %v640_v41  ;;  %vm654_vm8 = vmor %vm652_vm7, %vm653_vm6  ;;  %vm9366_vm14 = vcmask 130048  }
 0x4c5   :  { %v649_v35 = vsub.f32 1.0, %v648_v32  ;;  %v630_v38 = vsel %vm627_vm15, %v629_v27, %v625_v33  ;;  %v894_v39 = vmul.f32 %v645_v13, %v6973_v53 }
 0x4c6   :  { %v893_v37 = vmul.f32 %v630_v38, %v6950_v48 }
 0x4c7   :  { %v650_v18 = vmul.f32 %v6189_v58, %v649_v35 }
 0x4c8   :  { %5848 = vmatmul.msk.f32.gmra.mxu1 %vm9367_vm1, %v893_v37 }
 0x4c9   :  { %v651_v42 = vadd.f32 %v6189_v58, %v650_v18 }
 0x4cb   :  { %v572_v14 = vpop.xlane.xlu0 %571  ;;  %v655_v48 = vsel %vm654_vm8, %v6189_v58, %v651_v42 }
 0x4cc   :  { %v584_v20 = vadd.f32 1e-16, %v572_v14  ;;  %v660_v45 = vsel %vm657_vm9, %v659_v44, %v655_v48 }
 0x4cd   :  { %v895_v49 = vmul.f32 %v660_v45, %v6960_v61 }
 0x4ce   :  { %6190 = vrcp.f32 %v584_v20  ;;  %v673_v52 = vand.u32 2147483648, %v584_v20  ;;  %v671_v53 = vand.u32 2147483647, %v584_v20  ;;  %vm667_vm11 = vweird.f32 %v584_v20 }
 0x4cf   :  { %6192 = vrcp.f32 %v6669_v34 }
 0x4d0   :  { %5849 = vmatmul.msk.f32.gmra.mxu1 %vm9367_vm1, %v894_v39  ;;  %v674_v60 = vor.u32 1.1754944e-38, %v673_v52  ;;  %vm672_vm13 = vcmp.eq.f32.partialorder %v671_v53, 8.507059e+37 }
 0x4d4   :  { %v6191_v46 = vpop.eup %6190 }
 0x4d5   :  { %v663_v54 = vmul.f32 %v6191_v46, %v584_v20  ;;  %vm668_vm10 = vweird.f32 %v6191_v46  ;;  %v6193_v48 = vpop.eup %6192 }
 0x4d6   :  { %vm669_vm12 = vmor %vm667_vm11, %vm668_vm10  ;;  %vm1144_vm15 = vweird.f32 %v6193_v48 }
 0x4d7   :  { %v664_v50 = vsub.f32 1.0, %v663_v54 }
 0x4d8   :  { %5850 = vmatmul.msk.f32.gmra.mxu1 %vm9367_vm1, %v895_v49 }
 0x4d9   :  { %v665_v55 = vmul.f32 %v6191_v46, %v664_v50 }
 0x4db   :  { %v666_v59 = vadd.f32 %v6191_v46, %v665_v55  ;;  %v1140_v55 = vmul.f32 64.0, %v6193_v48 }
 0x4dd   :  { %v670_v56 = vsel %vm669_vm12, %v6191_v46, %v666_v59 }
 0x4de   :  { %v675_v62 = vsel %vm672_vm13, %v674_v60, %v670_v56 }
 0x4df   :  { %v896_v63 = vmul.f32 %v675_v62, %v6982_v9 }
 0x4e1   :  { %5851 = vmatmul.msk.f32.gmra.mxu1 %vm9367_vm1, %v896_v63 }
 0x4fa   :  { %v1059_v0 = vpop.f32.mrf.mxu2 }
 0x4fb   :  { %1089 = vrot.lane.b32.xlu1 %v1059_v0, %s6668_s16 }
 0x502   :  { %v1062_v61 = vpop.f32.mrf.mxu2 }
 0x503   :  { %1091 = vrot.lane.b32.xlu1 %v1062_v61, %s6668_s16 }
 0x50a   :  { %v1065_v28 = vpop.f32.mrf.mxu2 }
 0x50b   :  { %1093 = vrot.lane.b32.xlu2 %v1065_v28, %s6668_s16 }
 0x512   :  { %v1068_v1 = vpop.f32.mrf.mxu2 }
 0x513   :  { %1095 = vrot.lane.b32.xlu0 %v1068_v1, %s6668_s16  ;;  %v1141_v1 = vsub.f32 1.0, %v1140_v55 }
 0x517   :  { %v1088_v10 = vpop.permute.xlu2 %1087 }
 0x51a   :  { %v1071_v2 = vpop.f32.mrf.mxu2 }
 0x51b   :  { %1097 = vrot.lane.b32.xlu1 %v1071_v2, %s6668_s16 }
 0x520   :  { %v940_v9 = vpop.f32.mrf.mxu1 }
 0x524   :  { %v1074_v3 = vpop.f32.mrf.mxu2 }
 0x525   :  { %1099 = vrot.lane.b32.xlu2 %v1074_v3, %s6668_s16 }
 0x527   :  { %v1086_v7 = vpop.permute.xlu1 %1085 }
 0x528   :  { %v7104_v22 = vsel %vm9366_vm14, %v940_v9, %v1086_v7  ;;  %v1142_v7 = vmul.f32 %v6193_v48, %v1141_v1 }
 0x529   :  { %v1147_v29 = vmul.f32 %v7104_v22, %v7104_v22  ;;  %v1118_v58 = vsel %vm9365_vm0, %v7104_v22, 0.0 }
 0x52b   :  { %v1155_v35 = vsel %vm9365_vm0, %v1147_v29, 0.0 }
 0x53c   :  { %v943_v5 = vpop.f32.mrf.mxu1 }
 0x53d   :  { %v7101_v15 = vsel %vm9366_vm14, %v943_v5, %v1088_v10 }
 0x53e   :  { %v1148_v25 = vmul.f32 %v7101_v15, %v7101_v15  ;;  %v1119_v24 = vsel %vm9365_vm0, %v7101_v15, 0.0 }
 0x53f   :  { %v1120_v33 = vadd.f32 %v1119_v24, %v1118_v58  ;;  %v1274_v58 = vld [vmem:[%s9352_s4 + $0x10] sm:$0xff] }
 0x540   :  { %v1156_v4 = vsel %vm9365_vm0, %v1148_v25, 0.0 }
 0x541   :  { %v1157_v41 = vadd.f32 %v1156_v4, %v1155_v35 }
 0x545   :  { %v946_v6 = vpop.f32.mrf.mxu1 }
 0x54d   :  { %v949_v8 = vpop.f32.mrf.mxu1 }
 0x555   :  { %v952_v11 = vpop.f32.mrf.mxu1 }
 0x55e   :  { %v955_v38 = vpop.f32.mrf.mxu1 }
 0x565   :  { %v1094_v30 = vpop.permute.xlu2 %1093 }
 0x566   :  { %v7132_v18 = vsel %vm9366_vm14, %v952_v11, %v1094_v30 }
 0x567   :  { %v1151_v21 = vmul.f32 %v7132_v18, %v7132_v18  ;;  %v1125_v45 = vsel %vm9365_vm0, %v7132_v18, 0.0 }
 0x569   :  { %v1162_v50 = vsel %vm9365_vm0, %v1151_v21, 0.0 }
 0x56d   :  { %v1090_v57 = vpop.permute.xlu1 %1089 }
 0x56e   :  { %v7107_v23 = vsel %vm9366_vm14, %v946_v6, %v1090_v57 }
 0x56f   :  { %v1149_v31 = vmul.f32 %v7107_v23, %v7107_v23  ;;  %v1121_v32 = vsel %vm9365_vm0, %v7107_v23, 0.0 }
 0x570   :  { %v1122_v19 = vadd.f32 %v1121_v32, %v1120_v33  ;;  %v1273_v33 = vld [vmem:[%s9352_s4 + $0x8] sm:$0xff] }
 0x571   :  { %v1158_v36 = vsel %vm9365_vm0, %v1149_v31, 0.0  ;;  %v1275_v31 = vld [vmem:[%s9352_s4 + $0x18] sm:$0xff] }
 0x572   :  { %v1159_v42 = vadd.f32 %v1158_v36, %v1157_v41  ;;  %1313 = vmatpush.msra.mxu3 %v1275_v31 }
 0x574   :  { %1314 = vmatpush.msra.mxu3 %v1274_v58 }
 0x575   :  { %v1092_v17 = vpop.permute.xlu1 %1091 }
 0x576   :  { %v7112_v26 = vsel %vm9366_vm14, %v949_v8, %v1092_v17  ;;  %v1143_v17 = vadd.f32 %v6193_v48, %v1142_v7  ;;  %1315 = vmatpush.msra.mxu3 %v1273_v33 }
 0x577   :  { %v1150_v27 = vmul.f32 %v7112_v26, %v7112_v26  ;;  %v1123_v37 = vsel %vm9365_vm0, %v7112_v26, 0.0 }
 0x578   :  { %v1124_v20 = vadd.f32 %v1123_v37, %v1122_v19  ;;  %v7172_v4 = vsel %vm1144_vm15, %v6193_v48, %v1143_v17 }
 0x579   :  { %v1160_v14 = vsel %vm9365_vm0, %v1150_v27, 0.0 }
 0x57a   :  { %v1161_v44 = vadd.f32 %v1160_v14, %v1159_v42  ;;  %v1126_v49 = vadd.f32 %v1125_v45, %v1124_v20 }
 0x57c   :  { %v1163_v60 = vadd.f32 %v1162_v50, %v1161_v44 }
 0x57f   :  { %v1100_v39 = vpop.permute.xlu2 %1099 }
 0x580   :  { %v7148_v54 = vsel %vm9366_vm14, %v7080_v51, %v1100_v39 }
 0x581   :  { %v1154_v62 = vmul.f32 %v7148_v54, %v7148_v54  ;;  %v1131_v28 = vsel %vm9365_vm0, %v7148_v54, 0.0 }
 0x583   :  { %v1168_v9 = vsel %vm9365_vm0, %v1154_v62, 0.0 }
 0x585   :  { %v1096_v40 = vpop.permute.xlu0 %1095 }
 0x586   :  { %v7135_v13 = vsel %vm9366_vm14, %v955_v38, %v1096_v40  ;;  %v1272_v38 = vld [vmem:[%s9352_s4] sm:$0xff] }
 0x587   :  { %v1152_v43 = vmul.f32 %v7135_v13, %v7135_v13  ;;  %v1127_v46 = vsel %vm9365_vm0, %v7135_v13, 0.0  ;;  %1316 = vmatpush.msra.mxu3 %v1272_v38 }
 0x588   :  { %v1128_v59 = vadd.f32 %v1127_v46, %v1126_v49 }
 0x589   :  { %v1164_v52 = vsel %vm9365_vm0, %v1152_v43, 0.0  ;;  %v69_v43 = vld [vmem:[%s9353_s3] sm:$0x3] }
 0x58a   :  { %v1165_v0 = vadd.f32 %v1164_v52, %v1163_v60  ;;  %v7193_v45 = vperm.slane %v69_v43, 0  ;;  %v7199_v55 = vperm.slane %v69_v43, 1 }
 0x58d   :  { %v1098_v53 = vpop.permute.xlu1 %1097 }
 0x58e   :  { %v7154_v56 = vsel %vm9366_vm14, %v7075_v47, %v1098_v53 }
 0x58f   :  { %v1129_v51 = vsel %vm9365_vm0, %v7154_v56, 0.0  ;;  %v1153_v63 = vmul.f32 %v7154_v56, %v7154_v56 }
 0x590   :  { %v1130_v61 = vadd.f32 %v1129_v51, %v1128_v59 }
 0x591   :  { %v1166_v2 = vsel %vm9365_vm0, %v1153_v63, 0.0 }
 0x592   :  { %v1132_v3 = vadd.f32 %v1131_v28, %v1130_v61  ;;  %v1167_v47 = vadd.f32 %v1166_v2, %v1165_v0 }
 0x594   :  { %v1133_v5 = vrot.slane %v1132_v3, 4  ;;  %v1169_v6 = vadd.f32 %v1168_v9, %v1167_v47 }
 0x596   :  { %v1134_v8 = vadd.f32 %v1133_v5, %v1132_v3  ;;  %v1170_v57 = vrot.slane %v1169_v6, 4 }
 0x598   :  { %v1135_v10 = vrot.slane %v1134_v8, 2  ;;  %v1171_v11 = vadd.f32 %v1170_v57, %v1169_v6 }
 0x59a   :  { %v1136_v25 = vadd.f32 %v1135_v10, %v1134_v8  ;;  %v1172_v29 = vrot.slane %v1171_v11, 2 }
 0x59c   :  { %v1137_v24 = vrot.slane %v1136_v25, 1  ;;  %v1173_v30 = vadd.f32 %v1172_v29, %v1171_v11 }
 0x59e   :  { %v1138_v32 = vadd.f32 %v1137_v24, %v1136_v25  ;;  %v1174_v27 = vrot.slane %v1173_v30, 1 }
 0x5a0   :  { %v7178_v34 = vmul.f32 %v7172_v4, %v1138_v32  ;;  %v1175_v35 = vadd.f32 %v1174_v27, %v1173_v30 }
 0x5a2   :  { %v1176_v36 = vmul.f32 %v1175_v35, %v7172_v4  ;;  %v1177_v37 = vmul.f32 %v7178_v34, %v7178_v34  ;;  %v1185_v40 = vsub.f32 %v7154_v56, %v7178_v34  ;;  %v1186_v19 = vsub.f32 %v7148_v54, %v7178_v34 }
 0x5a3   :  { %v1179_v46 = vsub.f32 %v7104_v22, %v7178_v34  ;;  %v1180_v49 = vsub.f32 %v7101_v15, %v7178_v34  ;;  %v1181_v59 = vsub.f32 %v7107_v23, %v7178_v34  ;;  %v1182_v1 = vsub.f32 %v7112_v26, %v7178_v34 }
 0x5a4   :  { %v1178_v41 = vsub.f32 %v1176_v36, %v1177_v37  ;;  %v1183_v6 = vsub.f32 %v7132_v18, %v7178_v34  ;;  %v1184_v18 = vsub.f32 %v7135_v13, %v7178_v34 }
 0x5a6   :  { %v1187_v14 = vadd.f32 1e-05, %v1178_v41 }
 0x5a8   :  { %6194 = vrsqrt.f32 %v1187_v14  ;;  %vm1194_vm3 = vweird.f32 %v1187_v14 }
 0x5ae   :  { %v6195_v42 = vpop.eup %6194 }
 0x5af   :  { %v1189_v20 = vmul.f32 %v6195_v42, %v1187_v14  ;;  %vm1195_vm2 = vweird.f32 %v6195_v42 }
 0x5b0   :  { %vm1196_vm4 = vmor %vm1194_vm3, %vm1195_vm2 }
 0x5b1   :  { %v1190_v21 = vmul.f32 %v6195_v42, %v1189_v20 }
 0x5b3   :  { %v1191_v39 = vmul.f32 0.5, %v1190_v21 }
 0x5b5   :  { %v1192_v48 = vsub.f32 1.5, %v1191_v39 }
 0x5b7   :  { %v1193_v44 = vmul.f32 %v6195_v42, %v1192_v48 }
 0x5b9   :  { %v1197_v50 = vsel %vm1196_vm4, %v6195_v42, %v1193_v44 }
 0x5ba   :  { %v1198_v52 = vmul.f32 %v1197_v50, %v1179_v46  ;;  %v1199_v53 = vmul.f32 %v1197_v50, %v1180_v49  ;;  %v1200_v51 = vmul.f32 %v1197_v50, %v1181_v59  ;;  %v1201_v3 = vmul.f32 %v1197_v50, %v1182_v1 }
 0x5bb   :  { %v1202_v10 = vmul.f32 %v1197_v50, %v1183_v6  ;;  %v1203_v31 = vmul.f32 %v1197_v50, %v1184_v18  ;;  %v1204_v13 = vmul.f32 %v1197_v50, %v1185_v40  ;;  %v1205_v40 = vmul.f32 %v1197_v50, %v1186_v19 }
 0x5bc   :  { %v1207_v60 = vmul.f32 %v7193_v45, %v1198_v52  ;;  %v1208_v62 = vmul.f32 %v7193_v45, %v1199_v53  ;;  %v1209_v15 = vmul.f32 %v7193_v45, %v1200_v51  ;;  %v1210_v9 = vmul.f32 %v7193_v45, %v1201_v3 }
 0x5bd   :  { %v1211_v25 = vmul.f32 %v7193_v45, %v1202_v10  ;;  %v1212_v33 = vmul.f32 %v7193_v45, %v1203_v31  ;;  %v1213_v14 = vmul.f32 %v7193_v45, %v1204_v13  ;;  %v1214_v44 = vmul.f32 %v7193_v45, %v1205_v40 }
 0x5be   :  { %v1216_v63 = vadd.f32 %v7199_v55, %v1207_v60  ;;  %v1217_v22 = vadd.f32 %v7199_v55, %v1208_v62  ;;  %v1218_v23 = vadd.f32 %v7199_v55, %v1209_v15  ;;  %v1219_v57 = vadd.f32 %v7199_v55, %v1210_v9 }
 0x5bf   :  { %v1220_v30 = vadd.f32 %v7199_v55, %v1211_v25  ;;  %v1221_v36 = vadd.f32 %v7199_v55, %v1212_v33  ;;  %v1222_v56 = vadd.f32 %v7199_v55, %v1213_v14  ;;  %v1223_v52 = vadd.f32 %v7199_v55, %v1214_v44 }
 0x5c0   :  { %v1232_v0 = vmin.f32 %v1216_v63, 0.0  ;;  %v1233_v61 = vmin.f32 %v1217_v22, 0.0  ;;  %v1234_v47 = vmin.f32 %v1218_v23, 0.0  ;;  %vm1224_vm5 = vcmp.gt.f32.partialorder %v1216_v63, 0.0 }
 0x5c1   :  { %v1235_v17 = vmin.f32 %v1219_v57, 0.0  ;;  %vm1225_vm6 = vcmp.gt.f32.partialorder %v1217_v22, 0.0  ;;  %v1236_v27 = vmin.f32 %v1220_v30, 0.0  ;;  %vm1226_vm7 = vcmp.gt.f32.partialorder %v1218_v23, 0.0 }
 0x5c2   :  { %v1240_v28 = vmul.f32 1.442695, %v1232_v0  ;;  %v1242_v2 = vmul.f32 1.442695, %v1233_v61  ;;  %v1244_v8 = vmul.f32 1.442695, %v1234_v47 }
 0x5c3   :  { %v1246_v24 = vmul.f32 1.442695, %v1235_v17  ;;  %v1248_v38 = vmul.f32 1.442695, %v1236_v27  ;;  %v1237_v42 = vmin.f32 %v1221_v36, 0.0  ;;  %vm1227_vm8 = vcmp.gt.f32.partialorder %v1219_v57, 0.0 }
 0x5c4   :  { %6196 = vpow2.f32 %v1240_v28  ;;  %v1238_v48 = vmin.f32 %v1222_v56, 0.0  ;;  %vm1228_vm9 = vcmp.gt.f32.partialorder %v1220_v30, 0.0  ;;  %v1239_v54 = vmin.f32 %v1223_v52, 0.0 }
 0x5c5   :  { %6198 = vpow2.f32 %v1242_v2  ;;  %v1250_v21 = vmul.f32 1.442695, %v1237_v42  ;;  %vm1229_vm10 = vcmp.gt.f32.partialorder %v1221_v36, 0.0  ;;  %vm1230_vm11 = vcmp.gt.f32.partialorder %v1222_v56, 0.0 }
 0x5c6   :  { %6200 = vpow2.f32 %v1244_v8  ;;  %v1252_v49 = vmul.f32 1.442695, %v1238_v48  ;;  %v1254_v19 = vmul.f32 1.442695, %v1239_v54  ;;  %vm1231_vm12 = vcmp.gt.f32.partialorder %v1223_v52, 0.0 }
 0x5c7   :  { %6202 = vpow2.f32 %v1246_v24 }
 0x5c8   :  { %6204 = vpow2.f32 %v1248_v38 }
 0x5c9   :  { %6206 = vpow2.f32 %v1250_v21 }
 0x5ca   :  { %v6197_v5 = vpop.eup %6196  ;;  %6208 = vpow2.f32 %v1252_v49 }
 0x5cb   :  { %v5862_v7 = vadd.f32 -1.0, %v6197_v5  ;;  %v6199_v11 = vpop.eup %6198  ;;  %6210 = vpow2.f32 %v1254_v19 }
 0x5cc   :  { %v5863_v29 = vadd.f32 -1.0, %v6199_v11  ;;  %v6201_v32 = vpop.eup %6200 }
 0x5cd   :  { %v7215_v26 = vsel %vm1224_vm5, %v1216_v63, %v5862_v7  ;;  %v5864_v35 = vadd.f32 -1.0, %v6201_v32  ;;  %v6203_v41 = vpop.eup %6202 }
 0x5ce   :  { %5870 = vmatmul.msk.f32.vlgmr.msra.gmra.mxu3 %vm9365_vm0, %v7215_v26  ;;  %v7223_v58 = vsel %vm1225_vm6, %v1217_v22, %v5863_v29  ;;  %v5865_v20 = vadd.f32 -1.0, %v6203_v41  ;;  %v6205_v43 = vpop.eup %6204 }
 0x5cf   :  { %v7232_v37 = vsel %vm1226_vm7, %v1218_v23, %v5864_v35  ;;  %v5866_v46 = vadd.f32 -1.0, %v6205_v43  ;;  %v6207_v59 = vpop.eup %6206 }
 0x5d0   :  { %v7241_v39 = vsel %vm1227_vm8, %v1219_v57, %v5865_v20  ;;  %v5867_v34 = vadd.f32 -1.0, %v6207_v59  ;;  %v6209_v60 = vpop.eup %6208 }
 0x5d1   :  { %v7247_v53 = vsel %vm1228_vm9, %v1220_v30, %v5866_v46  ;;  %v5868_v45 = vadd.f32 -1.0, %v6209_v60  ;;  %v6211_v62 = vpop.eup %6210 }
 0x5d2   :  { %v7251_v50 = vsel %vm1229_vm10, %v1221_v36, %v5867_v34  ;;  %v5869_v51 = vadd.f32 -1.0, %v6211_v62 }
 0x5d3   :  { %v7255_v55 = vsel %vm1230_vm11, %v1222_v56, %v5868_v45 }
 0x5d4   :  { %9370 = vst [vmem:[#allocation2_spill] sm:$0xff] %v7255_v55  ;;  %v7259_v63 = vsel %vm1231_vm12, %v1223_v52, %v5869_v51 }
 0x5d6   :  { %5871 = vmatmul.msk.f32.gmra.mxu3 %vm9365_vm0, %v7223_v58 }
 0x5de   :  { %5872 = vmatmul.msk.f32.gmra.mxu3 %vm9365_vm0, %v7232_v37 }
 0x5e6   :  { %5873 = vmatmul.msk.f32.gmra.mxu3 %vm9365_vm0, %v7241_v39 }
 0x5ee   :  { %5874 = vmatmul.msk.f32.gmra.mxu3 %vm9365_vm0, %v7247_v53 }
 0x5f6   :  { %5875 = vmatmul.msk.f32.gmra.mxu3 %vm9365_vm0, %v7251_v50 }
 0x5fe   :  { %5876 = vmatmul.msk.f32.gmra.mxu3 %vm9365_vm0, %v7255_v55 }
 0x606   :  { %5877 = vmatmul.msk.f32.gmra.mxu3 %vm9365_vm0, %v7259_v63 }
 0x651   :  { %v7263_v22 = vpop.f32.mrf.mxu3 }
 0x652   :  { %1504 = vperm.xlu0 %6030, %v7263_v22   ;;  %1447 = vrot.lane.b32.xlu1 %v7263_v22, %s6664_s27 }
 0x659   :  { %v7268_v0 = vpop.f32.mrf.mxu3 }
 0x65a   :  { %6051 = vset.pattern.permute.xlu0 %v6665_v16  ;;  %1350 = vrot.lane.b32.xlu1 %v7263_v22, %s6663_s26 }
 0x65b   :  { %1449 = vrot.lane.b32.xlu2 %v7268_v0, %s6664_s27  ;;  %1407 = vperm.xlu0 %6051, %v7263_v22  }
 0x661   :  { %v7276_v61 = vpop.f32.mrf.mxu3 }
 0x662   :  { %1451 = vrot.lane.b32.xlu1 %v7276_v61, %s6664_s27 }
 0x663   :  { %1352 = vrot.lane.b32.xlu2 %v7268_v0, %s6663_s26  ;;  %1411 = vperm.xlu0 %6051, %v7268_v0  }
 0x669   :  { %v7283_v15 = vpop.f32.mrf.mxu3 }
 0x66a   :  { %1354 = vrot.lane.b32.xlu1 %v7276_v61, %s6663_s26 }
 0x66b   :  { %1508 = vperm.xlu2 %6027, %v7268_v0   ;;  %1453 = vrot.lane.b32.xlu0 %v7283_v15, %s6664_s27 }
 0x66c   :  { %6053 = vset.pattern.permute.xlu0 %v6662_v12 }
 0x671   :  { %v7291_v28 = vpop.f32.mrf.mxu3 }
 0x672   :  { %1512 = vperm.xlu1 %6029, %v7276_v61  }
 0x673   :  { %6052 = vset.pattern.permute.xlu2 %v6665_v16  ;;  %1516 = vperm.xlu0 %6053, %v7283_v15  }
 0x674   :  { %1415 = vperm.xlu2 %6052, %v7276_v61  }
 0x679   :  { %v7297_v1 = vpop.f32.mrf.mxu3 }
 0x67a   :  { %1356 = vrot.lane.b32.xlu1 %v7283_v15, %s6663_s26  ;;  %v6062_v41 = vpack.i.bf16 %v7291_v28, %v7297_v1 }
 0x67b   :  { %1358 = vrot.lane.b32.xlu0 %v7291_v28, %s6663_s26 }
 0x67c   :  { %1455 = vrot.lane.b32.xlu2 %v7291_v28, %s6664_s27 }
 0x67d   :  { %6054 = vset.pattern.permute.xlu2 %v6662_v12 }
 0x681   :  { %v1336_v2 = vpop.f32.mrf.mxu3 }
 0x682   :  { %1457 = vrot.lane.b32.xlu1 %v7297_v1, %s6664_s27 }
 0x683   :  { %1459 = vrot.lane.b32.xlu0 %v1336_v2, %s6664_s27 }
 0x684   :  { %1520 = vperm.xlu2 %6054, %v7291_v28  }
 0x689   :  { %v7310_v23 = vpop.f32.mrf.mxu3 }
 0x68a   :  { %2136 = vmatpush.msrb.mxu0 %v7310_v23  ;;  %v6057_v36 = vpack.i.bf16 %v1336_v2, %v7310_v23 }
 0x68b   :  { %1362 = vrot.lane.b32.xlu0 %v1336_v2, %s6663_s26 }
 0x68c   :  { %1360 = vrot.lane.b32.xlu2 %v7297_v1, %s6663_s26  ;;  %2137 = vmatpush.msrb.mxu0 %v1336_v2 }
 0x68e   :  { %2138 = vmatpush.msrb.mxu0 %v7297_v1 }
 0x690   :  { %2139 = vmatpush.msrb.mxu0 %v7291_v28 }
 0x692   :  { %2140 = vmatpush.msrb.mxu0 %v7283_v15 }
 0x693   :  { %1532 = vperm.xlu0 %6053, %v7310_v23  }
 0x694   :  { %1524 = vperm.xlu2 %6054, %v7297_v1   ;;  %2141 = vmatpush.msrb.mxu0 %v7276_v61 }
 0x696   :  { %2142 = vmatpush.msrb.mxu0 %v7268_v0 }
 0x698   :  { %2143 = vmatpush.msrb.mxu0 %v7263_v22 }
 0x69b   :  { %6055 = vset.pattern.permute.xlu0 %v6665_v16 }
 0x69c   :  { %1528 = vperm.xlu2 %6054, %v1336_v2  }
 0x6a4   :  { %1461 = vrot.lane.b32.xlu2 %v7310_v23, %s6664_s27 }
 0x6ac   :  { %1364 = vrot.lane.b32.xlu2 %v7310_v23, %s6663_s26 }
 0x6b5   :  { %v1450_v12 = vpop.permute.xlu2 %1449 }
 0x6bd   :  { %v1353_v3 = vpop.permute.xlu2 %1352 }
 0x6c4   :  { %v1505_v47 = vpop.permute.xlu0 %1504  ;;  %v1448_v9 = vpop.permute.xlu1 %1447 }
 0x6c5   :  { %v1509_v5 = vpop.permute.xlu2 %1508  ;;  %1471 = vxpose.xlu1.b32.start [1/8] (short) (narrow) %v1448_v9, 8 }
 0x6cc   :  { %v1351_v6 = vpop.permute.xlu1 %1350 }
 0x6cd   :  { %v7329_v7 = vpop.permute.xlu0 %1407  ;;  %1472 = vxpose.xlu1.b32.cont [2/8] (short) (narrow) %v1450_v12, 8 }
 0x6ce   :  { %v7331_v8 = vpop.permute.xlu2 %1415 }
 0x6d4   :  { %v1452_v57 = vpop.permute.xlu1 %1451 }
 0x6d5   :  { %v7333_v10 = vpop.permute.xlu0 %1411  ;;  %1473 = vxpose.xlu1.b32.cont [3/8] (short) (narrow) %v1452_v57, 8 }
 0x6d6   :  { %v1456_v11 = vpop.permute.xlu2 %1455 }
 0x6dc   :  { %v1355_v17 = vpop.permute.xlu1 %1354 }
 0x6dd   :  { %v1454_v25 = vpop.permute.xlu0 %1453 }
 0x6de   :  { %v1521_v29 = vpop.permute.xlu2 %1520  ;;  %1474 = vxpose.xlu1.b32.cont [4/8] (short) (narrow) %v1454_v25, 8 }
 0x6e4   :  { %v1513_v18 = vpop.permute.xlu1 %1512 }
 0x6e5   :  { %v1517_v30 = vpop.permute.xlu0 %1516 }
 0x6e6   :  { %v1361_v24 = vpop.permute.xlu2 %1360  ;;  %1475 = vxpose.xlu1.b32.cont [5/8] (short) (narrow) %v1456_v11, 8 }
 0x6ec   :  { %v1357_v31 = vpop.permute.xlu1 %1356 }
 0x6ed   :  { %v1359_v27 = vpop.permute.xlu0 %1358 }
 0x6ee   :  { %v1525_v32 = vpop.permute.xlu2 %1524 }
 0x6f4   :  { %v1458_v33 = vpop.permute.xlu1 %1457 }
 0x6f5   :  { %1476 = vxpose.xlu1.b32.cont [6/8] (short) (narrow) %v1458_v33, 8  ;;  %v1460_v13 = vpop.permute.xlu0 %1459 }
 0x6f6   :  { %v1529_v35 = vpop.permute.xlu2 %1528 }
 0x6fd   :  { %1477 = vxpose.xlu1.b32.cont [7/8] (short) (narrow) %v1460_v13, 8  ;;  %v1363_v44 = vpop.permute.xlu0 %1362 }
 0x6fe   :  { %v1462_v38 = vpop.permute.xlu2 %1461 }
 0x705   :  { %1478 = vxpose.xlu1.b32.end [8/8] (short) (narrow) %v1462_v38, 8  ;;  %v1533_v49 = vpop.permute.xlu0 %1532 }
 0x706   :  { %v1365_v19 = vpop.permute.xlu2 %1364 }
 0x758   :  { %6056 = vset.pattern.permute.xlu1 %v6665_v16 }
 0x75f   :  { %1431 = vperm.xlu1 %6056, %v1336_v2  }
 0x767   :  { %6058 = vrot.lane.b32.xlu1 %v6057_v36, %s6667_s24 }
 0x76f   :  { %6063 = vrot.lane.b32.xlu1 %v6062_v41, %s6667_s24 }
 0x771   :  { %v1487_v14 = vpop.trf.xlu1 }
 0x772   :  { %v1535_v42 = vperm.slane %v1487_v14, 0 }
 0x774   :  { %v1537_v20 = vadd.f32 %v1535_v42, %v1509_v5  ;;  %v1536_v21 = vadd.f32 %v1535_v42, %v1505_v47  ;;  %v1538_v56 = vadd.f32 %v1535_v42, %v1513_v18  ;;  %v1539_v40 = vadd.f32 %v1535_v42, %v1517_v30 }
 0x775   :  { %v1540_v43 = vadd.f32 %v1535_v42, %v1521_v29  ;;  %v1541_v48 = vadd.f32 %v1535_v42, %v1525_v32  ;;  %v1542_v46 = vadd.f32 %v1535_v42, %v1529_v35  ;;  %v1543_v52 = vadd.f32 %v1535_v42, %v1533_v49 }
 0x776   :  { %1554 = vrot.lane.b32.xlu0 %v1537_v20, %s6666_s0  ;;  %1552 = vrot.lane.b32.xlu2 %v1536_v21, %s6666_s0 }
 0x77e   :  { %1419 = vperm.xlu0 %6055, %v7283_v15   ;;  %1556 = vrot.lane.b32.xlu2 %v1538_v56, %s6666_s0 }
 0x786   :  { %1423 = vperm.xlu0 %6055, %v7291_v28  }
 0x78e   :  { %1427 = vperm.xlu0 %6055, %v7297_v1  }
 0x796   :  { %1435 = vperm.xlu0 %6055, %v7310_v23  }
 0x79e   :  { %1558 = vrot.lane.b32.xlu0 %v1539_v40, %s6666_s0 }
 0x7a4   :  { %1374 = vxpose.xlu2.b32.start [1/8] (short) (narrow) %v1351_v6, 8 }
 0x7a6   :  { %1560 = vrot.lane.b32.xlu0 %v1540_v43, %s6666_s0 }
 0x7ac   :  { %1375 = vxpose.xlu2.b32.cont [2/8] (short) (narrow) %v1353_v3, 8 }
 0x7ae   :  { %1562 = vrot.lane.b32.xlu0 %v1541_v48, %s6666_s0 }
 0x7b4   :  { %1376 = vxpose.xlu2.b32.cont [3/8] (short) (narrow) %v1355_v17, 8 }
 0x7b6   :  { %1564 = vrot.lane.b32.xlu0 %v1542_v46, %s6666_s0 }
 0x7bc   :  { %1377 = vxpose.xlu2.b32.cont [4/8] (short) (narrow) %v1357_v31, 8 }
 0x7be   :  { %1566 = vrot.lane.b32.xlu0 %v1543_v52, %s6666_s0 }
 0x7c4   :  { %1378 = vxpose.xlu2.b32.cont [5/8] (short) (narrow) %v1359_v27, 8 }
 0x7cc   :  { %1379 = vxpose.xlu2.b32.cont [6/8] (short) (narrow) %v1361_v24, 8 }
 0x7d0   :  { %v1553_v47 = vpop.permute.xlu2 %1552 }
 0x7d1   :  { %v1432_v59 = vpop.permute.xlu1 %1431 }
 0x7d4   :  { %1380 = vxpose.xlu2.b32.cont [7/8] (short) (narrow) %v1363_v44, 8 }
 0x7d8   :  { %v1557_v5 = vpop.permute.xlu2 %1556 }
 0x7d9   :  { %v6059_v54 = vpop.permute.xlu1 %6058 }
 0x7da   :  { %v6060_v34 = vunpack.i.l.bf16 %v6059_v54  ;;  %v6061_v60 = vunpack.i.h.bf16 %v6059_v54 }
 0x7dc   :  { %2249 = vmatpush.msrb.mxu3 %v6060_v34  ;;  %1381 = vxpose.xlu2.b32.end [8/8] (short) (narrow) %v1365_v19, 8 }
 0x7de   :  { %2250 = vmatpush.msrb.mxu3 %v6061_v60 }
 0x7e1   :  { %v6064_v45 = vpop.permute.xlu1 %6063 }
 0x7e2   :  { %v6065_v62 = vunpack.i.l.bf16 %v6064_v45  ;;  %v6066_v51 = vunpack.i.h.bf16 %v6064_v45 }
 0x7e4   :  { %2251 = vmatpush.msrb.mxu3 %v6065_v62 }
 0x7e6   :  { %2252 = vmatpush.msrb.mxu3 %v6066_v51 }
 0x7e8   :  { %v1555_v28 = vpop.permute.xlu0 %1554 }
 0x7f0   :  { %v1420_v1 = vpop.permute.xlu0 %1419 }
 0x7f8   :  { %v1424_v2 = vpop.permute.xlu0 %1423 }
 0x800   :  { %v1428_v23 = vpop.permute.xlu0 %1427 }
 0x808   :  { %v1436_v12 = vpop.permute.xlu0 %1435 }
 0x810   :  { %v1559_v3 = vpop.permute.xlu0 %1558 }
 0x818   :  { %v1561_v9 = vpop.permute.xlu0 %1560 }
 0x820   :  { %v1563_v6 = vpop.permute.xlu0 %1562 }
 0x828   :  { %v1565_v31 = vpop.permute.xlu0 %1564 }
 0x830   :  { %v1567_v46 = vpop.permute.xlu0 %1566 }
 0x83d   :  { %v1390_v57 = vpop.trf.xlu2 }
 0x83e   :  { %v1438_v11 = vperm.slane %v1390_v57, 0 }
 0x840   :  { %v1439_v17 = vadd.f32 %v1438_v11, %v7329_v7  ;;  %v1440_v25 = vadd.f32 %v1438_v11, %v7333_v10  ;;  %v1441_v29 = vadd.f32 %v1438_v11, %v7331_v8  ;;  %v1442_v18 = vadd.f32 %v1438_v11, %v1420_v1 }
 0x841   :  { %v1443_v24 = vadd.f32 %v1438_v11, %v1424_v2  ;;  %v1445_v30 = vadd.f32 %v1438_v11, %v1432_v59  ;;  %v1444_v43 = vadd.f32 %v1438_v11, %v1428_v23  ;;  %v1446_v48 = vadd.f32 %v1438_v11, %v1436_v12 }
 0x842   :  { %v1578_v32 = vsel %vm9367_vm1, %v1441_v29, %v1557_v5  ;;  %v1576_v27 = vsel %vm9367_vm1, %v1439_v17, %v1553_v47  ;;  %v1577_v33 = vsel %vm9367_vm1, %v1440_v25, %v1555_v28  ;;  %v1579_v35 = vsel %vm9367_vm1, %v1442_v18, %v1559_v3 }
 0x843   :  { %v1582_v13 = vsel %vm9367_vm1, %v1445_v30, %v1565_v31  ;;  %v1586_v38 = vsub.f32 0.0, %v1578_v32  ;;  %v1584_v7 = vsub.f32 0.0, %v1576_v27  ;;  %v1585_v36 = vsub.f32 0.0, %v1577_v33 }
 0x844   :  { %v1590_v10 = vsub.f32 0.0, %v1582_v13  ;;  %v1587_v41 = vsub.f32 0.0, %v1579_v35  ;;  %v1580_v8 = vsel %vm9367_vm1, %v1443_v24, %v1561_v9  ;;  %v1581_v49 = vsel %vm9367_vm1, %v1444_v43, %v1563_v6 }
 0x845   :  { %v1596_v14 = vmul.f32 1.442695, %v1586_v38  ;;  %v1592_v42 = vmul.f32 1.442695, %v1584_v7  ;;  %v1594_v21 = vmul.f32 1.442695, %v1585_v36  ;;  %v1583_v59 = vsel %vm9367_vm1, %v1446_v48, %v1567_v46 }
 0x846   :  { %v1604_v20 = vmul.f32 1.442695, %v1590_v10  ;;  %v1588_v56 = vsub.f32 0.0, %v1580_v8  ;;  %v1598_v40 = vmul.f32 1.442695, %v1587_v41  ;;  %v1589_v45 = vsub.f32 0.0, %v1581_v49 }
 0x847   :  { %6212 = vpow2.f32 %v1596_v14  ;;  %v1591_v51 = vsub.f32 0.0, %v1583_v59 }
 0x848   :  { %6214 = vpow2.f32 %v1604_v20  ;;  %v1600_v44 = vmul.f32 1.442695, %v1588_v56  ;;  %v1602_v3 = vmul.f32 1.442695, %v1589_v45 }
 0x849   :  { %6216 = vpow2.f32 %v1592_v42  ;;  %v1606_v47 = vmul.f32 1.442695, %v1591_v51 }
 0x84a   :  { %6218 = vpow2.f32 %v1594_v21 }
 0x84b   :  { %6220 = vpow2.f32 %v1598_v40 }
 0x84c   :  { %6222 = vpow2.f32 %v1600_v44 }
 0x84d   :  { %v6213_v52 = vpop.eup %6212 }
 0x84e   :  { %v6215_v54 = vpop.eup %6214  ;;  %v1610_v34 = vadd.f32 1.0, %v6213_v52 }
 0x84f   :  { %v6217_v19 = vpop.eup %6216  ;;  %v1614_v60 = vadd.f32 1.0, %v6215_v54 }
 0x850   :  { %v6219_v62 = vpop.eup %6218  ;;  %6224 = vrcp.f32 %v1610_v34  ;;  %v7364_v1 = vadd.f32 1.0, %v6217_v19  ;;  %v1655_v5 = vand.u32 2147483647, %v1610_v34  ;;  %v1657_v6 = vand.u32 2147483648, %v1610_v34 }
 0x851   :  { %v6221_v28 = vpop.eup %6220  ;;  %6226 = vrcp.f32 %v1614_v60  ;;  %v7366_v2 = vadd.f32 1.0, %v6219_v62  ;;  %v1715_v9 = vand.u32 2147483647, %v1614_v60  ;;  %v1717_v11 = vand.u32 2147483648, %v1614_v60 }
 0x852   :  { %v6223_v23 = vpop.eup %6222  ;;  %v7368_v12 = vadd.f32 1.0, %v6221_v28  ;;  %6228 = vrcp.f32 %v7364_v1  ;;  %vm1711_vm13 = vweird.f32 %v1614_v60  ;;  %vm1651_vm15 = vweird.f32 %v1610_v34 }
 0x853   :  { %6230 = vrcp.f32 %v7366_v2  ;;  %v7373_v17 = vadd.f32 1.0, %v6223_v23  ;;  %vm7375_vm2 = vcmp.eq.f32.partialorder %v1715_v9, 8.507059e+37  ;;  %vm7379_vm3 = vcmp.eq.f32.partialorder %v1655_v5, 8.507059e+37 }
 0x854   :  { %6232 = vrcp.f32 %v7368_v12  ;;  %v1658_v32 = vor.u32 1.1754944e-38, %v1657_v6  ;;  %v1718_v35 = vor.u32 1.1754944e-38, %v1717_v11  ;;  %vm1621_vm4 = vweird.f32 %v7364_v1 }
 0x855   :  { %6234 = vpow2.f32 %v1602_v3  ;;  %v1625_v36 = vand.u32 2147483647, %v7364_v1  ;;  %v1627_v8 = vand.u32 2147483648, %v7364_v1  ;;  %vm1636_vm7 = vweird.f32 %v7366_v2 }
 0x856   :  { %v6225_v57 = vpop.eup %6224  ;;  %6236 = vpow2.f32 %v1606_v47  ;;  %v1640_v44 = vand.u32 2147483647, %v7366_v2  ;;  %v1642_v46 = vand.u32 2147483648, %v7366_v2 }
 0x857   :  { %v6227_v25 = vpop.eup %6226  ;;  %v1647_v29 = vmul.f32 %v6225_v57, %v1610_v34  ;;  %6238 = vrcp.f32 %v7373_v17  ;;  %vm1652_vm5 = vweird.f32 %v6225_v57  ;;  %v1628_v3 = vor.u32 1.1754944e-38, %v1627_v8 }
 0x858   :  { %v1707_v18 = vmul.f32 %v6227_v25, %v1614_v60  ;;  %v6229_v27 = vpop.eup %6228  ;;  %vm1712_vm6 = vweird.f32 %v6227_v25  ;;  %vm1653_vm8 = vmor %vm1651_vm15, %vm1652_vm5 }
 0x859   :  { %v1648_v30 = vsub.f32 1.0, %v1647_v29  ;;  %v6231_v13 = vpop.eup %6230  ;;  %v1617_v7 = vmul.f32 %v6229_v27, %v7364_v1  ;;  %vm1713_vm9 = vmor %vm1711_vm13, %vm1712_vm6  ;;  %vm1622_vm10 = vweird.f32 %v6229_v27  ;;  %vm1626_vm13 = vcmp.eq.f32.partialorder %v1625_v36, 8.507059e+37  ;;  %v6623_v36 = vld [vmem:[%s9351_s1 + $0x30] sm:$0xff] }
 0x85a   :  { %v1708_v33 = vsub.f32 1.0, %v1707_v18  ;;  %v7387_v10 = vpop.eup %6232  ;;  %v1632_v14 = vmul.f32 %v6231_v13, %v7366_v2  ;;  %vm1637_vm11 = vweird.f32 %v6231_v13  ;;  %vm1623_vm12 = vmor %vm1621_vm4, %vm1622_vm10  ;;  %vm1666_vm4 = vweird.f32 %v7368_v12 }
 0x85b   :  { %v1649_v38 = vmul.f32 %v6225_v57, %v1648_v30  ;;  %v6235_v42 = vpop.eup %6234  ;;  %v1618_v21 = vsub.f32 1.0, %v1617_v7  ;;  %v1662_v56 = vmul.f32 %v7387_v10, %v7368_v12  ;;  %vm1638_vm15 = vmor %vm1636_vm7, %vm1637_vm11  ;;  %v1672_v30 = vand.u32 2147483648, %v7368_v12 }
 0x85c   :  { %v1709_v41 = vmul.f32 %v6227_v25, %v1708_v33  ;;  %v6237_v40 = vpop.eup %6236  ;;  %v1633_v48 = vsub.f32 1.0, %v1632_v14  ;;  %v7405_v23 = vadd.f32 1.0, %v6235_v42 }
 0x85d   :  { %v1650_v20 = vadd.f32 %v6225_v57, %v1649_v38  ;;  %v1619_v52 = vmul.f32 %v6229_v27, %v1618_v21  ;;  %v1663_v59 = vsub.f32 1.0, %v1662_v56  ;;  %v7399_v54 = vpop.eup %6238  ;;  %v7415_v18 = vadd.f32 1.0, %v6237_v40  ;;  %v6624_v21 = vld [vmem:[%s9351_s1] sm:$0xff] }
 0x85e   :  { %v1710_v43 = vadd.f32 %v6227_v25, %v1709_v41  ;;  %v1634_v62 = vmul.f32 %v6231_v13, %v1633_v48  ;;  %v1677_v6 = vmul.f32 %v7399_v54, %v7373_v17  ;;  %v1673_v14 = vor.u32 1.1754944e-38, %v1672_v30 }
 0x85f   :  { %v1654_v49 = vsel %vm1653_vm8, %v6225_v57, %v1650_v20  ;;  %v1620_v28 = vadd.f32 %v6229_v27, %v1619_v52  ;;  %v1664_v5 = vmul.f32 %v7387_v10, %v1663_v59  ;;  %vm1682_vm7 = vweird.f32 %v7399_v54 }
 0x860   :  { %v1714_v19 = vsel %vm1713_vm9, %v6227_v25, %v1710_v43  ;;  %v1659_v45 = vsel %vm7379_vm3, %v1658_v32, %v1654_v49  ;;  %v1635_v47 = vadd.f32 %v6231_v13, %v1634_v62  ;;  %v1643_v25 = vor.u32 1.1754944e-38, %v1642_v46 }
 0x861   :  { %v1719_v34 = vsel %vm7375_vm2, %v1718_v35, %v1714_v19  ;;  %v1740_v51 = vmul.f32 1.442695, %v1659_v45  ;;  %v1624_v9 = vsel %vm1623_vm12, %v6229_v27, %v1620_v28  ;;  %vm1641_vm2 = vcmp.eq.f32.partialorder %v1640_v44, 8.507059e+37  ;;  %v6622_v35 = vld [vmem:[%s9351_s1 + $0x10] sm:$0xff] }
 0x862   :  { %v1748_v60 = vmul.f32 1.442695, %v1719_v34  ;;  %v1629_v57 = vsel %vm1626_vm13, %v1628_v3, %v1624_v9  ;;  %v1639_v11 = vsel %vm1638_vm15, %v6231_v13, %v1635_v47  ;;  %v1665_v2 = vadd.f32 %v7387_v10, %v1664_v5 }
 0x863   :  { %6240 = vpow2.f32 %v1740_v51  ;;  %v1736_v29 = vmul.f32 1.442695, %v1629_v57  ;;  %v1644_v1 = vsel %vm1641_vm2, %v1643_v25, %v1639_v11  ;;  %vm1667_vm3 = vweird.f32 %v7387_v10  ;;  %v6625_v51 = vld [vmem:[%s9351_s1 + $0x8] sm:$0xff]  ;;  %v6626_v57 = vld [vmem:[%s9351_s1 + $0x18] sm:$0xff] }
 0x864   :  { %6242 = vpow2.f32 %v1748_v60  ;;  %v1678_v24 = vsub.f32 1.0, %v1677_v6  ;;  %v1738_v32 = vmul.f32 1.442695, %v1644_v1  ;;  %v1670_v27 = vand.u32 2147483647, %v7368_v12  ;;  %vm7427_vm5 = vmor %vm1666_vm4, %vm1667_vm3 }
 0x865   :  { %6244 = vrcp.f32 %v7405_v23  ;;  %v1669_v12 = vsel %vm7427_vm5, %v7387_v10, %v1665_v2  ;;  %v1687_v44 = vand.u32 2147483648, %v7373_v17  ;;  %vm1681_vm8 = vweird.f32 %v7373_v17 }
 0x866   :  { %6246 = vpow2.f32 %v1736_v29  ;;  %v1679_v8 = vmul.f32 %v7399_v54, %v1678_v24  ;;  %vm1671_vm6 = vcmp.eq.f32.partialorder %v1670_v27, 8.507059e+37  ;;  %v1685_v49 = vand.u32 2147483647, %v7373_v17  ;;  %vm1683_vm9 = vmor %vm1681_vm8, %vm1682_vm7 }
 0x867   :  { %6248 = vrcp.f32 %v7415_v18  ;;  %v1674_v10 = vsel %vm1671_vm6, %v1673_v14, %v1669_v12  ;;  %v6072_v59 = vpack.i.bf16 %v7263_v22, %v7268_v0  ;;  %v1688_v34 = vor.u32 1.1754944e-38, %v1687_v44  ;;  %v6629_v12 = vld [vmem:[%s9351_s1 + $0x38] sm:$0xff] }
 0x868   :  { %6250 = vpow2.f32 %v1738_v32  ;;  %v1680_v40 = vadd.f32 %v7399_v54, %v1679_v8  ;;  %v1742_v46 = vmul.f32 1.442695, %v1674_v10  ;;  %vm1686_vm10 = vcmp.eq.f32.partialorder %v1685_v49, 8.507059e+37  ;;  %v6627_v32 = vld [vmem:[%s9351_s1 + $0x20] sm:$0xff] }
 0x869   :  { %v6241_v31 = vpop.eup %6240  ;;  %v1702_v0 = vand.u32 2147483648, %v7405_v23  ;;  %vm1696_vm12 = vweird.f32 %v7405_v23  ;;  %v1700_v3 = vand.u32 2147483647, %v7405_v23  ;;  %vm1726_vm3 = vweird.f32 %v7415_v18 }
 0x86a   :  { %v6243_v33 = vpop.eup %6242  ;;  %v7425_v13 = vmul.f32 %v6622_v35, %v6241_v31  ;;  %v1684_v19 = vsel %vm1683_vm9, %v7399_v54, %v1680_v40  ;;  %6252 = vpow2.f32 %v1742_v46  ;;  %v1730_v2 = vand.u32 2147483647, %v7415_v18 }
 0x86b   :  { %v6245_v7 = vpop.eup %6244  ;;  %v7435_v41 = vmul.f32 %v6623_v36, %v6243_v33  ;;  %v1689_v28 = vsel %vm1686_vm10, %v1688_v34, %v1684_v19  ;;  %v1703_v6 = vor.u32 1.1754944e-38, %v1702_v0  ;;  %vm1701_vm15 = vcmp.eq.f32.partialorder %v1700_v3, 8.507059e+37 }
 0x86c   :  { %1924 = vrot.lane.b32.xlu2 %v7425_v13, %s6666_s0  ;;  %v1692_v42 = vmul.f32 %v6245_v7, %v7405_v23  ;;  %v6247_v20 = vpop.eup %6246  ;;  %vm1697_vm11 = vweird.f32 %v6245_v7  ;;  %v1744_v54 = vmul.f32 1.442695, %v1689_v28  ;;  %v1732_v23 = vand.u32 2147483648, %v7415_v18 }
 0x86d   :  { %1932 = vrot.lane.b32.xlu1 %v7435_v41, %s6666_s0  ;;  %v7449_v56 = vmul.f32 %v6624_v21, %v6247_v20  ;;  %v6249_v48 = vpop.eup %6248  ;;  %vm1698_vm13 = vmor %vm1696_vm12, %vm1697_vm11  ;;  %vm1731_vm5 = vcmp.eq.f32.partialorder %v1730_v2, 8.507059e+37 }
 0x86e   :  { %v1693_v43 = vsub.f32 1.0, %v1692_v42  ;;  %v6251_v52 = vpop.eup %6250  ;;  %v1722_v62 = vmul.f32 %v6249_v48, %v7415_v18  ;;  %6254 = vpow2.f32 %v1744_v54  ;;  %vm1727_vm2 = vweird.f32 %v6249_v48  ;;  %v6628_v18 = vld [vmem:[%s9351_s1 + $0x28] sm:$0xff] }
 0x86f   :  { %1920 = vrot.lane.b32.xlu0 %v7449_v56, %s6666_s0  ;;  %v7466_v17 = vmul.f32 %v6625_v51, %v6251_v52  ;;  %vm1728_vm4 = vmor %vm1726_vm3, %vm1727_vm2  ;;  %v1733_v31 = vor.u32 1.1754944e-38, %v1732_v23 }
 0x870   :  { %v1694_v45 = vmul.f32 %v6245_v7, %v1693_v43  ;;  %v1723_v22 = vsub.f32 1.0, %v1722_v62  ;;  %v6253_v47 = vpop.eup %6252  ;;  %v6067_v43 = vpack.i.bf16 %v7276_v61, %v7283_v15 }
 0x871   :  { %v7476_v11 = vmul.f32 %v6626_v57, %v6253_v47 }
 0x872   :  { %v1695_v60 = vadd.f32 %v6245_v7, %v1694_v45  ;;  %v1724_v5 = vmul.f32 %v6249_v48, %v1723_v22 }
 0x874   :  { %v1699_v9 = vsel %vm1698_vm13, %v6245_v7, %v1695_v60  ;;  %v1725_v29 = vadd.f32 %v6249_v48, %v1724_v5  ;;  %v6255_v24 = vpop.eup %6254 }
 0x875   :  { %6073 = vrot.lane.b32.xlu1 %v6072_v59, %s6667_s24  ;;  %v1704_v25 = vsel %vm1701_vm15, %v1703_v6, %v1699_v9  ;;  %v7486_v27 = vmul.f32 %v6627_v32, %v6255_v24 }
 0x876   :  { %v1746_v1 = vmul.f32 1.442695, %v1704_v25  ;;  %v1729_v30 = vsel %vm1728_vm4, %v6249_v48, %v1725_v29 }
 0x877   :  { %1922 = vrot.lane.b32.xlu0 %v7466_v17, %s6666_s0  ;;  %v1734_v33 = vsel %vm1731_vm5, %v1733_v31, %v1729_v30 }
 0x878   :  { %6256 = vpow2.f32 %v1746_v1  ;;  %v1750_v35 = vmul.f32 1.442695, %v1734_v33 }
 0x87a   :  { %6258 = vpow2.f32 %v1750_v35 }
 0x87e   :  { %v6257_v38 = vpop.eup %6256 }
 0x87f   :  { %1926 = vrot.lane.b32.xlu0 %v7476_v11, %s6666_s0  ;;  %v7493_v7 = vmul.f32 %v6628_v18, %v6257_v38 }
 0x880   :  { %v6259_v36 = vpop.eup %6258 }
 0x881   :  { %v7500_v8 = vmul.f32 %v6629_v12, %v6259_v36 }
 0x887   :  { %1928 = vrot.lane.b32.xlu0 %v7486_v27, %s6666_s0 }
 0x88f   :  { %1930 = vrot.lane.b32.xlu0 %v7493_v7, %s6666_s0 }
 0x897   :  { %1934 = vrot.lane.b32.xlu0 %v7500_v8, %s6666_s0 }
 0x8c6   :  { %v1925_v19 = vpop.permute.xlu2 %1924 }
 0x8c7   :  { %v1950_v45 = vsel %vm9367_vm1, %v1925_v19, 0.0 }
 0x8df   :  { %v1933_v62 = vpop.permute.xlu1 %1932 }
 0x8e0   :  { %v1962_v61 = vsel %vm9367_vm1, %v1933_v62, 0.0 }
 0x8e1   :  { %v1921_v14 = vpop.permute.xlu0 %1920 }
 0x8e2   :  { %v1944_v42 = vsel %vm9367_vm1, %v1921_v14, 0.0 }
 0x8e3   :  { %1945 = vadd.xlane.f32.xlu0 %v1944_v42 }
 0x8e7   :  { %v6074_v15 = vpop.permute.xlu1 %6073 }
 0x8e8   :  { %v6075_v38 = vunpack.i.l.bf16 %v6074_v15  ;;  %v6076_v12 = vunpack.i.h.bf16 %v6074_v15 }
 0x8e9   :  { %v1923_v20 = vpop.permute.xlu0 %1922 }
 0x8ea   :  { %v1947_v21 = vsel %vm9367_vm1, %v1923_v20, 0.0 }
 0x8eb   :  { %1948 = vadd.xlane.f32.xlu1 %v1947_v21 }
 0x8f1   :  { %v1927_v10 = vpop.permute.xlu0 %1926 }
 0x8f2   :  { %v1953_v40 = vsel %vm9367_vm1, %v1927_v10, 0.0 }
 0x8f3   :  { %1954 = vadd.xlane.f32.xlu1 %v1953_v40 }
 0x8f7   :  { %6068 = vrot.lane.b32.xlu0 %v6067_v43, %s6667_s24 }
 0x8f9   :  { %v1929_v48 = vpop.permute.xlu0 %1928 }
 0x8fa   :  { %v1956_v44 = vsel %vm9367_vm1, %v1929_v48, 0.0 }
 0x8fb   :  { %1957 = vadd.xlane.f32.xlu2 %v1956_v44 }
 0x901   :  { %v1931_v46 = vpop.permute.xlu0 %1930 }
 0x902   :  { %v1959_v49 = vsel %vm9367_vm1, %v1931_v46, 0.0  ;;  %v1763_v46 = vsel %vm9367_vm1, %v7466_v17, 0.0 }
 0x903   :  { %1960 = vadd.xlane.f32.xlu1 %v1959_v49 }
 0x909   :  { %v1935_v52 = vpop.permute.xlu0 %1934 }
 0x90a   :  { %v1965_v59 = vsel %vm9367_vm1, %v1935_v52, 0.0 }
 0x90b   :  { %1966 = vadd.xlane.f32.xlu2 %v1965_v59 }
 0x921   :  { %1951 = vadd.xlane.f32.xlu0 %v1950_v45 }
 0x929   :  { %1963 = vadd.xlane.f32.xlu0 %v1962_v61 }
 0x956   :  { %v1946_v34 = vpop.xlane.xlu0 %1945 }
 0x957   :  { %v1968_v51 = vadd.f32 1e-16, %v1946_v34  ;;  %v1769_v34 = vsel %vm9367_vm1, %v7476_v11, 0.0 }
 0x959   :  { %6260 = vrcp.f32 %v1968_v51  ;;  %v1987_v3 = vand.u32 2147483648, %v1968_v51  ;;  %v1985_v9 = vand.u32 2147483647, %v1968_v51  ;;  %vm1981_vm7 = vweird.f32 %v1968_v51 }
 0x95b   :  { %v1988_v57 = vor.u32 1.1754944e-38, %v1987_v3  ;;  %vm1986_vm9 = vcmp.eq.f32.partialorder %v1985_v9, 8.507059e+37 }
 0x95e   :  { %v1949_v28 = vpop.xlane.xlu1 %1948 }
 0x95f   :  { %v6261_v60 = vpop.eup %6260  ;;  %v1969_v22 = vadd.f32 1e-16, %v1949_v28 }
 0x960   :  { %v1977_v0 = vmul.f32 %v6261_v60, %v1968_v51  ;;  %vm1982_vm6 = vweird.f32 %v6261_v60 }
 0x961   :  { %6262 = vrcp.f32 %v1969_v22  ;;  %vm1983_vm8 = vmor %vm1981_vm7, %vm1982_vm6  ;;  %v2002_v31 = vand.u32 2147483648, %v1969_v22  ;;  %v2000_v35 = vand.u32 2147483647, %v1969_v22  ;;  %vm1996_vm11 = vweird.f32 %v1969_v22 }
 0x962   :  { %v1978_v54 = vsub.f32 1.0, %v1977_v0 }
 0x963   :  { %v2003_v36 = vor.u32 1.1754944e-38, %v2002_v31  ;;  %vm2001_vm13 = vcmp.eq.f32.partialorder %v2000_v35, 8.507059e+37 }
 0x964   :  { %v1979_v47 = vmul.f32 %v6261_v60, %v1978_v54 }
 0x966   :  { %v1980_v5 = vadd.f32 %v6261_v60, %v1979_v47  ;;  %v1955_v21 = vpop.xlane.xlu1 %1954 }
 0x967   :  { %v6263_v6 = vpop.eup %6262  ;;  %v7519_v10 = vadd.f32 1e-16, %v1955_v21 }
 0x968   :  { %v1992_v25 = vmul.f32 %v6263_v6, %v1969_v22  ;;  %v1984_v29 = vsel %vm1983_vm8, %v6261_v60, %v1980_v5  ;;  %vm1997_vm10 = vweird.f32 %v6263_v6  ;;  %v1760_v22 = vsel %vm9367_vm1, %v7449_v56, 0.0 }
 0x969   :  { %v6069_v23 = vpop.permute.xlu0 %6068  ;;  %v1989_v1 = vsel %vm1986_vm9, %v1988_v57, %v1984_v29  ;;  %vm1998_vm12 = vmor %vm1996_vm11, %vm1997_vm10  ;;  %6264 = vrcp.f32 %v7519_v10  ;;  %vm2026_vm6 = vweird.f32 %v7519_v10 }
 0x96a   :  { %v1993_v2 = vsub.f32 1.0, %v1992_v25  ;;  %v2169_v24 = vmul.f32 %v1989_v1, %v7449_v56  ;;  %v6070_v30 = vunpack.i.l.bf16 %v6069_v23  ;;  %v6071_v32 = vunpack.i.h.bf16 %v6069_v23 }
 0x96c   :  { %2185 = vrot.lane.b32.xlu2 %v2169_v24, %s6666_s0  ;;  %2253 = vmatpush.msrb.mxu3 %v6070_v30  ;;  %v1994_v33 = vmul.f32 %v6263_v6, %v1993_v2  ;;  %v2032_v24 = vand.u32 2147483648, %v7519_v10 }
 0x96e   :  { %2254 = vmatpush.msrb.mxu3 %v6071_v32  ;;  %v1995_v18 = vadd.f32 %v6263_v6, %v1994_v33  ;;  %v1958_v40 = vpop.xlane.xlu2 %1957 }
 0x96f   :  { %v7526_v49 = vadd.f32 1e-16, %v1958_v40  ;;  %v7528_v59 = vpop.eup %6264  ;;  %v2033_v40 = vor.u32 1.1754944e-38, %v2032_v24 }
 0x970   :  { %2255 = vmatpush.msrb.mxu3 %v6075_v38  ;;  %v1999_v14 = vsel %vm1998_vm12, %v6263_v6, %v1995_v18  ;;  %v2022_v45 = vmul.f32 %v7528_v59, %v7519_v10  ;;  %vm2027_vm4 = vweird.f32 %v7528_v59 }
 0x971   :  { %v2004_v42 = vsel %vm2001_vm13, %v2003_v36, %v1999_v14  ;;  %vm7564_vm7 = vmor %vm2026_vm6, %vm2027_vm4 }
 0x972   :  { %2256 = vmatpush.msrb.mxu3 %v6076_v12  ;;  %v2170_v20 = vmul.f32 %v2004_v42, %v7466_v17  ;;  %v2023_v28 = vsub.f32 1.0, %v2022_v45 }
 0x974   :  { %2187 = vrot.lane.b32.xlu1 %v2170_v20, %s6666_s0  ;;  %v2024_v9 = vmul.f32 %v7528_v59, %v2023_v28  ;;  %v2030_v20 = vand.u32 2147483647, %v7519_v10 }
 0x976   :  { %v1961_v43 = vpop.xlane.xlu1 %1960  ;;  %v2025_v31 = vadd.f32 %v7528_v59, %v2024_v9  ;;  %vm2031_vm10 = vcmp.eq.f32.partialorder %v2030_v20, 8.507059e+37 }
 0x977   :  { %v7522_v48 = vadd.f32 1e-16, %v1961_v43 }
 0x978   :  { %v2029_v21 = vsel %vm7564_vm7, %v7528_v59, %v2025_v31 }
 0x979   :  { %6266 = vrcp.f32 %v7522_v48  ;;  %v2062_v59 = vand.u32 2147483648, %v7522_v48  ;;  %vm2056_vm13 = vweird.f32 %v7522_v48 }
 0x97e   :  { %v1967_v19 = vpop.xlane.xlu2 %1966 }
 0x97f   :  { %v7534_v62 = vadd.f32 1e-16, %v1967_v19  ;;  %v7536_v61 = vpop.eup %6266 }
 0x980   :  { %v2052_v3 = vmul.f32 %v7536_v61, %v7522_v48  ;;  %vm2057_vm9 = vweird.f32 %v7536_v61 }
 0x981   :  { %v2090_v24 = vand.u32 2147483647, %v7534_v62 }
 0x982   :  { %v2053_v29 = vsub.f32 1.0, %v2052_v3 }
 0x984   :  { %v2054_v36 = vmul.f32 %v7536_v61, %v2053_v29 }
 0x986   :  { %v2055_v45 = vadd.f32 %v7536_v61, %v2054_v36  ;;  %v1775_v36 = vsel %vm9367_vm1, %v7493_v7, 0.0 }
 0x994   :  { %v1952_v44 = vpop.xlane.xlu0 %1951 }
 0x995   :  { %v1970_v52 = vadd.f32 1e-16, %v1952_v44  ;;  %1764 = vadd.xlane.f32.xlu2 %v1763_v46 }
 0x997   :  { %6268 = vrcp.f32 %v1970_v52  ;;  %v2017_v5 = vand.u32 2147483648, %v1970_v52  ;;  %v2015_v25 = vand.u32 2147483647, %v1970_v52  ;;  %vm2011_vm2 = vweird.f32 %v1970_v52 }
 0x998   :  { %6270 = vrcp.f32 %v7526_v49 }
 0x999   :  { %6272 = vrcp.f32 %v7534_v62  ;;  %v2018_v30 = vor.u32 1.1754944e-38, %v2017_v5  ;;  %vm2016_vm5 = vcmp.eq.f32.partialorder %v2015_v25, 8.507059e+37  ;;  %v2045_v5 = vand.u32 2147483647, %v7526_v49 }
 0x99c   :  { %v1964_v15 = vpop.xlane.xlu0 %1963 }
 0x99d   :  { %v6269_v51 = vpop.eup %6268  ;;  %v7540_v60 = vadd.f32 1e-16, %v1964_v15  ;;  %1770 = vadd.xlane.f32.xlu2 %v1769_v34  ;;  %v2034_v15 = vsel %vm2031_vm10, %v2033_v40, %v2029_v21  ;;  %v2060_v34 = vand.u32 2147483647, %v7522_v48  ;;  %v2063_v48 = vor.u32 1.1754944e-38, %v2062_v59 }
 0x99e   :  { %v2007_v0 = vmul.f32 %v6269_v51, %v1970_v52  ;;  %1761 = vadd.xlane.f32.xlu1 %v1760_v22  ;;  %v7545_v54 = vpop.eup %6270  ;;  %vm2012_vm15 = vweird.f32 %v6269_v51 }
 0x99f   :  { %6274 = vrcp.f32 %v7540_v60  ;;  %v2037_v6 = vmul.f32 %v7545_v54, %v7526_v49  ;;  %v7553_v23 = vpop.eup %6272  ;;  %vm2013_vm3 = vmor %vm2011_vm2, %vm2012_vm15  ;;  %v2077_v46 = vand.u32 2147483648, %v7540_v60  ;;  %v2075_v19 = vand.u32 2147483647, %v7540_v60 }
 0x9a0   :  { %v2008_v47 = vsub.f32 1.0, %v2007_v0  ;;  %v2082_v38 = vmul.f32 %v7553_v23, %v7534_v62  ;;  %vm2071_vm11 = vweird.f32 %v7540_v60  ;;  %vm2041_vm15 = vweird.f32 %v7526_v49  ;;  %vm2058_vm2 = vmor %vm2056_vm13, %vm2057_vm9 }
 0x9a1   :  { %v2038_v32 = vsub.f32 1.0, %v2037_v6  ;;  %v2078_v28 = vor.u32 1.1754944e-38, %v2077_v46  ;;  %vm2076_vm4 = vcmp.eq.f32.partialorder %v2075_v19, 8.507059e+37  ;;  %v2047_v0 = vand.u32 2147483648, %v7526_v49 }
 0x9a2   :  { %v2009_v57 = vmul.f32 %v6269_v51, %v2008_v47  ;;  %v2083_v52 = vsub.f32 1.0, %v2082_v38  ;;  %v2172_v47 = vmul.f32 %v2034_v15, %v7476_v11  ;;  %vm2087_vm7 = vweird.f32 %v7553_v23 }
 0x9a3   :  { %v2039_v43 = vmul.f32 %v7545_v54, %v2038_v32  ;;  %v2048_v25 = vor.u32 1.1754944e-38, %v2047_v0  ;;  %vm2086_vm9 = vweird.f32 %v7534_v62 }
 0x9a4   :  { %v2010_v1 = vadd.f32 %v6269_v51, %v2009_v57  ;;  %v2084_v3 = vmul.f32 %v7553_v23, %v2083_v52  ;;  %vm2088_vm10 = vmor %vm2086_vm9, %vm2087_vm7 }
 0x9a5   :  { %v6275_v2 = vpop.eup %6274  ;;  %v2040_v22 = vadd.f32 %v7545_v54, %v2039_v43 }
 0x9a6   :  { %v2067_v33 = vmul.f32 %v6275_v2, %v7540_v60  ;;  %v2014_v35 = vsel %vm2013_vm3, %v6269_v51, %v2010_v1  ;;  %vm2072_vm8 = vweird.f32 %v6275_v2  ;;  %vm2042_vm3 = vweird.f32 %v7545_v54 }
 0x9a7   :  { %v2019_v18 = vsel %vm2016_vm5, %v2018_v30, %v2014_v35  ;;  %vm2073_vm12 = vmor %vm2071_vm11, %vm2072_vm8  ;;  %v2059_v60 = vsel %vm2058_vm2, %v7536_v61, %v2055_v45  ;;  %vm2061_vm5 = vcmp.eq.f32.partialorder %v2060_v34, 8.507059e+37  ;;  %v2085_v29 = vadd.f32 %v7553_v23, %v2084_v3 }
 0x9a8   :  { %v2068_v12 = vsub.f32 1.0, %v2067_v33  ;;  %v2171_v14 = vmul.f32 %v2019_v18, %v7425_v13  ;;  %vm2043_vm6 = vmor %vm2041_vm15, %vm2042_vm3  ;;  %v2064_v6 = vsel %vm2061_vm5, %v2063_v48, %v2059_v60  ;;  %vm2046_vm8 = vcmp.eq.f32.partialorder %v2045_v5, 8.507059e+37 }
 0x9a9   :  { %v2044_v57 = vsel %vm2043_vm6, %v7545_v54, %v2040_v22  ;;  %v2092_v1 = vand.u32 2147483648, %v7534_v62  ;;  %v2174_v49 = vmul.f32 %v2064_v6, %v7493_v7  ;;  %v2089_v54 = vsel %vm2088_vm10, %v7553_v23, %v2085_v29 }
 0x9aa   :  { %2189 = vrot.lane.b32.xlu0 %v2171_v14, %s6666_s0  ;;  %v2069_v44 = vmul.f32 %v6275_v2, %v2068_v12  ;;  %vm2091_vm11 = vcmp.eq.f32.partialorder %v2090_v24, 8.507059e+37  ;;  %v1766_v62 = vsel %vm9367_vm1, %v7425_v13, 0.0  ;;  %v1778_v23 = vsel %vm9367_vm1, %v7435_v41, 0.0 }
 0x9ab   :  { %v2093_v31 = vor.u32 1.1754944e-38, %v2092_v1  ;;  %v1772_v18 = vsel %vm9367_vm1, %v7486_v27, 0.0  ;;  %v1781_v12 = vsel %vm9367_vm1, %v7500_v8, 0.0 }
 0x9ac   :  { %v2070_v10 = vadd.f32 %v6275_v2, %v2069_v44 }
 0x9ad   :  { %v2094_v32 = vsel %vm2091_vm11, %v2093_v31, %v2089_v54 }
 0x9ae   :  { %v2074_v51 = vsel %vm2073_vm12, %v6275_v2, %v2070_v10  ;;  %v2049_v2 = vsel %vm2046_vm8, %v2048_v25, %v2044_v57  ;;  %v2176_v33 = vmul.f32 %v2094_v32, %v7500_v8 }
 0x9af   :  { %v2079_v9 = vsel %vm2076_vm4, %v2078_v28, %v2074_v51  ;;  %v2173_v30 = vmul.f32 %v2049_v2, %v7486_v27 }
 0x9b0   :  { %v2175_v61 = vmul.f32 %v2079_v9, %v7435_v41 }
 0x9b2   :  { %2191 = vrot.lane.b32.xlu0 %v2172_v47, %s6666_s0 }
 0x9b5   :  { %2197 = vrot.lane.b32.xlu2 %v2175_v61, %s6666_s0 }
 0x9b7   :  { %2195 = vrot.lane.b32.xlu1 %v2174_v49, %s6666_s0 }
 0x9ba   :  { %2193 = vrot.lane.b32.xlu0 %v2173_v30, %s6666_s0 }
 0x9bf   :  { %2199 = vrot.lane.b32.xlu1 %v2176_v33, %s6666_s0 }
 0x9c6   :  { %v2186_v35 = vpop.permute.xlu2 %2185 }
 0x9c7   :  { %5886 = vmatmul.msk.f32.vlgmr.msrb.gmra.mxu3 %vm9367_vm1, %v2186_v35 }
 0x9e4   :  { %1767 = vadd.xlane.f32.xlu0 %v1766_v62 }
 0x9e6   :  { %v2188_v38 = vpop.permute.xlu1 %2187 }
 0x9e7   :  { %5887 = vmatmul.msk.f32.gmra.mxu3 %vm9367_vm1, %v2188_v38 }
 0x9e9   :  { %1779 = vadd.xlane.f32.xlu1 %v1778_v23 }
 0x9ec   :  { %1773 = vadd.xlane.f32.xlu0 %v1772_v18 }
 0x9f4   :  { %1776 = vadd.xlane.f32.xlu0 %v1775_v36 }
 0x9fc   :  { %1782 = vadd.xlane.f32.xlu0 %v1781_v12 }
 0xa08   :  { %v1765_v14 = vpop.xlane.xlu2 %1764 }
 0xa09   :  { %v1785_v42 = vadd.f32 1e-16, %v1765_v14 }
 0xa0b   :  { %6276 = vrcp.f32 %v1785_v42  ;;  %v1818_v47 = vand.u32 2147483648, %v1785_v42  ;;  %vm1812_vm4 = vweird.f32 %v1785_v42  ;;  %v1816_v48 = vand.u32 2147483647, %v1785_v42 }
 0xa0d   :  { %v1819_v6 = vor.u32 1.1754944e-38, %v1818_v47  ;;  %vm1817_vm6 = vcmp.eq.f32.partialorder %v1816_v48, 8.507059e+37 }
 0xa10   :  { %v1771_v29 = vpop.xlane.xlu2 %1770 }
 0xa11   :  { %v1762_v20 = vpop.xlane.xlu1 %1761  ;;  %v6277_v40 = vpop.eup %6276  ;;  %v1787_v24 = vadd.f32 1e-16, %v1771_v29 }
 0xa12   :  { %v1784_v21 = vadd.f32 1e-16, %v1762_v20  ;;  %v1808_v43 = vmul.f32 %v6277_v40, %v1785_v42  ;;  %vm1813_vm3 = vweird.f32 %v6277_v40 }
 0xa13   :  { %vm1814_vm5 = vmor %vm1812_vm4, %vm1813_vm3 }
 0xa14   :  { %6278 = vrcp.f32 %v1784_v21  ;;  %v1809_v46 = vsub.f32 1.0, %v1808_v43  ;;  %v1803_v10 = vand.u32 2147483648, %v1784_v21  ;;  %v1801_v15 = vand.u32 2147483647, %v1784_v21 }
 0xa15   :  { %vm1797_vm13 = vweird.f32 %v1784_v21  ;;  %6280 = vrcp.f32 %v1787_v24 }
 0xa16   :  { %v1810_v34 = vmul.f32 %v6277_v40, %v1809_v46  ;;  %v1804_v28 = vor.u32 1.1754944e-38, %v1803_v10  ;;  %vm1802_vm2 = vcmp.eq.f32.partialorder %v1801_v15, 8.507059e+37  ;;  %v1848_v15 = vand.u32 2147483648, %v1787_v24 }
 0xa18   :  { %v1811_v60 = vadd.f32 %v6277_v40, %v1810_v34 }
 0xa1a   :  { %v6279_v44 = vpop.eup %6278  ;;  %v1815_v5 = vsel %vm1814_vm5, %v6277_v40, %v1811_v60 }
 0xa1b   :  { %v1793_v52 = vmul.f32 %v6279_v44, %v1784_v21  ;;  %vm1798_vm12 = vweird.f32 %v6279_v44  ;;  %v1820_v57 = vsel %vm1817_vm6, %v1819_v6, %v1815_v5 }
 0xa1c   :  { %v2190_v19 = vpop.permute.xlu0 %2189  ;;  %vm1799_vm15 = vmor %vm1797_vm13, %vm1798_vm12  ;;  %v2097_v25 = vmul.f32 %v1820_v57, %v7466_v17  ;;  %v6281_v17 = vpop.eup %6280  ;;  %vm1842_vm12 = vweird.f32 %v1787_v24 }
 0xa1d   :  { %v1794_v45 = vsub.f32 1.0, %v1793_v52  ;;  %5888 = vmatmul.msk.f32.gmra.mxu3 %vm9367_vm1, %v2190_v19  ;;  %v1838_v31 = vmul.f32 %v6281_v17, %v1787_v24  ;;  %vm1843_vm10 = vweird.f32 %v6281_v17 }
 0xa1e   :  { %vm1844_vm13 = vmor %vm1842_vm12, %vm1843_vm10 }
 0xa1f   :  { %v1795_v59 = vmul.f32 %v6279_v44, %v1794_v45  ;;  %v1839_v62 = vsub.f32 1.0, %v1838_v31 }
 0xa21   :  { %v1796_v51 = vadd.f32 %v6279_v44, %v1795_v59  ;;  %v1840_v42 = vmul.f32 %v6281_v17, %v1839_v62 }
 0xa23   :  { %v1800_v22 = vsel %vm1799_vm15, %v6279_v44, %v1796_v51  ;;  %v1841_v45 = vadd.f32 %v6281_v17, %v1840_v42 }
 0xa24   :  { %v2192_v0 = vpop.permute.xlu0 %2191  ;;  %v1805_v3 = vsel %vm1802_vm2, %v1804_v28, %v1800_v22  ;;  %v1846_v28 = vand.u32 2147483647, %v1787_v24 }
 0xa25   :  { %5889 = vmatmul.msk.f32.gmra.mxu3 %vm9367_vm1, %v2192_v0  ;;  %v2096_v9 = vmul.f32 %v1805_v3, %v7449_v56  ;;  %v2198_v56 = vpop.permute.xlu2 %2197  ;;  %v1845_v22 = vsel %vm1844_vm13, %v6281_v17, %v1841_v45  ;;  %v1849_v0 = vor.u32 1.1754944e-38, %v1848_v15 }
 0xa26   :  { %vm1847_vm15 = vcmp.eq.f32.partialorder %v1846_v28, 8.507059e+37 }
 0xa27   :  { %5878 = vmatmul.msk.f32.vlgmr.msrb.gmra.mxu0 %vm9367_vm1, %v2096_v9  ;;  %v1850_v48 = vsel %vm1847_vm15, %v1849_v0, %v1845_v22 }
 0xa29   :  { %v2196_v1 = vpop.permute.xlu1 %2195 }
 0xa2c   :  { %v2194_v61 = vpop.permute.xlu0 %2193 }
 0xa2d   :  { %5890 = vmatmul.msk.f32.gmra.mxu3 %vm9367_vm1, %v2194_v61 }
 0xa2f   :  { %5879 = vmatmul.msk.f32.gmra.mxu0 %vm9367_vm1, %v2097_v25  ;;  %v2099_v25 = vmul.f32 %v1850_v48, %v7476_v11 }
 0xa31   :  { %v2200_v49 = vpop.permute.xlu1 %2199 }
 0xa35   :  { %5891 = vmatmul.msk.f32.gmra.mxu3 %vm9367_vm1, %v2196_v1 }
 0xa3d   :  { %5892 = vmatmul.msk.f32.gmra.mxu3 %vm9367_vm1, %v2198_v56 }
 0xa45   :  { %5893 = vmatmul.msk.f32.gmra.mxu3 %vm9367_vm1, %v2200_v49 }
 0xa4a   :  { %v2258_v2 = vpop.f32.mrf.mxu3 }
 0xa4b   :  { %2290 = vrot.lane.b32.xlu2 %v2258_v2, %s6668_s16 }
 0xa57   :  { %v1768_v54 = vpop.xlane.xlu0 %1767 }
 0xa58   :  { %v1786_v30 = vadd.f32 1e-16, %v1768_v54 }
 0xa5a   :  { %6282 = vrcp.f32 %v1786_v30  ;;  %v1833_v18 = vand.u32 2147483648, %v1786_v30  ;;  %v1831_v14 = vand.u32 2147483647, %v1786_v30  ;;  %vm1827_vm8 = vweird.f32 %v1786_v30 }
 0xa5c   :  { %v1780_v36 = vpop.xlane.xlu1 %1779  ;;  %v1834_v46 = vor.u32 1.1754944e-38, %v1833_v18  ;;  %vm1832_vm11 = vcmp.eq.f32.partialorder %v1831_v14, 8.507059e+37 }
 0xa5d   :  { %v7631_v43 = vadd.f32 1e-16, %v1780_v36 }
 0xa5f   :  { %v1774_v32 = vpop.xlane.xlu0 %1773 }
 0xa60   :  { %v6283_v33 = vpop.eup %6282  ;;  %v1788_v35 = vadd.f32 1e-16, %v1774_v32 }
 0xa61   :  { %v1823_v38 = vmul.f32 %v6283_v33, %v1786_v30  ;;  %vm1828_vm7 = vweird.f32 %v6283_v33 }
 0xa62   :  { %6284 = vrcp.f32 %v1788_v35  ;;  %vm1829_vm9 = vmor %vm1827_vm8, %vm1828_vm7  ;;  %v1863_v57 = vand.u32 2147483648, %v1788_v35  ;;  %vm1857_vm3 = vweird.f32 %v1788_v35  ;;  %v1861_v29 = vand.u32 2147483647, %v1788_v35 }
 0xa63   :  { %v1824_v23 = vsub.f32 1.0, %v1823_v38 }
 0xa64   :  { %v1864_v2 = vor.u32 1.1754944e-38, %v1863_v57  ;;  %vm1862_vm5 = vcmp.eq.f32.partialorder %v1861_v29, 8.507059e+37 }
 0xa65   :  { %v1825_v12 = vmul.f32 %v6283_v33, %v1824_v23 }
 0xa67   :  { %v1777_v20 = vpop.xlane.xlu0 %1776  ;;  %v1826_v21 = vadd.f32 %v6283_v33, %v1825_v12  ;;  %v1893_v12 = vand.u32 2147483648, %v7631_v43 }
 0xa68   :  { %v6285_v40 = vpop.eup %6284  ;;  %v1789_v44 = vadd.f32 1e-16, %v1777_v20 }
 0xa69   :  { %v1853_v52 = vmul.f32 %v6285_v40, %v1788_v35  ;;  %v1830_v19 = vsel %vm1829_vm9, %v6283_v33, %v1826_v21  ;;  %vm1858_vm2 = vweird.f32 %v6285_v40  ;;  %v1894_v21 = vor.u32 1.1754944e-38, %v1893_v12 }
 0xa6a   :  { %6286 = vrcp.f32 %v1789_v44  ;;  %v2261_v10 = vpop.f32.mrf.mxu3  ;;  %v1835_v59 = vsel %vm1832_vm11, %v1834_v46, %v1830_v19  ;;  %vm1859_vm4 = vmor %vm1857_vm3, %vm1858_vm2  ;;  %v1878_v31 = vand.u32 2147483648, %v1789_v44  ;;  %vm1872_vm7 = vweird.f32 %v1789_v44 }
 0xa6b   :  { %v1854_v34 = vsub.f32 1.0, %v1853_v52  ;;  %2292 = vrot.lane.b32.xlu0 %v2261_v10, %s6668_s16  ;;  %v2098_v51 = vmul.f32 %v1835_v59, %v7425_v13  ;;  %6288 = vrcp.f32 %v7631_v43  ;;  %v1876_v32 = vand.u32 2147483647, %v1789_v44 }
 0xa6c   :  { %v1879_v38 = vor.u32 1.1754944e-38, %v1878_v31  ;;  %vm1887_vm11 = vweird.f32 %v7631_v43 }
 0xa6d   :  { %5880 = vmatmul.msk.f32.gmra.mxu0 %vm9367_vm1, %v2098_v51  ;;  %v1855_v60 = vmul.f32 %v6285_v40, %v1854_v34  ;;  %vm1877_vm9 = vcmp.eq.f32.partialorder %v1876_v32, 8.507059e+37 }
 0xa6f   :  { %v1783_v3 = vpop.xlane.xlu0 %1782  ;;  %v1856_v6 = vadd.f32 %v6285_v40, %v1855_v60 }
 0xa70   :  { %v6287_v47 = vpop.eup %6286  ;;  %v1791_v9 = vadd.f32 1e-16, %v1783_v3 }
 0xa71   :  { %v1868_v5 = vmul.f32 %v6287_v47, %v1789_v44  ;;  %v6289_v13 = vpop.eup %6288  ;;  %v1860_v56 = vsel %vm1859_vm4, %v6285_v40, %v1856_v6  ;;  %vm1873_vm6 = vweird.f32 %v6287_v47 }
 0xa72   :  { %6290 = vrcp.f32 %v1791_v9  ;;  %v1883_v1 = vmul.f32 %v6289_v13, %v7631_v43  ;;  %v1865_v24 = vsel %vm1862_vm5, %v1864_v2, %v1860_v56  ;;  %vm1874_vm8 = vmor %vm1872_vm7, %vm1873_vm6  ;;  %vm1888_vm10 = vweird.f32 %v6289_v13 }
 0xa73   :  { %v1869_v61 = vsub.f32 1.0, %v1868_v5  ;;  %v2100_v11 = vmul.f32 %v1865_v24, %v7486_v27  ;;  %v1891_v27 = vand.u32 2147483647, %v7631_v43  ;;  %vm1889_vm12 = vmor %vm1887_vm11, %vm1888_vm10  ;;  %v1908_v46 = vand.u32 2147483648, %v1791_v9 }
 0xa74   :  { %v1884_v54 = vsub.f32 1.0, %v1883_v1  ;;  %vm1902_vm2 = vweird.f32 %v1791_v9  ;;  %v1906_v19 = vand.u32 2147483647, %v1791_v9 }
 0xa75   :  { %5881 = vmatmul.msk.f32.gmra.mxu0 %vm9367_vm1, %v2099_v25  ;;  %v1870_v49 = vmul.f32 %v6287_v47, %v1869_v61  ;;  %vm1892_vm13 = vcmp.eq.f32.partialorder %v1891_v27, 8.507059e+37  ;;  %v1909_v43 = vor.u32 1.1754944e-38, %v1908_v46 }
 0xa76   :  { %v1885_v62 = vmul.f32 %v6289_v13, %v1884_v54  ;;  %vm1907_vm4 = vcmp.eq.f32.partialorder %v1906_v19, 8.507059e+37 }
 0xa77   :  { %v1871_v30 = vadd.f32 %v6287_v47, %v1870_v49 }
 0xa78   :  { %v6291_v17 = vpop.eup %6290  ;;  %v1886_v36 = vadd.f32 %v6289_v13, %v1885_v62 }
 0xa79   :  { %v1898_v33 = vmul.f32 %v6291_v17, %v1791_v9  ;;  %v1875_v35 = vsel %vm1874_vm8, %v6287_v47, %v1871_v30  ;;  %vm1903_vm15 = vweird.f32 %v6291_v17 }
 0xa7a   :  { %v1880_v23 = vsel %vm1877_vm9, %v1879_v38, %v1875_v35  ;;  %v1890_v42 = vsel %vm1889_vm12, %v6289_v13, %v1886_v36  ;;  %vm1904_vm3 = vmor %vm1902_vm2, %vm1903_vm15 }
 0xa7b   :  { %v1899_v18 = vsub.f32 1.0, %v1898_v33  ;;  %v2101_v14 = vmul.f32 %v1880_v23, %v7493_v7  ;;  %v1895_v40 = vsel %vm1892_vm13, %v1894_v21, %v1890_v42 }
 0xa7c   :  { %v2102_v52 = vmul.f32 %v1895_v40, %v7435_v41 }
 0xa7d   :  { %5882 = vmatmul.msk.f32.gmra.mxu0 %vm9367_vm1, %v2100_v11  ;;  %v1900_v20 = vmul.f32 %v6291_v17, %v1899_v18 }
 0xa7f   :  { %v1901_v44 = vadd.f32 %v6291_v17, %v1900_v20 }
 0xa81   :  { %v1905_v7 = vsel %vm1904_vm3, %v6291_v17, %v1901_v44 }
 0xa82   :  { %v1910_v45 = vsel %vm1907_vm4, %v1909_v43, %v1905_v7 }
 0xa83   :  { %v2103_v10 = vmul.f32 %v1910_v45, %v7500_v8 }
 0xa85   :  { %5883 = vmatmul.msk.f32.gmra.mxu0 %vm9367_vm1, %v2101_v14 }
 0xa8d   :  { %5884 = vmatmul.msk.f32.gmra.mxu0 %vm9367_vm1, %v2102_v52 }
 0xa95   :  { %5885 = vmatmul.msk.f32.gmra.mxu0 %vm9367_vm1, %v2103_v10 }
 0xaa0   :  { %v2264_v59 = vpop.f32.mrf.mxu3 }
 0xaa1   :  { %2294 = vrot.lane.b32.xlu2 %v2264_v59, %s6668_s16 }
 0xaa4   :  { %v2145_v8 = vpop.f32.mrf.mxu0 }
 0xaa5   :  { %v2291_v3 = vpop.permute.xlu2 %2290 }
 0xaa6   :  { %v7662_v57 = vsel %vm9366_vm14, %v2145_v8, %v2291_v3 }
 0xaa7   :  { %v2344_v56 = vmul.f32 %v7662_v57, %v7662_v57  ;;  %v2322_v17 = vsel %vm9365_vm0, %v7662_v57, 0.0 }
 0xaa8   :  { %v2267_v15 = vpop.f32.mrf.mxu3 }
 0xaa9   :  { %2296 = vrot.lane.b32.xlu2 %v2267_v15, %s6668_s16  ;;  %v2352_v35 = vsel %vm9365_vm0, %v2344_v56, 0.0 }
 0xaac   :  { %v2148_v22 = vpop.f32.mrf.mxu0 }
 0xab0   :  { %v2270_v41 = vpop.f32.mrf.mxu3 }
 0xab1   :  { %2298 = vrot.lane.b32.xlu0 %v2270_v41, %s6668_s16 }
 0xab8   :  { %v2273_v34 = vpop.f32.mrf.mxu3 }
 0xab9   :  { %2300 = vrot.lane.b32.xlu2 %v2273_v34, %s6668_s16 }
 0xac0   :  { %v2276_v51 = vpop.f32.mrf.mxu3 }
 0xac1   :  { %2302 = vrot.lane.b32.xlu0 %v2276_v51, %s6668_s16 }
 0xac8   :  { %v2279_v28 = vpop.f32.mrf.mxu3 }
 0xac9   :  { %2304 = vrot.lane.b32.xlu2 %v2279_v28, %s6668_s16 }
 0xadd   :  { %v2293_v48 = vpop.permute.xlu0 %2292 }
 0xade   :  { %v7659_v13 = vsel %vm9366_vm14, %v2148_v22, %v2293_v48 }
 0xadf   :  { %v2345_v25 = vmul.f32 %v7659_v13, %v7659_v13  ;;  %v2323_v49 = vsel %vm9365_vm0, %v7659_v13, 0.0 }
 0xae0   :  { %v2324_v33 = vadd.f32 %v2323_v49, %v2322_v17  ;;  %v2472_v17 = vld [vmem:[%s9354_s6 + $0x18] sm:$0xff] }
 0xae1   :  { %v2353_v31 = vsel %vm9365_vm0, %v2345_v25, 0.0  ;;  %2510 = vmatpush.msrb.mxu1 %v2472_v17 }
 0xae2   :  { %v2354_v18 = vadd.f32 %v2353_v31, %v2352_v35  ;;  %v2471_v31 = vld [vmem:[%s9354_s6 + $0x10] sm:$0xff] }
 0xae3   :  { %2511 = vmatpush.msrb.mxu1 %v2471_v31 }
 0xaea   :  { %v2151_v60 = vpop.f32.mrf.mxu0 }
 0xaf2   :  { %v2154_v0 = vpop.f32.mrf.mxu0 }
 0xafa   :  { %v2157_v47 = vpop.f32.mrf.mxu0 }
 0xafb   :  { %v2295_v9 = vpop.permute.xlu2 %2294 }
 0xafc   :  { %v7665_v61 = vsel %vm9366_vm14, %v2151_v60, %v2295_v9 }
 0xafd   :  { %v2346_v2 = vmul.f32 %v7665_v61, %v7665_v61  ;;  %v2325_v11 = vsel %vm9365_vm0, %v7665_v61, 0.0 }
 0xafe   :  { %v2326_v36 = vadd.f32 %v2325_v11, %v2324_v33  ;;  %v2470_v33 = vld [vmem:[%s9354_s6 + $0x8] sm:$0xff] }
 0xaff   :  { %v2355_v62 = vsel %vm9365_vm0, %v2346_v2, 0.0  ;;  %2512 = vmatpush.msrb.mxu1 %v2470_v33 }
 0xb00   :  { %v2356_v27 = vadd.f32 %v2355_v62, %v2354_v18 }
 0xb02   :  { %v2160_v5 = vpop.f32.mrf.mxu0 }
 0xb03   :  { %v2297_v6 = vpop.permute.xlu2 %2296 }
 0xb04   :  { %v7670_v1 = vsel %vm9366_vm14, %v2154_v0, %v2297_v6 }
 0xb05   :  { %v2347_v32 = vmul.f32 %v7670_v1, %v7670_v1  ;;  %v2327_v38 = vsel %vm9365_vm0, %v7670_v1, 0.0 }
 0xb06   :  { %v2328_v42 = vadd.f32 %v2327_v38, %v2326_v36  ;;  %v2469_v38 = vld [vmem:[%s9354_s6] sm:$0xff]  ;;  %s6673_s6 = smov 118  }
 0xb07   :  { %v2357_v12 = vsel %vm9365_vm0, %v2347_v32, 0.0  ;;  %2513 = vmatpush.msrb.mxu1 %v2469_v38 }
 0xb08   :  { %v2358_v44 = vadd.f32 %v2357_v12, %v2356_v27 }
 0xb0a   :  { %v2163_v24 = vpop.f32.mrf.mxu0 }
 0xb12   :  { %v2166_v52 = vpop.f32.mrf.mxu0 }
 0xb13   :  { %v2301_v54 = vpop.permute.xlu2 %2300 }
 0xb14   :  { %v7698_v20 = vsel %vm9366_vm14, %v2160_v5, %v2301_v54 }
 0xb15   :  { %v2349_v19 = vmul.f32 %v7698_v20, %v7698_v20  ;;  %v2331_v45 = vsel %vm9365_vm0, %v7698_v20, 0.0 }
 0xb17   :  { %v2361_v41 = vsel %vm9365_vm0, %v2349_v19, 0.0 }
 0xb23   :  { %v2299_v29 = vpop.permute.xlu0 %2298  ;;  %v2305_v40 = vpop.permute.xlu2 %2304 }
 0xb24   :  { %v7679_v30 = vsel %vm9366_vm14, %v2157_v47, %v2299_v29  ;;  %v7704_v43 = vsel %vm9366_vm14, %v2166_v52, %v2305_v40 }
 0xb25   :  { %v2348_v23 = vmul.f32 %v7679_v30, %v7679_v30  ;;  %v2329_v14 = vsel %vm9365_vm0, %v7679_v30, 0.0  ;;  %v2351_v34 = vmul.f32 %v7704_v43, %v7704_v43  ;;  %v2335_v60 = vsel %vm9365_vm0, %v7704_v43, 0.0 }
 0xb26   :  { %v2330_v46 = vadd.f32 %v2329_v14, %v2328_v42 }
 0xb27   :  { %v2359_v21 = vsel %vm9365_vm0, %v2348_v23, 0.0  ;;  %v2365_v9 = vsel %vm9365_vm0, %v2351_v34, 0.0 }
 0xb28   :  { %v2360_v7 = vadd.f32 %v2359_v21, %v2358_v44  ;;  %v2332_v15 = vadd.f32 %v2331_v45, %v2330_v46  ;;  %v1276_v46 = vld [vmem:[%s9355_s5] sm:$0x3]  ;;  %s6672_s5 = smov 120  }
 0xb29   :  { %v7753_v34 = vperm.slane %v1276_v46, 1 }
 0xb2a   :  { %v2362_v22 = vadd.f32 %v2361_v41, %v2360_v7  ;;  %v7747_v7 = vperm.slane %v1276_v46, 0 }
 0xb33   :  { %v2303_v10 = vpop.permute.xlu0 %2302 }
 0xb34   :  { %v7709_v59 = vsel %vm9366_vm14, %v2163_v24, %v2303_v10 }
 0xb35   :  { %v2333_v51 = vsel %vm9365_vm0, %v7709_v59, 0.0  ;;  %v2350_v28 = vmul.f32 %v7709_v59, %v7709_v59 }
 0xb36   :  { %v2334_v8 = vadd.f32 %v2333_v51, %v2332_v15 }
 0xb37   :  { %v2363_v0 = vsel %vm9365_vm0, %v2350_v28, 0.0 }
 0xb38   :  { %v2336_v3 = vadd.f32 %v2335_v60, %v2334_v8  ;;  %v2364_v47 = vadd.f32 %v2363_v0, %v2362_v22 }
 0xb3a   :  { %v2337_v48 = vrot.slane %v2336_v3, 4  ;;  %v2366_v5 = vadd.f32 %v2365_v9, %v2364_v47 }
 0xb3c   :  { %v2338_v6 = vadd.f32 %v2337_v48, %v2336_v3  ;;  %v2367_v25 = vrot.slane %v2366_v5, 4 }
 0xb3e   :  { %v2339_v29 = vrot.slane %v2338_v6, 2  ;;  %v2368_v56 = vadd.f32 %v2367_v25, %v2366_v5 }
 0xb40   :  { %v2340_v49 = vadd.f32 %v2339_v29, %v2338_v6  ;;  %v2369_v2 = vrot.slane %v2368_v56, 2 }
 0xb42   :  { %v2341_v24 = vrot.slane %v2340_v49, 1  ;;  %v2370_v54 = vadd.f32 %v2369_v2, %v2368_v56 }
 0xb44   :  { %v2342_v11 = vadd.f32 %v2341_v24, %v2340_v49  ;;  %v2371_v32 = vrot.slane %v2370_v54, 1 }
 0xb46   :  { %v7732_v35 = vmul.f32 %v2342_v11, %v7172_v4  ;;  %v2372_v62 = vadd.f32 %v2371_v32, %v2370_v54 }
 0xb48   :  { %v2373_v23 = vmul.f32 %v2372_v62, %v7172_v4  ;;  %v2374_v18 = vmul.f32 %v7732_v35, %v7732_v35  ;;  %v2382_v36 = vsub.f32 %v7709_v59, %v7732_v35  ;;  %v2383_v14 = vsub.f32 %v7704_v43, %v7732_v35 }
 0xb49   :  { %v2376_v45 = vsub.f32 %v7662_v57, %v7732_v35  ;;  %v2377_v10 = vsub.f32 %v7659_v13, %v7732_v35  ;;  %v2378_v28 = vsub.f32 %v7665_v61, %v7732_v35  ;;  %v2379_v48 = vsub.f32 %v7670_v1, %v7732_v35 }
 0xb4a   :  { %v2375_v12 = vsub.f32 %v2373_v23, %v2374_v18  ;;  %v2380_v49 = vsub.f32 %v7679_v30, %v7732_v35  ;;  %v2381_v30 = vsub.f32 %v7698_v20, %v7732_v35 }
 0xb4c   :  { %v2384_v27 = vadd.f32 1e-05, %v2375_v12 }
 0xb4e   :  { %6292 = vrsqrt.f32 %v2384_v27  ;;  %vm2391_vm6 = vweird.f32 %v2384_v27 }
 0xb54   :  { %v6293_v42 = vpop.eup %6292 }
 0xb55   :  { %v2386_v21 = vmul.f32 %v6293_v42, %v2384_v27  ;;  %vm2392_vm5 = vweird.f32 %v6293_v42 }
 0xb56   :  { %vm2393_vm7 = vmor %vm2391_vm6, %vm2392_vm5 }
 0xb57   :  { %v2387_v40 = vmul.f32 %v6293_v42, %v2386_v21 }
 0xb59   :  { %v2388_v44 = vmul.f32 0.5, %v2387_v40 }
 0xb5b   :  { %v2389_v52 = vsub.f32 1.5, %v2388_v44 }
 0xb5d   :  { %v2390_v19 = vmul.f32 %v6293_v42, %v2389_v52 }
 0xb5f   :  { %v2394_v15 = vsel %vm2393_vm7, %v6293_v42, %v2390_v19 }
 0xb60   :  { %v2395_v41 = vmul.f32 %v2394_v15, %v2376_v45  ;;  %v2396_v51 = vmul.f32 %v2394_v15, %v2377_v10  ;;  %v2397_v60 = vmul.f32 %v2394_v15, %v2378_v28  ;;  %v2398_v6 = vmul.f32 %v2394_v15, %v2379_v48 }
 0xb61   :  { %v2399_v17 = vmul.f32 %v2394_v15, %v2380_v49  ;;  %v2400_v23 = vmul.f32 %v2394_v15, %v2381_v30  ;;  %v2401_v20 = vmul.f32 %v2394_v15, %v2382_v36  ;;  %v2402_v36 = vmul.f32 %v2394_v15, %v2383_v14 }
 0xb62   :  { %v2404_v8 = vmul.f32 %v7747_v7, %v2395_v41  ;;  %v2405_v22 = vmul.f32 %v7747_v7, %v2396_v51  ;;  %v2406_v13 = vmul.f32 %v7747_v7, %v2397_v60  ;;  %v2407_v29 = vmul.f32 %v7747_v7, %v2398_v6 }
 0xb63   :  { %v2408_v32 = vmul.f32 %v7747_v7, %v2399_v17  ;;  %v2409_v42 = vmul.f32 %v7747_v7, %v2400_v23  ;;  %v2410_v19 = vmul.f32 %v7747_v7, %v2401_v20  ;;  %v2411_v60 = vmul.f32 %v7747_v7, %v2402_v36 }
 0xb64   :  { %v2413_v0 = vadd.f32 %v7753_v34, %v2404_v8  ;;  %v2414_v57 = vadd.f32 %v7753_v34, %v2405_v22  ;;  %v2415_v61 = vadd.f32 %v7753_v34, %v2406_v13  ;;  %v2416_v54 = vadd.f32 %v7753_v34, %v2407_v29 }
 0xb65   :  { %v2417_v38 = vadd.f32 %v7753_v34, %v2408_v32  ;;  %v2418_v44 = vadd.f32 %v7753_v34, %v2409_v42  ;;  %v2419_v59 = vadd.f32 %v7753_v34, %v2410_v19  ;;  %v6670_v8 = vmov 19  }
 0xb66   :  { %v2429_v3 = vmin.f32 %v2413_v0, 0.0  ;;  %v2430_v47 = vmin.f32 %v2414_v57, 0.0  ;;  %v2431_v25 = vmin.f32 %v2415_v61, 0.0  ;;  %vm2421_vm8 = vcmp.gt.f32.partialorder %v2413_v0, 0.0  ;;  %6077 = vset.pattern.permute.xlu2 %v6670_v8  ;;  %6081 = vset.pattern.permute.xlu1 %v6670_v8 }
 0xb67   :  { %v2432_v11 = vmin.f32 %v2416_v54, 0.0  ;;  %vm2422_vm9 = vcmp.gt.f32.partialorder %v2414_v57, 0.0  ;;  %v2433_v27 = vmin.f32 %v2417_v38, 0.0  ;;  %vm2423_vm10 = vcmp.gt.f32.partialorder %v2415_v61, 0.0 }
 0xb68   :  { %v2437_v9 = vmul.f32 1.442695, %v2429_v3  ;;  %v2439_v5 = vmul.f32 1.442695, %v2430_v47  ;;  %v2441_v24 = vmul.f32 1.442695, %v2431_v25  ;;  %v2420_v3 = vadd.f32 %v7753_v34, %v2411_v60 }
 0xb69   :  { %v2443_v62 = vmul.f32 1.442695, %v2432_v11  ;;  %v2445_v40 = vmul.f32 1.442695, %v2433_v27  ;;  %v2434_v45 = vmin.f32 %v2418_v44, 0.0  ;;  %vm2424_vm11 = vcmp.gt.f32.partialorder %v2416_v54, 0.0 }
 0xb6a   :  { %6294 = vpow2.f32 %v2437_v9  ;;  %v2435_v22 = vmin.f32 %v2419_v59, 0.0  ;;  %vm2425_vm12 = vcmp.gt.f32.partialorder %v2417_v38, 0.0  ;;  %v2436_v14 = vmin.f32 %v2420_v3, 0.0 }
 0xb6b   :  { %6296 = vpow2.f32 %v2439_v5  ;;  %v2447_v41 = vmul.f32 1.442695, %v2434_v45  ;;  %vm2426_vm13 = vcmp.gt.f32.partialorder %v2418_v44, 0.0  ;;  %vm2427_vm15 = vcmp.gt.f32.partialorder %v2419_v59, 0.0 }
 0xb6c   :  { %6298 = vpow2.f32 %v2441_v24  ;;  %v2451_v47 = vmul.f32 1.442695, %v2436_v14  ;;  %vm2428_vm2 = vcmp.gt.f32.partialorder %v2420_v3, 0.0  ;;  %v6671_v6 = vmov 9  }
 0xb6d   :  { %6300 = vpow2.f32 %v2443_v62  ;;  %6082 = vset.pattern.permute.xlu0 %v6671_v6 }
 0xb6e   :  { %6302 = vpow2.f32 %v2445_v40 }
 0xb6f   :  { %6304 = vpow2.f32 %v2447_v41 }
 0xb70   :  { %v6295_v56 = vpop.eup %6294 }
 0xb71   :  { %v5894_v2 = vadd.f32 -1.0, %v6295_v56  ;;  %v6297_v31 = vpop.eup %6296 }
 0xb72   :  { %v5895_v33 = vadd.f32 -1.0, %v6297_v31  ;;  %v6299_v12 = vpop.eup %6298 }
 0xb73   :  { %v7769_v1 = vsel %vm2421_vm8, %v2413_v0, %v5894_v2  ;;  %v5896_v21 = vadd.f32 -1.0, %v6299_v12  ;;  %v6301_v52 = vpop.eup %6300 }
 0xb74   :  { %5902 = vmatmul.msk.f32.vlgmr.msrb.gmra.mxu1 %vm9365_vm0, %v7769_v1  ;;  %v7777_v18 = vsel %vm2422_vm9, %v2414_v57, %v5895_v33  ;;  %v5897_v10 = vadd.f32 -1.0, %v6301_v52  ;;  %v6303_v28 = vpop.eup %6302  ;;  %v2449_v57 = vmul.f32 1.442695, %v2435_v22 }
 0xb75   :  { %v7786_v46 = vsel %vm2423_vm10, %v2415_v61, %v5896_v21  ;;  %v5898_v0 = vadd.f32 -1.0, %v6303_v28  ;;  %v6305_v35 = vpop.eup %6304 }
 0xb76   :  { %v7795_v51 = vsel %vm2424_vm11, %v2416_v54, %v5897_v10  ;;  %6306 = vpow2.f32 %v2449_v57  ;;  %v5899_v15 = vadd.f32 -1.0, %v6305_v35 }
 0xb77   :  { %v7801_v43 = vsel %vm2425_vm12, %v2417_v38, %v5898_v0  ;;  %6308 = vpow2.f32 %v2451_v47 }
 0xb78   :  { %v7805_v13 = vsel %vm2426_vm13, %v2418_v44, %v5899_v15 }
 0xb7c   :  { %5903 = vmatmul.msk.f32.gmra.mxu1 %vm9365_vm0, %v7777_v18  ;;  %v6307_v9 = vpop.eup %6306 }
 0xb7d   :  { %v5900_v7 = vadd.f32 -1.0, %v6307_v9  ;;  %v6309_v48 = vpop.eup %6308 }
 0xb7e   :  { %v5901_v5 = vadd.f32 -1.0, %v6309_v48 }
 0xb7f   :  { %v7809_v34 = vsel %vm2427_vm15, %v2419_v59, %v5900_v7 }
 0xb80   :  { %v7813_v61 = vsel %vm2428_vm2, %v2420_v3, %v5901_v5 }
 0xb84   :  { %5904 = vmatmul.msk.f32.gmra.mxu1 %vm9365_vm0, %v7786_v46 }
 0xb8c   :  { %5905 = vmatmul.msk.f32.gmra.mxu1 %vm9365_vm0, %v7795_v51 }
 0xb94   :  { %5906 = vmatmul.msk.f32.gmra.mxu1 %vm9365_vm0, %v7801_v43 }
 0xb9c   :  { %5907 = vmatmul.msk.f32.gmra.mxu1 %vm9365_vm0, %v7805_v13 }
 0xba4   :  { %5908 = vmatmul.msk.f32.gmra.mxu1 %vm9365_vm0, %v7809_v34 }
 0xbac   :  { %5909 = vmatmul.msk.f32.gmra.mxu1 %vm9365_vm0, %v7813_v61 }
 0xbf1   :  { %v7817_v25 = vpop.f32.mrf.mxu1 }
 0xbf2   :  { %2701 = vperm.xlu2 %6077, %v7817_v25   ;;  %2547 = vrot.lane.b32.xlu0 %v7817_v25, %s6672_s5 }
 0xbf3   :  { %2644 = vrot.lane.b32.xlu1 %v7817_v25, %s6667_s24 }
 0xbf9   :  { %v7824_v29 = vpop.f32.mrf.mxu1 }
 0xbfa   :  { %6078 = vset.pattern.permute.xlu2 %v6671_v6  ;;  %2646 = vrot.lane.b32.xlu0 %v7824_v29, %s6667_s24 }
 0xbfb   :  { %2549 = vrot.lane.b32.xlu1 %v7824_v29, %s6672_s5  ;;  %2604 = vperm.xlu2 %6078, %v7817_v25  }
 0xc01   :  { %v7831_v56 = vpop.f32.mrf.mxu1 }
 0xc02   :  { %2551 = vrot.lane.b32.xlu0 %v7831_v56, %s6672_s5 }
 0xc03   :  { %2709 = vperm.xlu1 %6081, %v7831_v56   ;;  %6079 = vset.pattern.permute.xlu2 %v6670_v8 }
 0xc04   :  { %2705 = vperm.xlu2 %6079, %v7824_v29  }
 0xc09   :  { %v7837_v49 = vpop.f32.mrf.mxu1 }
 0xc0a   :  { %2612 = vperm.xlu0 %6082, %v7831_v56  }
 0xc0b   :  { %2553 = vrot.lane.b32.xlu1 %v7837_v49, %s6672_s5 }
 0xc0c   :  { %6080 = vset.pattern.permute.xlu2 %v6671_v6 }
 0xc0d   :  { %2608 = vperm.xlu2 %6080, %v7824_v29  }
 0xc11   :  { %v7843_v2 = vpop.f32.mrf.mxu1 }
 0xc12   :  { %2650 = vrot.lane.b32.xlu0 %v7837_v49, %s6667_s24 }
 0xc13   :  { %6083 = vset.pattern.permute.xlu0 %v6670_v8 }
 0xc15   :  { %2648 = vrot.lane.b32.xlu2 %v7831_v56, %s6667_s24 }
 0xc16   :  { %6084 = vset.pattern.permute.xlu2 %v6670_v8 }
 0xc19   :  { %v7849_v24 = vpop.f32.mrf.mxu1 }
 0xc1a   :  { %2713 = vperm.xlu0 %6083, %v7837_v49  }
 0xc1d   :  { %2652 = vrot.lane.b32.xlu2 %v7843_v2, %s6667_s24 }
 0xc21   :  { %v7854_v54 = vpop.f32.mrf.mxu1 }
 0xc22   :  { %2555 = vrot.lane.b32.xlu0 %v7843_v2, %s6672_s5 }
 0xc25   :  { %2717 = vperm.xlu2 %6084, %v7843_v2  }
 0xc29   :  { %v7859_v17 = vpop.f32.mrf.mxu1 }
 0xc2a   :  { %2654 = vrot.lane.b32.xlu0 %v7849_v24, %s6667_s24  ;;  %2658 = vrot.lane.b32.xlu1 %v7859_v17, %s6667_s24 }
 0xc2b   :  { %3333 = vmatpush.msra.mxu2 %v7859_v17 }
 0xc2d   :  { %3334 = vmatpush.msra.mxu2 %v7854_v54  ;;  %2557 = vrot.lane.b32.xlu2 %v7849_v24, %s6672_s5 }
 0xc2f   :  { %3335 = vmatpush.msra.mxu2 %v7849_v24 }
 0xc31   :  { %3336 = vmatpush.msra.mxu2 %v7843_v2 }
 0xc32   :  { %2721 = vperm.xlu0 %6083, %v7849_v24  }
 0xc33   :  { %3337 = vmatpush.msra.mxu2 %v7837_v49 }
 0xc35   :  { %3338 = vmatpush.msra.mxu2 %v7831_v56  ;;  %2656 = vrot.lane.b32.xlu2 %v7854_v54, %s6667_s24 }
 0xc37   :  { %3339 = vmatpush.msra.mxu2 %v7824_v29 }
 0xc39   :  { %3340 = vmatpush.msra.mxu2 %v7817_v25 }
 0xc3a   :  { %2559 = vrot.lane.b32.xlu0 %v7854_v54, %s6672_s5 }
 0xc3d   :  { %2561 = vrot.lane.b32.xlu2 %v7859_v17, %s6672_s5 }
 0xc42   :  { %2725 = vperm.xlu0 %6083, %v7854_v54  }
 0xc4a   :  { %2729 = vperm.xlu0 %6083, %v7859_v17  }
 0xc4c   :  { %v2702_v31 = vpop.permute.xlu2 %2701 }
 0xc52   :  { %6085 = vset.pattern.permute.xlu0 %v6671_v6 }
 0xc53   :  { %2616 = vperm.xlu0 %6085, %v7837_v49  }
 0xc55   :  { %v7885_v11 = vpop.permute.xlu2 %2604 }
 0xc5b   :  { %2620 = vperm.xlu0 %6085, %v7843_v2  }
 0xc5e   :  { %v2706_v32 = vpop.permute.xlu2 %2705 }
 0xc63   :  { %2624 = vperm.xlu0 %6085, %v7849_v24  }
 0xc64   :  { %v2548_v33 = vpop.permute.xlu0 %2547 }
 0xc65   :  { %v2645_v30 = vpop.permute.xlu1 %2644 }
 0xc66   :  { %2668 = vxpose.xlu1.b32.start [1/8] (short) (narrow) %v2645_v30, 8 }
 0xc67   :  { %v7889_v62 = vpop.permute.xlu2 %2608 }
 0xc6b   :  { %2632 = vperm.xlu0 %6085, %v7859_v17  }
 0xc6c   :  { %v2647_v38 = vpop.permute.xlu0 %2646 }
 0xc6d   :  { %v2550_v40 = vpop.permute.xlu1 %2549 }
 0xc6e   :  { %2669 = vxpose.xlu1.b32.cont [2/8] (short) (narrow) %v2647_v38, 8 }
 0xc6f   :  { %v2649_v12 = vpop.permute.xlu2 %2648 }
 0xc73   :  { %2628 = vperm.xlu0 %6085, %v7854_v54  }
 0xc74   :  { %v2552_v23 = vpop.permute.xlu0 %2551 }
 0xc75   :  { %v2710_v19 = vpop.permute.xlu1 %2709 }
 0xc76   :  { %2670 = vxpose.xlu1.b32.cont [3/8] (short) (narrow) %v2649_v12, 8 }
 0xc77   :  { %v2653_v21 = vpop.permute.xlu2 %2652 }
 0xc7b   :  { %6106 = vset.pattern.permute.xlu0 %v6665_v16 }
 0xc7c   :  { %v7894_v27 = vpop.permute.xlu0 %2612 }
 0xc7d   :  { %v2554_v41 = vpop.permute.xlu1 %2553 }
 0xc7f   :  { %v2718_v44 = vpop.permute.xlu2 %2717 }
 0xc84   :  { %v2651_v42 = vpop.permute.xlu0 %2650 }
 0xc85   :  { %2671 = vxpose.xlu1.b32.cont [4/8] (short) (narrow) %v2651_v42, 8 }
 0xc87   :  { %v2558_v45 = vpop.permute.xlu2 %2557 }
 0xc8c   :  { %v2714_v20 = vpop.permute.xlu0 %2713 }
 0xc8d   :  { %2672 = vxpose.xlu1.b32.cont [5/8] (short) (narrow) %v2653_v21, 8 }
 0xc8f   :  { %v2657_v59 = vpop.permute.xlu2 %2656 }
 0xc94   :  { %v2556_v52 = vpop.permute.xlu0 %2555 }
 0xc97   :  { %v2562_v5 = vpop.permute.xlu2 %2561 }
 0xc9c   :  { %v2655_v10 = vpop.permute.xlu0 %2654  ;;  %v2659_v36 = vpop.permute.xlu1 %2658 }
 0xc9d   :  { %2673 = vxpose.xlu1.b32.cont [6/8] (short) (narrow) %v2655_v10, 8 }
 0xca4   :  { %v2722_v28 = vpop.permute.xlu0 %2721 }
 0xca5   :  { %2674 = vxpose.xlu1.b32.cont [7/8] (short) (narrow) %v2657_v59, 8 }
 0xcac   :  { %v2560_v8 = vpop.permute.xlu0 %2559 }
 0xcad   :  { %2675 = vxpose.xlu1.b32.end [8/8] (short) (narrow) %v2659_v36, 8 }
 0xcb4   :  { %v2726_v22 = vpop.permute.xlu0 %2725 }
 0xcbc   :  { %v2730_v57 = vpop.permute.xlu0 %2729 }
 0xcc5   :  { %v2617_v6 = vpop.permute.xlu0 %2616 }
 0xd00   :  { %6107 = vset.pattern.permute.xlu1 %v6665_v16 }
 0xd19   :  { %v2684_v60 = vpop.trf.xlu1 }
 0xd1a   :  { %v2732_v0 = vperm.slane %v2684_v60, 0 }
 0xd1c   :  { %v2740_v3 = vadd.f32 %v2732_v0, %v2730_v57  ;;  %v2736_v35 = vadd.f32 %v2732_v0, %v2714_v20  ;;  %v2733_v14 = vadd.f32 %v2732_v0, %v2702_v31  ;;  %v2737_v15 = vadd.f32 %v2732_v0, %v2718_v44  ;;  %v2621_v31 = vpop.permute.xlu0 %2620 }
 0xd1d   :  { %v2734_v47 = vadd.f32 %v2732_v0, %v2706_v32  ;;  %v2738_v9 = vadd.f32 %v2732_v0, %v2722_v28  ;;  %v2735_v7 = vadd.f32 %v2732_v0, %v2710_v19  ;;  %v2739_v48 = vadd.f32 %v2732_v0, %v2726_v22 }
 0xd1e   :  { %2763 = vrot.lane.b32.xlu1 %v2740_v3, %s6666_s0  ;;  %2755 = vrot.lane.b32.xlu0 %v2736_v35, %s6666_s0 }
 0xd1f   :  { %2749 = vrot.lane.b32.xlu2 %v2733_v14, %s6666_s0 }
 0xd24   :  { %v2625_v32 = vpop.permute.xlu0 %2624 }
 0xd26   :  { %2757 = vrot.lane.b32.xlu0 %v2737_v15, %s6666_s0 }
 0xd27   :  { %2751 = vrot.lane.b32.xlu2 %v2734_v47, %s6666_s0 }
 0xd2c   :  { %v2633_v30 = vpop.permute.xlu0 %2632 }
 0xd2e   :  { %2759 = vrot.lane.b32.xlu0 %v2738_v9, %s6666_s0 }
 0xd2f   :  { %2753 = vrot.lane.b32.xlu2 %v2735_v7, %s6666_s0 }
 0xd34   :  { %v2629_v38 = vpop.permute.xlu0 %2628 }
 0xd36   :  { %2761 = vrot.lane.b32.xlu0 %v2739_v48, %s6666_s0 }
 0xd55   :  { %2571 = vxpose.xlu2.b32.start [1/8] (short) (narrow) %v2548_v33, 8 }
 0xd5d   :  { %2572 = vxpose.xlu2.b32.cont [2/8] (short) (narrow) %v2550_v40, 8 }
 0xd65   :  { %2573 = vxpose.xlu2.b32.cont [3/8] (short) (narrow) %v2552_v23, 8 }
 0xd6d   :  { %2574 = vxpose.xlu2.b32.cont [4/8] (short) (narrow) %v2554_v41, 8 }
 0xd75   :  { %2575 = vxpose.xlu2.b32.cont [5/8] (short) (narrow) %v2556_v52, 8 }
 0xd79   :  { %v2750_v12 = vpop.permute.xlu2 %2749 }
 0xd7d   :  { %2576 = vxpose.xlu2.b32.cont [6/8] (short) (narrow) %v2558_v45, 8 }
 0xd81   :  { %v2752_v21 = vpop.permute.xlu2 %2751 }
 0xd85   :  { %2577 = vxpose.xlu2.b32.cont [7/8] (short) (narrow) %v2560_v8, 8 }
 0xd89   :  { %v2754_v44 = vpop.permute.xlu2 %2753 }
 0xd8d   :  { %2578 = vxpose.xlu2.b32.end [8/8] (short) (narrow) %v2562_v5, 8 }
 0xd90   :  { %v2756_v42 = vpop.permute.xlu0 %2755  ;;  %v2764_v8 = vpop.permute.xlu1 %2763 }
 0xd98   :  { %v2758_v20 = vpop.permute.xlu0 %2757 }
 0xda0   :  { %v2760_v19 = vpop.permute.xlu0 %2759 }
 0xda8   :  { %v2762_v22 = vpop.permute.xlu0 %2761 }
 0xdee   :  { %v2587_v33 = vpop.trf.xlu2 }
 0xdef   :  { %v2635_v40 = vperm.slane %v2587_v33, 0  ;;  %6108 = vset.pattern.permute.xlu2 %v6665_v16 }
 0xdf1   :  { %v2636_v23 = vadd.f32 %v2635_v40, %v7885_v11  ;;  %v2637_v52 = vadd.f32 %v2635_v40, %v7889_v62  ;;  %v2638_v45 = vadd.f32 %v2635_v40, %v7894_v27  ;;  %v2639_v10 = vadd.f32 %v2635_v40, %v2617_v6 }
 0xdf2   :  { %v2640_v41 = vadd.f32 %v2635_v40, %v2621_v31  ;;  %v2641_v59 = vadd.f32 %v2635_v40, %v2625_v32  ;;  %v2642_v36 = vadd.f32 %v2635_v40, %v2629_v38  ;;  %v2643_v28 = vadd.f32 %v2635_v40, %v2633_v30 }
 0xdf3   :  { %v2775_v60 = vsel %vm9367_vm1, %v2638_v45, %v2754_v44  ;;  %v2773_v0 = vsel %vm9367_vm1, %v2636_v23, %v2750_v12  ;;  %v2774_v57 = vsel %vm9367_vm1, %v2637_v52, %v2752_v21  ;;  %v2776_v16 = vsel %vm9367_vm1, %v2639_v10, %v2756_v42 }
 0xdf4   :  { %v2780_v11 = vsel %vm9367_vm1, %v2643_v28, %v2764_v8  ;;  %v2783_v62 = vsub.f32 0.0, %v2775_v60  ;;  %v2781_v3 = vsub.f32 0.0, %v2773_v0  ;;  %v2779_v27 = vsel %vm9367_vm1, %v2642_v36, %v2762_v22 }
 0xdf5   :  { %v2788_v35 = vsub.f32 0.0, %v2780_v11  ;;  %v2787_v14 = vsub.f32 0.0, %v2779_v27  ;;  %v2782_v15 = vsub.f32 0.0, %v2774_v57  ;;  %v2784_v47 = vsub.f32 0.0, %v2776_v16 }
 0xdf6   :  { %v2793_v9 = vmul.f32 1.442695, %v2783_v62  ;;  %v2789_v7 = vmul.f32 1.442695, %v2781_v3  ;;  %v2777_v31 = vsel %vm9367_vm1, %v2640_v41, %v2758_v20  ;;  %v2778_v30 = vsel %vm9367_vm1, %v2641_v59, %v2760_v19 }
 0xdf7   :  { %v2803_v48 = vmul.f32 1.442695, %v2788_v35  ;;  %v2801_v5 = vmul.f32 1.442695, %v2787_v14  ;;  %v2791_v6 = vmul.f32 1.442695, %v2782_v15 }
 0xdf8   :  { %6310 = vpow2.f32 %v2793_v9  ;;  %v2795_v32 = vmul.f32 1.442695, %v2784_v47  ;;  %v2785_v38 = vsub.f32 0.0, %v2777_v31  ;;  %v2786_v12 = vsub.f32 0.0, %v2778_v30 }
 0xdf9   :  { %6312 = vpow2.f32 %v2803_v48 }
 0xdfa   :  { %6314 = vpow2.f32 %v2789_v7  ;;  %v2797_v33 = vmul.f32 1.442695, %v2785_v38  ;;  %v2799_v52 = vmul.f32 1.442695, %v2786_v12 }
 0xdfb   :  { %6316 = vpow2.f32 %v2801_v5 }
 0xdfc   :  { %6318 = vpow2.f32 %v2791_v6 }
 0xdfd   :  { %6320 = vpow2.f32 %v2795_v32 }
 0xdfe   :  { %v6311_v42 = vpop.eup %6310 }
 0xdff   :  { %v6313_v21 = vpop.eup %6312  ;;  %v7917_v44 = vadd.f32 1.0, %v6311_v42 }
 0xe00   :  { %v6315_v40 = vpop.eup %6314  ;;  %v7919_v23 = vadd.f32 1.0, %v6313_v21 }
 0xe01   :  { %v6317_v20 = vpop.eup %6316  ;;  %6322 = vrcp.f32 %v7917_v44  ;;  %v7923_v10 = vadd.f32 1.0, %v6315_v40  ;;  %v2852_v59 = vand.u32 2147483647, %v7917_v44  ;;  %v2854_v8 = vand.u32 2147483648, %v7917_v44 }
 0xe02   :  { %v6319_v45 = vpop.eup %6318  ;;  %6324 = vrcp.f32 %v7919_v23  ;;  %v7925_v41 = vadd.f32 1.0, %v6317_v20  ;;  %v2927_v28 = vand.u32 2147483647, %v7919_v23  ;;  %v2929_v22 = vand.u32 2147483648, %v7919_v23 }
 0xe03   :  { %v6321_v19 = vpop.eup %6320  ;;  %6326 = vpow2.f32 %v2797_v33  ;;  %v7928_v36 = vadd.f32 1.0, %v6319_v45  ;;  %vm2923_vm3 = vweird.f32 %v7919_v23  ;;  %vm2848_vm4 = vweird.f32 %v7917_v44 }
 0xe04   :  { %6328 = vpow2.f32 %v2799_v52  ;;  %v7935_v60 = vadd.f32 1.0, %v6321_v19  ;;  %v2824_v57 = vand.u32 2147483648, %v7923_v10  ;;  %vm7942_vm5 = vcmp.eq.f32.partialorder %v2852_v59, 8.507059e+37 }
 0xe05   :  { %6330 = vrcp.f32 %v7923_v10  ;;  %v2822_v3 = vand.u32 2147483647, %v7923_v10  ;;  %v2914_v27 = vand.u32 2147483648, %v7925_v41  ;;  %vm7949_vm6 = vcmp.eq.f32.partialorder %v2927_v28, 8.507059e+37 }
 0xe06   :  { %6332 = vrcp.f32 %v7925_v41  ;;  %v2855_v47 = vor.u32 1.1754944e-38, %v2854_v8  ;;  %v2912_v9 = vand.u32 2147483647, %v7925_v41  ;;  %v2930_v48 = vor.u32 1.1754944e-38, %v2929_v22 }
 0xe07   :  { %v6323_v0 = vpop.eup %6322  ;;  %6334 = vrcp.f32 %v7928_v36  ;;  %vm2818_vm7 = vweird.f32 %v7923_v10  ;;  %v2825_v32 = vor.u32 1.1754944e-38, %v2824_v57  ;;  %vm2908_vm9 = vweird.f32 %v7925_v41 }
 0xe08   :  { %v6325_v16 = vpop.eup %6324  ;;  %v2844_v11 = vmul.f32 %v6323_v0, %v7917_v44  ;;  %6336 = vrcp.f32 %v7935_v60  ;;  %vm2849_vm8 = vweird.f32 %v6323_v0  ;;  %vm7960_vm11 = vcmp.eq.f32.partialorder %v2822_v3, 8.507059e+37 }
 0xe09   :  { %v6327_v35 = vpop.eup %6326  ;;  %v2919_v14 = vmul.f32 %v6325_v16, %v7919_v23  ;;  %vm2924_vm10 = vweird.f32 %v6325_v16  ;;  %v2915_v21 = vor.u32 1.1754944e-38, %v2914_v27  ;;  %vm2833_vm12 = vweird.f32 %v7928_v36  ;;  %vm2850_vm2 = vmor %vm2848_vm4, %vm2849_vm8 }
 0xe0a   :  { %v7954_v7 = vpop.eup %6328  ;;  %v2845_v5 = vsub.f32 1.0, %v2844_v11  ;;  %vm7966_vm13 = vcmp.eq.f32.partialorder %v2912_v9, 8.507059e+37  ;;  %v2837_v45 = vand.u32 2147483647, %v7928_v36  ;;  %v2839_v19 = vand.u32 2147483648, %v7928_v36  ;;  %vm2925_vm1 = vmor %vm2923_vm3, %vm2924_vm10 }
 0xe0b   :  { %v6331_v6 = vpop.eup %6330  ;;  %v2920_v31 = vsub.f32 1.0, %v2919_v14  ;;  %v7981_v9 = vadd.f32 1.0, %v6327_v35 }
 0xe0c   :  { %v6333_v30 = vpop.eup %6332  ;;  %v2846_v38 = vmul.f32 %v6323_v0, %v2845_v5  ;;  %v2814_v12 = vmul.f32 %v6331_v6, %v7923_v10  ;;  %vm2819_vm15 = vweird.f32 %v6331_v6 }
 0xe0d   :  { %v6335_v33 = vpop.eup %6334  ;;  %v2921_v40 = vmul.f32 %v6325_v16, %v2920_v31  ;;  %v2904_v52 = vmul.f32 %v6333_v30, %v7925_v41  ;;  %vm2909_vm0 = vweird.f32 %v6333_v30  ;;  %vm2820_vm3 = vmor %vm2818_vm7, %vm2819_vm15 }
 0xe0e   :  { %v2847_v59 = vadd.f32 %v6323_v0, %v2846_v38  ;;  %v2815_v28 = vsub.f32 1.0, %v2814_v12  ;;  %v2829_v8 = vmul.f32 %v6335_v33, %v7928_v36  ;;  %vm2834_vm14 = vweird.f32 %v6335_v33  ;;  %v7976_v11 = vpop.eup %6336  ;;  %vm2910_vm4 = vmor %vm2908_vm9, %vm2909_vm0 }
 0xe0f   :  { %v2922_v22 = vadd.f32 %v6325_v16, %v2921_v40  ;;  %v2905_v57 = vsub.f32 1.0, %v2904_v52  ;;  %v2859_v38 = vmul.f32 %v7976_v11, %v7935_v60  ;;  %vm2864_vm0 = vweird.f32 %v7976_v11 }
 0xe10   :  { %v2851_v3 = vsel %vm2850_vm2, %v6323_v0, %v2847_v59  ;;  %v2816_v27 = vmul.f32 %v6331_v6, %v2815_v28  ;;  %v2830_v14 = vsub.f32 1.0, %v2829_v8  ;;  %vm2878_vm9 = vweird.f32 %v7981_v9 }
 0xe11   :  { %v2926_v5 = vsel %vm2925_vm1, %v6325_v16, %v2922_v22  ;;  %v2856_v31 = vsel %vm7942_vm5, %v2855_v47, %v2851_v3  ;;  %v2906_v44 = vmul.f32 %v6333_v30, %v2905_v57  ;;  %vm7992_vm1 = vcmp.eq.f32.partialorder %v2837_v45, 8.507059e+37  ;;  %vm2835_vm5 = vmor %vm2833_vm12, %vm2834_vm14  ;;  %v6631_v57 = vld [vmem:[%s9351_s1 + $0x38] sm:$0xff] }
 0xe12   :  { %v2931_v12 = vsel %vm7949_vm6, %v2930_v48, %v2926_v5  ;;  %v2937_v40 = vmul.f32 1.442695, %v2856_v31  ;;  %v2817_v52 = vadd.f32 %v6331_v6, %v2816_v27  ;;  %v2831_v23 = vmul.f32 %v6335_v33, %v2830_v14  ;;  %v6632_v31 = vld [vmem:[%s9351_s1] sm:$0xff] }
 0xe13   :  { %v2947_v55 = vmul.f32 1.442695, %v2931_v12  ;;  %v2907_v0 = vadd.f32 %v6333_v30, %v2906_v44  ;;  %v2860_v62 = vsub.f32 1.0, %v2859_v38  ;;  %v2840_v47 = vor.u32 1.1754944e-38, %v2839_v19 }
 0xe14   :  { %6338 = vpow2.f32 %v2937_v40  ;;  %v2821_v35 = vsel %vm2820_vm3, %v6331_v6, %v2817_v52  ;;  %v2832_v15 = vadd.f32 %v6335_v33, %v2831_v23  ;;  %vm2863_vm14 = vweird.f32 %v7935_v60 }
 0xe15   :  { %6340 = vpow2.f32 %v2947_v55  ;;  %v2826_v48 = vsel %vm7960_vm11, %v2825_v32, %v2821_v35  ;;  %v2911_v10 = vsel %vm2910_vm4, %v6333_v30, %v2907_v0  ;;  %v2861_v45 = vmul.f32 %v7976_v11, %v2860_v62  ;;  %vm8023_vm6 = vmor %vm2863_vm14, %vm2864_vm0 }
 0xe16   :  { %v2933_v59 = vmul.f32 1.442695, %v2826_v48  ;;  %v2916_v6 = vsel %vm7966_vm13, %v2915_v21, %v2911_v10  ;;  %v2836_v28 = vsel %vm2835_vm5, %v6335_v33, %v2832_v15  ;;  %6342 = vrcp.f32 %v7981_v9 }
 0xe17   :  { %v2945_v41 = vmul.f32 1.442695, %v2916_v6  ;;  %v2841_v55 = vsel %vm7992_vm1, %v2840_v47, %v2836_v28  ;;  %v8011_v32 = vadd.f32 1.0, %v7954_v7  ;;  %v2862_v36 = vadd.f32 %v7976_v11, %v2861_v45  ;;  %v6630_v7 = vld [vmem:[%s9351_s1 + $0x10] sm:$0xff] }
 0xe18   :  { %6344 = vpow2.f32 %v2933_v59  ;;  %v2869_v30 = vand.u32 2147483648, %v7935_v60  ;;  %v2935_v21 = vmul.f32 1.442695, %v2841_v55  ;;  %v2867_v33 = vand.u32 2147483647, %v7935_v60  ;;  %v6633_v47 = vld [vmem:[%s9351_s1 + $0x30] sm:$0xff] }
 0xe19   :  { %6346 = vpow2.f32 %v2945_v41  ;;  %v2866_v60 = vsel %vm8023_vm6, %v7976_v11, %v2862_v36  ;;  %v2884_v23 = vand.u32 2147483648, %v7981_v9  ;;  %v2882_v16 = vand.u32 2147483647, %v7981_v9 }
 0xe1a   :  { %v6339_v42 = vpop.eup %6338  ;;  %6348 = vrcp.f32 %v8011_v32  ;;  %v2870_v27 = vor.u32 1.1754944e-38, %v2869_v30  ;;  %vm2868_vm7 = vcmp.eq.f32.partialorder %v2867_v33, 8.507059e+37  ;;  %v2899_v36 = vand.u32 2147483648, %v8011_v32 }
 0xe1b   :  { %v6341_v20 = vpop.eup %6340  ;;  %v8021_v19 = vmul.f32 %v6630_v7, %v6339_v42  ;;  %6350 = vpow2.f32 %v2935_v21  ;;  %v2885_v59 = vor.u32 1.1754944e-38, %v2884_v23  ;;  %vm2883_vm11 = vcmp.eq.f32.partialorder %v2882_v16, 8.507059e+37  ;;  %v6635_v7 = vld [vmem:[%s9351_s1 + $0x18] sm:$0xff] }
 0xe1c   :  { %v6343_v22 = vpop.eup %6342  ;;  %v8031_v3 = vmul.f32 %v6631_v57, %v6341_v20  ;;  %v2871_v38 = vsel %vm2868_vm7, %v2870_v27, %v2866_v60  ;;  %vm2893_vm13 = vweird.f32 %v8011_v32  ;;  %v2897_v42 = vand.u32 2147483647, %v8011_v32 }
 0xe1d   :  { %3121 = vrot.lane.b32.xlu2 %v8021_v19, %s6666_s0  ;;  %v2874_v14 = vmul.f32 %v6343_v22, %v7981_v9  ;;  %vm2879_vm8 = vweird.f32 %v6343_v22  ;;  %v2939_v0 = vmul.f32 1.442695, %v2871_v38  ;;  %v6634_v9 = vld [vmem:[%s9351_s1 + $0x8] sm:$0xff]  ;;  %v2900_v20 = vor.u32 1.1754944e-38, %v2899_v36 }
 0xe1e   :  { %v6345_v5 = vpop.eup %6344  ;;  %3131 = vrot.lane.b32.xlu1 %v8031_v3, %s6666_s0  ;;  %vm2880_vm10 = vmor %vm2878_vm9, %vm2879_vm8  ;;  %vm2898_vm2 = vcmp.eq.f32.partialorder %v2897_v42, 8.507059e+37  ;;  %vm9391_vm3 = vcmask 523264   ;;  %v6086_v16 = vpack.i.bf16 %v7854_v54, %v7859_v17 }
 0xe1f   :  { %v8044_v44 = vmul.f32 %v6632_v31, %v6345_v5  ;;  %v2875_v11 = vsub.f32 1.0, %v2874_v14  ;;  %v6347_v12 = vpop.eup %6346  ;;  %6352 = vpow2.f32 %v2939_v0  ;;  %v6637_v5 = vld [vmem:[%s9351_s1 + $0x28] sm:$0xff]  ;;  %v2963_v38 = vsel %vm9391_vm3, %v8021_v19, 0.0  ;;  %vm9392_vm1 = vmmov %vm9391_vm3 }
 0xe20   :  { %v6349_v40 = vpop.eup %6348  ;;  %v8055_v48 = vmul.f32 %v6633_v47, %v6347_v12  ;;  %v6096_v12 = vpack.i.bf16 %v7831_v56, %v7837_v49  ;;  %vm9393_vm4 = vmmov %vm9392_vm1  ;;  %v6101_v47 = vpack.i.bf16 %v7817_v25, %v7824_v29 }
 0xe21   :  { %3117 = vrot.lane.b32.xlu0 %v8044_v44, %s6666_s0  ;;  %v2876_v52 = vmul.f32 %v6343_v22, %v2875_v11  ;;  %v2889_v62 = vmul.f32 %v6349_v40, %v8011_v32  ;;  %v6351_v15 = vpop.eup %6350  ;;  %vm2894_vm12 = vweird.f32 %v6349_v40  ;;  %v6636_v32 = vld [vmem:[%s9351_s1 + $0x20] sm:$0xff]  ;;  %vm9394_vm5 = vmmov %vm9392_vm1 }
 0xe22   :  { %v8062_v28 = vmul.f32 %v6634_v9, %v6351_v15  ;;  %vm2895_vm15 = vmor %vm2893_vm13, %vm2894_vm12  ;;  %v6091_v15 = vpack.i.bf16 %v7843_v2, %v7849_v24 }
 0xe23   :  { %v2877_v35 = vadd.f32 %v6343_v22, %v2876_v52  ;;  %v2890_v10 = vsub.f32 1.0, %v2889_v62  ;;  %vm9395_vm0 = vmmov %vm9392_vm1 }
 0xe24   :  { %v2960_v52 = vsel %vm9394_vm5, %v8062_v28, 0.0  ;;  %vm9396_vm14 = vmmov %vm9395_vm0 }
 0xe25   :  { %v2881_v45 = vsel %vm2880_vm10, %v6343_v22, %v2877_v35  ;;  %v2891_v6 = vmul.f32 %v6349_v40, %v2890_v10  ;;  %v6353_v21 = vpop.eup %6352  ;;  %vm9397_vm6 = vmmov %vm9395_vm0 }
 0xe26   :  { %3129 = vrot.lane.b32.xlu1 %v8055_v48, %s6666_s0  ;;  %v2886_v41 = vsel %vm2883_vm11, %v2885_v59, %v2881_v45  ;;  %v8072_v8 = vmul.f32 %v6635_v7, %v6353_v21  ;;  %vm9398_vm7 = vmmov %vm9395_vm0 }
 0xe27   :  { %v2892_v55 = vadd.f32 %v6349_v40, %v2891_v6  ;;  %v2941_v30 = vmul.f32 1.442695, %v2886_v41  ;;  %vm9399_vm8 = vmmov %vm9395_vm0 }
 0xe28   :  { %v2966_v11 = vsel %vm9392_vm1, %v8072_v8, 0.0  ;;  %vm9400_vm9 = vmmov %vm9395_vm0 }
 0xe29   :  { %3119 = vrot.lane.b32.xlu0 %v8062_v28, %s6666_s0  ;;  %v2896_v33 = vsel %vm2895_vm15, %v6349_v40, %v2892_v55  ;;  %6354 = vpow2.f32 %v2941_v30  ;;  %v2957_v40 = vsel %vm9393_vm4, %v8044_v44, 0.0  ;;  %vm9401_vm15 = vmmov %vm9395_vm0 }
 0xe2a   :  { %v2901_v22 = vsel %vm2898_vm2, %v2900_v20, %v2896_v33  ;;  %vm9402_vm2 = vmmov %vm9395_vm0 }
 0xe2b   :  { %v2943_v57 = vmul.f32 1.442695, %v2901_v22 }
 0xe2d   :  { %6356 = vpow2.f32 %v2943_v57 }
 0xe2f   :  { %v6355_v60 = vpop.eup %6354 }
 0xe30   :  { %v8079_v27 = vmul.f32 %v6636_v32, %v6355_v60 }
 0xe31   :  { %3123 = vrot.lane.b32.xlu0 %v8072_v8, %s6666_s0 }
 0xe32   :  { %v2969_v54 = vsel %vm9398_vm7, %v8079_v27, 0.0 }
 0xe33   :  { %v6357_v14 = vpop.eup %6356 }
 0xe34   :  { %v8086_v31 = vmul.f32 %v6637_v5, %v6357_v14 }
 0xe36   :  { %v2972_v25 = vsel %vm9399_vm8, %v8086_v31, 0.0  ;;  %vm9404_vm8 = vmmov %vm9402_vm2 }
 0xe39   :  { %3125 = vrot.lane.b32.xlu0 %v8079_v27, %s6666_s0 }
 0xe41   :  { %3127 = vrot.lane.b32.xlu0 %v8086_v31, %s6666_s0 }
 0xe46   :  { %2964 = vadd.xlane.f32.xlu2 %v2963_v38 }
 0xe50   :  { %2967 = vadd.xlane.f32.xlu1 %v2966_v11 }
 0xe5e   :  { %6097 = vrot.lane.b32.xlu2 %v6096_v12, %s6673_s6 }
 0xe6b   :  { %2958 = vadd.xlane.f32.xlu0 %v2957_v40 }
 0xe73   :  { %2961 = vadd.xlane.f32.xlu0 %v2960_v52 }
 0xe77   :  { %v3122_v23 = vpop.permute.xlu2 %3121 }
 0xe78   :  { %v3147_v0 = vsel %vm9395_vm0, %v3122_v23, 0.0 }
 0xe79   :  { %3148 = vadd.xlane.f32.xlu1 %v3147_v0 }
 0xe90   :  { %v8111_v45 = vpop.permute.xlu1 %3131 }
 0xe92   :  { %6087 = vrot.lane.b32.xlu1 %v6086_v16, %s6673_s6 }
 0xe93   :  { %v3118_v62 = vpop.permute.xlu0 %3117 }
 0xe94   :  { %v3141_v56 = vsel %vm9396_vm14, %v3118_v62, 0.0  ;;  %vm9403_vm14 = vmmov %vm9402_vm2 }
 0xe95   :  { %3142 = vadd.xlane.f32.xlu0 %v3141_v56 }
 0xe98   :  { %v8113_v9 = vpop.permute.xlu1 %3129 }
 0xe9b   :  { %v3120_v49 = vpop.permute.xlu0 %3119 }
 0xe9c   :  { %v3144_v35 = vsel %vm9397_vm6, %v3120_v49, 0.0 }
 0xe9d   :  { %3145 = vadd.xlane.f32.xlu0 %v3144_v35 }
 0xea3   :  { %v3124_v17 = vpop.permute.xlu0 %3123 }
 0xea4   :  { %v3150_v7 = vsel %vm9400_vm9, %v3124_v17, 0.0 }
 0xeab   :  { %v3126_v10 = vpop.permute.xlu0 %3125 }
 0xeac   :  { %v3153_v16 = vsel %vm9401_vm15, %v3126_v10, 0.0  ;;  %vm9406_vm15 = vmmov %vm9402_vm2 }
 0xeb1   :  { %6092 = vrot.lane.b32.xlu0 %v6091_v15, %s6673_s6 }
 0xeb3   :  { %v3128_v59 = vpop.permute.xlu0 %3127 }
 0xeb9   :  { %6102 = vrot.lane.b32.xlu0 %v6101_v47, %s6673_s6  ;;  %v2965_v6 = vpop.xlane.xlu2 %2964 }
 0xeba   :  { %v8115_v41 = vadd.f32 1e-16, %v2965_v6 }
 0xebc   :  { %2970 = vadd.xlane.f32.xlu1 %v2969_v54  ;;  %vm3024_vm6 = vweird.f32 %v8115_v41 }
 0xec3   :  { %v2968_v29 = vpop.xlane.xlu1 %2967 }
 0xec4   :  { %v8120_v30 = vadd.f32 1e-16, %v2968_v29  ;;  %v3156_v29 = vsel %vm9403_vm14, %v3128_v59, 0.0 }
 0xede   :  { %v2959_v2 = vpop.xlane.xlu0 %2958 }
 0xedf   :  { %v2981_v24 = vadd.f32 1e-16, %v2959_v2 }
 0xee1   :  { %6358 = vrcp.f32 %v2981_v24  ;;  %v3000_v57 = vand.u32 2147483648, %v2981_v24  ;;  %v2998_v32 = vand.u32 2147483647, %v2981_v24  ;;  %vm2994_vm11 = vweird.f32 %v2981_v24 }
 0xee2   :  { %6360 = vrcp.f32 %v8115_v41 }
 0xee3   :  { %2973 = vadd.xlane.f32.xlu0 %v2972_v25  ;;  %v3001_v11 = vor.u32 1.1754944e-38, %v3000_v57  ;;  %vm2999_vm13 = vcmp.eq.f32.partialorder %v2998_v32, 8.507059e+37  ;;  %v3030_v25 = vand.u32 2147483648, %v8115_v41 }
 0xee6   :  { %v2962_v55 = vpop.xlane.xlu0 %2961 }
 0xee7   :  { %v6359_v36 = vpop.eup %6358  ;;  %v2982_v42 = vadd.f32 1e-16, %v2962_v55 }
 0xee8   :  { %v6361_v21 = vpop.eup %6360  ;;  %v2990_v33 = vmul.f32 %v6359_v36, %v2981_v24  ;;  %vm2995_vm10 = vweird.f32 %v6359_v36 }
 0xee9   :  { %6362 = vrcp.f32 %v2982_v42  ;;  %v3020_v22 = vmul.f32 %v6361_v21, %v8115_v41  ;;  %vm2996_vm12 = vmor %vm2994_vm11, %vm2995_vm10  ;;  %v3015_v56 = vand.u32 2147483648, %v2982_v42  ;;  %v3013_v47 = vand.u32 2147483647, %v2982_v42 }
 0xeea   :  { %v2991_v20 = vsub.f32 1.0, %v2990_v33  ;;  %6364 = vrcp.f32 %v8120_v30  ;;  %vm3009_vm1 = vweird.f32 %v2982_v42  ;;  %vm3025_vm5 = vweird.f32 %v6361_v21  ;;  %vm9405_vm11 = vmmov %vm9402_vm2 }
 0xeeb   :  { %3151 = vadd.xlane.f32.xlu0 %v3150_v7  ;;  %v3021_v38 = vsub.f32 1.0, %v3020_v22  ;;  %v3016_v17 = vor.u32 1.1754944e-38, %v3015_v56  ;;  %vm3014_vm0 = vcmp.eq.f32.partialorder %v3013_v47, 8.507059e+37  ;;  %vm3026_vm7 = vmor %vm3024_vm6, %vm3025_vm5  ;;  %v3031_v7 = vor.u32 1.1754944e-38, %v3030_v25 }
 0xeec   :  { %v2992_v60 = vmul.f32 %v6359_v36, %v2991_v20  ;;  %v3162_v59 = vsel %vm9405_vm11, %v8111_v45, 0.0 }
 0xeed   :  { %v3022_v49 = vmul.f32 %v6361_v21, %v3021_v38 }
 0xeee   :  { %v2993_v14 = vadd.f32 %v6359_v36, %v2992_v60  ;;  %v3045_v60 = vand.u32 2147483648, %v8120_v30 }
 0xeef   :  { %v6363_v5 = vpop.eup %6362  ;;  %v3023_v10 = vadd.f32 %v6361_v21, %v3022_v49 }
 0xef0   :  { %v3005_v12 = vmul.f32 %v6363_v5, %v2982_v42  ;;  %v2997_v40 = vsel %vm2996_vm12, %v6359_v36, %v2993_v14  ;;  %v6365_v52 = vpop.eup %6364  ;;  %vm3010_vm3 = vweird.f32 %v6363_v5  ;;  %v3028_v36 = vand.u32 2147483647, %v8115_v41  ;;  %v3149_v42 = vpop.xlane.xlu1 %3148 }
 0xef1   :  { %v3002_v23 = vsel %vm2999_vm13, %v3001_v11, %v2997_v40  ;;  %v3035_v35 = vmul.f32 %v6365_v52, %v8120_v30  ;;  %vm3011_vm4 = vmor %vm3009_vm1, %vm3010_vm3  ;;  %v3027_v33 = vsel %vm3026_vm7, %v6361_v21, %v3023_v10  ;;  %vm3040_vm10 = vweird.f32 %v6365_v52 }
 0xef2   :  { %v3006_v0 = vsub.f32 1.0, %v3005_v12  ;;  %v3293_v62 = vmul.f32 %v3002_v23, %v8044_v44  ;;  %vm3029_vm9 = vcmp.eq.f32.partialorder %v3028_v36, 8.507059e+37  ;;  %v8138_v32 = vadd.f32 1e-16, %v3149_v42  ;;  %vm9407_vm3 = vmmov %vm9404_vm8 }
 0xef3   :  { %3154 = vadd.xlane.f32.xlu0 %v3153_v16  ;;  %v3036_v6 = vsub.f32 1.0, %v3035_v35  ;;  %v3032_v22 = vsel %vm3029_vm9, %v3031_v7, %v3027_v33  ;;  %vm3039_vm12 = vweird.f32 %v8120_v30  ;;  %v3043_v14 = vand.u32 2147483647, %v8120_v30  ;;  %vm9408_vm1 = vmmov %vm9407_vm3 }
 0xef4   :  { %5910 = vmatmul.msk.f32.vlgmr.msra.gmra.mxu2 %vm9402_vm2, %v3293_v62  ;;  %v3007_v15 = vmul.f32 %v6363_v5, %v3006_v0  ;;  %v3295_v41 = vmul.f32 %v3032_v22, %v8021_v19  ;;  %vm3041_vm13 = vmor %vm3039_vm12, %vm3040_vm10  ;;  %v3046_v11 = vor.u32 1.1754944e-38, %v3045_v60  ;;  %6366 = vrcp.f32 %v8138_v32 }
 0xef5   :  { %v3037_v20 = vmul.f32 %v6365_v52, %v3036_v6  ;;  %vm3044_vm2 = vcmp.eq.f32.partialorder %v3043_v14, 8.507059e+37  ;;  %v3159_v30 = vsel %vm9407_vm3, %v8113_v9, 0.0  ;;  %v3214_v33 = vand.u32 2147483648, %v8138_v32 }
 0xef6   :  { %v3008_v54 = vadd.f32 %v6363_v5, %v3007_v15 }
 0xef7   :  { %v3038_v57 = vadd.f32 %v6365_v52, %v3037_v20 }
 0xef8   :  { %v3012_v2 = vsel %vm3011_vm4, %v6363_v5, %v3008_v54  ;;  %vm9409_vm4 = vmmov %vm9408_vm1 }
 0xef9   :  { %v3017_v24 = vsel %vm3014_vm0, %v3016_v17, %v3012_v2  ;;  %v3042_v5 = vsel %vm3041_vm13, %v6365_v52, %v3038_v57  ;;  %v2978_v15 = vsel %vm9409_vm4, %v8031_v3, 0.0  ;;  %v3212_v57 = vand.u32 2147483647, %v8138_v32 }
 0xefa   :  { %v3294_v55 = vmul.f32 %v3017_v24, %v8062_v28  ;;  %v3047_v12 = vsel %vm3044_vm2, %v3046_v11, %v3042_v5  ;;  %v6367_v52 = vpop.eup %6366 }
 0xefb   :  { %3157 = vadd.xlane.f32.xlu0 %v3156_v29  ;;  %v3296_v0 = vmul.f32 %v3047_v12, %v8072_v8  ;;  %v3204_v16 = vmul.f32 %v6367_v52, %v8138_v32  ;;  %vm3209_vm7 = vweird.f32 %v6367_v52  ;;  %vm3213_vm13 = vcmp.eq.f32.partialorder %v3212_v57, 8.507059e+37 }
 0xefc   :  { %5911 = vmatmul.msk.f32.gmra.mxu2 %vm9404_vm8, %v3294_v55  ;;  %vm3208_vm8 = vweird.f32 %v8138_v32 }
 0xefd   :  { %v3205_v47 = vsub.f32 1.0, %v3204_v16  ;;  %vm3210_vm10 = vmor %vm3208_vm8, %vm3209_vm7 }
 0xeff   :  { %v3206_v2 = vmul.f32 %v6367_v52, %v3205_v47 }
 0xf01   :  { %v3207_v42 = vadd.f32 %v6367_v52, %v3206_v2 }
 0xf03   :  { %3163 = vadd.xlane.f32.xlu0 %v3162_v59 }
 0xf04   :  { %5912 = vmatmul.msk.f32.gmra.mxu2 %vm9406_vm15, %v3295_v41  ;;  %v6088_v21 = vpop.permute.xlu1 %6087  ;;  %v3211_v41 = vsel %vm3210_vm10, %v6367_v52, %v3207_v42 }
 0xf05   :  { %v6089_v38 = vunpack.i.l.bf16 %v6088_v21  ;;  %v6090_v45 = vunpack.i.h.bf16 %v6088_v21  ;;  %v3215_v21 = vor.u32 1.1754944e-38, %v3214_v33 }
 0xf07   :  { %3446 = vmatpush.msra.mxu0 %v6089_v38  ;;  %5998 = vmatpush.msrb.mxu2 %v6089_v38 }
 0xf08   :  { %v3143_v40 = vpop.xlane.xlu0 %3142 }
 0xf09   :  { %v3165_v23 = vadd.f32 1e-16, %v3143_v40  ;;  %3447 = vmatpush.msra.mxu0 %v6090_v45  ;;  %5999 = vmatpush.msrb.mxu2 %v6090_v45  ;;  %v6098_v40 = vpop.permute.xlu2 %6097 }
 0xf0a   :  { %v6100_v52 = vunpack.i.h.bf16 %v6098_v40 }
 0xf0b   :  { %6368 = vrcp.f32 %v3165_v23  ;;  %3160 = vadd.xlane.f32.xlu0 %v3159_v30  ;;  %v3184_v54 = vand.u32 2147483648, %v3165_v23  ;;  %v3182_v6 = vand.u32 2147483647, %v3165_v23  ;;  %vm3178_vm0 = vweird.f32 %v3165_v23 }
 0xf0c   :  { %5913 = vmatmul.msk.f32.gmra.mxu2 %vm9408_vm1, %v3296_v0  ;;  %v6099_v0 = vunpack.i.l.bf16 %v6098_v40 }
 0xf0d   :  { %v3185_v25 = vor.u32 1.1754944e-38, %v3184_v54  ;;  %vm3183_vm6 = vcmp.eq.f32.partialorder %v3182_v6, 8.507059e+37 }
 0xf10   :  { %v3146_v62 = vpop.xlane.xlu0 %3145 }
 0xf11   :  { %v6369_v56 = vpop.eup %6368  ;;  %v3166_v49 = vadd.f32 1e-16, %v3146_v62 }
 0xf12   :  { %v3174_v35 = vmul.f32 %v6369_v56, %v3165_v23  ;;  %vm3179_vm5 = vweird.f32 %v6369_v56 }
 0xf13   :  { %6370 = vrcp.f32 %v3166_v49  ;;  %2979 = vadd.xlane.f32.xlu0 %v2978_v15  ;;  %vm3180_vm14 = vmor %vm3178_vm0, %vm3179_vm5  ;;  %v3199_v22 = vand.u32 2147483648, %v3166_v49  ;;  %v3197_v60 = vand.u32 2147483647, %v3166_v49  ;;  %vm3193_vm11 = vweird.f32 %v3166_v49 }
 0xf14   :  { %v3175_v9 = vsub.f32 1.0, %v3174_v35  ;;  %vm9410_vm5 = vcmask 523264  }
 0xf15   :  { %v3200_v5 = vor.u32 1.1754944e-38, %v3199_v22  ;;  %vm3198_vm15 = vcmp.eq.f32.partialorder %v3197_v60, 8.507059e+37  ;;  %vm9411_vm0 = vmmov %vm9410_vm5 }
 0xf16   :  { %v3176_v17 = vmul.f32 %v6369_v56, %v3175_v9 }
 0xf18   :  { %v3177_v10 = vadd.f32 %v6369_v56, %v3176_v17 }
 0xf19   :  { %v6371_v24 = vpop.eup %6370 }
 0xf1a   :  { %v3189_v29 = vmul.f32 %v6371_v24, %v3166_v49  ;;  %v3181_v55 = vsel %vm3180_vm14, %v6369_v56, %v3177_v10  ;;  %vm3194_vm9 = vweird.f32 %v6371_v24 }
 0xf1b   :  { %v3186_v36 = vsel %vm3183_vm6, %v3185_v25, %v3181_v55  ;;  %vm3195_vm12 = vmor %vm3193_vm11, %vm3194_vm9  ;;  %v2975_v25 = vsel %vm9411_vm0, %v8055_v48, 0.0 }
 0xf1c   :  { %v3190_v20 = vsub.f32 1.0, %v3189_v29  ;;  %v3366_v7 = vmul.f32 %v3186_v36, %v8044_v44  ;;  %v3216_v44 = vsel %vm3213_vm13, %v3215_v21, %v3211_v41  ;;  %vm9412_vm9 = vmmov %vm9411_vm0 }
 0xf1d   :  { %v3368_v23 = vmul.f32 %v3216_v44, %v8021_v19 }
 0xf1e   :  { %v3191_v59 = vmul.f32 %v6371_v24, %v3190_v20  ;;  %3382 = vrot.lane.b32.xlu2 %v3366_v7, %s6666_s0 }
 0xf20   :  { %v3192_v14 = vadd.f32 %v6371_v24, %v3191_v59 }
 0xf22   :  { %v3196_v38 = vsel %vm3195_vm12, %v6371_v24, %v3192_v14 }
 0xf23   :  { %v6093_v11 = vpop.permute.xlu0 %6092  ;;  %v3201_v45 = vsel %vm3198_vm15, %v3200_v5, %v3196_v38 }
 0xf24   :  { %v6094_v12 = vunpack.i.l.bf16 %v6093_v11  ;;  %v3367_v32 = vmul.f32 %v3201_v45, %v8062_v28  ;;  %v6095_v30 = vunpack.i.h.bf16 %v6093_v11 }
 0xf26   :  { %3384 = vrot.lane.b32.xlu1 %v3367_v32, %s6666_s0  ;;  %3448 = vmatpush.msra.mxu0 %v6094_v12 }
 0xf27   :  { %6000 = vmatpush.msrb.mxu2 %v6094_v12  ;;  %3386 = vrot.lane.b32.xlu0 %v3368_v23, %s6666_s0 }
 0xf28   :  { %3449 = vmatpush.msra.mxu0 %v6095_v30 }
 0xf29   :  { %6001 = vmatpush.msrb.mxu2 %v6095_v30 }
 0xf2a   :  { %3450 = vmatpush.msra.mxu0 %v6099_v0 }
 0xf2b   :  { %6002 = vmatpush.msrb.mxu2 %v6099_v0  ;;  %v6103_v16 = vpop.permute.xlu0 %6102 }
 0xf2c   :  { %v6104_v62 = vunpack.i.l.bf16 %v6103_v16  ;;  %3451 = vmatpush.msra.mxu0 %v6100_v52  ;;  %v6105_v28 = vunpack.i.h.bf16 %v6103_v16 }
 0xf2d   :  { %6003 = vmatpush.msrb.mxu2 %v6100_v52 }
 0xf2e   :  { %3452 = vmatpush.msra.mxu0 %v6104_v62 }
 0xf2f   :  { %6004 = vmatpush.msrb.mxu2 %v6104_v62  ;;  %v2971_v19 = vpop.xlane.xlu1 %2970 }
 0xf30   :  { %3453 = vmatpush.msra.mxu0 %v6105_v28  ;;  %v2985_v56 = vadd.f32 1e-16, %v2971_v19 }
 0xf31   :  { %6005 = vmatpush.msrb.mxu2 %v6105_v28 }
 0xf32   :  { %6372 = vrcp.f32 %v2985_v56  ;;  %v3060_v47 = vand.u32 2147483648, %v2985_v56  ;;  %v3058_v54 = vand.u32 2147483647, %v2985_v56  ;;  %vm3054_vm3 = vweird.f32 %v2985_v56 }
 0xf34   :  { %v3061_v6 = vor.u32 1.1754944e-38, %v3060_v47  ;;  %vm3059_vm4 = vcmp.eq.f32.partialorder %v3058_v54, 8.507059e+37 }
 0xf38   :  { %v6373_v49 = vpop.eup %6372 }
 0xf39   :  { %v3050_v35 = vmul.f32 %v6373_v49, %v2985_v56  ;;  %vm3055_vm2 = vweird.f32 %v6373_v49 }
 0xf3a   :  { %vm3056_vm1 = vmor %vm3054_vm3, %vm3055_vm2 }
 0xf3b   :  { %v3051_v15 = vsub.f32 1.0, %v3050_v35 }
 0xf3d   :  { %v3052_v9 = vmul.f32 %v6373_v49, %v3051_v15 }
 0xf3f   :  { %v3053_v17 = vadd.f32 %v6373_v49, %v3052_v9 }
 0xf41   :  { %v3057_v2 = vsel %vm3056_vm1, %v6373_v49, %v3053_v17 }
 0xf42   :  { %v3062_v10 = vsel %vm3059_vm4, %v3061_v6, %v3057_v2  ;;  %vm9413_vm4 = vmmov %vm9411_vm0 }
 0xf43   :  { %v3297_v24 = vmul.f32 %v3062_v10, %v8079_v27 }
 0xf45   :  { %5914 = vmatmul.msk.f32.gmra.mxu2 %vm9410_vm5, %v3297_v24 }
 0xf47   :  { %2976 = vadd.xlane.f32.xlu2 %v2975_v25 }
 0xf56   :  { %v2974_v29 = vpop.xlane.xlu0 %2973 }
 0xf57   :  { %v2986_v55 = vadd.f32 1e-16, %v2974_v29 }
 0xf59   :  { %6374 = vrcp.f32 %v2986_v55  ;;  %v3075_v22 = vand.u32 2147483648, %v2986_v55  ;;  %v3073_v59 = vand.u32 2147483647, %v2986_v55  ;;  %vm3069_vm6 = vweird.f32 %v2986_v55 }
 0xf5b   :  { %v3076_v5 = vor.u32 1.1754944e-38, %v3075_v22  ;;  %vm3074_vm8 = vcmp.eq.f32.partialorder %v3073_v59, 8.507059e+37 }
 0xf5e   :  { %v3152_v36 = vpop.xlane.xlu0 %3151 }
 0xf5f   :  { %v6375_v42 = vpop.eup %6374  ;;  %v3168_v33 = vadd.f32 1e-16, %v3152_v36 }
 0xf60   :  { %v3065_v20 = vmul.f32 %v6375_v42, %v2986_v55  ;;  %vm3070_vm14 = vweird.f32 %v6375_v42 }
 0xf61   :  { %6376 = vrcp.f32 %v3168_v33  ;;  %vm3071_vm7 = vmor %vm3069_vm6, %vm3070_vm14  ;;  %v3229_v32 = vand.u32 2147483648, %v3168_v33  ;;  %v3227_v23 = vand.u32 2147483647, %v3168_v33  ;;  %vm3223_vm11 = vweird.f32 %v3168_v33 }
 0xf62   :  { %v3066_v7 = vsub.f32 1.0, %v3065_v20 }
 0xf63   :  { %v3230_v62 = vor.u32 1.1754944e-38, %v3229_v32  ;;  %vm3228_vm13 = vcmp.eq.f32.partialorder %v3227_v23, 8.507059e+37 }
 0xf64   :  { %v3067_v57 = vmul.f32 %v6375_v42, %v3066_v7 }
 0xf66   :  { %v3155_v60 = vpop.xlane.xlu0 %3154  ;;  %v3068_v41 = vadd.f32 %v6375_v42, %v3067_v57 }
 0xf67   :  { %v6377_v14 = vpop.eup %6376  ;;  %v3169_v21 = vadd.f32 1e-16, %v3155_v60 }
 0xf68   :  { %v3219_v38 = vmul.f32 %v6377_v14, %v3168_v33  ;;  %v3072_v44 = vsel %vm3071_vm7, %v6375_v42, %v3068_v41  ;;  %vm3224_vm10 = vweird.f32 %v6377_v14 }
 0xf69   :  { %6378 = vrcp.f32 %v3169_v21  ;;  %v3077_v11 = vsel %vm3074_vm8, %v3076_v5, %v3072_v44  ;;  %vm3225_vm12 = vmor %vm3223_vm11, %vm3224_vm10  ;;  %v3244_v15 = vand.u32 2147483648, %v3169_v21  ;;  %v3242_v9 = vand.u32 2147483647, %v3169_v21 }
 0xf6a   :  { %v3220_v45 = vsub.f32 1.0, %v3219_v38  ;;  %v3298_v12 = vmul.f32 %v3077_v11, %v8086_v31  ;;  %vm3238_vm2 = vweird.f32 %v3169_v21 }
 0xf6b   :  { %v3245_v10 = vor.u32 1.1754944e-38, %v3244_v15  ;;  %vm3243_vm1 = vcmp.eq.f32.partialorder %v3242_v9, 8.507059e+37 }
 0xf6c   :  { %v3221_v40 = vmul.f32 %v6377_v14, %v3220_v45  ;;  %5915 = vmatmul.msk.f32.gmra.mxu2 %vm9412_vm9, %v3298_v12 }
 0xf6e   :  { %v3158_v30 = vpop.xlane.xlu0 %3157  ;;  %v3222_v0 = vadd.f32 %v6377_v14, %v3221_v40 }
 0xf6f   :  { %v6379_v52 = vpop.eup %6378  ;;  %v3170_v16 = vadd.f32 1e-16, %v3158_v30 }
 0xf70   :  { %v3234_v28 = vmul.f32 %v6379_v52, %v3169_v21  ;;  %v3226_v19 = vsel %vm3225_vm12, %v6377_v14, %v3222_v0  ;;  %vm3239_vm15 = vweird.f32 %v6379_v52 }
 0xf71   :  { %6380 = vrcp.f32 %v3170_v16  ;;  %v3231_v56 = vsel %vm3228_vm13, %v3230_v62, %v3226_v19  ;;  %vm3240_vm3 = vmor %vm3238_vm2, %vm3239_vm15  ;;  %v3259_v42 = vand.u32 2147483648, %v3170_v16  ;;  %v3257_v20 = vand.u32 2147483647, %v3170_v16 }
 0xf72   :  { %v3235_v49 = vsub.f32 1.0, %v3234_v28  ;;  %v3369_v35 = vmul.f32 %v3231_v56, %v8072_v8  ;;  %vm3253_vm0 = vweird.f32 %v3170_v16  ;;  %vm9414_vm2 = vmmov %vm9413_vm4 }
 0xf73   :  { %v3260_v60 = vor.u32 1.1754944e-38, %v3259_v42  ;;  %vm3258_vm6 = vcmp.eq.f32.partialorder %v3257_v20, 8.507059e+37 }
 0xf74   :  { %v3236_v47 = vmul.f32 %v6379_v52, %v3235_v49  ;;  %3388 = vrot.lane.b32.xlu1 %v3369_v35, %s6666_s0 }
 0xf76   :  { %v3164_v54 = vpop.xlane.xlu0 %3163  ;;  %v3237_v17 = vadd.f32 %v6379_v52, %v3236_v47 }
 0xf77   :  { %v6381_v6 = vpop.eup %6380  ;;  %v3172_v2 = vadd.f32 1e-16, %v3164_v54 }
 0xf78   :  { %v3249_v24 = vmul.f32 %v6381_v6, %v3170_v16  ;;  %v3383_v25 = vpop.permute.xlu2 %3382  ;;  %v3241_v29 = vsel %vm3240_vm3, %v6379_v52, %v3237_v17  ;;  %vm3254_vm5 = vweird.f32 %v6381_v6  ;;  %vm9415_vm3 = vmmov %vm9414_vm2 }
 0xf79   :  { %6382 = vrcp.f32 %v3172_v2  ;;  %5918 = vmatmul.msk.f32.vlgmr.msra.gmra.mxu0 %vm9413_vm4, %v3383_v25  ;;  %v3246_v8 = vsel %vm3243_vm1, %v3245_v10, %v3241_v29  ;;  %vm3255_vm14 = vmor %vm3253_vm0, %vm3254_vm5  ;;  %v3289_v38 = vand.u32 2147483648, %v3172_v2  ;;  %v3287_v11 = vand.u32 2147483647, %v3172_v2 }
 0xf7a   :  { %v3250_v55 = vsub.f32 1.0, %v3249_v24  ;;  %v3370_v36 = vmul.f32 %v3246_v8, %v8079_v27  ;;  %vm3283_vm8 = vweird.f32 %v3172_v2 }
 0xf7b   :  { %v3290_v32 = vor.u32 1.1754944e-38, %v3289_v38  ;;  %vm3288_vm10 = vcmp.eq.f32.partialorder %v3287_v11, 8.507059e+37 }
 0xf7c   :  { %v3251_v33 = vmul.f32 %v6381_v6, %v3250_v55  ;;  %3390 = vrot.lane.b32.xlu1 %v3370_v36, %s6666_s0 }
 0xf7e   :  { %v3161_v7 = vpop.xlane.xlu0 %3160  ;;  %v3252_v22 = vadd.f32 %v6381_v6, %v3251_v33 }
 0xf7f   :  { %v6383_v57 = vpop.eup %6382  ;;  %v3171_v59 = vadd.f32 1e-16, %v3161_v7 }
 0xf80   :  { %v3279_v41 = vmul.f32 %v6383_v57, %v3172_v2  ;;  %v3256_v14 = vsel %vm3255_vm14, %v6381_v6, %v3252_v22  ;;  %vm3284_vm7 = vweird.f32 %v6383_v57 }
 0xf81   :  { %6384 = vrcp.f32 %v3171_v59  ;;  %v3261_v21 = vsel %vm3258_vm6, %v3260_v60, %v3256_v14  ;;  %vm3285_vm9 = vmor %vm3283_vm8, %vm3284_vm7  ;;  %v3274_v16 = vand.u32 2147483648, %v3171_v59  ;;  %v3272_v62 = vand.u32 2147483647, %v3171_v59 }
 0xf82   :  { %v3280_v5 = vsub.f32 1.0, %v3279_v41  ;;  %v3371_v27 = vmul.f32 %v3261_v21, %v8086_v31  ;;  %vm3268_vm12 = vweird.f32 %v3171_v59  ;;  %vm9416_vm8 = vmmov %vm9414_vm2 }
 0xf83   :  { %v3275_v19 = vor.u32 1.1754944e-38, %v3274_v16  ;;  %vm3273_vm15 = vcmp.eq.f32.partialorder %v3272_v62, 8.507059e+37 }
 0xf84   :  { %v3281_v44 = vmul.f32 %v6383_v57, %v3280_v5  ;;  %3392 = vrot.lane.b32.xlu2 %v3371_v27, %s6666_s0 }
 0xf86   :  { %v3282_v45 = vadd.f32 %v6383_v57, %v3281_v44  ;;  %v2980_v15 = vpop.xlane.xlu0 %2979 }
 0xf87   :  { %v6385_v12 = vpop.eup %6384  ;;  %v2988_v54 = vadd.f32 1e-16, %v2980_v15 }
 0xf88   :  { %v3264_v40 = vmul.f32 %v6385_v12, %v3171_v59  ;;  %v3286_v23 = vsel %vm3285_vm9, %v6383_v57, %v3282_v45  ;;  %vm3269_vm11 = vweird.f32 %v6385_v12 }
 0xf89   :  { %v3291_v30 = vsel %vm3288_vm10, %v3290_v32, %v3286_v23  ;;  %vm3270_vm13 = vmor %vm3268_vm12, %vm3269_vm11  ;;  %6386 = vrcp.f32 %v2988_v54  ;;  %v3105_v60 = vand.u32 2147483648, %v2988_v54  ;;  %vm3099_vm6 = vweird.f32 %v2988_v54  ;;  %v3342_v23 = vpop.f32.mrf.mxu2 }
 0xf8a   :  { %v3265_v0 = vsub.f32 1.0, %v3264_v40  ;;  %v3373_v52 = vmul.f32 %v3291_v30, %v8031_v3  ;;  %v3103_v14 = vand.u32 2147483647, %v2988_v54  ;;  %vm9417_vm10 = vmmov %vm9414_vm2 }
 0xf8b   :  { %v3106_v5 = vor.u32 1.1754944e-38, %v3105_v60  ;;  %vm9418_vm11 = vmmov %vm9414_vm2 }
 0xf8c   :  { %v3266_v31 = vmul.f32 %v6385_v12, %v3265_v0  ;;  %3396 = vrot.lane.b32.xlu1 %v3373_v52, %s6666_s0  ;;  %vm3104_vm9 = vcmp.eq.f32.partialorder %v3103_v14, 8.507059e+37  ;;  %vm9419_vm12 = vmmov %vm9414_vm2 }
 0xf8e   :  { %v3267_v28 = vadd.f32 %v6385_v12, %v3266_v31 }
 0xf8f   :  { %v6387_v2 = vpop.eup %6386 }
 0xf90   :  { %v3271_v56 = vsel %vm3270_vm13, %v6385_v12, %v3267_v28  ;;  %v3095_v10 = vmul.f32 %v6387_v2, %v2988_v54  ;;  %vm3100_vm14 = vweird.f32 %v6387_v2  ;;  %vm9420_vm13 = vmmov %vm9414_vm2 }
 0xf91   :  { %v3276_v49 = vsel %vm3273_vm15, %v3275_v19, %v3271_v56  ;;  %vm3101_vm7 = vmor %vm3099_vm6, %vm3100_vm14  ;;  %v3345_v30 = vpop.f32.mrf.mxu2 }
 0xf92   :  { %v3372_v35 = vmul.f32 %v3276_v49, %v8055_v48  ;;  %v3096_v25 = vsub.f32 1.0, %v3095_v10  ;;  %vm9421_vm15 = vmmov %vm9414_vm2 }
 0xf94   :  { %3394 = vrot.lane.b32.xlu0 %v3372_v35, %s6666_s0  ;;  %v3097_v33 = vmul.f32 %v6387_v2, %v3096_v25  ;;  %s6674_s0 = smov 8  }
 0xf96   :  { %v3098_v57 = vadd.f32 %v6387_v2, %v3097_v33 }
 0xf98   :  { %v3385_v47 = vpop.permute.xlu1 %3384  ;;  %v3102_v21 = vsel %vm3101_vm7, %v6387_v2, %v3098_v57 }
 0xf99   :  { %5919 = vmatmul.msk.f32.gmra.mxu0 %vm9414_vm2, %v3385_v47  ;;  %v3387_v9 = vpop.permute.xlu0 %3386  ;;  %v3107_v27 = vsel %vm3104_vm9, %v3106_v5, %v3102_v21  ;;  %v3348_v0 = vpop.f32.mrf.mxu2  ;;  %v3692_v47 = vld [vmem:[%s9356_s8 + $0x8] sm:$0xff] }
 0xf9a   :  { %v3300_v38 = vmul.f32 %v3107_v27, %v8031_v3  ;;  %6006 = vmatpush.msra.mxu3 %v3692_v47  ;;  %3732 = vmatpush.msra.mxu2 %v3692_v47 }
 0xfa1   :  { %5920 = vmatmul.msk.f32.gmra.mxu0 %vm9415_vm3, %v3387_v9  ;;  %v3351_v52 = vpop.f32.mrf.mxu2  ;;  %vm3511_vm3 = vcmask 64512  }
 0xfba   :  { %v2977_v17 = vpop.xlane.xlu2 %2976 }
 0xfbb   :  { %v2987_v6 = vadd.f32 1e-16, %v2977_v17 }
 0xfbd   :  { %6388 = vrcp.f32 %v2987_v6  ;;  %v3090_v55 = vand.u32 2147483648, %v2987_v6  ;;  %v3088_v42 = vand.u32 2147483647, %v2987_v6  ;;  %vm3084_vm4 = vweird.f32 %v2987_v6 }
 0xfbf   :  { %v3091_v7 = vor.u32 1.1754944e-38, %v3090_v55  ;;  %vm3089_vm0 = vcmp.eq.f32.partialorder %v3088_v42, 8.507059e+37 }
 0xfc3   :  { %v6389_v24 = vpop.eup %6388 }
 0xfc4   :  { %v3080_v29 = vmul.f32 %v6389_v24, %v2987_v6  ;;  %vm3085_vm1 = vweird.f32 %v6389_v24 }
 0xfc5   :  { %vm3086_vm5 = vmor %vm3084_vm4, %vm3085_vm1  ;;  %vm9422_vm1 = vcmask 130048  }
 0xfc6   :  { %v3081_v8 = vsub.f32 1.0, %v3080_v29  ;;  %vm9423_vm4 = vmmov %vm9422_vm1 }
 0xfc8   :  { %v3082_v36 = vmul.f32 %v6389_v24, %v3081_v8  ;;  %v3354_v16 = vpop.f32.mrf.mxu2 }
 0xfca   :  { %v3083_v20 = vadd.f32 %v6389_v24, %v3082_v36 }
 0xfcc   :  { %v3087_v22 = vsel %vm3086_vm5, %v6389_v24, %v3083_v20  ;;  %vm9424_vm5 = vmmov %vm9422_vm1 }
 0xfcd   :  { %v3092_v59 = vsel %vm3089_vm0, %v3091_v7, %v3087_v22  ;;  %vm9425_vm0 = vmmov %vm9422_vm1 }
 0xfce   :  { %v3299_v41 = vmul.f32 %v3092_v59, %v8055_v48  ;;  %vm9426_vm14 = vmmov %vm9425_vm0 }
 0xfcf   :  { %vm9427_vm6 = vmmov %vm9425_vm0 }
 0xfd0   :  { %5916 = vmatmul.msk.f32.gmra.mxu2 %vm9416_vm8, %v3299_v41  ;;  %vm9428_vm7 = vmmov %vm9425_vm0 }
 0xfd1   :  { %vm9429_vm8 = vmmov %vm9425_vm0 }
 0xfd2   :  { %vm9430_vm9 = vmmov %vm9425_vm0 }
 0xfd8   :  { %5917 = vmatmul.msk.f32.gmra.mxu2 %vm9417_vm10, %v3300_v38  ;;  %vm9431_vm10 = vmmov %vm9425_vm0 }
 0xfde   :  { %v3393_v48 = vpop.permute.xlu2 %3392 }
 0xfe6   :  { %v3389_v44 = vpop.permute.xlu1 %3388 }
 0xfe7   :  { %5921 = vmatmul.msk.f32.gmra.mxu0 %vm9418_vm11, %v3389_v44  ;;  %vm9432_vm11 = vmmov %vm9425_vm0 }
 0xfee   :  { %v3391_v11 = vpop.permute.xlu1 %3390 }
 0xfef   :  { %5922 = vmatmul.msk.f32.gmra.mxu0 %vm9419_vm12, %v3391_v11  ;;  %v3357_v62 = vpop.f32.mrf.mxu2  ;;  %vm9433_vm12 = vmmov %vm9425_vm0 }
 0xff6   :  { %v3455_v45 = vpop.f32.mrf.mxu0 }
 0xff7   :  { %5923 = vmatmul.msk.f32.gmra.mxu0 %vm9420_vm13, %v3393_v48  ;;  %3487 = vrot.lane.b32.xlu1 %v3455_v45, %s6674_s0  ;;  %vm9434_vm13 = vmmov %vm9425_vm0 }
 0xffe   :  { %v3397_v12 = vpop.permute.xlu1 %3396 }
 0xfff   :  { %5925 = vmatmul.msk.f32.vlgmr.msrb.gmra.mxu2 %vm9421_vm15, %v3397_v12  ;;  %vm9435_vm15 = vmmov %vm9425_vm0 }
0x1006   :  { %v3395_v32 = vpop.permute.xlu0 %3394 }
0x1007   :  { %5924 = vmatmul.msk.f32.gmra.mxu0 %vm9414_vm2, %v3395_v32  ;;  %vm9436_vm2 = vmmov %vm9425_vm0 }
0x1016   :  { %v3458_v3 = vpop.f32.mrf.mxu0 }
0x1017   :  { %3489 = vrot.lane.b32.xlu0 %v3458_v3, %s6674_s0 }
0x101e   :  { %v3461_v40 = vpop.f32.mrf.mxu0 }
0x101f   :  { %3491 = vrot.lane.b32.xlu1 %v3461_v40, %s6674_s0 }
0x1053   :  { %v3360_v19 = vpop.f32.mrf.mxu2 }
0x105b   :  { %v3363_v49 = vpop.f32.mrf.mxu2 }
0x1064   :  { %v3464_v31 = vpop.f32.mrf.mxu0 }
0x1065   :  { %3493 = vrot.lane.b32.xlu2 %v3464_v31, %s6674_s0 }
0x1069   :  { %v3488_v9 = vpop.permute.xlu1 %3487 }
0x106a   :  { %v8196_v10 = vsel %vm3511_vm3, %v3342_v23, %v3488_v9 }
0x106b   :  { %v3542_v55 = vmul.f32 %v8196_v10, %v8196_v10  ;;  %v3520_v7 = vsel %vm9423_vm4, %v8196_v10, 0.0 }
0x106c   :  { %v3467_v28 = vpop.f32.mrf.mxu0 }
0x106d   :  { %3495 = vrot.lane.b32.xlu0 %v3467_v28, %s6674_s0  ;;  %v3550_v14 = vsel %vm9426_vm14, %v3542_v55, 0.0  ;;  %vm9438_vm14 = vmmov %vm9425_vm0 }
0x1074   :  { %v3470_v56 = vpop.f32.mrf.mxu0 }
0x1075   :  { %3497 = vrot.lane.b32.xlu1 %v3470_v56, %s6674_s0 }
0x1082   :  { %v3476_v35 = vpop.f32.mrf.mxu2 }
0x1083   :  { %3501 = vrot.lane.b32.xlu0 %v3476_v35, %s6674_s0 }
0x1084   :  { %v3473_v15 = vpop.f32.mrf.mxu0 }
0x1085   :  { %3499 = vrot.lane.b32.xlu2 %v3473_v15, %s6674_s0 }
0x1089   :  { %v3490_v54 = vpop.permute.xlu0 %3489 }
0x108a   :  { %v8193_v6 = vsel %vm3511_vm3, %v3345_v30, %v3490_v54 }
0x108b   :  { %v3543_v25 = vmul.f32 %v8193_v6, %v8193_v6  ;;  %v3521_v36 = vsel %vm9422_vm1, %v8193_v6, 0.0  ;;  %vm9437_vm1 = vmmov %vm9425_vm0 }
0x108c   :  { %v3522_v60 = vadd.f32 %v3521_v36, %v3520_v7 }
0x108d   :  { %v3551_v22 = vsel %vm9424_vm5, %v3543_v25, 0.0 }
0x108e   :  { %v3552_v38 = vadd.f32 %v3551_v22, %v3550_v14 }
0x1091   :  { %v3492_v17 = vpop.permute.xlu1 %3491 }
0x1092   :  { %v8199_v24 = vsel %vm3511_vm3, %v3348_v0, %v3492_v17 }
0x1093   :  { %v3544_v42 = vmul.f32 %v8199_v24, %v8199_v24  ;;  %v3523_v57 = vsel %vm9425_vm0, %v8199_v24, 0.0 }
0x1094   :  { %v3524_v44 = vadd.f32 %v3523_v57, %v3522_v60 }
0x1095   :  { %v3553_v21 = vsel %vm9427_vm6, %v3544_v42, 0.0  ;;  %vm9439_vm6 = vmmov %vm9425_vm0 }
0x1096   :  { %v3554_v32 = vadd.f32 %v3553_v21, %v3552_v38 }
0x10bf   :  { %v3494_v2 = vpop.permute.xlu2 %3493 }
0x10c0   :  { %v8204_v8 = vsel %vm3511_vm3, %v3351_v52, %v3494_v2 }
0x10c1   :  { %v3545_v59 = vmul.f32 %v8204_v8, %v8204_v8  ;;  %v3525_v5 = vsel %vm9428_vm7, %v8204_v8, 0.0  ;;  %vm9440_vm7 = vmmov %vm9425_vm0 }
0x10c2   :  { %v3526_v3 = vadd.f32 %v3525_v5, %v3524_v44 }
0x10c3   :  { %v3555_v11 = vsel %vm9429_vm8, %v3545_v59, 0.0  ;;  %vm9441_vm8 = vmmov %vm9425_vm0 }
0x10c4   :  { %v3556_v30 = vadd.f32 %v3555_v11, %v3554_v32 }
0x10df   :  { %v3496_v29 = vpop.permute.xlu0 %3495  ;;  %v3500_v45 = vpop.permute.xlu2 %3499 }
0x10e0   :  { %v8213_v20 = vsel %vm3511_vm3, %v3354_v16, %v3496_v29  ;;  %v8240_v52 = vsel %vm3511_vm3, %v3360_v19, %v3500_v45 }
0x10e1   :  { %v3546_v27 = vmul.f32 %v8213_v20, %v8213_v20  ;;  %v3527_v48 = vsel %vm9430_vm9, %v8213_v20, 0.0  ;;  %v3548_v28 = vmul.f32 %v8240_v52, %v8240_v52  ;;  %v3531_v35 = vsel %vm9434_vm13, %v8240_v52, 0.0  ;;  %vm9442_vm9 = vmmov %vm9425_vm0 }
0x10e2   :  { %v3528_v0 = vadd.f32 %v3527_v48, %v3526_v3  ;;  %vm9446_vm13 = vmmov %vm9425_vm0 }
0x10e3   :  { %v3557_v40 = vsel %vm9431_vm10, %v3546_v27, 0.0  ;;  %v3561_v54 = vsel %vm9435_vm15, %v3548_v28, 0.0  ;;  %vm9443_vm10 = vmmov %vm9425_vm0 }
0x10e4   :  { %v3558_v31 = vadd.f32 %v3557_v40, %v3556_v30  ;;  %vm9447_vm15 = vmmov %vm9425_vm0 }
0x10e7   :  { %v3498_v33 = vpop.permute.xlu1 %3497 }
0x10e8   :  { %v8223_v41 = vsel %vm3511_vm3, %v3357_v62, %v3498_v33 }
0x10e9   :  { %v3547_v12 = vmul.f32 %v8223_v41, %v8223_v41  ;;  %v3529_v23 = vsel %vm9432_vm11, %v8223_v41, 0.0  ;;  %vm9444_vm11 = vmmov %vm9425_vm0 }
0x10ea   :  { %v3530_v62 = vadd.f32 %v3529_v23, %v3528_v0  ;;  %v2473_v23 = vld [vmem:[%s9357_s7] sm:$0x3] }
0x10eb   :  { %v3559_v16 = vsel %vm9433_vm12, %v3547_v12, 0.0  ;;  %v3601_v0 = vperm.slane %v2473_v23, 0  ;;  %vm9445_vm12 = vmmov %vm9425_vm0 }
0x10ec   :  { %v3560_v56 = vadd.f32 %v3559_v16, %v3558_v31  ;;  %v3532_v47 = vadd.f32 %v3531_v35, %v3530_v62  ;;  %v3610_v62 = vperm.slane %v2473_v23, 1 }
0x10ee   :  { %v3562_v2 = vadd.f32 %v3561_v54, %v3560_v56 }
0x10f5   :  { %v3502_v15 = vpop.permute.xlu0 %3501 }
0x10f6   :  { %v3519_v9 = vsel %vm3511_vm3, %v3363_v49, %v3502_v15  ;;  %v3691_v49 = vld [vmem:[%s9356_s8] sm:$0xff] }
0x10f7   :  { %v3533_v19 = vsel %vm9436_vm2, %v3519_v9, 0.0  ;;  %v3549_v17 = vmul.f32 %v3519_v9, %v3519_v9  ;;  %6007 = vmatpush.msra.mxu3 %v3691_v49  ;;  %3733 = vmatpush.msra.mxu2 %v3691_v49  ;;  %vm9448_vm2 = vmmov %vm9425_vm0 }
0x10f8   :  { %v3534_v25 = vadd.f32 %v3533_v19, %v3532_v47 }
0x10f9   :  { %v3563_v29 = vsel %vm9437_vm1, %v3549_v17, 0.0  ;;  %vm9449_vm1 = vmmov %vm9425_vm0 }
0x10fa   :  { %v3535_v55 = vrot.slane %v3534_v25, 4  ;;  %v3564_v36 = vadd.f32 %v3563_v29, %v3562_v2 }
0x10fc   :  { %v3536_v42 = vadd.f32 %v3535_v55, %v3534_v25  ;;  %v3565_v33 = vrot.slane %v3564_v36, 4 }
0x10fe   :  { %v3537_v7 = vrot.slane %v3536_v42, 2  ;;  %v3566_v22 = vadd.f32 %v3565_v33, %v3564_v36 }
0x1100   :  { %v3538_v57 = vadd.f32 %v3537_v7, %v3536_v42  ;;  %v3567_v59 = vrot.slane %v3566_v22, 2 }
0x1102   :  { %v3539_v60 = vrot.slane %v3538_v57, 1  ;;  %v3568_v14 = vadd.f32 %v3567_v59, %v3566_v22 }
0x1104   :  { %v3540_v21 = vadd.f32 %v3539_v60, %v3538_v57  ;;  %v3569_v5 = vrot.slane %v3568_v14, 1 }
0x1106   :  { %v3541_v27 = vmul.f32 %v3540_v21, %v7172_v4  ;;  %v3570_v38 = vadd.f32 %v3569_v5, %v3568_v14 }
0x1108   :  { %v3571_v44 = vmul.f32 %v3570_v38, %v7172_v4  ;;  %v3572_v11 = vmul.f32 %v3541_v27, %v3541_v27  ;;  %v3581_v16 = vsub.f32 %v3519_v9, %v3541_v27  ;;  %v3574_v28 = vsub.f32 %v8196_v10, %v3541_v27 }
0x1109   :  { %v3575_v56 = vsub.f32 %v8193_v6, %v3541_v27  ;;  %v3576_v35 = vsub.f32 %v8199_v24, %v3541_v27  ;;  %v3577_v15 = vsub.f32 %v8204_v8, %v3541_v27  ;;  %v3578_v54 = vsub.f32 %v8213_v20, %v3541_v27 }
0x110a   :  { %v3573_v48 = vsub.f32 %v3571_v44, %v3572_v11  ;;  %v3579_v19 = vsub.f32 %v8223_v41, %v3541_v27  ;;  %v3580_v17 = vsub.f32 %v8240_v52, %v3541_v27 }
0x110c   :  { %v3582_v45 = vadd.f32 1e-05, %v3573_v48 }
0x110e   :  { %6390 = vrsqrt.f32 %v3582_v45  ;;  %vm3589_vm4 = vweird.f32 %v3582_v45 }
0x1114   :  { %v6391_v12 = vpop.eup %6390 }
0x1115   :  { %v3584_v32 = vmul.f32 %v6391_v12, %v3582_v45  ;;  %vm3590_vm3 = vweird.f32 %v6391_v12 }
0x1116   :  { %vm3591_vm5 = vmor %vm3589_vm4, %vm3590_vm3 }
0x1117   :  { %v3585_v3 = vmul.f32 %v6391_v12, %v3584_v32  ;;  %vm9450_vm3 = vmmov %vm9425_vm0 }
0x1118   :  { %vm9451_vm4 = vmmov %vm9425_vm0 }
0x1119   :  { %v3586_v40 = vmul.f32 0.5, %v3585_v3 }
0x111b   :  { %v3587_v30 = vsub.f32 1.5, %v3586_v40 }
0x111d   :  { %v3588_v31 = vmul.f32 %v6391_v12, %v3587_v30 }
0x111f   :  { %v3592_v47 = vsel %vm3591_vm5, %v6391_v12, %v3588_v31  ;;  %vm9452_vm5 = vmmov %vm9425_vm0 }
0x1120   :  { %v3600_v9 = vmul.f32 %v3592_v47, %v3581_v16  ;;  %v3593_v2 = vmul.f32 %v3592_v47, %v3574_v28  ;;  %v3594_v25 = vmul.f32 %v3592_v47, %v3575_v56  ;;  %v3595_v29 = vmul.f32 %v3592_v47, %v3576_v35 }
0x1121   :  { %v3596_v55 = vmul.f32 %v3592_v47, %v3577_v15  ;;  %v3597_v36 = vmul.f32 %v3592_v47, %v3578_v54  ;;  %v3598_v10 = vmul.f32 %v3592_v47, %v3579_v19  ;;  %v3599_v42 = vmul.f32 %v3592_v47, %v3580_v17 }
0x1122   :  { %v3602_v6 = vmul.f32 %v3601_v0, %v3593_v2  ;;  %v3603_v33 = vmul.f32 %v3601_v0, %v3594_v25  ;;  %v3604_v24 = vmul.f32 %v3601_v0, %v3595_v29  ;;  %v3609_v52 = vmul.f32 %v3601_v0, %v3600_v9 }
0x1123   :  { %v3605_v7 = vmul.f32 %v3601_v0, %v3596_v55  ;;  %v3606_v8 = vmul.f32 %v3601_v0, %v3597_v36  ;;  %v3607_v22 = vmul.f32 %v3601_v0, %v3598_v10  ;;  %v3608_v41 = vmul.f32 %v3601_v0, %v3599_v42 }
0x1124   :  { %v3611_v57 = vadd.f32 %v3610_v62, %v3602_v6  ;;  %v3612_v20 = vadd.f32 %v3610_v62, %v3603_v33  ;;  %v3613_v59 = vadd.f32 %v3610_v62, %v3604_v24  ;;  %v3618_v5 = vadd.f32 %v3610_v62, %v3609_v52 }
0x1125   :  { %v3614_v49 = vadd.f32 %v3610_v62, %v3605_v7  ;;  %v3615_v60 = vadd.f32 %v3610_v62, %v3606_v8  ;;  %v3616_v14 = vadd.f32 %v3610_v62, %v3607_v22  ;;  %v3617_v21 = vadd.f32 %v3610_v62, %v3608_v41 }
0x1126   :  { %3619 = vst.msk [vmem:[%s9358_s14] sm:$0xff] %vm9425_vm0, %v3611_v57  ;;  %5926 = vmatmul.msk.f32.vlgmr.msra.gmra.mxu2 %vm9438_vm14, %v3611_v57  ;;  %5927 = vmatmul.msk.f32.vlgmr.msra.gmra.mxu3 %vm9439_vm6, %v3612_v20 }
0x1127   :  { %3620 = vst.msk [vmem:[%s9358_s14 + $0x8] sm:$0xff] %vm9440_vm7, %v3612_v20 }
0x1128   :  { %3621 = vst.msk [vmem:[%s9358_s14 + $0x10] sm:$0xff] %vm9441_vm8, %v3613_v59 }
0x1129   :  { %3622 = vst.msk [vmem:[%s9358_s14 + $0x18] sm:$0xff] %vm9442_vm9, %v3614_v49 }
0x112a   :  { %3623 = vst.msk [vmem:[%s9358_s14 + $0x20] sm:$0xff] %vm9443_vm10, %v3615_v60 }
0x112b   :  { %3624 = vst.msk [vmem:[%s9358_s14 + $0x28] sm:$0xff] %vm9444_vm11, %v3616_v14 }
0x112c   :  { %3625 = vst.msk [vmem:[%s9358_s14 + $0x30] sm:$0xff] %vm9445_vm12, %v3617_v21 }
0x112d   :  { %3626 = vst.msk [vmem:[%s9358_s14 + $0x38] sm:$0xff] %vm9446_vm13, %v3618_v5 }
0x112e   :  { %5928 = vmatmul.msk.f32.gmra.mxu3 %vm9447_vm15, %v3613_v59 }
0x1136   :  { %5929 = vmatmul.msk.f32.gmra.mxu3 %vm9448_vm2, %v3614_v49 }
0x113e   :  { %5930 = vmatmul.msk.f32.gmra.mxu3 %vm9449_vm1, %v3615_v60 }
0x1146   :  { %5931 = vmatmul.msk.f32.gmra.mxu3 %vm9450_vm3, %v3616_v14 }
0x114e   :  { %5932 = vmatmul.msk.f32.gmra.mxu3 %vm9451_vm4, %v3617_v21 }
0x1156   :  { %5933 = vmatmul.msk.f32.gmra.mxu3 %vm9452_vm5, %v3618_v5 }
0x11a9   :  { %v3735_v27 = vpop.f32.mrf.mxu2  ;;  %v3738_v38 = vpop.f32.mrf.mxu3 }
0x11aa   :  { %3769 = vrot.lane.b32.xlu2 %v3738_v38, %s6663_s26  ;;  %3767 = vrot.lane.b32.xlu1 %v3735_v27, %s6663_s26 }
0x11b1   :  { %v3741_v44 = vpop.f32.mrf.mxu3 }
0x11b2   :  { %3771 = vrot.lane.b32.xlu0 %v3741_v44, %s6663_s26 }
0x11b9   :  { %v3744_v11 = vpop.f32.mrf.mxu3 }
0x11ba   :  { %3773 = vrot.lane.b32.xlu1 %v3744_v11, %s6663_s26 }
0x11c1   :  { %v3747_v48 = vpop.f32.mrf.mxu3 }
0x11c2   :  { %3775 = vrot.lane.b32.xlu2 %v3747_v48, %s6663_s26 }
0x11c9   :  { %v3750_v45 = vpop.f32.mrf.mxu3 }
0x11ca   :  { %3777 = vrot.lane.b32.xlu0 %v3750_v45, %s6663_s26 }
0x11d1   :  { %v3753_v12 = vpop.f32.mrf.mxu3 }
0x11d2   :  { %3824 = vperm.xlu0 %6106, %v3735_v27   ;;  %3779 = vrot.lane.b32.xlu1 %v3753_v12, %s6663_s26 }
0x11d9   :  { %v3756_v32 = vpop.f32.mrf.mxu3 }
0x11da   :  { %3781 = vrot.lane.b32.xlu2 %v3756_v32, %s6663_s26  ;;  %4232 = vmatpush.msra.mxu1 %v3756_v32 }
0x11db   :  { %3840 = vperm.xlu0 %6106, %v3747_v48   ;;  %3828 = vperm.xlu1 %6107, %v3738_v38  }
0x11dc   :  { %4233 = vmatpush.msra.mxu1 %v3753_v12 }
0x11de   :  { %4234 = vmatpush.msra.mxu1 %v3750_v45 }
0x11e0   :  { %4235 = vmatpush.msra.mxu1 %v3747_v48 }
0x11e2   :  { %3832 = vperm.xlu2 %6108, %v3741_v44   ;;  %4236 = vmatpush.msra.mxu1 %v3744_v11 }
0x11e3   :  { %3848 = vperm.xlu0 %6106, %v3753_v12  }
0x11e4   :  { %4237 = vmatpush.msra.mxu1 %v3741_v44 }
0x11e6   :  { %4238 = vmatpush.msra.mxu1 %v3738_v38 }
0x11e8   :  { %4239 = vmatpush.msra.mxu1 %v3735_v27 }
0x11ea   :  { %3836 = vperm.xlu2 %6108, %v3744_v11  }
0x11f2   :  { %3844 = vperm.xlu2 %6108, %v3750_v45  }
0x11fa   :  { %3852 = vperm.xlu2 %6108, %v3756_v32  }
0x1204   :  { %v3770_v40 = vpop.permute.xlu2 %3769 }
0x121c   :  { %v3768_v3 = vpop.permute.xlu1 %3767  ;;  %v3776_v0 = vpop.permute.xlu2 %3775 }
0x121d   :  { %3791 = vxpose.xlu1.b32.start [1/8] (short) (narrow) %v3768_v3, 8 }
0x1224   :  { %v3772_v23 = vpop.permute.xlu0 %3771 }
0x1225   :  { %3792 = vxpose.xlu1.b32.cont [2/8] (short) (narrow) %v3770_v40, 8 }
0x122c   :  { %v3774_v30 = vpop.permute.xlu1 %3773 }
0x122d   :  { %3793 = vxpose.xlu1.b32.cont [3/8] (short) (narrow) %v3772_v23, 8 }
0x1234   :  { %v3782_v62 = vpop.permute.xlu2 %3781 }
0x1235   :  { %3794 = vxpose.xlu1.b32.cont [4/8] (short) (narrow) %v3774_v30, 8 }
0x123c   :  { %v3778_v16 = vpop.permute.xlu0 %3777  ;;  %v3833_v28 = vpop.permute.xlu2 %3832 }
0x123d   :  { %3795 = vxpose.xlu1.b32.cont [5/8] (short) (narrow) %v3776_v0, 8 }
0x1244   :  { %v3780_v31 = vpop.permute.xlu1 %3779  ;;  %v3837_v56 = vpop.permute.xlu2 %3836 }
0x1245   :  { %3796 = vxpose.xlu1.b32.cont [6/8] (short) (narrow) %v3778_v16, 8  ;;  %v3825_v35 = vpop.permute.xlu0 %3824 }
0x124c   :  { %v3845_v47 = vpop.permute.xlu2 %3844 }
0x124d   :  { %3797 = vxpose.xlu1.b32.cont [7/8] (short) (narrow) %v3780_v31, 8  ;;  %v3829_v15 = vpop.permute.xlu1 %3828  ;;  %v3841_v54 = vpop.permute.xlu0 %3840 }
0x1254   :  { %v3853_v8 = vpop.permute.xlu2 %3852 }
0x1255   :  { %3798 = vxpose.xlu1.b32.end [8/8] (short) (narrow) %v3782_v62, 8  ;;  %v3849_v59 = vpop.permute.xlu0 %3848 }
0x12af   :  { %3665 = vrot.lane.b32.xlu1 %v7795_v51, %s6663_s26 }
0x12c1   :  { %v3807_v19 = vpop.trf.xlu1 }
0x12c2   :  { %v3855_v17 = vperm.slane %v3807_v19, 0 }
0x12c4   :  { %v3857_v9 = vadd.f32 %v3855_v17, %v3829_v15  ;;  %v3856_v2 = vadd.f32 %v3855_v17, %v3825_v35  ;;  %v3859_v25 = vadd.f32 %v3855_v17, %v3837_v56  ;;  %v3858_v29 = vadd.f32 %v3855_v17, %v3833_v28 }
0x12c5   :  { %v3861_v55 = vadd.f32 %v3855_v17, %v3845_v47  ;;  %v3860_v36 = vadd.f32 %v3855_v17, %v3841_v54  ;;  %v3863_v49 = vadd.f32 %v3855_v17, %v3853_v8  ;;  %v3862_v60 = vadd.f32 %v3855_v17, %v3849_v59 }
0x12c6   :  { %v3865_v10 = vsub.f32 0.0, %v3857_v9  ;;  %v3864_v42 = vsub.f32 0.0, %v3856_v2  ;;  %v3867_v6 = vsub.f32 0.0, %v3859_v25  ;;  %v3866_v33 = vsub.f32 0.0, %v3858_v29 }
0x12c7   :  { %v3869_v24 = vsub.f32 0.0, %v3861_v55  ;;  %v3868_v7 = vsub.f32 0.0, %v3860_v36  ;;  %v3871_v21 = vsub.f32 0.0, %v3863_v49  ;;  %v3870_v5 = vsub.f32 0.0, %v3862_v60 }
0x12c8   :  { %v3874_v22 = vmul.f32 1.442695, %v3865_v10  ;;  %v3872_v57 = vmul.f32 1.442695, %v3864_v42  ;;  %v3878_v20 = vmul.f32 1.442695, %v3867_v6 }
0x12c9   :  { %v3876_v41 = vmul.f32 1.442695, %v3866_v33  ;;  %v3882_v52 = vmul.f32 1.442695, %v3869_v24  ;;  %v3880_v14 = vmul.f32 1.442695, %v3868_v7 }
0x12ca   :  { %6392 = vpow2.f32 %v3874_v22  ;;  %v3886_v11 = vmul.f32 1.442695, %v3871_v21  ;;  %v3884_v12 = vmul.f32 1.442695, %v3870_v5 }
0x12cb   :  { %6394 = vpow2.f32 %v3872_v57 }
0x12cc   :  { %6396 = vpow2.f32 %v3878_v20 }
0x12cd   :  { %6398 = vpow2.f32 %v3876_v41 }
0x12ce   :  { %6400 = vpow2.f32 %v3882_v52 }
0x12cf   :  { %6402 = vpow2.f32 %v3880_v14 }
0x12d0   :  { %v6393_v27 = vpop.eup %6392 }
0x12d1   :  { %v6395_v38 = vpop.eup %6394  ;;  %v8316_v44 = vadd.f32 1.0, %v6393_v27 }
0x12d2   :  { %v6397_v48 = vpop.eup %6396  ;;  %v8318_v45 = vadd.f32 1.0, %v6395_v38 }
0x12d3   :  { %v6399_v32 = vpop.eup %6398  ;;  %6404 = vrcp.f32 %v8316_v44  ;;  %v8322_v23 = vadd.f32 1.0, %v6397_v48  ;;  %v3920_v0 = vand.u32 2147483647, %v8316_v44  ;;  %v3922_v31 = vand.u32 2147483648, %v8316_v44 }
0x12d4   :  { %v6401_v3 = vpop.eup %6400  ;;  %6406 = vrcp.f32 %v8318_v45  ;;  %v8324_v30 = vadd.f32 1.0, %v6399_v32  ;;  %v3905_v62 = vand.u32 2147483647, %v8318_v45  ;;  %v3907_v28 = vand.u32 2147483648, %v8318_v45 }
0x12d5   :  { %v6403_v40 = vpop.eup %6402  ;;  %6408 = vpow2.f32 %v3886_v11  ;;  %v8327_v16 = vadd.f32 1.0, %v6401_v3  ;;  %vm3916_vm0 = vweird.f32 %v8316_v44  ;;  %v3952_v15 = vand.u32 2147483648, %v8322_v23 }
0x12d6   :  { %6410 = vpow2.f32 %v3884_v12  ;;  %v8334_v56 = vadd.f32 1.0, %v6403_v40  ;;  %v3937_v47 = vand.u32 2147483648, %v8324_v30  ;;  %vm8341_vm14 = vcmp.eq.f32.partialorder %v3920_v0, 8.507059e+37 }
0x12d7   :  { %6412 = vrcp.f32 %v8322_v23  ;;  %vm3901_vm6 = vweird.f32 %v8318_v45  ;;  %v3950_v9 = vand.u32 2147483647, %v8322_v23  ;;  %v3923_v25 = vor.u32 1.1754944e-38, %v3922_v31 }
0x12d8   :  { %6414 = vrcp.f32 %v8324_v30  ;;  %vm8348_vm7 = vcmp.eq.f32.partialorder %v3905_v62, 8.507059e+37  ;;  %v3935_v36 = vand.u32 2147483647, %v8324_v30  ;;  %v3908_v6 = vor.u32 1.1754944e-38, %v3907_v28 }
0x12d9   :  { %v6405_v35 = vpop.eup %6404  ;;  %6416 = vrcp.f32 %v8327_v16  ;;  %vm3946_vm8 = vweird.f32 %v8322_v23  ;;  %v3953_v7 = vor.u32 1.1754944e-38, %v3952_v15  ;;  %vm3931_vm10 = vweird.f32 %v8324_v30 }
0x12da   :  { %v6407_v54 = vpop.eup %6406  ;;  %v3912_v19 = vmul.f32 %v6405_v35, %v8316_v44  ;;  %6418 = vrcp.f32 %v8334_v56  ;;  %vm3917_vm9 = vweird.f32 %v6405_v35  ;;  %v3938_v8 = vor.u32 1.1754944e-38, %v3937_v47 }
0x12db   :  { %v6409_v2 = vpop.eup %6408  ;;  %v3897_v29 = vmul.f32 %v6407_v54, %v8318_v45  ;;  %vm3902_vm11 = vweird.f32 %v6407_v54  ;;  %vm8359_vm12 = vcmp.eq.f32.partialorder %v3950_v9, 8.507059e+37  ;;  %v3980_v41 = vand.u32 2147483647, %v8327_v16  ;;  %vm3918_vm1 = vmor %vm3916_vm0, %vm3917_vm9 }
0x12dc   :  { %v8353_v10 = vpop.eup %6410  ;;  %v3913_v42 = vsub.f32 1.0, %v3912_v19  ;;  %vm8366_vm15 = vcmp.eq.f32.partialorder %v3935_v36, 8.507059e+37  ;;  %v3982_v21 = vand.u32 2147483648, %v8327_v16  ;;  %v3965_v5 = vand.u32 2147483647, %v8334_v56  ;;  %vm3903_vm13 = vmor %vm3901_vm6, %vm3902_vm11 }
0x12dd   :  { %v6413_v33 = vpop.eup %6412  ;;  %v3898_v24 = vsub.f32 1.0, %v3897_v29  ;;  %vm3961_vm5 = vweird.f32 %v8334_v56  ;;  %v8380_v31 = vadd.f32 1.0, %v6409_v2  ;;  %v3967_v17 = vand.u32 2147483648, %v8334_v56 }
0x12de   :  { %v6415_v22 = vpop.eup %6414  ;;  %v3914_v57 = vmul.f32 %v6405_v35, %v3913_v42  ;;  %v3942_v20 = vmul.f32 %v6413_v33, %v8322_v23  ;;  %vm3947_vm2 = vweird.f32 %v6413_v33  ;;  %vm3981_vm9 = vcmp.eq.f32.partialorder %v3980_v41, 8.507059e+37 }
0x12df   :  { %v6417_v49 = vpop.eup %6416  ;;  %v3899_v52 = vmul.f32 %v6407_v54, %v3898_v24  ;;  %v3927_v60 = vmul.f32 %v6415_v22, %v8324_v30  ;;  %vm3932_vm3 = vweird.f32 %v6415_v22  ;;  %vm3948_vm0 = vmor %vm3946_vm8, %vm3947_vm2  ;;  %vm3966_vm11 = vcmp.eq.f32.partialorder %v3965_v5, 8.507059e+37 }
0x12e0   :  { %v3915_v27 = vadd.f32 %v6405_v35, %v3914_v57  ;;  %v3943_v38 = vsub.f32 1.0, %v3942_v20  ;;  %v3972_v11 = vmul.f32 %v6417_v49, %v8327_v16  ;;  %vm3977_vm4 = vweird.f32 %v6417_v49  ;;  %v6419_v32 = vpop.eup %6418 }
0x12e1   :  { %v3900_v48 = vadd.f32 %v6407_v54, %v3899_v52  ;;  %v3928_v12 = vsub.f32 1.0, %v3927_v60  ;;  %v3957_v15 = vmul.f32 %v6419_v32, %v8334_v56  ;;  %vm3962_vm6 = vweird.f32 %v6419_v32  ;;  %v6638_v60 = vld [vmem:[%s9351_s1 + $0x8] sm:$0xff]  ;;  %v6639_v56 = vld [vmem:[%s9351_s1] sm:$0xff] }
0x12e2   :  { %v3919_v3 = vsel %vm3918_vm1, %v6405_v35, %v3915_v27  ;;  %v3944_v40 = vmul.f32 %v6413_v33, %v3943_v38  ;;  %v3973_v0 = vsub.f32 1.0, %v3972_v11  ;;  %v8409_v57 = vadd.f32 1.0, %v8353_v10 }
0x12e3   :  { %v3924_v44 = vsel %vm8341_vm14, %v3923_v25, %v3919_v3  ;;  %v3904_v62 = vsel %vm3903_vm13, %v6407_v54, %v3900_v48  ;;  %v3929_v28 = vmul.f32 %v6415_v22, %v3928_v12  ;;  %v3958_v2 = vsub.f32 1.0, %v3957_v15  ;;  %vm3933_vm14 = vmor %vm3931_vm10, %vm3932_vm3  ;;  %v6641_v15 = vld [vmem:[%s9351_s1 + $0x10] sm:$0xff] }
0x12e4   :  { %v4018_v47 = vmul.f32 1.442695, %v3924_v44  ;;  %v3909_v19 = vsel %vm8348_vm7, %v3908_v6, %v3904_v62  ;;  %v3945_v35 = vadd.f32 %v6413_v33, %v3944_v40  ;;  %v3974_v9 = vmul.f32 %v6417_v49, %v3973_v0  ;;  %vm3963_vm10 = vmor %vm3961_vm5, %vm3962_vm6  ;;  %v6640_v44 = vld [vmem:[%s9351_s1 + $0x18] sm:$0xff] }
0x12e5   :  { %v4016_v29 = vmul.f32 1.442695, %v3909_v19  ;;  %v3930_v45 = vadd.f32 %v6415_v22, %v3929_v28  ;;  %vm9461_vm7 = vweird.f32 %v8327_v16  ;;  %v3959_v42 = vmul.f32 %v6419_v32, %v3958_v2 }
0x12e6   :  { %6420 = vpow2.f32 %v4018_v47  ;;  %v3949_v54 = vsel %vm3948_vm0, %v6413_v33, %v3945_v35  ;;  %v3975_v25 = vadd.f32 %v6417_v49, %v3974_v9  ;;  %vm8399_vm8 = vmor %vm9461_vm7, %vm3977_vm4  ;;  %v3968_v16 = vor.u32 1.1754944e-38, %v3967_v17 }
0x12e7   :  { %6422 = vpow2.f32 %v4016_v29  ;;  %v3954_v55 = vsel %vm8359_vm12, %v3953_v7, %v3949_v54  ;;  %v3934_v36 = vsel %vm3933_vm14, %v6415_v22, %v3930_v45  ;;  %v3983_v7 = vor.u32 1.1754944e-38, %v3982_v21 }
0x12e8   :  { %v4022_v6 = vmul.f32 1.442695, %v3954_v55  ;;  %v3939_v30 = vsel %vm8366_vm15, %v3938_v8, %v3934_v36  ;;  %v3979_v33 = vsel %vm8399_vm8, %v6417_v49, %v3975_v25  ;;  %6424 = vrcp.f32 %v8380_v31 }
0x12e9   :  { %v4020_v24 = vmul.f32 1.442695, %v3939_v30  ;;  %v3960_v22 = vadd.f32 %v6419_v32, %v3959_v42  ;;  %v3984_v8 = vsel %vm3981_vm9, %v3983_v7, %v3979_v33  ;;  %vm9464_vm12 = vcmask 523264   ;;  %v6642_v30 = vld [vmem:[%s9351_s1 + $0x28] sm:$0xff]  ;;  %v6643_v7 = vld [vmem:[%s9351_s1 + $0x20] sm:$0xff] }
0x12ea   :  { %6426 = vpow2.f32 %v4022_v6  ;;  %v4026_v21 = vmul.f32 1.442695, %v3984_v8  ;;  %vm9465_vm13 = vmmov %vm9464_vm12  ;;  %v4010_v3 = vand.u32 2147483647, %v8380_v31  ;;  %v4012_v40 = vand.u32 2147483648, %v8380_v31 }
0x12eb   :  { %6428 = vpow2.f32 %v4020_v24  ;;  %v3964_v20 = vsel %vm3963_vm10, %v6419_v32, %v3960_v22  ;;  %vm4006_vm2 = vweird.f32 %v8380_v31  ;;  %vm9466_vm4 = vmmov %vm9464_vm12  ;;  %v3995_v17 = vand.u32 2147483647, %v8409_v57 }
0x12ec   :  { %v6421_v59 = vpop.eup %6420  ;;  %v3969_v49 = vsel %vm3966_vm11, %v3968_v16, %v3964_v20  ;;  %6430 = vrcp.f32 %v8409_v57  ;;  %vm4011_vm3 = vcmp.eq.f32.partialorder %v4010_v3, 8.507059e+37  ;;  %v4013_v9 = vor.u32 1.1754944e-38, %v4012_v40  ;;  %vm9467_vm5 = vmmov %vm9466_vm4 }
0x12ed   :  { %v6423_v52 = vpop.eup %6422  ;;  %v8417_v10 = vmul.f32 %v6638_v60, %v6421_v59  ;;  %v4024_v27 = vmul.f32 1.442695, %v3969_v49  ;;  %6432 = vpow2.f32 %v4026_v21  ;;  %v3997_v54 = vand.u32 2147483648, %v8409_v57  ;;  %vm9468_vm8 = vmmov %vm9466_vm4  ;;  %v6645_v21 = vld [vmem:[%s9351_s1 + $0x30] sm:$0xff] }
0x12ee   :  { %v6425_v41 = vpop.eup %6424  ;;  %v8423_v14 = vmul.f32 %v6639_v56, %v6423_v52  ;;  %vm3991_vm14 = vweird.f32 %v8409_v57  ;;  %vm3996_vm7 = vcmp.eq.f32.partialorder %v3995_v17, 8.507059e+37  ;;  %vm9469_vm9 = vmmov %vm9466_vm4  ;;  %v6644_v52 = vld [vmem:[%s9351_s1 + $0x38] sm:$0xff] }
0x12ef   :  { %v4043_v5 = vsel %vm9464_vm12, %v8417_v10, 0.0  ;;  %v4002_v38 = vmul.f32 %v6425_v41, %v8380_v31  ;;  %6434 = vpow2.f32 %v4024_v27  ;;  %vm4007_vm15 = vweird.f32 %v6425_v41  ;;  %vm9470_vm10 = vmmov %vm9466_vm4 }
0x12f0   :  { %v6427_v11 = vpop.eup %6426  ;;  %4044 = vadd.xlane.f32.xlu2 %v4043_v5  ;;  %v4040_v48 = vsel %vm9465_vm13, %v8423_v14, 0.0  ;;  %vm4008_vm1 = vmor %vm4006_vm2, %vm4007_vm15  ;;  %v3998_v24 = vor.u32 1.1754944e-38, %v3997_v54 }
0x12f1   :  { %v6429_v12 = vpop.eup %6428  ;;  %4041 = vadd.xlane.f32.xlu0 %v4040_v48  ;;  %v4003_v32 = vsub.f32 1.0, %v4002_v38  ;;  %v8435_v62 = vmul.f32 %v6640_v44, %v6427_v11  ;;  %vm9471_vm11 = vmmov %vm9466_vm4 }
0x12f2   :  { %v6431_v0 = vpop.eup %6430  ;;  %v8440_v47 = vmul.f32 %v6641_v15, %v6429_v12 }
0x12f3   :  { %v4004_v28 = vmul.f32 %v6425_v41, %v4003_v32  ;;  %v3987_v19 = vmul.f32 %v6431_v0, %v8409_v57  ;;  %v4049_v45 = vsel %vm9466_vm4, %v8435_v62, 0.0  ;;  %v6433_v25 = vpop.eup %6432  ;;  %vm3992_vm0 = vweird.f32 %v6431_v0 }
0x12f4   :  { %v4046_v55 = vsel %vm9467_vm5, %v8440_v47, 0.0  ;;  %v8454_v33 = vmul.f32 %v6642_v30, %v6433_v25  ;;  %vm3993_vm6 = vmor %vm3991_vm14, %vm3992_vm0 }
0x12f5   :  { %v4005_v35 = vadd.f32 %v6425_v41, %v4004_v28  ;;  %v3988_v29 = vsub.f32 1.0, %v3987_v19  ;;  %v6435_v31 = vpop.eup %6434 }
0x12f6   :  { %v8459_v22 = vmul.f32 %v6643_v7, %v6435_v31  ;;  %v4055_v57 = vsel %vm9468_vm8, %v8454_v33, 0.0  ;;  %vm9472_vm8 = vmmov %vm9467_vm5 }
0x12f7   :  { %v4009_v2 = vsel %vm4008_vm1, %v6425_v41, %v4005_v35  ;;  %v3989_v23 = vmul.f32 %v6431_v0, %v3988_v29 }
0x12f8   :  { %4050 = vadd.xlane.f32.xlu2 %v4049_v45  ;;  %v4014_v36 = vsel %vm4011_vm3, %v4013_v9, %v4009_v2  ;;  %v4052_v59 = vsel %vm9469_vm9, %v8459_v22, 0.0 }
0x12f9   :  { %4047 = vadd.xlane.f32.xlu0 %v4046_v55  ;;  %v4030_v42 = vmul.f32 1.442695, %v4014_v36  ;;  %v3990_v6 = vadd.f32 %v6431_v0, %v3989_v23 }
0x12fb   :  { %6436 = vpow2.f32 %v4030_v42  ;;  %v3994_v16 = vsel %vm3993_vm6, %v6431_v0, %v3990_v6 }
0x12fc   :  { %v3999_v8 = vsel %vm3996_vm7, %v3998_v24, %v3994_v16 }
0x12fd   :  { %v4028_v20 = vmul.f32 1.442695, %v3999_v8 }
0x12ff   :  { %6438 = vpow2.f32 %v4028_v20 }
0x1300   :  { %4056 = vadd.xlane.f32.xlu2 %v4055_v57 }
0x1301   :  { %v6437_v49 = vpop.eup %6436  ;;  %4053 = vadd.xlane.f32.xlu0 %v4052_v59 }
0x1302   :  { %v8468_v60 = vmul.f32 %v6644_v52, %v6437_v49 }
0x1304   :  { %v4061_v56 = vsel %vm9470_vm10, %v8468_v60, 0.0 }
0x1305   :  { %v6439_v41 = vpop.eup %6438 }
0x1306   :  { %v8475_v5 = vmul.f32 %v6645_v21, %v6439_v41 }
0x1308   :  { %4062 = vadd.xlane.f32.xlu2 %v4061_v56  ;;  %v4058_v27 = vsel %vm9471_vm11, %v8475_v5, 0.0 }
0x1309   :  { %4059 = vadd.xlane.f32.xlu0 %v4058_v27 }
0x131d   :  { %3659 = vrot.lane.b32.xlu0 %v7769_v1, %s6663_s26 }
0x1320   :  { %3661 = vrot.lane.b32.xlu2 %v7777_v18, %s6663_s26 }
0x1325   :  { %3663 = vrot.lane.b32.xlu0 %v7786_v46, %s6663_s26 }
0x1328   :  { %3669 = vrot.lane.b32.xlu2 %v7805_v13, %s6663_s26 }
0x132d   :  { %3667 = vrot.lane.b32.xlu0 %v7801_v43, %s6663_s26 }
0x1330   :  { %3673 = vrot.lane.b32.xlu2 %v7813_v61, %s6663_s26 }
0x1335   :  { %3671 = vrot.lane.b32.xlu0 %v7809_v34, %s6663_s26 }
0x1363   :  { %v4045_v38 = vpop.xlane.xlu2 %4044 }
0x1364   :  { %v4065_v11 = vadd.f32 1e-16, %v4045_v38  ;;  %v4042_v48 = vpop.xlane.xlu0 %4041 }
0x1365   :  { %v4064_v12 = vadd.f32 1e-16, %v4042_v48 }
0x1366   :  { %6440 = vrcp.f32 %v4065_v11  ;;  %v4098_v7 = vand.u32 2147483648, %v4065_v11  ;;  %vm4092_vm3 = vweird.f32 %v4065_v11  ;;  %v4096_v20 = vand.u32 2147483647, %v4065_v11 }
0x1367   :  { %6442 = vrcp.f32 %v4064_v12  ;;  %v4081_v29 = vand.u32 2147483647, %v4064_v12  ;;  %v4083_v45 = vand.u32 2147483648, %v4064_v12  ;;  %vm4077_vm13 = vweird.f32 %v4064_v12 }
0x1368   :  { %v4099_v41 = vor.u32 1.1754944e-38, %v4098_v7  ;;  %vm4097_vm0 = vcmp.eq.f32.partialorder %v4096_v20, 8.507059e+37 }
0x1369   :  { %vm4082_vm2 = vcmp.eq.f32.partialorder %v4081_v29, 8.507059e+37  ;;  %v4084_v36 = vor.u32 1.1754944e-38, %v4083_v45 }
0x136b   :  { %v4051_v32 = vpop.xlane.xlu2 %4050 }
0x136c   :  { %v6441_v3 = vpop.eup %6440  ;;  %v4048_v40 = vpop.xlane.xlu0 %4047  ;;  %v8493_v28 = vadd.f32 1e-16, %v4051_v32 }
0x136d   :  { %v6443_v0 = vpop.eup %6442  ;;  %v4088_v44 = vmul.f32 %v6441_v3, %v4065_v11  ;;  %v4066_v15 = vadd.f32 1e-16, %v4048_v40  ;;  %vm4093_vm1 = vweird.f32 %v6441_v3 }
0x136e   :  { %v4073_v19 = vmul.f32 %v6443_v0, %v4064_v12  ;;  %vm4078_vm12 = vweird.f32 %v6443_v0  ;;  %vm4094_vm4 = vmor %vm4092_vm3, %vm4093_vm1  ;;  %vm4122_vm11 = vweird.f32 %v8493_v28 }
0x136f   :  { %v4089_v35 = vsub.f32 1.0, %v4088_v44  ;;  %6444 = vrcp.f32 %v4066_v15  ;;  %vm4079_vm15 = vmor %vm4077_vm13, %vm4078_vm12  ;;  %v4113_v11 = vand.u32 2147483648, %v4066_v15  ;;  %vm4107_vm6 = vweird.f32 %v4066_v15 }
0x1370   :  { %v4074_v9 = vsub.f32 1.0, %v4073_v19  ;;  %6446 = vrcp.f32 %v8493_v28  ;;  %v4111_v12 = vand.u32 2147483647, %v4066_v15  ;;  %vm9473_vm13 = vmmov %vm9467_vm5 }
0x1371   :  { %v4090_v17 = vmul.f32 %v6441_v3, %v4089_v35  ;;  %v4114_v44 = vor.u32 1.1754944e-38, %v4113_v11 }
0x1372   :  { %v4075_v2 = vmul.f32 %v6443_v0, %v4074_v9  ;;  %vm4112_vm9 = vcmp.eq.f32.partialorder %v4111_v12, 8.507059e+37 }
0x1373   :  { %v4091_v6 = vadd.f32 %v6441_v3, %v4090_v17  ;;  %v4057_v59 = vpop.xlane.xlu2 %4056 }
0x1374   :  { %v4076_v54 = vadd.f32 %v6443_v0, %v4075_v2  ;;  %v4054_v25 = vpop.xlane.xlu0 %4053  ;;  %v8502_v56 = vadd.f32 1e-16, %v4057_v59  ;;  %v4126_v2 = vand.u32 2147483647, %v8493_v28 }
0x1375   :  { %v6445_v55 = vpop.eup %6444  ;;  %v8496_v23 = vadd.f32 1e-16, %v4054_v25  ;;  %v4095_v49 = vsel %vm4094_vm4, %v6441_v3, %v4091_v6  ;;  %vm9474_vm4 = vmmov %vm9467_vm5 }
0x1376   :  { %v4103_v31 = vmul.f32 %v6445_v55, %v4066_v15  ;;  %v4080_v42 = vsel %vm4079_vm15, %v6443_v0, %v4076_v54  ;;  %v6447_v30 = vpop.eup %6446  ;;  %v4100_v21 = vsel %vm4097_vm0, %v4099_v41, %v4095_v49  ;;  %vm4108_vm14 = vweird.f32 %v6445_v55 }
0x1377   :  { %v4085_v24 = vsel %vm4082_vm2, %v4084_v36, %v4080_v42  ;;  %6448 = vrcp.f32 %v8496_v23  ;;  %v4118_v57 = vmul.f32 %v6447_v30, %v8493_v28  ;;  %v4193_v48 = vmul.f32 %v4100_v21, %v8417_v10  ;;  %vm4109_vm7 = vmor %vm4107_vm6, %vm4108_vm14 }
0x1378   :  { %v4104_v16 = vsub.f32 1.0, %v4103_v31  ;;  %v4192_v8 = vmul.f32 %v4085_v24, %v8423_v14  ;;  %6450 = vrcp.f32 %v8502_v56  ;;  %vm4123_vm10 = vweird.f32 %v6447_v30 }
0x1379   :  { %v4119_v27 = vsub.f32 1.0, %v4118_v57  ;;  %v4128_v15 = vand.u32 2147483648, %v8493_v28  ;;  %vm4124_vm12 = vmor %vm4122_vm11, %vm4123_vm10  ;;  %vm4127_vm15 = vcmp.eq.f32.partialorder %v4126_v2, 8.507059e+37  ;;  %v4143_v28 = vand.u32 2147483648, %v8496_v23 }
0x137a   :  { %5934 = vmatmul.msk.f32.vlgmr.msra.gmra.mxu1 %vm9467_vm5, %v4192_v8  ;;  %v4105_v52 = vmul.f32 %v6445_v55, %v4104_v16  ;;  %vm4137_vm1 = vweird.f32 %v8496_v23  ;;  %v4141_v16 = vand.u32 2147483647, %v8496_v23  ;;  %vm4152_vm14 = vweird.f32 %v8502_v56 }
0x137b   :  { %v4120_v0 = vmul.f32 %v6447_v30, %v4119_v27  ;;  %v4063_v54 = vpop.xlane.xlu2 %4062  ;;  %v4129_v36 = vor.u32 1.1754944e-38, %v4128_v15  ;;  %v4144_v57 = vor.u32 1.1754944e-38, %v4143_v28 }
0x137c   :  { %v4106_v38 = vadd.f32 %v6445_v55, %v4105_v52  ;;  %v4060_v3 = vpop.xlane.xlu0 %4059  ;;  %v4071_v31 = vadd.f32 1e-16, %v4063_v54  ;;  %vm4142_vm5 = vcmp.eq.f32.partialorder %v4141_v16, 8.507059e+37 }
0x137d   :  { %v6449_v14 = vpop.eup %6448  ;;  %v8508_v19 = vadd.f32 1e-16, %v4060_v3  ;;  %v4121_v29 = vadd.f32 %v6447_v30, %v4120_v0 }
0x137e   :  { %v4133_v32 = vmul.f32 %v6449_v14, %v8496_v23  ;;  %v4110_v40 = vsel %vm4109_vm7, %v6445_v55, %v4106_v38  ;;  %v6451_v10 = vpop.eup %6450  ;;  %vm4138_vm2 = vweird.f32 %v6449_v14  ;;  %v4156_v23 = vand.u32 2147483647, %v8502_v56  ;;  %vm9475_vm7 = vmmov %vm9474_vm4 }
0x137f   :  { %v4115_v35 = vsel %vm4112_vm9, %v4114_v44, %v4110_v40  ;;  %6452 = vrcp.f32 %v8508_v19  ;;  %v4148_v17 = vmul.f32 %v6451_v10, %v8502_v56  ;;  %v4125_v25 = vsel %vm4124_vm12, %v6447_v30, %v4121_v29  ;;  %vm4139_vm3 = vmor %vm4137_vm1, %vm4138_vm2 }
0x1380   :  { %v4134_v9 = vsub.f32 1.0, %v4133_v32  ;;  %v4194_v45 = vmul.f32 %v4115_v35, %v8440_v47  ;;  %v4130_v42 = vsel %vm4127_vm15, %v4129_v36, %v4125_v25  ;;  %6454 = vrcp.f32 %v4071_v31  ;;  %vm9476_vm12 = vmmov %vm9474_vm4 }
0x1381   :  { %v4149_v6 = vsub.f32 1.0, %v4148_v17  ;;  %v4195_v7 = vmul.f32 %v4130_v42, %v8435_v62  ;;  %vm4153_vm0 = vweird.f32 %v6451_v10  ;;  %v4158_v62 = vand.u32 2147483648, %v8502_v56 }
0x1382   :  { %5935 = vmatmul.msk.f32.gmra.mxu1 %vm9472_vm8, %v4193_v48  ;;  %v4135_v55 = vmul.f32 %v6449_v14, %v4134_v9  ;;  %vm4154_vm6 = vmor %vm4152_vm14, %vm4153_vm0  ;;  %vm4157_vm8 = vcmp.eq.f32.partialorder %v4156_v23, 8.507059e+37  ;;  %v4173_v3 = vand.u32 2147483648, %v8508_v19  ;;  %vm4167_vm10 = vweird.f32 %v8508_v19 }
0x1383   :  { %v4150_v20 = vmul.f32 %v6451_v10, %v4149_v6  ;;  %v4159_v11 = vor.u32 1.1754944e-38, %v4158_v62  ;;  %v4171_v56 = vand.u32 2147483647, %v8508_v19  ;;  %v4188_v29 = vand.u32 2147483648, %v4071_v31 }
0x1384   :  { %v4136_v47 = vadd.f32 %v6449_v14, %v4135_v55  ;;  %v4174_v44 = vor.u32 1.1754944e-38, %v4173_v3  ;;  %vm4182_vm2 = vweird.f32 %v4071_v31  ;;  %v4186_v15 = vand.u32 2147483647, %v4071_v31 }
0x1385   :  { %v6453_v24 = vpop.eup %6452  ;;  %v4151_v52 = vadd.f32 %v6451_v10, %v4150_v20  ;;  %vm9479_vm0 = vcmask 130048  }
0x1386   :  { %v4163_v30 = vmul.f32 %v6453_v24, %v8508_v19  ;;  %v4140_v8 = vsel %vm4139_vm3, %v6449_v14, %v4136_v47  ;;  %v6455_v41 = vpop.eup %6454  ;;  %vm4168_vm9 = vweird.f32 %v6453_v24  ;;  %vm9477_vm3 = vmmov %vm9474_vm4  ;;  %v4189_v19 = vor.u32 1.1754944e-38, %v4188_v29 }
0x1387   :  { %v4145_v59 = vsel %vm4142_vm5, %v4144_v57, %v4140_v8  ;;  %v4178_v27 = vmul.f32 %v6455_v41, %v4071_v31  ;;  %v4155_v38 = vsel %vm4154_vm6, %v6451_v10, %v4151_v52  ;;  %vm4169_vm11 = vmor %vm4167_vm10, %vm4168_vm9  ;;  %vm4183_vm15 = vweird.f32 %v6455_v41 }
0x1388   :  { %v4164_v49 = vsub.f32 1.0, %v4163_v30  ;;  %v4196_v21 = vmul.f32 %v4145_v59, %v8459_v22  ;;  %v4160_v48 = vsel %vm4157_vm8, %v4159_v11, %v4155_v38  ;;  %vm4184_vm1 = vmor %vm4182_vm2, %vm4183_vm15 }
0x1389   :  { %v4179_v12 = vsub.f32 1.0, %v4178_v27  ;;  %v4197_v22 = vmul.f32 %v4160_v48, %v8454_v33  ;;  %vm9478_vm5 = vmmov %vm9477_vm3 }
0x138a   :  { %5936 = vmatmul.msk.f32.gmra.mxu1 %vm9473_vm13, %v4194_v45  ;;  %v4165_v14 = vmul.f32 %v6453_v24, %v4164_v49  ;;  %vm4172_vm13 = vcmp.eq.f32.partialorder %v4171_v56, 8.507059e+37  ;;  %vm9480_vm14 = vmmov %vm9479_vm0 }
0x138b   :  { %v4180_v0 = vmul.f32 %v6455_v41, %v4179_v12  ;;  %vm9481_vm6 = vmmov %vm9479_vm0 }
0x138c   :  { %v4166_v32 = vadd.f32 %v6453_v24, %v4165_v14  ;;  %vm9483_vm8 = vmmov %vm9479_vm0 }
0x138d   :  { %v4181_v9 = vadd.f32 %v6455_v41, %v4180_v0  ;;  %vm9484_vm9 = vmmov %vm9479_vm0 }
0x138e   :  { %v4170_v40 = vsel %vm4169_vm11, %v6453_v24, %v4166_v32  ;;  %vm9485_vm10 = vmmov %vm9479_vm0 }
0x138f   :  { %v4175_v35 = vsel %vm4172_vm13, %v4174_v44, %v4170_v40  ;;  %v4185_v33 = vsel %vm4184_vm1, %v6455_v41, %v4181_v9  ;;  %vm9486_vm11 = vmmov %vm9479_vm0 }
0x1390   :  { %v4198_v10 = vmul.f32 %v4175_v35, %v8475_v5  ;;  %vm9488_vm13 = vmmov %vm9479_vm0 }
0x1391   :  { %vm9489_vm15 = vmmov %vm9479_vm0 }
0x1392   :  { %5937 = vmatmul.msk.f32.gmra.mxu1 %vm9474_vm4, %v4195_v7  ;;  %vm4187_vm4 = vcmp.eq.f32.partialorder %v4186_v15, 8.507059e+37  ;;  %vm9490_vm2 = vmmov %vm9479_vm0 }
0x1393   :  { %v4190_v45 = vsel %vm4187_vm4, %v4189_v19, %v4185_v33  ;;  %vm9491_vm1 = vmmov %vm9479_vm0 }
0x1394   :  { %v4199_v2 = vmul.f32 %v4190_v45, %v8468_v60  ;;  %vm9493_vm4 = vmmov %vm9479_vm0 }
0x139a   :  { %5938 = vmatmul.msk.f32.gmra.mxu1 %vm9475_vm7, %v4196_v21  ;;  %vm9482_vm7 = vmmov %vm9479_vm0 }
0x13a2   :  { %5939 = vmatmul.msk.f32.gmra.mxu1 %vm9476_vm12, %v4197_v22  ;;  %vm9487_vm12 = vmmov %vm9479_vm0 }
0x13aa   :  { %5940 = vmatmul.msk.f32.gmra.mxu1 %vm9477_vm3, %v4198_v10  ;;  %vm9492_vm3 = vmmov %vm9479_vm0 }
0x13b2   :  { %5941 = vmatmul.msk.f32.gmra.mxu1 %vm9478_vm5, %v4199_v2  ;;  %vm9494_vm5 = vmmov %vm9479_vm0 }
0x13f7   :  { %v8537_v17 = vpop.f32.mrf.mxu1 }
0x13f8   :  { %v4287_v60 = vmul.f32 %v8537_v17, %v8537_v17  ;;  %v4265_v47 = vsel %vm9480_vm14, %v8537_v17, 0.0 }
0x13fa   :  { %v4295_v30 = vsel %vm9483_vm8, %v4287_v60, 0.0  ;;  %vm9495_vm8 = vmmov %vm9491_vm1 }
0x13ff   :  { %v8539_v54 = vpop.f32.mrf.mxu1 }
0x1400   :  { %v4288_v31 = vmul.f32 %v8539_v54, %v8539_v54  ;;  %v4266_v42 = vsel %vm9479_vm0, %v8539_v54, 0.0 }
0x1401   :  { %v4267_v16 = vadd.f32 %v4266_v42, %v4265_v47 }
0x1402   :  { %v4296_v24 = vsel %vm9481_vm6, %v4288_v31, 0.0 }
0x1403   :  { %v4297_v59 = vadd.f32 %v4296_v24, %v4295_v30 }
0x1407   :  { %v8541_v25 = vpop.f32.mrf.mxu1 }
0x1408   :  { %v4289_v6 = vmul.f32 %v8541_v25, %v8541_v25  ;;  %v4268_v28 = vsel %vm9482_vm7, %v8541_v25, 0.0 }
0x1409   :  { %v4269_v49 = vadd.f32 %v4268_v28, %v4267_v16 }
0x140a   :  { %v4298_v8 = vsel %vm9484_vm9, %v4289_v6, 0.0 }
0x140b   :  { %v4299_v23 = vadd.f32 %v4298_v8, %v4297_v59  ;;  %v4421_v59 = vld [vmem:[%s9359_s10 + $0x8] sm:$0xff] }
0x140c   :  { %4461 = vmatpush.msrb.mxu2 %v4421_v59 }
0x140f   :  { %v8543_v5 = vpop.f32.mrf.mxu1 }
0x1410   :  { %v4290_v7 = vmul.f32 %v8543_v5, %v8543_v5  ;;  %v4270_v20 = vsel %vm9485_vm10, %v8543_v5, 0.0  ;;  %vm9496_vm10 = vmmov %vm9491_vm1 }
0x1411   :  { %v4271_v27 = vadd.f32 %v4270_v20, %v4269_v49  ;;  %v4420_v49 = vld [vmem:[%s9359_s10] sm:$0xff] }
0x1412   :  { %v4300_v41 = vsel %vm9486_vm11, %v4290_v7, 0.0  ;;  %4462 = vmatpush.msrb.mxu2 %v4420_v49 }
0x1413   :  { %v4301_v48 = vadd.f32 %v4300_v41, %v4299_v23 }
0x1417   :  { %v8545_v55 = vpop.f32.mrf.mxu1 }
0x1418   :  { %v4291_v57 = vmul.f32 %v8545_v55, %v8545_v55  ;;  %v4272_v62 = vsel %vm9487_vm12, %v8545_v55, 0.0  ;;  %vm9497_vm12 = vmmov %vm9491_vm1 }
0x1419   :  { %v4273_v12 = vadd.f32 %v4272_v62, %v4271_v27 }
0x141a   :  { %v4302_v38 = vsel %vm9488_vm13, %v4291_v57, 0.0 }
0x141b   :  { %v4303_v22 = vadd.f32 %v4302_v38, %v4301_v48 }
0x141f   :  { %v8547_v36 = vpop.f32.mrf.mxu1 }
0x1420   :  { %v4292_v21 = vmul.f32 %v8547_v36, %v8547_v36  ;;  %v4274_v14 = vsel %vm9489_vm15, %v8547_v36, 0.0  ;;  %vm9498_vm15 = vmmov %vm9491_vm1 }
0x1421   :  { %v4275_v56 = vadd.f32 %v4274_v14, %v4273_v12 }
0x1422   :  { %v4304_v32 = vsel %vm9490_vm2, %v4292_v21, 0.0 }
0x1423   :  { %v4305_v0 = vadd.f32 %v4304_v32, %v4303_v22 }
0x1427   :  { %v8570_v52 = vpop.f32.mrf.mxu1 }
0x1428   :  { %v4293_v11 = vmul.f32 %v8570_v52, %v8570_v52  ;;  %v4276_v3 = vsel %vm9491_vm1, %v8570_v52, 0.0 }
0x1429   :  { %v4277_v44 = vadd.f32 %v4276_v3, %v4275_v56 }
0x142a   :  { %v4306_v40 = vsel %vm9492_vm3, %v4293_v11, 0.0  ;;  %v3693_v11 = vld [vmem:[%s9360_s9] sm:$0x3] }
0x142b   :  { %v4307_v10 = vadd.f32 %v4306_v40, %v4305_v0  ;;  %v8610_v32 = vperm.slane %v3693_v11, 0  ;;  %v8620_v0 = vperm.slane %v3693_v11, 1 }
0x142f   :  { %v8586_v35 = vpop.f32.mrf.mxu1 }
0x1430   :  { %v4278_v9 = vsel %vm9493_vm4, %v8586_v35, 0.0  ;;  %v4294_v29 = vmul.f32 %v8586_v35, %v8586_v35  ;;  %vm9499_vm4 = vmmov %vm9491_vm1 }
0x1431   :  { %v4279_v15 = vadd.f32 %v4278_v9, %v4277_v44 }
0x1432   :  { %v4308_v33 = vsel %vm9494_vm5, %v4294_v29, 0.0 }
0x1433   :  { %v4280_v19 = vrot.slane %v4279_v15, 4  ;;  %v4309_v45 = vadd.f32 %v4308_v33, %v4307_v10 }
0x1435   :  { %v4281_v2 = vadd.f32 %v4280_v19, %v4279_v15  ;;  %v4310_v31 = vrot.slane %v4309_v45, 4 }
0x1437   :  { %v4282_v60 = vrot.slane %v4281_v2, 2  ;;  %v4311_v42 = vadd.f32 %v4310_v31, %v4309_v45 }
0x1439   :  { %v4283_v6 = vadd.f32 %v4282_v60, %v4281_v2  ;;  %v4312_v47 = vrot.slane %v4311_v42, 2 }
0x143b   :  { %v4284_v24 = vrot.slane %v4283_v6, 1  ;;  %v4313_v28 = vadd.f32 %v4312_v47, %v4311_v42 }
0x143d   :  { %v4285_v7 = vadd.f32 %v4284_v24, %v4283_v6  ;;  %v4314_v16 = vrot.slane %v4313_v28, 1 }
0x143f   :  { %v8594_v30 = vmul.f32 %v4285_v7, %v7172_v4  ;;  %v4315_v8 = vadd.f32 %v4314_v16, %v4313_v28  ;;  %v3660_v28 = vpop.permute.xlu0 %3659 }
0x1440   :  { %v3683_v59 = vadd.f32 %v3660_v28, %v7769_v1 }
0x1441   :  { %v4316_v20 = vmul.f32 %v4315_v8, %v7172_v4  ;;  %v4317_v57 = vmul.f32 %v8594_v30, %v8594_v30  ;;  %v4325_v62 = vsub.f32 %v8570_v52, %v8594_v30  ;;  %v4319_v3 = vsub.f32 %v8537_v17, %v8594_v30 }
0x1442   :  { %v4320_v22 = vsub.f32 %v8539_v54, %v8594_v30  ;;  %v4321_v56 = vsub.f32 %v8541_v25, %v8594_v30  ;;  %v4322_v19 = vsub.f32 %v8543_v5, %v8594_v30  ;;  %v4323_v24 = vsub.f32 %v8545_v55, %v8594_v30 }
0x1443   :  { %v4318_v41 = vsub.f32 %v4316_v20, %v4317_v57  ;;  %v4324_v55 = vsub.f32 %v8547_v36, %v8594_v30 }
0x1445   :  { %v4327_v21 = vadd.f32 1e-05, %v4318_v41 }
0x1447   :  { %6456 = vrsqrt.f32 %v4327_v21  ;;  %vm4334_vm14 = vweird.f32 %v4327_v21  ;;  %v3664_v36 = vpop.permute.xlu0 %3663 }
0x144d   :  { %v6457_v23 = vpop.eup %6456 }
0x144e   :  { %v4329_v27 = vmul.f32 %v6457_v23, %v4327_v21  ;;  %vm4335_vm0 = vweird.f32 %v6457_v23 }
0x144f   :  { %vm4336_vm6 = vmor %vm4334_vm14, %vm4335_vm0 }
0x1450   :  { %v4330_v38 = vmul.f32 %v6457_v23, %v4329_v27  ;;  %vm9500_vm0 = vmmov %vm9491_vm1 }
0x1452   :  { %v4331_v14 = vmul.f32 0.5, %v4330_v38  ;;  %v3662_v38 = vpop.permute.xlu2 %3661 }
0x1454   :  { %v4332_v48 = vsub.f32 1.5, %v4331_v14 }
0x1456   :  { %v4333_v12 = vmul.f32 %v6457_v23, %v4332_v48 }
0x1458   :  { %v8618_v40 = vsel %vm4336_vm6, %v6457_v23, %v4333_v12  ;;  %vm9501_vm6 = vmmov %vm9500_vm0 }
0x1459   :  { %v4338_v44 = vmul.f32 %v8618_v40, %v4319_v3  ;;  %v4339_v9 = vmul.f32 %v8618_v40, %v4320_v22  ;;  %v4340_v29 = vmul.f32 %v8618_v40, %v4321_v56  ;;  %v4341_v60 = vmul.f32 %v8618_v40, %v4322_v19 }
0x145a   :  { %v4342_v8 = vmul.f32 %v8618_v40, %v4323_v24  ;;  %v4343_v1 = vmul.f32 %v8618_v40, %v4324_v55  ;;  %v3684_v3 = vadd.f32 %v3662_v38, %v7777_v18 }
0x145b   :  { %v4347_v10 = vmul.f32 %v8610_v32, %v4338_v44  ;;  %v4348_v17 = vmul.f32 %v8610_v32, %v4339_v9  ;;  %v4349_v25 = vmul.f32 %v8610_v32, %v4340_v29  ;;  %v4350_v47 = vmul.f32 %v8610_v32, %v4341_v60  ;;  %v3666_v60 = vpop.permute.xlu1 %3665 }
0x145c   :  { %v4351_v23 = vmul.f32 %v8610_v32, %v4342_v8  ;;  %v4352_v44 = vmul.f32 %v8610_v32, %v4343_v1 }
0x145d   :  { %v4356_v15 = vadd.f32 %v8620_v0, %v4347_v10  ;;  %v4357_v54 = vadd.f32 %v8620_v0, %v4348_v17  ;;  %v4358_v31 = vadd.f32 %v8620_v0, %v4349_v25  ;;  %v4359_v5 = vadd.f32 %v8620_v0, %v4350_v47 }
0x145e   :  { %v4360_v11 = vadd.f32 %v8620_v0, %v4351_v23  ;;  %v4361_v10 = vadd.f32 %v8620_v0, %v4352_v44  ;;  %v4344_v17 = vmul.f32 %v8618_v40, %v4325_v62 }
0x145f   :  { %v4372_v33 = vmin.f32 %v4356_v15, 0.0  ;;  %v4373_v45 = vmin.f32 %v4357_v54, 0.0  ;;  %v4374_v6 = vmin.f32 %v4358_v31, 0.0  ;;  %vm4364_vm7 = vcmp.gt.f32.partialorder %v4356_v15, 0.0 }
0x1460   :  { %v4375_v21 = vmin.f32 %v4359_v5, 0.0  ;;  %vm4365_vm9 = vcmp.gt.f32.partialorder %v4357_v54, 0.0  ;;  %v4376_v56 = vmin.f32 %v4360_v11, 0.0  ;;  %vm4366_vm11 = vcmp.gt.f32.partialorder %v4358_v31, 0.0 }
0x1461   :  { %v4380_v2 = vmul.f32 1.442695, %v4372_v33  ;;  %v4382_v42 = vmul.f32 1.442695, %v4373_v45  ;;  %v4384_v16 = vmul.f32 1.442695, %v4374_v6  ;;  %v4353_v19 = vmul.f32 %v8610_v32, %v4344_v17 }
0x1462   :  { %v4386_v14 = vmul.f32 1.442695, %v4375_v21  ;;  %v4388_v29 = vmul.f32 1.442695, %v4376_v56  ;;  %v4377_v33 = vmin.f32 %v4361_v10, 0.0  ;;  %vm4367_vm13 = vcmp.gt.f32.partialorder %v4359_v5, 0.0 }
0x1463   :  { %6458 = vpow2.f32 %v4380_v2  ;;  %v4326_v2 = vsub.f32 %v8586_v35, %v8594_v30  ;;  %v3686_v6 = vadd.f32 %v3666_v60, %v7795_v51  ;;  %v3668_v35 = vpop.permute.xlu0 %3667  ;;  %vm4368_vm2 = vcmp.gt.f32.partialorder %v4360_v11, 0.0 }
0x1464   :  { %6460 = vpow2.f32 %v4382_v42  ;;  %v4390_v62 = vmul.f32 1.442695, %v4377_v33  ;;  %vm4369_vm3 = vcmp.gt.f32.partialorder %v4361_v10, 0.0 }
0x1465   :  { %6462 = vpow2.f32 %v4384_v16  ;;  %v4345_v52 = vmul.f32 %v8618_v40, %v4326_v2 }
0x1466   :  { %6464 = vpow2.f32 %v4386_v14 }
0x1467   :  { %6466 = vpow2.f32 %v4388_v29  ;;  %v4354_v47 = vmul.f32 %v8610_v32, %v4345_v52  ;;  %v3670_v32 = vpop.permute.xlu2 %3669 }
0x1468   :  { %6468 = vpow2.f32 %v4390_v62  ;;  %v3688_v21 = vadd.f32 %v3670_v32, %v7805_v13 }
0x1469   :  { %v6459_v7 = vpop.eup %6458  ;;  %v4363_v30 = vadd.f32 %v8620_v0, %v4354_v47 }
0x146a   :  { %v5942_v20 = vadd.f32 -1.0, %v6459_v7  ;;  %v6461_v57 = vpop.eup %6460 }
0x146b   :  { %v5943_v27 = vadd.f32 -1.0, %v6461_v57  ;;  %v6463_v12 = vpop.eup %6462  ;;  %vm4371_vm14 = vcmp.gt.f32.partialorder %v4363_v30, 0.0 }
0x146c   :  { %v4404_v49 = vsel %vm4364_vm7, %v4356_v15, %v5942_v20  ;;  %v5944_v9 = vadd.f32 -1.0, %v6463_v12  ;;  %v6465_v18 = vpop.eup %6464  ;;  %v4379_v20 = vmin.f32 %v4363_v30, 0.0 }
0x146d   :  { %v4412_v41 = vadd.f32 %v4404_v49, %v3683_v59  ;;  %v4405_v48 = vsel %vm4365_vm9, %v4357_v54, %v5943_v27  ;;  %v3685_v54 = vadd.f32 %v3664_v36, %v7786_v46  ;;  %v5945_v45 = vadd.f32 -1.0, %v6465_v18  ;;  %v6467_v46 = vpop.eup %6466  ;;  %v3672_v27 = vpop.permute.xlu0 %3671 }
0x146e   :  { %v4413_v22 = vadd.f32 %v4405_v48, %v3684_v3  ;;  %v4406_v15 = vsel %vm4366_vm11, %v4358_v31, %v5944_v9  ;;  %v4362_v31 = vadd.f32 %v8620_v0, %v4353_v19  ;;  %v5946_v7 = vadd.f32 -1.0, %v6467_v46  ;;  %v6469_v8 = vpop.eup %6468 }
0x146f   :  { %5950 = vmatmul.msk.f32.vlgmr.msrb.gmra.mxu2 %vm9495_vm8, %v4412_v41  ;;  %v4414_v25 = vadd.f32 %v4406_v15, %v3685_v54  ;;  %v4407_v42 = vsel %vm4367_vm13, %v4359_v5, %v5945_v45  ;;  %v3687_v5 = vadd.f32 %v3668_v35, %v7801_v43  ;;  %v5947_v51 = vadd.f32 -1.0, %v6469_v8  ;;  %v3674_v1 = vpop.permute.xlu2 %3673 }
0x1470   :  { %v4415_v24 = vadd.f32 %v4407_v42, %v3686_v6  ;;  %v4378_v28 = vmin.f32 %v4362_v31, 0.0  ;;  %v4408_v16 = vsel %vm4368_vm2, %v4360_v11, %v5946_v7  ;;  %v4394_v59 = vmul.f32 1.442695, %v4379_v20 }
0x1471   :  { %v4416_v57 = vadd.f32 %v4408_v16, %v3687_v5  ;;  %v4409_v49 = vsel %vm4369_vm3, %v4361_v10, %v5947_v51  ;;  %vm4370_vm5 = vcmp.gt.f32.partialorder %v4362_v31, 0.0  ;;  %v3689_v38 = vadd.f32 %v3672_v27, %v7809_v34 }
0x1472   :  { %v4392_v40 = vmul.f32 1.442695, %v4378_v28  ;;  %v4417_v0 = vadd.f32 %v4409_v49, %v3688_v21  ;;  %v3690_v13 = vadd.f32 %v3674_v1, %v7813_v61 }
0x1474   :  { %6470 = vpow2.f32 %v4392_v40 }
0x1475   :  { %6472 = vpow2.f32 %v4394_v59 }
0x1477   :  { %5951 = vmatmul.msk.f32.gmra.mxu2 %vm9496_vm10, %v4413_v22 }
0x147a   :  { %v6471_v41 = vpop.eup %6470 }
0x147b   :  { %v5948_v23 = vadd.f32 -1.0, %v6471_v41  ;;  %v6473_v55 = vpop.eup %6472 }
0x147c   :  { %v5949_v11 = vadd.f32 -1.0, %v6473_v55 }
0x147d   :  { %v4410_v43 = vsel %vm4370_vm5, %v4362_v31, %v5948_v23 }
0x147e   :  { %v4418_v14 = vadd.f32 %v4410_v43, %v3689_v38  ;;  %v4411_v48 = vsel %vm4371_vm14, %v4363_v30, %v5949_v11 }
0x147f   :  { %5952 = vmatmul.msk.f32.gmra.mxu2 %vm9497_vm12, %v4414_v25  ;;  %v4419_v12 = vadd.f32 %v4411_v48, %v3690_v13 }
0x1487   :  { %5953 = vmatmul.msk.f32.gmra.mxu2 %vm9498_vm15, %v4415_v24 }
0x148f   :  { %5954 = vmatmul.msk.f32.gmra.mxu2 %vm9491_vm1, %v4416_v57 }
0x1497   :  { %5955 = vmatmul.msk.f32.gmra.mxu2 %vm9499_vm4, %v4417_v0 }
0x149f   :  { %5956 = vmatmul.msk.f32.gmra.mxu2 %vm9500_vm0, %v4418_v14 }
0x14a7   :  { %5957 = vmatmul.msk.f32.gmra.mxu2 %vm9501_vm6, %v4419_v12 }
0x14f2   :  { %v4464_v3 = vpop.f32.mrf.mxu2 }
0x14f3   :  { %4496 = vrot.lane.b32.xlu0 %v4464_v3, %s6663_s26 }
0x14fa   :  { %v4467_v22 = vpop.f32.mrf.mxu2 }
0x14fb   :  { %4498 = vrot.lane.b32.xlu2 %v4467_v22, %s6663_s26 }
0x1502   :  { %v4470_v56 = vpop.f32.mrf.mxu2 }
0x1503   :  { %4500 = vrot.lane.b32.xlu0 %v4470_v56, %s6663_s26 }
0x150a   :  { %v4473_v34 = vpop.f32.mrf.mxu2 }
0x150b   :  { %4502 = vrot.lane.b32.xlu2 %v4473_v34, %s6663_s26 }
0x1512   :  { %v4476_v44 = vpop.f32.mrf.mxu2 }
0x1513   :  { %4504 = vrot.lane.b32.xlu0 %v4476_v44, %s6663_s26 }
0x151a   :  { %v4479_v9 = vpop.f32.mrf.mxu2 }
0x151b   :  { %4506 = vrot.lane.b32.xlu2 %v4479_v9, %s6663_s26 }
0x1522   :  { %v4482_v61 = vpop.f32.mrf.mxu2 }
0x1523   :  { %4557 = vperm.xlu2 %6108, %v4467_v22   ;;  %4577 = vperm.xlu1 %6107, %v4482_v61  }
0x1524   :  { %4508 = vrot.lane.b32.xlu0 %v4482_v61, %s6663_s26 }
0x152a   :  { %v4485_v36 = vpop.f32.mrf.mxu2 }
0x152b   :  { %4510 = vrot.lane.b32.xlu2 %v4485_v36, %s6663_s26  ;;  %4961 = vmatpush.msrb.mxu0 %v4485_v36 }
0x152c   :  { %4553 = vperm.xlu0 %6106, %v4464_v3  }
0x152d   :  { %4962 = vmatpush.msrb.mxu0 %v4482_v61 }
0x152f   :  { %4963 = vmatpush.msrb.mxu0 %v4479_v9 }
0x1531   :  { %4964 = vmatpush.msrb.mxu0 %v4476_v44 }
0x1533   :  { %4965 = vmatpush.msrb.mxu0 %v4473_v34 }
0x1534   :  { %4561 = vperm.xlu0 %6106, %v4470_v56  }
0x1535   :  { %4966 = vmatpush.msrb.mxu0 %v4470_v56 }
0x1537   :  { %4967 = vmatpush.msrb.mxu0 %v4467_v22 }
0x1539   :  { %4968 = vmatpush.msrb.mxu0 %v4464_v3 }
0x153c   :  { %4565 = vperm.xlu0 %6106, %v4473_v34  }
0x1544   :  { %4569 = vperm.xlu0 %6106, %v4476_v44  }
0x154c   :  { %4573 = vperm.xlu0 %6106, %v4479_v9  }
0x1554   :  { %4581 = vperm.xlu0 %6106, %v4485_v36  }
0x1555   :  { %v4499_v10 = vpop.permute.xlu2 %4498 }
0x1565   :  { %v4497_v29 = vpop.permute.xlu0 %4496  ;;  %v4503_v15 = vpop.permute.xlu2 %4502 }
0x1566   :  { %4520 = vxpose.xlu2.b32.start [1/8] (short) (narrow) %v4497_v29, 8 }
0x156e   :  { %4521 = vxpose.xlu2.b32.cont [2/8] (short) (narrow) %v4499_v10, 8 }
0x1575   :  { %v4501_v17 = vpop.permute.xlu0 %4500  ;;  %v4507_v54 = vpop.permute.xlu2 %4506 }
0x1576   :  { %4522 = vxpose.xlu2.b32.cont [3/8] (short) (narrow) %v4501_v17, 8 }
0x157d   :  { %v4558_v25 = vpop.permute.xlu2 %4557 }
0x157e   :  { %4523 = vxpose.xlu2.b32.cont [4/8] (short) (narrow) %v4503_v15, 8 }
0x1585   :  { %v4505_v18 = vpop.permute.xlu0 %4504  ;;  %v4511_v19 = vpop.permute.xlu2 %4510 }
0x1586   :  { %4524 = vxpose.xlu2.b32.cont [5/8] (short) (narrow) %v4505_v18, 8 }
0x158e   :  { %4525 = vxpose.xlu2.b32.cont [6/8] (short) (narrow) %v4507_v54, 8 }
0x1595   :  { %v4578_v59 = vpop.permute.xlu1 %4577 }
0x1596   :  { %v4509_v33 = vpop.permute.xlu0 %4508 }
0x1597   :  { %4526 = vxpose.xlu2.b32.cont [7/8] (short) (narrow) %v4509_v33, 8 }
0x159e   :  { %v4554_v45 = vpop.permute.xlu0 %4553 }
0x159f   :  { %4527 = vxpose.xlu2.b32.end [8/8] (short) (narrow) %v4511_v19, 8 }
0x15a6   :  { %v4562_v2 = vpop.permute.xlu0 %4561 }
0x15ae   :  { %v4566_v60 = vpop.permute.xlu0 %4565 }
0x15b6   :  { %v4570_v52 = vpop.permute.xlu0 %4569 }
0x15be   :  { %v4574_v62 = vpop.permute.xlu0 %4573 }
0x15c6   :  { %v4582_v46 = vpop.permute.xlu0 %4581 }
0x1600   :  { %v4536_v31 = vpop.trf.xlu2 }
0x1601   :  { %v4584_v42 = vperm.slane %v4536_v31, 0 }
0x1603   :  { %v4592_v6 = vadd.f32 %v4584_v42, %v4582_v46  ;;  %v4586_v47 = vadd.f32 %v4584_v42, %v4558_v25  ;;  %v4585_v24 = vadd.f32 %v4584_v42, %v4554_v45  ;;  %v4588_v28 = vadd.f32 %v4584_v42, %v4566_v60 }
0x1604   :  { %v4587_v7 = vadd.f32 %v4584_v42, %v4562_v2  ;;  %v4590_v35 = vadd.f32 %v4584_v42, %v4574_v62  ;;  %v4589_v41 = vadd.f32 %v4584_v42, %v4570_v52  ;;  %v4591_v0 = vadd.f32 %v4584_v42, %v4578_v59 }
0x1605   :  { %v4600_v30 = vsub.f32 0.0, %v4592_v6  ;;  %v4594_v40 = vsub.f32 0.0, %v4586_v47  ;;  %v4593_v16 = vsub.f32 0.0, %v4585_v24  ;;  %v4596_v8 = vsub.f32 0.0, %v4588_v28 }
0x1606   :  { %v4595_v5 = vsub.f32 0.0, %v4587_v7  ;;  %v4598_v20 = vsub.f32 0.0, %v4590_v35  ;;  %v4597_v27 = vsub.f32 0.0, %v4589_v41  ;;  %v4599_v43 = vsub.f32 0.0, %v4591_v0 }
0x1607   :  { %v4615_v57 = vmul.f32 1.442695, %v4600_v30  ;;  %v4603_v51 = vmul.f32 1.442695, %v4594_v40  ;;  %v4601_v32 = vmul.f32 1.442695, %v4593_v16 }
0x1608   :  { %v4607_v49 = vmul.f32 1.442695, %v4596_v8  ;;  %v4605_v21 = vmul.f32 1.442695, %v4595_v5  ;;  %v4611_v23 = vmul.f32 1.442695, %v4598_v20 }
0x1609   :  { %6474 = vpow2.f32 %v4615_v57  ;;  %v4609_v11 = vmul.f32 1.442695, %v4597_v27  ;;  %v4613_v13 = vmul.f32 1.442695, %v4599_v43 }
0x160a   :  { %6476 = vpow2.f32 %v4603_v51 }
0x160b   :  { %6478 = vpow2.f32 %v4601_v32 }
0x160c   :  { %6480 = vpow2.f32 %v4607_v49 }
0x160d   :  { %6482 = vpow2.f32 %v4605_v21 }
0x160e   :  { %6484 = vpow2.f32 %v4611_v23 }
0x160f   :  { %v6475_v55 = vpop.eup %6474 }
0x1610   :  { %v6477_v38 = vpop.eup %6476  ;;  %v8681_v14 = vadd.f32 1.0, %v6475_v55 }
0x1611   :  { %v6479_v1 = vpop.eup %6478  ;;  %v8683_v48 = vadd.f32 1.0, %v6477_v38 }
0x1612   :  { %v6481_v12 = vpop.eup %6480  ;;  %6486 = vrcp.f32 %v8681_v14  ;;  %v8687_v56 = vadd.f32 1.0, %v6479_v1  ;;  %v4739_v44 = vand.u32 2147483647, %v8681_v14  ;;  %v4741_v9 = vand.u32 2147483648, %v8681_v14 }
0x1613   :  { %v6483_v3 = vpop.eup %6482  ;;  %6488 = vrcp.f32 %v8683_v48  ;;  %v8689_v34 = vadd.f32 1.0, %v6481_v12  ;;  %v4649_v36 = vand.u32 2147483647, %v8683_v48  ;;  %v4651_v29 = vand.u32 2147483648, %v8683_v48 }
0x1614   :  { %v6485_v22 = vpop.eup %6484  ;;  %6490 = vpow2.f32 %v4609_v11  ;;  %v8693_v61 = vadd.f32 1.0, %v6483_v3  ;;  %vm4735_vm7 = vweird.f32 %v8681_v14  ;;  %vm4645_vm8 = vweird.f32 %v8683_v48 }
0x1615   :  { %6492 = vpow2.f32 %v4613_v13  ;;  %v8699_v10 = vadd.f32 1.0, %v6485_v22  ;;  %v4636_v15 = vand.u32 2147483648, %v8687_v56  ;;  %vm8706_vm9 = vcmp.eq.f32.partialorder %v4739_v44, 8.507059e+37 }
0x1616   :  { %6494 = vrcp.f32 %v8687_v56  ;;  %v4742_v33 = vor.u32 1.1754944e-38, %v4741_v9  ;;  %v4634_v19 = vand.u32 2147483647, %v8687_v56  ;;  %v4681_v45 = vand.u32 2147483648, %v8689_v34 }
0x1617   :  { %6496 = vrcp.f32 %v8689_v34  ;;  %vm8713_vm10 = vcmp.eq.f32.partialorder %v4649_v36, 8.507059e+37  ;;  %v4652_v62 = vor.u32 1.1754944e-38, %v4651_v29  ;;  %v4679_v31 = vand.u32 2147483647, %v8689_v34 }
0x1618   :  { %v6487_v17 = vpop.eup %6486  ;;  %6498 = vrcp.f32 %v8693_v61  ;;  %v4666_v42 = vand.u32 2147483648, %v8693_v61  ;;  %vm4630_vm11 = vweird.f32 %v8687_v56  ;;  %v4664_v47 = vand.u32 2147483647, %v8693_v61 }
0x1619   :  { %v6489_v18 = vpop.eup %6488  ;;  %v4731_v54 = vmul.f32 %v6487_v17, %v8681_v14  ;;  %6500 = vrcp.f32 %v8699_v10  ;;  %vm4736_vm12 = vweird.f32 %v6487_v17  ;;  %v4637_v7 = vor.u32 1.1754944e-38, %v4636_v15 }
0x161a   :  { %v6491_v2 = vpop.eup %6490  ;;  %v4641_v60 = vmul.f32 %v6489_v18, %v8683_v48  ;;  %vm4646_vm15 = vweird.f32 %v6489_v18  ;;  %vm8726_vm2 = vcmp.eq.f32.partialorder %v4634_v19, 8.507059e+37  ;;  %v4682_v8 = vor.u32 1.1754944e-38, %v4681_v45  ;;  %vm4737_vm0 = vmor %vm4735_vm7, %vm4736_vm12 }
0x161b   :  { %v8719_v46 = vpop.eup %6492  ;;  %v4732_v6 = vsub.f32 1.0, %v4731_v54  ;;  %vm8732_vm3 = vcmp.eq.f32.partialorder %v4679_v31, 8.507059e+37  ;;  %v4667_v32 = vor.u32 1.1754944e-38, %v4666_v42  ;;  %v4709_v59 = vand.u32 2147483647, %v8699_v10  ;;  %vm4647_vm13 = vmor %vm4645_vm8, %vm4646_vm15 }
0x161c   :  { %v6495_v24 = vpop.eup %6494  ;;  %v4642_v28 = vsub.f32 1.0, %v4641_v60  ;;  %vm8738_vm5 = vcmp.eq.f32.partialorder %v4664_v47, 8.507059e+37  ;;  %vm4705_vm1 = vweird.f32 %v8699_v10  ;;  %v8749_v1 = vadd.f32 1.0, %v6491_v2 }
0x161d   :  { %v6497_v35 = vpop.eup %6496  ;;  %v4733_v30 = vmul.f32 %v6487_v17, %v4732_v6  ;;  %v4626_v40 = vmul.f32 %v6495_v24, %v8687_v56  ;;  %vm4631_vm4 = vweird.f32 %v6495_v24  ;;  %v4711_v15 = vand.u32 2147483648, %v8699_v10 }
0x161e   :  { %v6499_v5 = vpop.eup %6498  ;;  %v4643_v20 = vmul.f32 %v6489_v18, %v4642_v28  ;;  %v4671_v57 = vmul.f32 %v6497_v35, %v8689_v34  ;;  %vm4676_vm14 = vweird.f32 %v6497_v35  ;;  %vm4632_vm7 = vmor %vm4630_vm11, %vm4631_vm4  ;;  %vm9512_vm8 = vweird.f32 %v8689_v34  ;;  %v6646_v28 = vld [vmem:[%s9351_s1 + $0x38] sm:$0xff] }
0x161f   :  { %v4734_v49 = vadd.f32 %v6487_v17, %v4733_v30  ;;  %v4627_v41 = vsub.f32 1.0, %v4626_v40  ;;  %v4656_v21 = vmul.f32 %v6499_v5, %v8693_v61  ;;  %vm4661_vm6 = vweird.f32 %v6499_v5  ;;  %v6501_v43 = vpop.eup %6500 }
0x1620   :  { %v4644_v23 = vadd.f32 %v6489_v18, %v4643_v20  ;;  %v4672_v27 = vsub.f32 1.0, %v4671_v57  ;;  %v4701_v3 = vmul.f32 %v6501_v43, %v8699_v10  ;;  %vm4706_vm12 = vweird.f32 %v6501_v43  ;;  %v6647_v10 = vld [vmem:[%s9351_s1 + $0x8] sm:$0xff]  ;;  %v6648_v57 = vld [vmem:[%s9351_s1] sm:$0xff] }
0x1621   :  { %v4738_v55 = vsel %vm4737_vm0, %v6487_v17, %v4734_v49  ;;  %v4628_v38 = vmul.f32 %v6495_v24, %v4627_v41  ;;  %v4657_v11 = vsub.f32 1.0, %v4656_v21  ;;  %vm4710_vm15 = vcmp.eq.f32.partialorder %v4709_v59, 8.507059e+37 }
0x1622   :  { %v4743_v14 = vsel %vm8706_vm9, %v4742_v33, %v4738_v55  ;;  %v4648_v13 = vsel %vm4647_vm13, %v6489_v18, %v4644_v23  ;;  %v4673_v12 = vmul.f32 %v6497_v35, %v4672_v27  ;;  %v4702_v17 = vsub.f32 1.0, %v4701_v3  ;;  %vm4677_vm9 = vmor %vm9512_vm8, %vm4676_vm14  ;;  %v6649_v27 = vld [vmem:[%s9351_s1 + $0x18] sm:$0xff] }
0x1623   :  { %v4759_v22 = vmul.f32 1.442695, %v4743_v14  ;;  %v4653_v44 = vsel %vm8713_vm10, %v4652_v62, %v4648_v13  ;;  %v4629_v9 = vadd.f32 %v6495_v24, %v4628_v38  ;;  %v4658_v36 = vmul.f32 %v6499_v5, %v4657_v11  ;;  %vm4707_vm13 = vmor %vm4705_vm1, %vm4706_vm12  ;;  %v6650_v13 = vld [vmem:[%s9351_s1 + $0x10] sm:$0xff] }
0x1624   :  { %v4747_v29 = vmul.f32 1.442695, %v4653_v44  ;;  %v4674_v48 = vadd.f32 %v6497_v35, %v4673_v12  ;;  %vm9513_vm10 = vweird.f32 %v8693_v61  ;;  %v4703_v56 = vmul.f32 %v6501_v43, %v4702_v17 }
0x1625   :  { %6502 = vpow2.f32 %v4759_v22  ;;  %v4633_v18 = vsel %vm4632_vm7, %v6495_v24, %v4629_v9  ;;  %v4659_v54 = vadd.f32 %v6499_v5, %v4658_v36  ;;  %vm4662_vm11 = vmor %vm9513_vm10, %vm4661_vm6  ;;  %v8774_v62 = vadd.f32 1.0, %v8719_v46 }
0x1626   :  { %6504 = vpow2.f32 %v4747_v29  ;;  %v4638_v25 = vsel %vm8726_vm2, %v4637_v7, %v4633_v18  ;;  %v4678_v33 = vsel %vm4677_vm9, %v6497_v35, %v4674_v48  ;;  %v4704_v52 = vadd.f32 %v6501_v43, %v4703_v56 }
0x1627   :  { %v4745_v19 = vmul.f32 1.442695, %v4638_v25  ;;  %v4683_v45 = vsel %vm8732_vm3, %v4682_v8, %v4678_v33  ;;  %v4663_v2 = vsel %vm4662_vm11, %v6499_v5, %v4659_v54  ;;  %6506 = vrcp.f32 %v8749_v1  ;;  %v6651_v54 = vld [vmem:[%s9351_s1 + $0x28] sm:$0xff] }
0x1628   :  { %v4751_v34 = vmul.f32 1.442695, %v4683_v45  ;;  %v4668_v60 = vsel %vm8738_vm5, %v4667_v32, %v4663_v2  ;;  %v4712_v61 = vor.u32 1.1754944e-38, %v4711_v15  ;;  %v4708_v42 = vsel %vm4707_vm13, %v6501_v43, %v4704_v52 }
0x1629   :  { %6508 = vpow2.f32 %v4745_v19  ;;  %v4749_v31 = vmul.f32 1.442695, %v4668_v60  ;;  %vm9514_vm2 = vcmask 523264   ;;  %v4694_v59 = vand.u32 2147483647, %v8749_v1 }
0x162a   :  { %6510 = vpow2.f32 %v4751_v34  ;;  %v4713_v47 = vsel %vm4710_vm15, %v4712_v61, %v4708_v42  ;;  %vm9515_vm1 = vmmov %vm9514_vm2  ;;  %v4696_v49 = vand.u32 2147483648, %v8749_v1  ;;  %vm4690_vm5 = vweird.f32 %v8749_v1  ;;  %v6652_v34 = vld [vmem:[%s9351_s1 + $0x20] sm:$0xff] }
0x162b   :  { %v6503_v6 = vpop.eup %6502  ;;  %6512 = vrcp.f32 %v8774_v62  ;;  %v4755_v40 = vmul.f32 1.442695, %v4713_v47  ;;  %vm9516_vm3 = vmmov %vm9515_vm1  ;;  %vm4695_vm14 = vcmp.eq.f32.partialorder %v4694_v59, 8.507059e+37  ;;  %v4724_v22 = vand.u32 2147483647, %v8774_v62 }
0x162c   :  { %v6505_v24 = vpop.eup %6504  ;;  %v8782_v7 = vmul.f32 %v6646_v28, %v6503_v6  ;;  %6514 = vpow2.f32 %v4749_v31  ;;  %v4697_v11 = vor.u32 1.1754944e-38, %v4696_v49  ;;  %v4726_v44 = vand.u32 2147483648, %v8774_v62  ;;  %vm9517_vm6 = vmmov %vm9515_vm1  ;;  %v6653_v31 = vld [vmem:[%s9351_s1 + $0x30] sm:$0xff]  ;;  %v9522_v6 = vld [vmem:[#allocation2_spill] sm:$0xff] }
0x162d   :  { %v6507_v46 = vpop.eup %6506  ;;  %v8788_v35 = vmul.f32 %v6647_v10, %v6505_v24  ;;  %6516 = vpow2.f32 %v4755_v40  ;;  %vm4720_vm8 = vweird.f32 %v8774_v62  ;;  %vm9518_vm9 = vmmov %vm9515_vm1  ;;  %vm4725_vm10 = vcmp.eq.f32.partialorder %v4724_v22, 8.507059e+37 }
0x162e   :  { %v4790_v30 = vsel %vm9514_vm2, %v8782_v7, 0.0  ;;  %v4686_v16 = vmul.f32 %v6507_v46, %v8749_v1  ;;  %vm4691_vm4 = vweird.f32 %v6507_v46  ;;  %v4727_v18 = vor.u32 1.1754944e-38, %v4726_v44  ;;  %vm9519_vm11 = vmmov %vm9515_vm1 }
0x162f   :  { %v6509_v8 = vpop.eup %6508  ;;  %4791 = vadd.xlane.f32.xlu2 %v4790_v30  ;;  %v4772_v5 = vsel %vm9515_vm1, %v8788_v35, 0.0  ;;  %vm4692_vm0 = vmor %vm4690_vm5, %vm4691_vm4 }
0x1630   :  { %v6511_v20 = vpop.eup %6510  ;;  %4773 = vadd.xlane.f32.xlu0 %v4772_v5  ;;  %v8798_v51 = vmul.f32 %v6648_v57, %v6509_v8  ;;  %v4687_v32 = vsub.f32 1.0, %v4686_v16  ;;  %vm9520_vm13 = vmmov %vm9515_vm1 }
0x1631   :  { %v6513_v41 = vpop.eup %6512  ;;  %v8807_v43 = vmul.f32 %v6649_v27, %v6511_v20  ;;  %vm9521_vm15 = vmmov %vm9515_vm1 }
0x1632   :  { %v4769_v21 = vsel %vm9516_vm3, %v8798_v51, 0.0  ;;  %v4688_v0 = vmul.f32 %v6507_v46, %v4687_v32  ;;  %v6515_v23 = vpop.eup %6514  ;;  %v4716_v55 = vmul.f32 %v6513_v41, %v8774_v62  ;;  %vm4721_vm7 = vweird.f32 %v6513_v41 }
0x1633   :  { %4770 = vadd.xlane.f32.xlu1 %v4769_v21  ;;  %v8814_v12 = vmul.f32 %v6650_v13, %v6515_v23  ;;  %v4778_v9 = vsel %vm9517_vm6, %v8807_v43, 0.0  ;;  %v6517_v29 = vpop.eup %6516  ;;  %vm4722_vm12 = vmor %vm4720_vm8, %vm4721_vm7 }
0x1634   :  { %v4689_v38 = vadd.f32 %v6507_v46, %v4688_v0  ;;  %v4717_v14 = vsub.f32 1.0, %v4716_v55  ;;  %v8826_v25 = vmul.f32 %v6651_v54, %v6517_v29 }
0x1635   :  { %v4775_v15 = vsel %vm9518_vm9, %v8814_v12, 0.0 }
0x1636   :  { %v4693_v3 = vsel %vm4692_vm0, %v6507_v46, %v4689_v38  ;;  %v4718_v1 = vmul.f32 %v6513_v41, %v4717_v14  ;;  %v4784_v45 = vsel %vm9519_vm11, %v8826_v25, 0.0 }
0x1637   :  { %v4698_v36 = vsel %vm4695_vm14, %v4697_v11, %v4693_v3 }
0x1638   :  { %4779 = vadd.xlane.f32.xlu0 %v4778_v9  ;;  %v4753_v48 = vmul.f32 1.442695, %v4698_v36  ;;  %v4719_v17 = vadd.f32 %v6513_v41, %v4718_v1 }
0x163a   :  { %6518 = vpow2.f32 %v4753_v48  ;;  %v4723_v33 = vsel %vm4722_vm12, %v6513_v41, %v4719_v17 }
0x163b   :  { %4776 = vadd.xlane.f32.xlu1 %v4775_v15  ;;  %v4728_v56 = vsel %vm4725_vm10, %v4727_v18, %v4723_v33  ;;  %vm9523_vm10 = vmmov %vm9517_vm6 }
0x163c   :  { %v4757_v19 = vmul.f32 1.442695, %v4728_v56 }
0x163e   :  { %6520 = vpow2.f32 %v4757_v19 }
0x1640   :  { %v6519_v2 = vpop.eup %6518  ;;  %4785 = vadd.xlane.f32.xlu0 %v4784_v45 }
0x1641   :  { %v8833_v60 = vmul.f32 %v6652_v34, %v6519_v2 }
0x1643   :  { %v4781_v52 = vsel %vm9520_vm13, %v8833_v60, 0.0 }
0x1644   :  { %4782 = vadd.xlane.f32.xlu1 %v4781_v52  ;;  %v6521_v62 = vpop.eup %6520 }
0x1645   :  { %v8840_v61 = vmul.f32 %v6653_v31, %v6521_v62 }
0x1647   :  { %v4787_v42 = vsel %vm9521_vm15, %v8840_v61, 0.0 }
0x164c   :  { %4788 = vadd.xlane.f32.xlu1 %v4787_v42 }
0x1654   :  { %3627 = vrot.lane.b32.xlu0 %v7215_v26, %s6663_s26 }
0x165c   :  { %3631 = vrot.lane.b32.xlu0 %v7232_v37, %s6663_s26 }
0x1664   :  { %3633 = vrot.lane.b32.xlu0 %v7241_v39, %s6663_s26 }
0x1665   :  { %3629 = vrot.lane.b32.xlu1 %v7223_v58, %s6663_s26 }
0x166c   :  { %3637 = vrot.lane.b32.xlu0 %v7251_v50, %s6663_s26 }
0x166d   :  { %3635 = vrot.lane.b32.xlu1 %v7247_v53, %s6663_s26 }
0x1674   :  { %3641 = vrot.lane.b32.xlu0 %v7259_v63, %s6663_s26 }
0x1675   :  { %3639 = vrot.lane.b32.xlu1 %v9522_v6, %s6663_s26 }
0x16a3   :  { %v4774_v47 = vpop.xlane.xlu0 %4773 }
0x16a4   :  { %v4794_v24 = vadd.f32 1e-16, %v4774_v47 }
0x16a6   :  { %6522 = vrcp.f32 %v4794_v24  ;;  %v4771_v28 = vpop.xlane.xlu1 %4770  ;;  %v4827_v9 = vand.u32 2147483648, %v4794_v24  ;;  %vm4821_vm0 = vweird.f32 %v4794_v24  ;;  %v4825_v29 = vand.u32 2147483647, %v4794_v24 }
0x16a7   :  { %v4793_v46 = vadd.f32 1e-16, %v4771_v28 }
0x16a8   :  { %v4828_v54 = vor.u32 1.1754944e-38, %v4827_v9  ;;  %vm4826_vm7 = vcmp.eq.f32.partialorder %v4825_v29, 8.507059e+37 }
0x16a9   :  { %6524 = vrcp.f32 %v4793_v46  ;;  %v4812_v49 = vand.u32 2147483648, %v4793_v46  ;;  %v4810_v21 = vand.u32 2147483647, %v4793_v46  ;;  %vm4806_vm1 = vweird.f32 %v4793_v46 }
0x16ab   :  { %v4780_v40 = vpop.xlane.xlu0 %4779  ;;  %v4813_v55 = vor.u32 1.1754944e-38, %v4812_v49  ;;  %vm4811_vm4 = vcmp.eq.f32.partialorder %v4810_v21, 8.507059e+37 }
0x16ac   :  { %v6523_v10 = vpop.eup %6522  ;;  %v8860_v57 = vadd.f32 1e-16, %v4780_v40 }
0x16ad   :  { %v4817_v30 = vmul.f32 %v6523_v10, %v4794_v24  ;;  %vm4822_vm5 = vweird.f32 %v6523_v10 }
0x16ae   :  { %v4777_v16 = vpop.xlane.xlu1 %4776  ;;  %vm4823_vm14 = vmor %vm4821_vm0, %vm4822_vm5  ;;  %v4857_v40 = vand.u32 2147483648, %v8860_v57  ;;  %vm4851_vm15 = vweird.f32 %v8860_v57 }
0x16af   :  { %v6525_v8 = vpop.eup %6524  ;;  %v4795_v5 = vadd.f32 1e-16, %v4777_v16  ;;  %v4818_v32 = vsub.f32 1.0, %v4817_v30 }
0x16b0   :  { %v4802_v20 = vmul.f32 %v6525_v8, %v4793_v46  ;;  %vm4807_vm2 = vweird.f32 %v6525_v8  ;;  %v4858_v49 = vor.u32 1.1754944e-38, %v4857_v40 }
0x16b1   :  { %6526 = vrcp.f32 %v4795_v5  ;;  %v4819_v0 = vmul.f32 %v6523_v10, %v4818_v32  ;;  %vm4808_vm3 = vmor %vm4806_vm1, %vm4807_vm2  ;;  %v4842_v2 = vand.u32 2147483648, %v4795_v5  ;;  %vm4836_vm9 = vweird.f32 %v4795_v5 }
0x16b2   :  { %v4803_v59 = vsub.f32 1.0, %v4802_v20  ;;  %6528 = vrcp.f32 %v8860_v57  ;;  %v4840_v52 = vand.u32 2147483647, %v4795_v5  ;;  %vm9524_vm1 = vmmov %vm9517_vm6 }
0x16b3   :  { %v4820_v22 = vadd.f32 %v6523_v10, %v4819_v0  ;;  %v4786_v15 = vpop.xlane.xlu0 %4785  ;;  %v4843_v24 = vor.u32 1.1754944e-38, %v4842_v2 }
0x16b4   :  { %v4804_v41 = vmul.f32 %v6525_v8, %v4803_v59  ;;  %v8869_v33 = vadd.f32 1e-16, %v4786_v15  ;;  %vm4841_vm11 = vcmp.eq.f32.partialorder %v4840_v52, 8.507059e+37 }
0x16b5   :  { %v4824_v18 = vsel %vm4823_vm14, %v6523_v10, %v4820_v22  ;;  %vm9525_vm14 = vmmov %vm9524_vm1 }
0x16b6   :  { %v4805_v23 = vadd.f32 %v6525_v8, %v4804_v41  ;;  %v4829_v56 = vsel %vm4826_vm7, %v4828_v54, %v4824_v18 }
0x16b7   :  { %v6527_v27 = vpop.eup %6526  ;;  %v4783_v38 = vpop.xlane.xlu1 %4782  ;;  %v4922_v34 = vmul.f32 %v4829_v56, %v8788_v35 }
0x16b8   :  { %v4832_v11 = vmul.f32 %v6527_v27, %v4795_v5  ;;  %v8863_v14 = vadd.f32 1e-16, %v4783_v38  ;;  %v4809_v13 = vsel %vm4808_vm3, %v6525_v8, %v4805_v23  ;;  %v6529_v44 = vpop.eup %6528  ;;  %vm4837_vm8 = vweird.f32 %v6527_v27  ;;  %v4792_v5 = vpop.xlane.xlu2 %4791 }
0x16b9   :  { %v4814_v3 = vsel %vm4811_vm4, %v4813_v55, %v4809_v13  ;;  %v4847_v48 = vmul.f32 %v6529_v44, %v8860_v57  ;;  %vm4838_vm12 = vmor %vm4836_vm9, %vm4837_vm8  ;;  %vm4852_vm13 = vweird.f32 %v6529_v44  ;;  %v4855_v8 = vand.u32 2147483647, %v8860_v57 }
0x16ba   :  { %v4833_v36 = vsub.f32 1.0, %v4832_v11  ;;  %v4921_v1 = vmul.f32 %v4814_v3, %v8798_v51  ;;  %6530 = vrcp.f32 %v8863_v14  ;;  %vm4853_vm2 = vmor %vm4851_vm15, %vm4852_vm13  ;;  %v4800_v41 = vadd.f32 1e-16, %v4792_v5 }
0x16bb   :  { %v4848_v19 = vsub.f32 1.0, %v4847_v48  ;;  %6532 = vrcp.f32 %v8869_v33  ;;  %vm4856_vm3 = vcmp.eq.f32.partialorder %v4855_v8, 8.507059e+37  ;;  %v4872_v57 = vand.u32 2147483648, %v8863_v14 }
0x16bc   :  { %v4834_v17 = vmul.f32 %v6527_v27, %v4833_v36  ;;  %5958 = vmatmul.msk.f32.vlgmr.msrb.gmra.mxu0 %vm9517_vm6, %v4921_v1  ;;  %vm4866_vm5 = vweird.f32 %v8863_v14  ;;  %v4870_v55 = vand.u32 2147483647, %v8863_v14  ;;  %v4887_v1 = vand.u32 2147483648, %v8869_v33 }
0x16bd   :  { %v4849_v62 = vmul.f32 %v6529_v44, %v4848_v19  ;;  %v4873_v3 = vor.u32 1.1754944e-38, %v4872_v57  ;;  %vm4881_vm8 = vweird.f32 %v8869_v33 }
0x16be   :  { %v4835_v45 = vadd.f32 %v6527_v27, %v4834_v17  ;;  %vm4871_vm6 = vcmp.eq.f32.partialorder %v4870_v55, 8.507059e+37  ;;  %v4888_v15 = vor.u32 1.1754944e-38, %v4887_v1 }
0x16bf   :  { %v4789_v42 = vpop.xlane.xlu1 %4788  ;;  %v4850_v30 = vadd.f32 %v6529_v44, %v4849_v62  ;;  %v4917_v62 = vand.u32 2147483648, %v4800_v41 }
0x16c0   :  { %v6531_v51 = vpop.eup %6530  ;;  %v4839_v47 = vsel %vm4838_vm12, %v6527_v27, %v4835_v45  ;;  %v8875_v28 = vadd.f32 1e-16, %v4789_v42  ;;  %vm9526_vm12 = vmmov %vm9524_vm1  ;;  %v4915_v42 = vand.u32 2147483647, %v4800_v41 }
0x16c1   :  { %v4862_v31 = vmul.f32 %v6531_v51, %v8863_v14  ;;  %v4844_v46 = vsel %vm4841_vm11, %v4843_v24, %v4839_v47  ;;  %v6533_v35 = vpop.eup %6532  ;;  %v4854_v59 = vsel %vm4853_vm2, %v6529_v44, %v4850_v30  ;;  %vm4867_vm4 = vweird.f32 %v6531_v51  ;;  %vm9527_vm2 = vmmov %vm9524_vm1 }
0x16c2   :  { %v4923_v16 = vmul.f32 %v4844_v46, %v8814_v12  ;;  %6534 = vrcp.f32 %v8875_v28  ;;  %v4877_v20 = vmul.f32 %v6533_v35, %v8869_v33  ;;  %v4859_v21 = vsel %vm4856_vm3, %v4858_v49, %v4854_v59  ;;  %vm4868_vm0 = vmor %vm4866_vm5, %vm4867_vm4 }
0x16c3   :  { %v4863_v10 = vsub.f32 1.0, %v4862_v31  ;;  %v4924_v27 = vmul.f32 %v4859_v21, %v8807_v43  ;;  %6536 = vrcp.f32 %v4800_v41  ;;  %vm4882_vm7 = vweird.f32 %v6533_v35 }
0x16c4   :  { %5959 = vmatmul.msk.f32.gmra.mxu0 %vm9523_vm10, %v4922_v34  ;;  %v4878_v0 = vsub.f32 1.0, %v4877_v20  ;;  %v4885_v14 = vand.u32 2147483647, %v8869_v33  ;;  %vm4883_vm9 = vmor %vm4881_vm8, %vm4882_vm7  ;;  %v4902_v19 = vand.u32 2147483648, %v8875_v28  ;;  %vm4896_vm13 = vweird.f32 %v8875_v28 }
0x16c5   :  { %v4864_v32 = vmul.f32 %v6531_v51, %v4863_v10  ;;  %v4900_v33 = vand.u32 2147483647, %v8875_v28  ;;  %vm4911_vm4 = vweird.f32 %v4800_v41  ;;  %v4918_v47 = vor.u32 1.1754944e-38, %v4917_v62 }
0x16c6   :  { %v4879_v38 = vmul.f32 %v6533_v35, %v4878_v0  ;;  %vm4886_vm10 = vcmp.eq.f32.partialorder %v4885_v14, 8.507059e+37  ;;  %v4903_v2 = vor.u32 1.1754944e-38, %v4902_v19  ;;  %vm9530_vm7 = vcmask 130048  }
0x16c7   :  { %v4865_v23 = vadd.f32 %v6531_v51, %v4864_v32  ;;  %vm9531_vm8 = vmmov %vm9530_vm7 }
0x16c8   :  { %v6535_v12 = vpop.eup %6534  ;;  %v4880_v9 = vadd.f32 %v6533_v35, %v4879_v38 }
0x16c9   :  { %v4892_v11 = vmul.f32 %v6535_v12, %v8875_v28  ;;  %v4869_v13 = vsel %vm4868_vm0, %v6531_v51, %v4865_v23  ;;  %v6537_v36 = vpop.eup %6536  ;;  %vm4897_vm11 = vweird.f32 %v6535_v12  ;;  %vm9528_vm0 = vmmov %vm9527_vm2 }
0x16ca   :  { %v4874_v22 = vsel %vm4871_vm6, %v4873_v3, %v4869_v13  ;;  %v4907_v29 = vmul.f32 %v6537_v36, %v4800_v41  ;;  %v4884_v17 = vsel %vm4883_vm9, %v6533_v35, %v4880_v9  ;;  %vm4898_vm15 = vmor %vm4896_vm13, %vm4897_vm11  ;;  %vm4912_vm3 = vweird.f32 %v6537_v36 }
0x16cb   :  { %v4893_v44 = vsub.f32 1.0, %v4892_v11  ;;  %v4925_v43 = vmul.f32 %v4874_v22, %v8833_v60  ;;  %v4889_v18 = vsel %vm4886_vm10, %v4888_v15, %v4884_v17  ;;  %vm4913_vm5 = vmor %vm4911_vm4, %vm4912_vm3 }
0x16cc   :  { %5960 = vmatmul.msk.f32.gmra.mxu0 %vm9524_vm1, %v4923_v16  ;;  %v4908_v54 = vsub.f32 1.0, %v4907_v29  ;;  %v4926_v60 = vmul.f32 %v4889_v18, %v8826_v25  ;;  %vm4901_vm1 = vcmp.eq.f32.partialorder %v4900_v33, 8.507059e+37  ;;  %vm9529_vm6 = vmmov %vm9528_vm0 }
0x16cd   :  { %v4894_v48 = vmul.f32 %v6535_v12, %v4893_v44  ;;  %vm9532_vm9 = vmmov %vm9530_vm7 }
0x16ce   :  { %v4909_v45 = vmul.f32 %v6537_v36, %v4908_v54  ;;  %vm9534_vm10 = vmmov %vm9530_vm7 }
0x16cf   :  { %v4895_v56 = vadd.f32 %v6535_v12, %v4894_v48  ;;  %vm9535_vm11 = vmmov %vm9530_vm7 }
0x16d0   :  { %v4910_v52 = vadd.f32 %v6537_v36, %v4909_v45  ;;  %vm9536_vm13 = vmmov %vm9530_vm7 }
0x16d1   :  { %v4899_v51 = vsel %vm4898_vm15, %v6535_v12, %v4895_v56  ;;  %vm9537_vm15 = vmmov %vm9530_vm7 }
0x16d2   :  { %v4904_v34 = vsel %vm4901_vm1, %v4903_v2, %v4899_v51  ;;  %v4914_v25 = vsel %vm4913_vm5, %v6537_v36, %v4910_v52 }
0x16d3   :  { %v4927_v31 = vmul.f32 %v4904_v34, %v8840_v61 }
0x16d4   :  { %5961 = vmatmul.msk.f32.gmra.mxu0 %vm9525_vm14, %v4924_v27  ;;  %vm4916_vm14 = vcmp.eq.f32.partialorder %v4915_v42, 8.507059e+37 }
0x16d5   :  { %v4919_v24 = vsel %vm4916_vm14, %v4918_v47, %v4914_v25 }
0x16d6   :  { %v4928_v28 = vmul.f32 %v4919_v24, %v8782_v7 }
0x16dc   :  { %5962 = vmatmul.msk.f32.gmra.mxu0 %vm9526_vm12, %v4925_v43  ;;  %vm9533_vm12 = vmmov %vm9530_vm7 }
0x16e4   :  { %5963 = vmatmul.msk.f32.gmra.mxu0 %vm9527_vm2, %v4926_v60  ;;  %vm9538_vm2 = vmmov %vm9530_vm7 }
0x16e5   :  { %vm9539_vm1 = vmmov %vm9538_vm2 }
0x16e6   :  { %vm9540_vm3 = vmmov %vm9539_vm1 }
0x16e7   :  { %vm9541_vm4 = vmmov %vm9539_vm1 }
0x16e8   :  { %vm9542_vm5 = vmmov %vm9539_vm1 }
0x16ec   :  { %5964 = vmatmul.msk.f32.gmra.mxu0 %vm9528_vm0, %v4927_v31  ;;  %vm9543_vm0 = vmmov %vm9539_vm1 }
0x16ed   :  { %vm9544_vm14 = vmmov %vm9543_vm0 }
0x16f4   :  { %5965 = vmatmul.msk.f32.gmra.mxu0 %vm9529_vm6, %v4928_v28  ;;  %vm9545_vm6 = vmmov %vm9543_vm0 }
0x1739   :  { %v8904_v46 = vpop.f32.mrf.mxu0 }
0x173a   :  { %v5016_v7 = vmul.f32 %v8904_v46, %v8904_v46  ;;  %v4994_v20 = vsel %vm9531_vm8, %v8904_v46, 0.0 }
0x173c   :  { %v5024_v21 = vsel %vm9534_vm10, %v5016_v7, 0.0  ;;  %vm9546_vm10 = vmmov %vm9543_vm0 }
0x1741   :  { %v8906_v10 = vpop.f32.mrf.mxu0 }
0x1742   :  { %v5017_v16 = vmul.f32 %v8906_v10, %v8906_v10  ;;  %v4995_v8 = vsel %vm9530_vm7, %v8906_v10, 0.0 }
0x1743   :  { %v4996_v41 = vadd.f32 %v4995_v8, %v4994_v20 }
0x1744   :  { %v5025_v32 = vsel %vm9532_vm9, %v5017_v16, 0.0 }
0x1745   :  { %v5026_v57 = vadd.f32 %v5025_v32, %v5024_v21  ;;  %v5149_v21 = vld [vmem:[%s9361_s12] sm:$0xff] }
0x1749   :  { %v8908_v30 = vpop.f32.mrf.mxu0 }
0x174a   :  { %v5018_v5 = vmul.f32 %v8908_v30, %v8908_v30  ;;  %v4997_v59 = vsel %vm9533_vm12, %v8908_v30, 0.0 }
0x174b   :  { %v4998_v27 = vadd.f32 %v4997_v59, %v4996_v41  ;;  %v5150_v41 = vld [vmem:[%s9361_s12 + $0x8] sm:$0xff] }
0x174c   :  { %v5027_v0 = vsel %vm9535_vm11, %v5018_v5, 0.0  ;;  %5190 = vmatpush.msrb.mxu3 %v5150_v41 }
0x174d   :  { %v5028_v3 = vadd.f32 %v5027_v0, %v5026_v57 }
0x174e   :  { %5191 = vmatpush.msrb.mxu3 %v5149_v21 }
0x1751   :  { %v8910_v35 = vpop.f32.mrf.mxu0 }
0x1752   :  { %v5019_v49 = vmul.f32 %v8910_v35, %v8910_v35  ;;  %v4999_v23 = vsel %vm9536_vm13, %v8910_v35, 0.0  ;;  %vm9547_vm13 = vmmov %vm9543_vm0 }
0x1753   :  { %v5000_v22 = vadd.f32 %v4999_v23, %v4998_v27 }
0x1754   :  { %v5029_v38 = vsel %vm9537_vm15, %v5019_v49, 0.0 }
0x1755   :  { %v5030_v1 = vadd.f32 %v5029_v38, %v5028_v3 }
0x1759   :  { %v8912_v61 = vpop.f32.mrf.mxu0 }
0x175a   :  { %v5020_v12 = vmul.f32 %v8912_v61, %v8912_v61  ;;  %v5001_v11 = vsel %vm9538_vm2, %v8912_v61, 0.0  ;;  %vm9548_vm2 = vmmov %vm9543_vm0 }
0x175b   :  { %v5002_v43 = vadd.f32 %v5001_v11, %v5000_v22  ;;  %v4422_v11 = vld [vmem:[%s9362_s11] sm:$0x3]  ;;  %s6675_s11 = smov 96  }
0x175c   :  { %v5031_v44 = vsel %vm9539_vm1, %v5020_v12, 0.0  ;;  %v8979_v22 = vperm.slane %v4422_v11, 0 }
0x175d   :  { %v5032_v48 = vadd.f32 %v5031_v44, %v5030_v1 }
0x1761   :  { %v8914_v40 = vpop.f32.mrf.mxu0 }
0x1762   :  { %v5021_v13 = vmul.f32 %v8914_v40, %v8914_v40  ;;  %v5003_v9 = vsel %vm9540_vm3, %v8914_v40, 0.0  ;;  %vm9549_vm3 = vmmov %vm9543_vm0 }
0x1763   :  { %v5004_v17 = vadd.f32 %v5003_v9, %v5002_v43  ;;  %v8989_v43 = vperm.slane %v4422_v11, 1 }
0x1764   :  { %v5033_v14 = vsel %vm9541_vm4, %v5021_v13, 0.0 }
0x1765   :  { %v5034_v18 = vadd.f32 %v5033_v14, %v5032_v48 }
0x1769   :  { %v8937_v55 = vpop.f32.mrf.mxu0 }
0x176a   :  { %v5022_v36 = vmul.f32 %v8937_v55, %v8937_v55  ;;  %v5005_v29 = vsel %vm9542_vm5, %v8937_v55, 0.0  ;;  %vm9550_vm5 = vmmov %vm9543_vm0 }
0x176b   :  { %v5006_v54 = vadd.f32 %v5005_v29, %v5004_v17 }
0x176c   :  { %v5035_v15 = vsel %vm9543_vm0, %v5022_v36, 0.0 }
0x176d   :  { %v5036_v33 = vadd.f32 %v5035_v15, %v5034_v18 }
0x1771   :  { %v8953_v56 = vpop.f32.mrf.mxu0 }
0x1772   :  { %v5007_v19 = vsel %vm9544_vm14, %v8953_v56, 0.0  ;;  %v5023_v60 = vmul.f32 %v8953_v56, %v8953_v56  ;;  %vm9551_vm14 = vmmov %vm9548_vm2 }
0x1773   :  { %v5008_v45 = vadd.f32 %v5007_v19, %v5006_v54 }
0x1774   :  { %v5037_v51 = vsel %vm9545_vm6, %v5023_v60, 0.0 }
0x1775   :  { %v5009_v2 = vrot.slane %v5008_v45, 4  ;;  %v5038_v34 = vadd.f32 %v5037_v51, %v5036_v33 }
0x1777   :  { %v5010_v52 = vadd.f32 %v5009_v2, %v5008_v45  ;;  %v5039_v62 = vrot.slane %v5038_v34, 4 }
0x1779   :  { %v5011_v31 = vrot.slane %v5010_v52, 2  ;;  %v5040_v42 = vadd.f32 %v5039_v62, %v5038_v34  ;;  %v3628_v62 = vpop.permute.xlu0 %3627 }
0x177b   :  { %v5012_v25 = vadd.f32 %v5011_v31, %v5010_v52  ;;  %v5041_v47 = vrot.slane %v5040_v42, 2 }
0x177d   :  { %v5013_v24 = vrot.slane %v5012_v25, 1  ;;  %v5042_v28 = vadd.f32 %v5041_v47, %v5040_v42 }
0x177f   :  { %v5014_v16 = vadd.f32 %v5013_v24, %v5012_v25  ;;  %v5043_v7 = vrot.slane %v5042_v28, 1 }
0x1781   :  { %v8961_v8 = vmul.f32 %v5014_v16, %v7172_v4  ;;  %v5044_v5 = vadd.f32 %v5043_v7, %v5042_v28  ;;  %v3651_v28 = vadd.f32 %v3628_v62, %v7215_v26 }
0x1783   :  { %v5045_v20 = vmul.f32 %v5044_v5, %v7172_v4  ;;  %v5046_v32 = vmul.f32 %v8961_v8, %v8961_v8  ;;  %v5055_v59 = vsub.f32 %v8953_v56, %v8961_v8  ;;  %v5054_v0 = vsub.f32 %v8937_v55, %v8961_v8 }
0x1784   :  { %v5048_v44 = vsub.f32 %v8904_v46, %v8961_v8  ;;  %v5049_v9 = vsub.f32 %v8906_v10, %v8961_v8  ;;  %v5050_v1 = vsub.f32 %v8908_v30, %v8961_v8  ;;  %v5051_v19 = vsub.f32 %v8910_v35, %v8961_v8 }
0x1785   :  { %v5047_v49 = vsub.f32 %v5045_v20, %v5046_v32  ;;  %v5052_v52 = vsub.f32 %v8912_v61, %v8961_v8  ;;  %v5053_v61 = vsub.f32 %v8914_v40, %v8961_v8 }
0x1787   :  { %v5056_v23 = vadd.f32 1e-05, %v5047_v49  ;;  %v3630_v49 = vpop.permute.xlu1 %3629 }
0x1789   :  { %6538 = vrsqrt.f32 %v5056_v23  ;;  %vm5063_vm8 = vweird.f32 %v5056_v23 }
0x178f   :  { %v6539_v12 = vpop.eup %6538 }
0x1790   :  { %v5058_v57 = vmul.f32 %v6539_v12, %v5056_v23  ;;  %vm5064_vm7 = vweird.f32 %v6539_v12 }
0x1791   :  { %vm5065_vm9 = vmor %vm5063_vm8, %vm5064_vm7 }
0x1792   :  { %v5059_v27 = vmul.f32 %v6539_v12, %v5058_v57  ;;  %v3652_v57 = vadd.f32 %v3630_v49, %v7223_v58  ;;  %vm9552_vm7 = vmmov %vm9548_vm2 }
0x1794   :  { %v5060_v38 = vmul.f32 0.5, %v5059_v27 }
0x1796   :  { %v5061_v13 = vsub.f32 1.5, %v5060_v38 }
0x1798   :  { %v5062_v3 = vmul.f32 %v6539_v12, %v5061_v13  ;;  %v3632_v13 = vpop.permute.xlu0 %3631 }
0x179a   :  { %v8985_v36 = vsel %vm5065_vm9, %v6539_v12, %v5062_v3  ;;  %vm9553_vm9 = vmmov %vm9548_vm2 }
0x179b   :  { %v5067_v14 = vmul.f32 %v8985_v36, %v5048_v44  ;;  %v5068_v29 = vmul.f32 %v8985_v36, %v5049_v9  ;;  %v5069_v48 = vmul.f32 %v8985_v36, %v5050_v1  ;;  %v5070_v51 = vmul.f32 %v8985_v36, %v5051_v19 }
0x179c   :  { %v5071_v35 = vmul.f32 %v8985_v36, %v5052_v52  ;;  %v5072_v26 = vmul.f32 %v8985_v36, %v5053_v61  ;;  %v5073_v9 = vmul.f32 %v8985_v36, %v5054_v0  ;;  %v5074_v55 = vmul.f32 %v8985_v36, %v5055_v59 }
0x179d   :  { %v5076_v17 = vmul.f32 %v8979_v22, %v5067_v14  ;;  %v5077_v46 = vmul.f32 %v8979_v22, %v5068_v29  ;;  %v5078_v18 = vmul.f32 %v8979_v22, %v5069_v48  ;;  %v5079_v34 = vmul.f32 %v8979_v22, %v5070_v51 }
0x179e   :  { %v5080_v20 = vmul.f32 %v8979_v22, %v5071_v35  ;;  %v5081_v11 = vmul.f32 %v8979_v22, %v5072_v26  ;;  %v3653_v14 = vadd.f32 %v3632_v13, %v7232_v37  ;;  %v6676_v61 = vmov 33  }
0x179f   :  { %v5085_v15 = vadd.f32 %v8989_v43, %v5076_v17  ;;  %v5086_v10 = vadd.f32 %v8989_v43, %v5077_v46  ;;  %v5087_v45 = vadd.f32 %v8989_v43, %v5078_v18  ;;  %v5088_v25 = vadd.f32 %v8989_v43, %v5079_v34  ;;  %6111 = vset.pattern.permute.xlu2 %v6676_v61 }
0x17a0   :  { %v5089_v21 = vadd.f32 %v8989_v43, %v5080_v20  ;;  %v5090_v44 = vadd.f32 %v8989_v43, %v5081_v11  ;;  %v5082_v17 = vmul.f32 %v8979_v22, %v5073_v9  ;;  %6109 = vset.pattern.permute.xlu1 %v6676_v61  ;;  %6110 = vset.pattern.permute.xlu0 %v6676_v61 }
0x17a1   :  { %v5101_v54 = vmin.f32 %v5085_v15, 0.0  ;;  %v5102_v30 = vmin.f32 %v5086_v10, 0.0  ;;  %v5103_v2 = vmin.f32 %v5087_v45, 0.0  ;;  %vm5093_vm12 = vcmp.gt.f32.partialorder %v5085_v15, 0.0 }
0x17a2   :  { %v5104_v5 = vmin.f32 %v5088_v25, 0.0  ;;  %vm5094_vm11 = vcmp.gt.f32.partialorder %v5086_v10, 0.0  ;;  %v5105_v38 = vmin.f32 %v5089_v21, 0.0  ;;  %vm5095_vm15 = vcmp.gt.f32.partialorder %v5087_v45, 0.0 }
0x17a3   :  { %v5109_v60 = vmul.f32 1.442695, %v5101_v54  ;;  %v5111_v33 = vmul.f32 1.442695, %v5102_v30  ;;  %v5113_v42 = vmul.f32 1.442695, %v5103_v2  ;;  %v5083_v30 = vmul.f32 %v8979_v22, %v5074_v55 }
0x17a4   :  { %v5115_v41 = vmul.f32 1.442695, %v5104_v5  ;;  %v5117_v40 = vmul.f32 1.442695, %v5105_v38  ;;  %v5106_v48 = vmin.f32 %v5090_v44, 0.0  ;;  %vm5096_vm1 = vcmp.gt.f32.partialorder %v5088_v25, 0.0 }
0x17a5   :  { %6540 = vpow2.f32 %v5109_v60  ;;  %v5092_v56 = vadd.f32 %v8989_v43, %v5083_v30  ;;  %vm5097_vm4 = vcmp.gt.f32.partialorder %v5089_v21, 0.0  ;;  %vm5098_vm0 = vcmp.gt.f32.partialorder %v5090_v44, 0.0 }
0x17a6   :  { %6542 = vpow2.f32 %v5111_v33  ;;  %v5119_v0 = vmul.f32 1.442695, %v5106_v48 }
0x17a7   :  { %6544 = vpow2.f32 %v5113_v42  ;;  %v5108_v2 = vmin.f32 %v5092_v56, 0.0  ;;  %vm5100_vm8 = vcmp.gt.f32.partialorder %v5092_v56, 0.0 }
0x17a8   :  { %6546 = vpow2.f32 %v5115_v41 }
0x17a9   :  { %6548 = vpow2.f32 %v5117_v40  ;;  %v5123_v52 = vmul.f32 1.442695, %v5108_v2 }
0x17aa   :  { %6550 = vpow2.f32 %v5119_v0 }
0x17ab   :  { %v6541_v31 = vpop.eup %6540 }
0x17ac   :  { %v5966_v47 = vadd.f32 -1.0, %v6541_v31  ;;  %v6543_v24 = vpop.eup %6542 }
0x17ad   :  { %v5967_v32 = vadd.f32 -1.0, %v6543_v24  ;;  %v6545_v12 = vpop.eup %6544 }
0x17ae   :  { %v5133_v16 = vsel %vm5093_vm12, %v5085_v15, %v5966_v47  ;;  %v5968_v3 = vadd.f32 -1.0, %v6545_v12  ;;  %v6547_v58 = vpop.eup %6546  ;;  %v3634_v15 = vpop.permute.xlu0 %3633 }
0x17af   :  { %v5141_v7 = vadd.f32 %v5133_v16, %v3651_v28  ;;  %v5134_v23 = vsel %vm5094_vm11, %v5086_v10, %v5967_v32  ;;  %v5969_v46 = vadd.f32 -1.0, %v6547_v58  ;;  %v5091_v10 = vadd.f32 %v8989_v43, %v5082_v17  ;;  %v6549_v37 = vpop.eup %6548 }
0x17b0   :  { %v5142_v27 = vadd.f32 %v5134_v23, %v3652_v57  ;;  %v5135_v1 = vsel %vm5095_vm15, %v5087_v45, %v5968_v3  ;;  %v3654_v54 = vadd.f32 %v3634_v15, %v7241_v39  ;;  %v5970_v33 = vadd.f32 -1.0, %v6549_v37  ;;  %v3636_v45 = vpop.permute.xlu1 %3635  ;;  %v6551_v36 = vpop.eup %6550 }
0x17b1   :  { %5974 = vmatmul.msk.f32.vlgmr.msrb.gmra.mxu3 %vm9546_vm10, %v5141_v7  ;;  %v5143_v29 = vadd.f32 %v5135_v1, %v3653_v14  ;;  %v5136_v18 = vsel %vm5096_vm1, %v5088_v25, %v5969_v46  ;;  %v5107_v60 = vmin.f32 %v5091_v10, 0.0  ;;  %v3655_v51 = vadd.f32 %v3636_v45, %v7247_v53 }
0x17b2   :  { %v5144_v19 = vadd.f32 %v5136_v18, %v3654_v54  ;;  %v5137_v59 = vsel %vm5097_vm4, %v5089_v21, %v5970_v33  ;;  %v5971_v39 = vadd.f32 -1.0, %v6551_v36  ;;  %vm5099_vm6 = vcmp.gt.f32.partialorder %v5091_v10, 0.0 }
0x17b3   :  { %v5121_v8 = vmul.f32 1.442695, %v5107_v60  ;;  %v5145_v34 = vadd.f32 %v5137_v59, %v3655_v51 }
0x17b4   :  { %v5138_v62 = vsel %vm5098_vm0, %v5090_v44, %v5971_v39 }
0x17b5   :  { %6552 = vpow2.f32 %v5121_v8 }
0x17b6   :  { %v3638_v22 = vpop.permute.xlu0 %3637  ;;  %6554 = vpow2.f32 %v5123_v52 }
0x17b7   :  { %v3656_v42 = vadd.f32 %v3638_v22, %v7251_v50 }
0x17b8   :  { %v3640_v35 = vpop.permute.xlu1 %3639 }
0x17b9   :  { %5975 = vmatmul.msk.f32.gmra.mxu3 %vm9547_vm13, %v5142_v27  ;;  %v5146_v43 = vadd.f32 %v5138_v62, %v3656_v42  ;;  %v3657_v24 = vadd.f32 %v3640_v35, %v9522_v6 }
0x17bb   :  { %v6553_v31 = vpop.eup %6552 }
0x17bc   :  { %v5972_v25 = vadd.f32 -1.0, %v6553_v31  ;;  %v6555_v47 = vpop.eup %6554 }
0x17bd   :  { %v5973_v16 = vadd.f32 -1.0, %v6555_v47 }
0x17be   :  { %v5139_v53 = vsel %vm5099_vm6, %v5091_v10, %v5972_v25  ;;  %v3642_v7 = vpop.permute.xlu0 %3641 }
0x17bf   :  { %v5147_v28 = vadd.f32 %v5139_v53, %v3657_v24  ;;  %v5140_v5 = vsel %vm5100_vm8, %v5092_v56, %v5973_v16  ;;  %v3658_v50 = vadd.f32 %v3642_v7, %v7259_v63 }
0x17c1   :  { %5976 = vmatmul.msk.f32.gmra.mxu3 %vm9548_vm2, %v5143_v29  ;;  %v5148_v20 = vadd.f32 %v5140_v5, %v3658_v50 }
0x17c9   :  { %5977 = vmatmul.msk.f32.gmra.mxu3 %vm9549_vm3, %v5144_v19 }
0x17d1   :  { %5978 = vmatmul.msk.f32.gmra.mxu3 %vm9550_vm5, %v5145_v34 }
0x17d9   :  { %5979 = vmatmul.msk.f32.gmra.mxu3 %vm9551_vm14, %v5146_v43 }
0x17e1   :  { %5980 = vmatmul.msk.f32.gmra.mxu3 %vm9552_vm7, %v5147_v28 }
0x17e9   :  { %5981 = vmatmul.msk.f32.gmra.mxu3 %vm9553_vm9, %v5148_v20 }
0x1834   :  { %v5193_v32 = vpop.f32.mrf.mxu3 }
0x1835   :  { %5225 = vrot.lane.b32.xlu1 %v5193_v32, %s6675_s11 }
0x183c   :  { %v5196_v6 = vpop.f32.mrf.mxu3 }
0x183d   :  { %5227 = vrot.lane.b32.xlu0 %v5196_v6, %s6675_s11 }
0x1844   :  { %v5199_v49 = vpop.f32.mrf.mxu3 }
0x1845   :  { %5229 = vrot.lane.b32.xlu1 %v5199_v49, %s6675_s11 }
0x184c   :  { %v5202_v41 = vpop.f32.mrf.mxu3 }
0x184d   :  { %5231 = vrot.lane.b32.xlu0 %v5202_v41, %s6675_s11 }
0x1854   :  { %v5205_v21 = vpop.f32.mrf.mxu3 }
0x1855   :  { %5233 = vrot.lane.b32.xlu1 %v5205_v21, %s6675_s11 }
0x185c   :  { %v5208_v26 = vpop.f32.mrf.mxu3 }
0x185d   :  { %5302 = vperm.xlu2 %6111, %v5208_v26   ;;  %5235 = vrot.lane.b32.xlu0 %v5208_v26, %s6675_s11 }
0x1864   :  { %v5211_v63 = vpop.f32.mrf.mxu3 }
0x1865   :  { %5237 = vrot.lane.b32.xlu1 %v5211_v63, %s6675_s11 }
0x186c   :  { %v5214_v23 = vpop.f32.mrf.mxu3 }
0x186d   :  { %5282 = vperm.xlu1 %6109, %v5193_v32   ;;  %5239 = vrot.lane.b32.xlu0 %v5214_v23, %s6675_s11 }
0x186e   :  { %5690 = vmatpush.msrb.mxu1 %v5214_v23 }
0x1870   :  { %5691 = vmatpush.msrb.mxu1 %v5211_v63 }
0x1872   :  { %5692 = vmatpush.msrb.mxu1 %v5208_v26 }
0x1874   :  { %5693 = vmatpush.msrb.mxu1 %v5205_v21 }
0x1875   :  { %5290 = vperm.xlu1 %6109, %v5199_v49   ;;  %5286 = vperm.xlu0 %6110, %v5196_v6  }
0x1876   :  { %5694 = vmatpush.msrb.mxu1 %v5202_v41 }
0x1878   :  { %5695 = vmatpush.msrb.mxu1 %v5199_v49 }
0x187a   :  { %5696 = vmatpush.msrb.mxu1 %v5196_v6 }
0x187c   :  { %5697 = vmatpush.msrb.mxu1 %v5193_v32 }
0x187d   :  { %5294 = vperm.xlu0 %6110, %v5202_v41  }
0x1885   :  { %5298 = vperm.xlu0 %6110, %v5205_v21  }
0x188d   :  { %5306 = vperm.xlu0 %6110, %v5211_v63  }
0x1895   :  { %5310 = vperm.xlu0 %6110, %v5214_v23  }
0x18a7   :  { %v5226_v12 = vpop.permute.xlu1 %5225 }
0x18aa   :  { %5249 = vxpose.xlu1.b32.start [1/8] (short) (narrow) %v5226_v12, 8 }
0x18af   :  { %v5228_v57 = vpop.permute.xlu0 %5227 }
0x18b2   :  { %5250 = vxpose.xlu1.b32.cont [2/8] (short) (narrow) %v5228_v57, 8 }
0x18b7   :  { %v5230_v27 = vpop.permute.xlu1 %5229  ;;  %v5303_v46 = vpop.permute.xlu2 %5302 }
0x18ba   :  { %5251 = vxpose.xlu1.b32.cont [3/8] (short) (narrow) %v5230_v27, 8 }
0x18bf   :  { %v5232_v38 = vpop.permute.xlu0 %5231 }
0x18c2   :  { %5252 = vxpose.xlu1.b32.cont [4/8] (short) (narrow) %v5232_v38, 8 }
0x18c7   :  { %v5234_v11 = vpop.permute.xlu1 %5233 }
0x18ca   :  { %5253 = vxpose.xlu1.b32.cont [5/8] (short) (narrow) %v5234_v11, 8 }
0x18cf   :  { %v5236_v13 = vpop.permute.xlu0 %5235 }
0x18d2   :  { %5254 = vxpose.xlu1.b32.cont [6/8] (short) (narrow) %v5236_v13, 8 }
0x18d7   :  { %v5238_v3 = vpop.permute.xlu1 %5237 }
0x18da   :  { %5255 = vxpose.xlu1.b32.cont [7/8] (short) (narrow) %v5238_v3, 8 }
0x18df   :  { %v5240_v40 = vpop.permute.xlu0 %5239  ;;  %v5283_v1 = vpop.permute.xlu1 %5282 }
0x18e2   :  { %5256 = vxpose.xlu1.b32.end [8/8] (short) (narrow) %v5240_v40, 8 }
0x18e7   :  { %v5287_v44 = vpop.permute.xlu0 %5286  ;;  %v5291_v14 = vpop.permute.xlu1 %5290 }
0x18ef   :  { %v5295_v9 = vpop.permute.xlu0 %5294 }
0x18f7   :  { %v5299_v58 = vpop.permute.xlu0 %5298 }
0x18ff   :  { %v5307_v29 = vpop.permute.xlu0 %5306 }
0x1907   :  { %v5311_v36 = vpop.permute.xlu0 %5310 }
0x194e   :  { %v5265_v48 = vpop.trf.xlu1 }
0x194f   :  { %v5313_v17 = vperm.slane %v5265_v48, 0 }
0x1951   :  { %v5314_v15 = vadd.f32 %v5313_v17, %v5283_v1  ;;  %v5315_v55 = vadd.f32 %v5313_v17, %v5287_v44  ;;  %v5316_v0 = vadd.f32 %v5313_v17, %v5291_v14  ;;  %v5317_v10 = vadd.f32 %v5313_v17, %v5295_v9 }
0x1952   :  { %v5319_v18 = vadd.f32 %v5313_v17, %v5303_v46  ;;  %v5318_v37 = vadd.f32 %v5313_v17, %v5299_v58  ;;  %v5320_v2 = vadd.f32 %v5313_v17, %v5307_v29  ;;  %v5321_v39 = vadd.f32 %v5313_v17, %v5311_v36 }
0x1953   :  { %v5322_v54 = vsub.f32 0.0, %v5314_v15  ;;  %v5323_v30 = vsub.f32 0.0, %v5315_v55  ;;  %v5324_v19 = vsub.f32 0.0, %v5316_v0  ;;  %v5325_v60 = vsub.f32 0.0, %v5317_v10 }
0x1954   :  { %v5327_v33 = vsub.f32 0.0, %v5319_v18  ;;  %v5326_v45 = vsub.f32 0.0, %v5318_v37  ;;  %v5328_v52 = vsub.f32 0.0, %v5320_v2  ;;  %v5329_v62 = vsub.f32 0.0, %v5321_v39  ;;  %v6657_v37 = vld [vmem:[%s9351_s1 + $0x18] sm:$0xff] }
0x1955   :  { %v5330_v56 = vmul.f32 1.442695, %v5322_v54  ;;  %v5332_v8 = vmul.f32 1.442695, %v5323_v30  ;;  %v5334_v59 = vmul.f32 1.442695, %v5324_v19 }
0x1956   :  { %v5336_v51 = vmul.f32 1.442695, %v5325_v60  ;;  %v5340_v34 = vmul.f32 1.442695, %v5327_v33  ;;  %v5338_v22 = vmul.f32 1.442695, %v5326_v45 }
0x1957   :  { %6556 = vpow2.f32 %v5330_v56  ;;  %v5342_v25 = vmul.f32 1.442695, %v5328_v52  ;;  %v5344_v47 = vmul.f32 1.442695, %v5329_v62 }
0x1958   :  { %6558 = vpow2.f32 %v5332_v8 }
0x1959   :  { %6560 = vpow2.f32 %v5334_v59 }
0x195a   :  { %6562 = vpow2.f32 %v5336_v51 }
0x195b   :  { %6564 = vpow2.f32 %v5340_v34 }
0x195c   :  { %6566 = vpow2.f32 %v5338_v22 }
0x195d   :  { %v6557_v31 = vpop.eup %6556 }
0x195e   :  { %v6559_v42 = vpop.eup %6558  ;;  %v9043_v43 = vadd.f32 1.0, %v6557_v31 }
0x195f   :  { %v6561_v35 = vpop.eup %6560  ;;  %v9045_v53 = vadd.f32 1.0, %v6559_v42 }
0x1960   :  { %v6563_v24 = vpop.eup %6562  ;;  %6568 = vrcp.f32 %v9043_v43  ;;  %v9049_v7 = vadd.f32 1.0, %v6561_v35  ;;  %v5363_v50 = vand.u32 2147483647, %v9043_v43  ;;  %v5365_v32 = vand.u32 2147483648, %v9043_v43 }
0x1961   :  { %v6565_v28 = vpop.eup %6564  ;;  %6570 = vrcp.f32 %v9045_v53  ;;  %v9051_v5 = vadd.f32 1.0, %v6563_v24  ;;  %v5378_v61 = vand.u32 2147483647, %v9045_v53  ;;  %v5380_v6 = vand.u32 2147483648, %v9045_v53 }
0x1962   :  { %v6567_v16 = vpop.eup %6566  ;;  %6572 = vpow2.f32 %v5342_v25  ;;  %v9054_v20 = vadd.f32 1.0, %v6565_v28  ;;  %vm5359_vm12 = vweird.f32 %v9043_v43  ;;  %v5395_v21 = vand.u32 2147483648, %v9049_v7 }
0x1963   :  { %6574 = vpow2.f32 %v5344_v47  ;;  %v9061_v49 = vadd.f32 1.0, %v6567_v16  ;;  %v5410_v26 = vand.u32 2147483648, %v9051_v5  ;;  %vm9068_vm10 = vcmp.eq.f32.partialorder %v5363_v50, 8.507059e+37 }
0x1964   :  { %6576 = vrcp.f32 %v9049_v7  ;;  %vm5374_vm11 = vweird.f32 %v9045_v53  ;;  %v5393_v57 = vand.u32 2147483647, %v9049_v7  ;;  %v5366_v38 = vor.u32 1.1754944e-38, %v5365_v32 }
0x1965   :  { %6578 = vrcp.f32 %v9051_v5  ;;  %vm9075_vm13 = vcmp.eq.f32.partialorder %v5378_v61, 8.507059e+37  ;;  %v5408_v3 = vand.u32 2147483647, %v9051_v5  ;;  %v5381_v9 = vor.u32 1.1754944e-38, %v5380_v6  ;;  %v6661_v6 = vld [vmem:[%s9351_s1 + $0x38] sm:$0xff] }
0x1966   :  { %v6569_v41 = vpop.eup %6568  ;;  %6580 = vrcp.f32 %v9054_v20  ;;  %vm5389_vm15 = vweird.f32 %v9049_v7  ;;  %v5396_v14 = vor.u32 1.1754944e-38, %v5395_v21  ;;  %vm5404_vm1 = vweird.f32 %v9051_v5 }
0x1967   :  { %v6571_v63 = vpop.eup %6570  ;;  %v5355_v23 = vmul.f32 %v6569_v41, %v9043_v43  ;;  %6582 = vrcp.f32 %v9061_v49  ;;  %vm5360_vm2 = vweird.f32 %v6569_v41  ;;  %v5411_v29 = vor.u32 1.1754944e-38, %v5410_v26 }
0x1968   :  { %v6573_v27 = vpop.eup %6572  ;;  %v5370_v11 = vmul.f32 %v6571_v63, %v9045_v53  ;;  %vm5375_vm3 = vweird.f32 %v6571_v63  ;;  %vm9086_vm4 = vcmp.eq.f32.partialorder %v5393_v57, 8.507059e+37  ;;  %v5438_v55 = vand.u32 2147483647, %v9054_v20  ;;  %vm5361_vm14 = vmor %vm5359_vm12, %vm5360_vm2 }
0x1969   :  { %v9080_v40 = vpop.eup %6574  ;;  %v5356_v44 = vsub.f32 1.0, %v5355_v23  ;;  %vm9094_vm5 = vcmp.eq.f32.partialorder %v5408_v3, 8.507059e+37  ;;  %vm5434_vm0 = vweird.f32 %v9054_v20  ;;  %v5440_v54 = vand.u32 2147483648, %v9054_v20  ;;  %vm5376_vm8 = vmor %vm5374_vm11, %vm5375_vm3  ;;  %v6655_v3 = vld [vmem:[%s9351_s1 + $0x8] sm:$0xff] }
0x196a   :  { %v6577_v1 = vpop.eup %6576  ;;  %v5371_v58 = vsub.f32 1.0, %v5370_v11  ;;  %v5423_v30 = vand.u32 2147483647, %v9061_v49  ;;  %v5425_v45 = vand.u32 2147483648, %v9061_v49  ;;  %v9110_v34 = vadd.f32 1.0, %v6573_v27 }
0x196b   :  { %v6579_v48 = vpop.eup %6578  ;;  %v5357_v17 = vmul.f32 %v6569_v41, %v5356_v44  ;;  %v5385_v46 = vmul.f32 %v6577_v1, %v9049_v7  ;;  %vm5390_vm6 = vweird.f32 %v6577_v1  ;;  %v9142_v26 = vadd.f32 1.0, %v9080_v40 }
0x196c   :  { %v9091_v0 = vpop.eup %6580  ;;  %v5372_v10 = vmul.f32 %v6571_v63, %v5371_v58  ;;  %v5400_v18 = vmul.f32 %v6579_v48, %v9051_v5  ;;  %vm5405_vm7 = vweird.f32 %v6579_v48  ;;  %vm5391_vm9 = vmor %vm5389_vm15, %vm5390_vm6  ;;  %vm5419_vm15 = vweird.f32 %v9061_v49 }
0x196d   :  { %v5358_v19 = vadd.f32 %v6569_v41, %v5357_v17  ;;  %v5386_v60 = vsub.f32 1.0, %v5385_v46  ;;  %v5430_v33 = vmul.f32 %v9091_v0, %v9054_v20  ;;  %v6583_v59 = vpop.eup %6582  ;;  %vm5435_vm12 = vweird.f32 %v9091_v0 }
0x196e   :  { %v5373_v56 = vadd.f32 %v6571_v63, %v5372_v10  ;;  %v5401_v8 = vsub.f32 1.0, %v5400_v18  ;;  %v5415_v62 = vmul.f32 %v6583_v59, %v9061_v49  ;;  %vm5420_vm11 = vweird.f32 %v6583_v59 }
0x196f   :  { %v5362_v36 = vsel %vm5361_vm14, %v6569_v41, %v5358_v19  ;;  %v5387_v51 = vmul.f32 %v6577_v1, %v5386_v60  ;;  %v5431_v2 = vsub.f32 1.0, %v5430_v33  ;;  %vm5421_vm2 = vmor %vm5419_vm15, %vm5420_vm11  ;;  %v5426_v20 = vor.u32 1.1754944e-38, %v5425_v45 }
0x1970   :  { %v5367_v39 = vsel %vm9068_vm10, %v5366_v38, %v5362_v36  ;;  %v5377_v22 = vsel %vm5376_vm8, %v6571_v63, %v5373_v56  ;;  %v5402_v52 = vmul.f32 %v6579_v48, %v5401_v8  ;;  %v5416_v47 = vsub.f32 1.0, %v5415_v62  ;;  %vm5406_vm10 = vmor %vm5404_vm1, %vm5405_vm7  ;;  %v6654_v38 = vld [vmem:[%s9351_s1] sm:$0xff] }
0x1971   :  { %v5474_v31 = vmul.f32 1.442695, %v5367_v39  ;;  %v5382_v42 = vsel %vm9075_vm13, %v5381_v9, %v5377_v22  ;;  %v5388_v43 = vadd.f32 %v6577_v1, %v5387_v51  ;;  %v5432_v25 = vmul.f32 %v9091_v0, %v5431_v2  ;;  %vm9132_vm13 = vmor %vm5434_vm0, %vm5435_vm12  ;;  %v6658_v62 = vld [vmem:[%s9351_s1 + $0x20] sm:$0xff] }
0x1972   :  { %v5476_v35 = vmul.f32 1.442695, %v5382_v42  ;;  %v5403_v53 = vadd.f32 %v6579_v48, %v5402_v52  ;;  %v5417_v7 = vmul.f32 %v6583_v59, %v5416_v47  ;;  %v5441_v63 = vor.u32 1.1754944e-38, %v5440_v54 }
0x1973   :  { %6584 = vpow2.f32 %v5474_v31  ;;  %v5392_v24 = vsel %vm5391_vm9, %v6577_v1, %v5388_v43  ;;  %v5433_v28 = vadd.f32 %v9091_v0, %v5432_v25  ;;  %vm5439_vm1 = vcmp.eq.f32.partialorder %v5438_v55, 8.507059e+37  ;;  %v6659_v43 = vld [vmem:[%s9351_s1 + $0x28] sm:$0xff] }
0x1974   :  { %6586 = vpow2.f32 %v5476_v35  ;;  %v5397_v16 = vsel %vm9086_vm4, %v5396_v14, %v5392_v24  ;;  %v5407_v50 = vsel %vm5406_vm10, %v6579_v48, %v5403_v53  ;;  %v5418_v21 = vadd.f32 %v6583_v59, %v5417_v7 }
0x1975   :  { %v5478_v32 = vmul.f32 1.442695, %v5397_v16  ;;  %v5412_v61 = vsel %vm9094_vm5, %v5411_v29, %v5407_v50  ;;  %6588 = vrcp.f32 %v9110_v34  ;;  %v5437_v41 = vsel %vm9132_vm13, %v9091_v0, %v5433_v28  ;;  %v6656_v0 = vld [vmem:[%s9351_s1 + $0x10] sm:$0xff] }
0x1976   :  { %v5480_v5 = vmul.f32 1.442695, %v5412_v61  ;;  %v5422_v23 = vsel %vm5421_vm2, %v6583_v59, %v5418_v21  ;;  %vm5424_vm3 = vcmp.eq.f32.partialorder %v5423_v30, 8.507059e+37  ;;  %v5442_v12 = vsel %vm5439_vm1, %v5441_v63, %v5437_v41  ;;  %v6660_v50 = vld [vmem:[%s9351_s1 + $0x30] sm:$0xff] }
0x1977   :  { %6590 = vpow2.f32 %v5478_v32  ;;  %v5427_v57 = vsel %vm5424_vm3, %v5426_v20, %v5422_v23  ;;  %vm9564_vm4 = vcmask 523264   ;;  %v5484_v1 = vmul.f32 1.442695, %v5442_v12 }
0x1978   :  { %6592 = vpow2.f32 %v5480_v5  ;;  %v5482_v44 = vmul.f32 1.442695, %v5427_v57  ;;  %vm9565_vm5 = vmmov %vm9564_vm4  ;;  %v5453_v46 = vand.u32 2147483647, %v9110_v34  ;;  %v5455_v15 = vand.u32 2147483648, %v9110_v34 }
0x1979   :  { %v6585_v49 = vpop.eup %6584  ;;  %6594 = vrcp.f32 %v9142_v26  ;;  %vm5449_vm14 = vweird.f32 %v9110_v34  ;;  %vm9566_vm8 = vmmov %vm9564_vm4  ;;  %v5468_v8 = vand.u32 2147483647, %v9142_v26  ;;  %v5470_v59 = vand.u32 2147483648, %v9142_v26 }
0x197a   :  { %v6587_v27 = vpop.eup %6586  ;;  %v9148_v11 = vmul.f32 %v6654_v38, %v6585_v49  ;;  %6596 = vpow2.f32 %v5482_v44  ;;  %vm5454_vm7 = vcmp.eq.f32.partialorder %v5453_v46, 8.507059e+37  ;;  %v5456_v60 = vor.u32 1.1754944e-38, %v5455_v15  ;;  %vm9567_vm9 = vmmov %vm9564_vm4 }
0x197b   :  { %v6589_v13 = vpop.eup %6588  ;;  %v9154_v40 = vmul.f32 %v6655_v3, %v6587_v27  ;;  %6598 = vpow2.f32 %v5484_v1  ;;  %vm5464_vm10 = vweird.f32 %v9142_v26  ;;  %v5471_v42 = vor.u32 1.1754944e-38, %v5470_v59  ;;  %vm9568_vm15 = vmmov %vm9564_vm4 }
0x197c   :  { %v5498_v9 = vsel %vm9564_vm4, %v9148_v11, 0.0  ;;  %v5445_v58 = vmul.f32 %v6589_v13, %v9110_v34  ;;  %vm5450_vm0 = vweird.f32 %v6589_v13  ;;  %vm5469_vm13 = vcmp.eq.f32.partialorder %v5468_v8, 8.507059e+37  ;;  %vm9569_vm2 = vmmov %vm9564_vm4 }
0x197d   :  { %v6591_v14 = vpop.eup %6590  ;;  %5499 = vadd.xlane.f32.xlu0 %v5498_v9  ;;  %v5501_v29 = vsel %vm9565_vm5, %v9154_v40, 0.0  ;;  %vm5451_vm6 = vmor %vm5449_vm14, %vm5450_vm0 }
0x197e   :  { %v6593_v48 = vpop.eup %6592  ;;  %5502 = vadd.xlane.f32.xlu2 %v5501_v29  ;;  %v5446_v17 = vsub.f32 1.0, %v5445_v58  ;;  %v9166_v10 = vmul.f32 %v6656_v0, %v6591_v14  ;;  %vm9570_vm1 = vmmov %vm9569_vm2 }
0x197f   :  { %v6595_v55 = vpop.eup %6594  ;;  %v9171_v54 = vmul.f32 %v6657_v37, %v6593_v48  ;;  %vm9571_vm3 = vmmov %vm9570_vm1 }
0x1980   :  { %v5447_v18 = vmul.f32 %v6589_v13, %v5446_v17  ;;  %v5460_v30 = vmul.f32 %v6595_v55, %v9142_v26  ;;  %v5504_v45 = vsel %vm9566_vm8, %v9166_v10, 0.0  ;;  %v6597_v36 = vpop.eup %6596  ;;  %vm5465_vm12 = vweird.f32 %v6595_v55 }
0x1981   :  { %v5507_v51 = vsel %vm9567_vm9, %v9171_v54, 0.0  ;;  %v6599_v34 = vpop.eup %6598  ;;  %v9185_v31 = vmul.f32 %v6658_v62, %v6597_v36  ;;  %vm5466_vm11 = vmor %vm5464_vm10, %vm5465_vm12 }
0x1982   :  { %v5448_v19 = vadd.f32 %v6589_v13, %v5447_v18  ;;  %v5461_v33 = vsub.f32 1.0, %v5460_v30  ;;  %v9190_v25 = vmul.f32 %v6659_v43, %v6599_v34  ;;  %vm9572_vm9 = vmmov %vm9570_vm1 }
0x1983   :  { %v5510_v24 = vsel %vm9568_vm15, %v9185_v31, 0.0  ;;  %vm9573_vm15 = vmmov %vm9570_vm1 }
0x1984   :  { %v5452_v56 = vsel %vm5451_vm6, %v6589_v13, %v5448_v19  ;;  %v5462_v39 = vmul.f32 %v6595_v55, %v5461_v33  ;;  %v5513_v28 = vsel %vm9569_vm2, %v9190_v25, 0.0 }
0x1985   :  { %5505 = vadd.xlane.f32.xlu0 %v5504_v45  ;;  %v5457_v2 = vsel %vm5454_vm7, %v5456_v60, %v5452_v56 }
0x1986   :  { %5508 = vadd.xlane.f32.xlu2 %v5507_v51  ;;  %v5486_v22 = vmul.f32 1.442695, %v5457_v2  ;;  %v5463_v52 = vadd.f32 %v6595_v55, %v5462_v39 }
0x1988   :  { %6600 = vpow2.f32 %v5486_v22  ;;  %v5467_v35 = vsel %vm5466_vm11, %v6595_v55, %v5463_v52 }
0x1989   :  { %v5472_v53 = vsel %vm5469_vm13, %v5471_v42, %v5467_v35 }
0x198a   :  { %v5488_v47 = vmul.f32 1.442695, %v5472_v53 }
0x198c   :  { %6602 = vpow2.f32 %v5488_v47 }
0x198d   :  { %5511 = vadd.xlane.f32.xlu0 %v5510_v24 }
0x198e   :  { %v6601_v16 = vpop.eup %6600  ;;  %5514 = vadd.xlane.f32.xlu2 %v5513_v28 }
0x198f   :  { %v9199_v7 = vmul.f32 %v6660_v50, %v6601_v16 }
0x1991   :  { %v5516_v61 = vsel %vm9570_vm1, %v9199_v7, 0.0 }
0x1992   :  { %v6603_v32 = vpop.eup %6602 }
0x1993   :  { %v9206_v5 = vmul.f32 %v6661_v6, %v6603_v32 }
0x1995   :  { %5517 = vadd.xlane.f32.xlu0 %v5516_v61  ;;  %v5519_v41 = vsel %vm9571_vm3, %v9206_v5, 0.0 }
0x1996   :  { %5520 = vadd.xlane.f32.xlu2 %v5519_v41 }
0x19f0   :  { %v5500_v21 = vpop.xlane.xlu0 %5499 }
0x19f1   :  { %v5503_v26 = vpop.xlane.xlu2 %5502  ;;  %v5522_v63 = vadd.f32 1e-16, %v5500_v21 }
0x19f2   :  { %v5523_v20 = vadd.f32 1e-16, %v5503_v26 }
0x19f3   :  { %6604 = vrcp.f32 %v5522_v63  ;;  %v5541_v58 = vand.u32 2147483648, %v5522_v63  ;;  %vm5535_vm5 = vweird.f32 %v5522_v63  ;;  %v5539_v29 = vand.u32 2147483647, %v5522_v63 }
0x19f4   :  { %6606 = vrcp.f32 %v5523_v20  ;;  %v5556_v33 = vand.u32 2147483648, %v5523_v20  ;;  %vm5550_vm7 = vweird.f32 %v5523_v20  ;;  %v5554_v56 = vand.u32 2147483647, %v5523_v20 }
0x19f5   :  { %v5542_v0 = vor.u32 1.1754944e-38, %v5541_v58  ;;  %vm5540_vm14 = vcmp.eq.f32.partialorder %v5539_v29, 8.507059e+37 }
0x19f6   :  { %v5557_v2 = vor.u32 1.1754944e-38, %v5556_v33  ;;  %vm5555_vm12 = vcmp.eq.f32.partialorder %v5554_v56, 8.507059e+37 }
0x19f8   :  { %v5506_v23 = vpop.xlane.xlu0 %5505 }
0x19f9   :  { %v6605_v49 = vpop.eup %6604  ;;  %v5509_v12 = vpop.xlane.xlu2 %5508  ;;  %v5524_v57 = vadd.f32 1e-16, %v5506_v23 }
0x19fa   :  { %v6607_v27 = vpop.eup %6606  ;;  %v5531_v38 = vmul.f32 %v6605_v49, %v5522_v63  ;;  %v9210_v3 = vadd.f32 1e-16, %v5509_v12  ;;  %vm5536_vm4 = vweird.f32 %v6605_v49 }
0x19fb   :  { %v5546_v13 = vmul.f32 %v6607_v27, %v5523_v20  ;;  %6608 = vrcp.f32 %v5524_v57  ;;  %vm5537_vm0 = vmor %vm5535_vm5, %vm5536_vm4  ;;  %vm5551_vm6 = vweird.f32 %v6607_v27  ;;  %v5571_v62 = vand.u32 2147483648, %v5524_v57 }
0x19fc   :  { %v5532_v44 = vsub.f32 1.0, %v5531_v38  ;;  %6610 = vrcp.f32 %v9210_v3  ;;  %vm5552_vm8 = vmor %vm5550_vm7, %vm5551_vm6  ;;  %vm5565_vm11 = vweird.f32 %v5524_v57  ;;  %v5569_v43 = vand.u32 2147483647, %v5524_v57 }
0x19fd   :  { %v5547_v9 = vsub.f32 1.0, %v5546_v13  ;;  %v5572_v28 = vor.u32 1.1754944e-38, %v5571_v62  ;;  %v5586_v6 = vand.u32 2147483648, %v9210_v3  ;;  %vm5580_vm3 = vweird.f32 %v9210_v3  ;;  %vm9574_vm5 = vmmov %vm9572_vm9 }
0x19fe   :  { %v5533_v1 = vmul.f32 %v6605_v49, %v5532_v44  ;;  %vm5570_vm2 = vcmp.eq.f32.partialorder %v5569_v43, 8.507059e+37  ;;  %v5584_v21 = vand.u32 2147483647, %v9210_v3 }
0x19ff   :  { %v5548_v17 = vmul.f32 %v6607_v27, %v5547_v9 }
0x1a00   :  { %v5534_v14 = vadd.f32 %v6605_v49, %v5533_v1  ;;  %v5512_v48 = vpop.xlane.xlu0 %5511 }
0x1a01   :  { %v6609_v46 = vpop.eup %6608  ;;  %v9213_v18 = vadd.f32 1e-16, %v5512_v48  ;;  %v5549_v30 = vadd.f32 %v6607_v27, %v5548_v17  ;;  %v5515_v36 = vpop.xlane.xlu2 %5514 }
0x1a02   :  { %v5561_v15 = vmul.f32 %v6609_v46, %v5524_v57  ;;  %v5538_v55 = vsel %vm5537_vm0, %v6605_v49, %v5534_v14  ;;  %v6611_v19 = vpop.eup %6610  ;;  %v9219_v39 = vadd.f32 1e-16, %v5515_v36  ;;  %vm5566_vm10 = vweird.f32 %v6609_v46 }
0x1a03   :  { %v5543_v60 = vsel %vm5540_vm14, %v5542_v0, %v5538_v55  ;;  %6612 = vrcp.f32 %v9213_v18  ;;  %v5576_v8 = vmul.f32 %v6611_v19, %v9210_v3  ;;  %v5553_v51 = vsel %vm5552_vm8, %v6607_v27, %v5549_v30  ;;  %vm5567_vm13 = vmor %vm5565_vm11, %vm5566_vm10 }
0x1a04   :  { %v5562_v37 = vsub.f32 1.0, %v5561_v15  ;;  %v5650_v45 = vmul.f32 %v5543_v60, %v9148_v11  ;;  %v5558_v34 = vsel %vm5555_vm12, %v5557_v2, %v5553_v51  ;;  %6614 = vrcp.f32 %v9219_v39  ;;  %vm9575_vm8 = vmmov %vm9574_vm5 }
0x1a05   :  { %v5577_v22 = vsub.f32 1.0, %v5576_v8  ;;  %v5651_v42 = vmul.f32 %v5558_v34, %v9154_v40  ;;  %vm5581_vm1 = vweird.f32 %v6611_v19  ;;  %v5587_v49 = vor.u32 1.1754944e-38, %v5586_v6 }
0x1a06   :  { %v5563_v59 = vmul.f32 %v6609_v46, %v5562_v37  ;;  %5982 = vmatmul.msk.f32.vlgmr.msrb.gmra.mxu1 %vm9572_vm9, %v5650_v45  ;;  %vm5582_vm4 = vmor %vm5580_vm3, %vm5581_vm1  ;;  %vm5585_vm0 = vcmp.eq.f32.partialorder %v5584_v21, 8.507059e+37  ;;  %v5601_v13 = vand.u32 2147483648, %v9213_v18  ;;  %vm5595_vm6 = vweird.f32 %v9213_v18 }
0x1a07   :  { %v5578_v35 = vmul.f32 %v6611_v19, %v5577_v22  ;;  %v5599_v44 = vand.u32 2147483647, %v9213_v18  ;;  %v5616_v15 = vand.u32 2147483648, %v9219_v39  ;;  %vm5610_vm10 = vweird.f32 %v9219_v39 }
0x1a08   :  { %v5564_v52 = vadd.f32 %v6609_v46, %v5563_v59  ;;  %v5518_v47 = vpop.xlane.xlu0 %5517  ;;  %v5602_v14 = vor.u32 1.1754944e-38, %v5601_v13  ;;  %v5614_v55 = vand.u32 2147483647, %v9219_v39 }
0x1a09   :  { %v6613_v11 = vpop.eup %6612  ;;  %v9225_v16 = vadd.f32 1e-16, %v5518_v47  ;;  %v5579_v61 = vadd.f32 %v6611_v19, %v5578_v35  ;;  %v5521_v20 = vpop.xlane.xlu2 %5520  ;;  %vm5600_vm9 = vcmp.eq.f32.partialorder %v5599_v44, 8.507059e+37  ;;  %v5617_v30 = vor.u32 1.1754944e-38, %v5616_v15 }
0x1a0a   :  { %v5591_v53 = vmul.f32 %v6613_v11, %v9213_v18  ;;  %v5568_v24 = vsel %vm5567_vm13, %v6609_v46, %v5564_v52  ;;  %v6615_v40 = vpop.eup %6614  ;;  %v5529_v12 = vadd.f32 1e-16, %v5521_v20  ;;  %vm5596_vm14 = vweird.f32 %v6613_v11  ;;  %vm9576_vm13 = vmmov %vm9574_vm5 }
0x1a0b   :  { %v5573_v50 = vsel %vm5570_vm2, %v5572_v28, %v5568_v24  ;;  %6616 = vrcp.f32 %v9225_v16  ;;  %v5606_v26 = vmul.f32 %v6615_v40, %v9219_v39  ;;  %v5583_v23 = vsel %vm5582_vm4, %v6611_v19, %v5579_v61  ;;  %vm5597_vm7 = vmor %vm5595_vm6, %vm5596_vm14 }
0x1a0c   :  { %v5592_v32 = vsub.f32 1.0, %v5591_v53  ;;  %v5652_v41 = vmul.f32 %v5573_v50, %v9166_v10  ;;  %v5588_v57 = vsel %vm5585_vm0, %v5587_v49, %v5583_v23  ;;  %6618 = vrcp.f32 %v5529_v12  ;;  %vm9577_vm4 = vmmov %vm9574_vm5 }
0x1a0d   :  { %v5607_v27 = vsub.f32 1.0, %v5606_v26  ;;  %v5653_v3 = vmul.f32 %v5588_v57, %v9171_v54  ;;  %vm5611_vm12 = vweird.f32 %v6615_v40  ;;  %v5631_v45 = vand.u32 2147483648, %v9225_v16 }
0x1a0e   :  { %5983 = vmatmul.msk.f32.gmra.mxu1 %vm9573_vm15, %v5651_v42  ;;  %v5593_v63 = vmul.f32 %v6613_v11, %v5592_v32  ;;  %vm5612_vm11 = vmor %vm5610_vm10, %vm5611_vm12  ;;  %vm5615_vm15 = vcmp.eq.f32.partialorder %v5614_v55, 8.507059e+37  ;;  %vm5625_vm1 = vweird.f32 %v9225_v16  ;;  %v5629_v56 = vand.u32 2147483647, %v9225_v16 }
0x1a0f   :  { %v5608_v9 = vmul.f32 %v6615_v40, %v5607_v27  ;;  %v5632_v36 = vor.u32 1.1754944e-38, %v5631_v45  ;;  %v5646_v39 = vand.u32 2147483648, %v5529_v12  ;;  %vm5640_vm14 = vweird.f32 %v5529_v12 }
0x1a10   :  { %v5594_v38 = vadd.f32 %v6613_v11, %v5593_v63  ;;  %v5644_v22 = vand.u32 2147483647, %v5529_v12  ;;  %vm9580_vm12 = vcmask 261120  }
0x1a11   :  { %v6617_v10 = vpop.eup %6616  ;;  %v5609_v17 = vadd.f32 %v6615_v40, %v5608_v9  ;;  %v5647_v52 = vor.u32 1.1754944e-38, %v5646_v39  ;;  %vm9581_vm10 = vmmov %vm9580_vm12 }
0x1a12   :  { %v5621_v1 = vmul.f32 %v6617_v10, %v9225_v16  ;;  %v5598_v58 = vsel %vm5597_vm7, %v6613_v11, %v5594_v38  ;;  %v6619_v46 = vpop.eup %6618  ;;  %vm5626_vm2 = vweird.f32 %v6617_v10  ;;  %vm9578_vm7 = vmmov %vm9577_vm4 }
0x1a13   :  { %v5603_v29 = vsel %vm5600_vm9, %v5602_v14, %v5598_v58  ;;  %v5636_v0 = vmul.f32 %v6619_v46, %v5529_v12  ;;  %v5613_v37 = vsel %vm5612_vm11, %v6615_v40, %v5609_v17  ;;  %vm5627_vm3 = vmor %vm5625_vm1, %vm5626_vm2  ;;  %vm5641_vm0 = vweird.f32 %v6619_v46 }
0x1a14   :  { %v5622_v48 = vsub.f32 1.0, %v5621_v1  ;;  %v5654_v54 = vmul.f32 %v5603_v29, %v9185_v31  ;;  %v5618_v19 = vsel %vm5615_vm15, %v5617_v30, %v5613_v37  ;;  %vm5642_vm6 = vmor %vm5640_vm14, %vm5641_vm0 }
0x1a15   :  { %v5637_v60 = vsub.f32 1.0, %v5636_v0  ;;  %v5655_v31 = vmul.f32 %v5618_v19, %v9190_v25  ;;  %vm9579_vm9 = vmmov %vm9577_vm4 }
0x1a16   :  { %5984 = vmatmul.msk.f32.gmra.mxu1 %vm9574_vm5, %v5652_v41  ;;  %v5623_v18 = vmul.f32 %v6617_v10, %v5622_v48  ;;  %vm5630_vm5 = vcmp.eq.f32.partialorder %v5629_v56, 8.507059e+37  ;;  %vm9582_vm11 = vmmov %vm9581_vm10 }
0x1a17   :  { %v5638_v8 = vmul.f32 %v6619_v46, %v5637_v60  ;;  %vm9584_vm15 = vmmov %vm9581_vm10 }
0x1a18   :  { %v5624_v33 = vadd.f32 %v6617_v10, %v5623_v18  ;;  %vm9585_vm2 = vmmov %vm9581_vm10 }
0x1a19   :  { %v5639_v2 = vadd.f32 %v6619_v46, %v5638_v8  ;;  %vm9586_vm1 = vmmov %vm9585_vm2 }
0x1a1a   :  { %v5628_v59 = vsel %vm5627_vm3, %v6617_v10, %v5624_v33  ;;  %vm9587_vm3 = vmmov %vm9586_vm1 }
0x1a1b   :  { %v5633_v51 = vsel %vm5630_vm5, %v5632_v36, %v5628_v59  ;;  %v5643_v25 = vsel %vm5642_vm6, %v6619_v46, %v5639_v2  ;;  %vm9589_vm5 = vmmov %vm9586_vm1 }
0x1a1c   :  { %v5656_v34 = vmul.f32 %v5633_v51, %v9199_v7  ;;  %vm9590_vm0 = vmmov %vm9586_vm1 }
0x1a1d   :  { %vm9591_vm14 = vmmov %vm9590_vm0 }
0x1a1e   :  { %5985 = vmatmul.msk.f32.gmra.mxu1 %vm9575_vm8, %v5653_v3  ;;  %vm5645_vm8 = vcmp.eq.f32.partialorder %v5644_v22, 8.507059e+37  ;;  %vm9592_vm6 = vmmov %vm9590_vm0 }
0x1a1f   :  { %v5648_v11 = vsel %vm5645_vm8, %v5647_v52, %v5643_v25  ;;  %vm9594_vm8 = vmmov %vm9590_vm0 }
0x1a20   :  { %v5657_v62 = vmul.f32 %v5648_v11, %v9206_v5 }
0x1a26   :  { %5986 = vmatmul.msk.f32.gmra.mxu1 %vm9576_vm13, %v5654_v54  ;;  %vm9583_vm13 = vmmov %vm9581_vm10 }
0x1a2e   :  { %5987 = vmatmul.msk.f32.gmra.mxu1 %vm9577_vm4, %v5655_v31  ;;  %vm9588_vm4 = vmmov %vm9586_vm1 }
0x1a36   :  { %5988 = vmatmul.msk.f32.gmra.mxu1 %vm9578_vm7, %v5656_v34  ;;  %vm9593_vm7 = vmmov %vm9590_vm0 }
0x1a3e   :  { %5989 = vmatmul.msk.f32.gmra.mxu1 %vm9579_vm9, %v5657_v62  ;;  %vm9595_vm9 = vmmov %vm9590_vm0 }
0x1a83   :  { %v9254_v42 = vpop.f32.mrf.mxu1 }
0x1a84   :  { %v5745_v5 = vmul.f32 %v9254_v42, %v9254_v42  ;;  %v5723_v50 = vsel %vm9581_vm10, %v9254_v42, 0.0 }
0x1a86   :  { %v5753_v41 = vsel %vm9584_vm15, %v5745_v5, 0.0  ;;  %vm9597_vm15 = vmmov %vm9590_vm0 }
0x1a8b   :  { %v9256_v43 = vpop.f32.mrf.mxu1 }
0x1a8c   :  { %v5746_v24 = vmul.f32 %v9256_v43, %v9256_v43  ;;  %v5724_v28 = vsel %vm9580_vm12, %v9256_v43, 0.0 }
0x1a8d   :  { %v5725_v6 = vadd.f32 %v5724_v28, %v5723_v50 }
0x1a8e   :  { %v5754_v32 = vsel %vm9582_vm11, %v5746_v24, 0.0 }
0x1a8f   :  { %v5755_v20 = vadd.f32 %v5754_v32, %v5753_v41 }
0x1a93   :  { %v9258_v35 = vpop.f32.mrf.mxu1 }
0x1a94   :  { %v5747_v16 = vmul.f32 %v9258_v35, %v9258_v35  ;;  %v5726_v61 = vsel %vm9583_vm13, %v9258_v35, 0.0  ;;  %vm9596_vm13 = vmmov %vm9590_vm0 }
0x1a95   :  { %v5727_v23 = vadd.f32 %v5726_v61, %v5725_v6 }
0x1a96   :  { %v5756_v21 = vsel %vm9585_vm2, %v5747_v16, 0.0  ;;  %v5151_v16 = vld [vmem:[%s9363_s13] sm:$0x3]  ;;  %vm9598_vm2 = vmmov %vm9590_vm0 }
0x1a97   :  { %v5757_v38 = vadd.f32 %v5756_v21, %v5755_v20  ;;  %v5804_v61 = vperm.slane %v5151_v16, 0 }
0x1a9b   :  { %v9260_v53 = vpop.f32.mrf.mxu1 }
0x1a9c   :  { %v5748_v40 = vmul.f32 %v9260_v53, %v9260_v53  ;;  %v5728_v26 = vsel %vm9586_vm1, %v9260_v53, 0.0  ;;  %vm9599_vm1 = vmmov %vm9590_vm0 }
0x1a9d   :  { %v5729_v10 = vadd.f32 %v5728_v26, %v5727_v23 }
0x1a9e   :  { %v5758_v12 = vsel %vm9587_vm3, %v5748_v40, 0.0  ;;  %vm9600_vm3 = vmmov %vm9590_vm0 }
0x1a9f   :  { %v5759_v9 = vadd.f32 %v5758_v12, %v5757_v38 }
0x1aa3   :  { %v9262_v7 = vpop.f32.mrf.mxu1 }
0x1aa4   :  { %v5749_v63 = vmul.f32 %v9262_v7, %v9262_v7  ;;  %v5730_v57 = vsel %vm9588_vm4, %v9262_v7, 0.0  ;;  %vm9601_vm4 = vmmov %vm9590_vm0 }
0x1aa5   :  { %v5731_v1 = vadd.f32 %v5730_v57, %v5729_v10 }
0x1aa6   :  { %v5760_v13 = vsel %vm9589_vm5, %v5749_v63, 0.0  ;;  %vm9602_vm5 = vmmov %vm9590_vm0 }
0x1aa7   :  { %v5761_v29 = vadd.f32 %v5760_v13, %v5759_v9 }
0x1aab   :  { %v9264_v47 = vpop.f32.mrf.mxu1 }
0x1aac   :  { %v5750_v27 = vmul.f32 %v9264_v47, %v9264_v47  ;;  %v5732_v3 = vsel %vm9590_vm0, %v9264_v47, 0.0 }
0x1aad   :  { %v5733_v48 = vadd.f32 %v5732_v3, %v5731_v1 }
0x1aae   :  { %v5762_v58 = vsel %vm9591_vm14, %v5750_v27, 0.0 }
0x1aaf   :  { %v5763_v46 = vadd.f32 %v5762_v58, %v5761_v29 }
0x1ab3   :  { %v9287_v49 = vpop.f32.mrf.mxu1 }
0x1ab4   :  { %v5751_v44 = vmul.f32 %v9287_v49, %v9287_v49  ;;  %v5734_v14 = vsel %vm9592_vm6, %v9287_v49, 0.0 }
0x1ab5   :  { %v5735_v15 = vadd.f32 %v5734_v14, %v5733_v48 }
0x1ab6   :  { %v5764_v17 = vsel %vm9593_vm7, %v5751_v44, 0.0 }
0x1ab7   :  { %v5765_v18 = vadd.f32 %v5764_v17, %v5763_v46 }
0x1abb   :  { %v5720_v54 = vpop.f32.mrf.mxu1 }
0x1abc   :  { %v5736_v55 = vsel %vm9594_vm8, %v5720_v54, 0.0  ;;  %v5752_v0 = vmul.f32 %v5720_v54, %v5720_v54 }
0x1abd   :  { %v5737_v37 = vadd.f32 %v5736_v55, %v5735_v15 }
0x1abe   :  { %v5766_v30 = vsel %vm9595_vm9, %v5752_v0, 0.0 }
0x1abf   :  { %v5738_v19 = vrot.slane %v5737_v37, 4  ;;  %v5767_v60 = vadd.f32 %v5766_v30, %v5765_v18 }
0x1ac1   :  { %v5739_v33 = vadd.f32 %v5738_v19, %v5737_v37  ;;  %v5768_v45 = vrot.slane %v5767_v60, 4 }
0x1ac3   :  { %v5740_v31 = vrot.slane %v5739_v33, 2  ;;  %v5769_v56 = vadd.f32 %v5768_v45, %v5767_v60 }
0x1ac5   :  { %v5741_v8 = vadd.f32 %v5740_v31, %v5739_v33  ;;  %v5770_v59 = vrot.slane %v5769_v56, 2 }
0x1ac7   :  { %v5742_v36 = vrot.slane %v5741_v8, 1  ;;  %v5771_v51 = vadd.f32 %v5770_v59, %v5769_v56 }
0x1ac9   :  { %v5743_v2 = vadd.f32 %v5742_v36, %v5741_v8  ;;  %v5772_v39 = vrot.slane %v5771_v51, 1 }
0x1acb   :  { %v5744_v34 = vmul.f32 %v5743_v2, %v7172_v4  ;;  %v5773_v22 = vadd.f32 %v5772_v39, %v5771_v51 }
0x1acd   :  { %v5774_v25 = vmul.f32 %v5773_v22, %v7172_v4  ;;  %v5775_v52 = vmul.f32 %v5744_v34, %v5744_v34  ;;  %v5777_v40 = vsub.f32 %v9254_v42, %v5744_v34  ;;  %v5813_v4 = vperm.slane %v5151_v16, 1 }
0x1ace   :  { %v5778_v41 = vsub.f32 %v9256_v43, %v5744_v34  ;;  %v5779_v21 = vsub.f32 %v9258_v35, %v5744_v34  ;;  %v5780_v26 = vsub.f32 %v9260_v53, %v5744_v34  ;;  %v5781_v63 = vsub.f32 %v9262_v7, %v5744_v34 }
0x1acf   :  { %v5776_v11 = vsub.f32 %v5774_v25, %v5775_v52  ;;  %v5782_v20 = vsub.f32 %v9264_v47, %v5744_v34  ;;  %v5783_v23 = vsub.f32 %v9287_v49, %v5744_v34  ;;  %v5784_v12 = vsub.f32 %v5720_v54, %v5744_v34 }
0x1ad1   :  { %v5785_v62 = vadd.f32 1e-05, %v5776_v11 }
0x1ad3   :  { %6620 = vrsqrt.f32 %v5785_v62  ;;  %vm5792_vm10 = vweird.f32 %v5785_v62 }
0x1ad9   :  { %v6621_v24 = vpop.eup %6620 }
0x1ada   :  { %v5787_v5 = vmul.f32 %v6621_v24, %v5785_v62  ;;  %vm5793_vm12 = vweird.f32 %v6621_v24 }
0x1adb   :  { %vm5794_vm11 = vmor %vm5792_vm10, %vm5793_vm12 }
0x1adc   :  { %v5788_v28 = vmul.f32 %v6621_v24, %v5787_v5 }
0x1ade   :  { %v5789_v50 = vmul.f32 0.5, %v5788_v28 }
0x1ae0   :  { %v5790_v32 = vsub.f32 1.5, %v5789_v50 }
0x1ae2   :  { %v5791_v6 = vmul.f32 %v6621_v24, %v5790_v32 }
0x1ae4   :  { %v5795_v57 = vsel %vm5794_vm11, %v6621_v24, %v5791_v6 }
0x1ae5   :  { %v5796_v27 = vmul.f32 %v5795_v57, %v5777_v40  ;;  %v5797_v42 = vmul.f32 %v5795_v57, %v5778_v41  ;;  %v5798_v38 = vmul.f32 %v5795_v57, %v5779_v21  ;;  %v5799_v10 = vmul.f32 %v5795_v57, %v5780_v26 }
0x1ae6   :  { %v5800_v13 = vmul.f32 %v5795_v57, %v5781_v63  ;;  %v5801_v3 = vmul.f32 %v5795_v57, %v5782_v20  ;;  %v5802_v43 = vmul.f32 %v5795_v57, %v5783_v23  ;;  %v5803_v44 = vmul.f32 %v5795_v57, %v5784_v12 }
0x1ae7   :  { %v5805_v35 = vmul.f32 %v5804_v61, %v5796_v27  ;;  %v5806_v9 = vmul.f32 %v5804_v61, %v5797_v42  ;;  %v5807_v53 = vmul.f32 %v5804_v61, %v5798_v38  ;;  %v5808_v1 = vmul.f32 %v5804_v61, %v5799_v10 }
0x1ae8   :  { %v5809_v7 = vmul.f32 %v5804_v61, %v5800_v13  ;;  %v5810_v58 = vmul.f32 %v5804_v61, %v5801_v3  ;;  %v5811_v14 = vmul.f32 %v5804_v61, %v5802_v43  ;;  %v5812_v48 = vmul.f32 %v5804_v61, %v5803_v44 }
0x1ae9   :  { %v5814_v47 = vadd.f32 %v5813_v4, %v5805_v35  ;;  %v5815_v29 = vadd.f32 %v5813_v4, %v5806_v9  ;;  %v5816_v49 = vadd.f32 %v5813_v4, %v5807_v53  ;;  %v5817_v17 = vadd.f32 %v5813_v4, %v5808_v1 }
0x1aea   :  { %v5818_v46 = vadd.f32 %v5813_v4, %v5809_v7  ;;  %v5819_v15 = vadd.f32 %v5813_v4, %v5810_v58  ;;  %v5820_v54 = vadd.f32 %v5813_v4, %v5811_v14  ;;  %v5821_v55 = vadd.f32 %v5813_v4, %v5812_v48 }
0x1aeb   :  { %5822 = vst.msk [vmem:[%s9364_s15] sm:$0xff] %vm9596_vm13, %v5814_v47 }
0x1aec   :  { %5823 = vst.msk [vmem:[%s9364_s15 + $0x8] sm:$0xff] %vm9597_vm15, %v5815_v29 }
0x1aed   :  { %5824 = vst.msk [vmem:[%s9364_s15 + $0x10] sm:$0xff] %vm9598_vm2, %v5816_v49 }
0x1aee   :  { %5825 = vst.msk [vmem:[%s9364_s15 + $0x18] sm:$0xff] %vm9599_vm1, %v5817_v17 }
0x1aef   :  { %5826 = vst.msk [vmem:[%s9364_s15 + $0x20] sm:$0xff] %vm9600_vm3, %v5818_v46 }
0x1af0   :  { %5827 = vst.msk [vmem:[%s9364_s15 + $0x28] sm:$0xff] %vm9601_vm4, %v5819_v15 }
0x1af1   :  { %5828 = vst.msk [vmem:[%s9364_s15 + $0x30] sm:$0xff] %vm9602_vm5, %v5820_v54 }
0x1af2   :  { %5829 = vst.msk [vmem:[%s9364_s15 + $0x38] sm:$0xff] %vm9590_vm0, %v5821_v55 }

</bundles_post_ra>
